<compile_context>
chip_gen: v7x
topology: tpu7x:2x2x1
jax: 0.10.0
libtpu: 0.0.40
codegen_flags: <defaults>
</compile_context>

<pallas_src>
import functools

import jax
import jax.numpy as jnp
from jax.experimental import pallas as pl
from jax.experimental.pallas import tpu as pltpu

KSIZE = 3      # DepthCorr default kernel_size
LANES = 128    # TPU lane width; channel dims are padded to a multiple of this


def _pad_to_lanes(c):
    return max(LANES, ((c + LANES - 1) // LANES) * LANES)


def _round_up8(n):
    return ((n + 7) // 8) * 8


# ---------------------------------------------------------------------------
# Fused kernel: branch convs (+BN+ReLU) -> depthwise cross-corr -> head.
# All activations are kept flattened row-major: row r = i*W + j, 128*k lanes.
# Rows belonging to invalid (out-of-window) spatial positions carry junk that
# is never consumed by later valid rows and is sliced off in the wrapper.
# ---------------------------------------------------------------------------
def _depth_corr_kernel(xk_ref, xs_ref,
                       wk_ref, sk_ref, bk_ref,
                       ws_ref, ss_ref, bs_ref,
                       w1_ref, s1_ref, b1_ref,
                       w2_ref, b2_ref,
                       o_ref,
                       xkp_ref, xsp_ref, sfp_ref):
    f32 = jnp.float32

    def conv3x3_bn_relu(x_ref, xpad_ref, w_ref, s_ref, b_ref):
        """3x3 VALID conv + folded BN + ReLU, returned as (H*W, Hp)."""
        _, H, W, Cp = x_ref.shape
        n = H * W
        tail = xpad_ref.shape[0] - n
        # Flatten the image once into scratch (zeroed tail keeps every tap
        # window read below in bounds).
        xpad_ref[pl.ds(0, n), :] = x_ref[0].reshape(n, Cp)
        xpad_ref[pl.ds(n, tail), :] = jnp.zeros((tail, Cp), f32)
        # im2col: tap (dy, dx) of output row r is input row r + dy*W + dx.
        # Lane-concatenate the 9 taps -> ONE MXU contraction with K = 9*Cp.
        cols = [xpad_ref[pl.ds(dy * W + dx, n), :]
                for dy in range(KSIZE) for dx in range(KSIZE)]
        patch = jnp.concatenate(cols, axis=-1)                 # (n, 9*Cp)
        y = jnp.dot(patch, w_ref[...], preferred_element_type=f32)
        return jnp.maximum(y * s_ref[...] + b_ref[...], 0.0)   # (n, Hp)

    # --- branch convolutions (conv_kernel / conv_search) ---------------------
    kfeat = conv3x3_bn_relu(xk_ref, xkp_ref, wk_ref, sk_ref, bk_ref)
    sfeat = conv3x3_bn_relu(xs_ref, xsp_ref, ws_ref, ss_ref, bs_ref)

    _, Hk, Wk, _ = xk_ref.shape
    _, Hs, Ws, _ = xs_ref.shape
    Hko, Wko = Hk - KSIZE + 1, Wk - KSIZE + 1
    ns = Hs * Ws

    # Stash search features (zeroed tail) so each correlation tap is a single
    # in-bounds strided window load from VMEM.
    tail_s = sfp_ref.shape[0] - ns
    sfp_ref[pl.ds(0, ns), :] = sfeat
    sfp_ref[pl.ds(ns, tail_s), :] = jnp.zeros((tail_s, sfp_ref.shape[1]), f32)

    # --- depthwise cross-correlation (conv2d_dw_group) -----------------------
    # corr[r, c] = sum_{dy,dx} sfeat[r + dy*Ws + dx, c] * kfeat[dy*Wk + dx, c]
    acc = jnp.zeros_like(sfeat)
    for dy in range(Hko):
        for dx in range(Wko):
            win = sfp_ref[pl.ds(dy * Ws + dx, ns), :]
            ktap = kfeat[dy * Wk + dx:dy * Wk + dx + 1, :]      # (1, Hp)
            acc = acc + win * ktap

    # --- head: 1x1 conv + BN + ReLU + 1x1 conv (+bias), pointwise ------------
    y = jnp.dot(acc, w1_ref[...], preferred_element_type=f32)
    y = jnp.maximum(y * s1_ref[...] + b1_ref[...], 0.0)
    z = jnp.dot(y, w2_ref[...], preferred_element_type=f32) + b2_ref[...]
    o_ref[0] = z                                                # (ns, Cout_p)


# ---------------------------------------------------------------------------
# Parameter init (matches the nn.Module) + one-time packing for the kernel.
# ---------------------------------------------------------------------------
def _fold_bn(gamma, beta, mean, var, eps=1e-5):
    scale = gamma / jnp.sqrt(var + eps)
    bias = beta - mean * scale
    return scale, bias


def init_depth_corr_params(key, in_channels, hidden, out_channels, ksize=3):
    ks = jax.random.split(key, 12)

    def conv_w(k, o, i, kh, kw):
        fan_in = i * kh * kw
        return (jax.random.normal(k, (o, i, kh, kw), jnp.float32)
                / jnp.sqrt(jnp.float32(fan_in)))

    def bn_params(k, c):
        k1, k2, k3, k4 = jax.random.split(k, 4)
        gamma = jax.random.uniform(k1, (c,), jnp.float32, 0.5, 1.5)
        beta = 0.1 * jax.random.normal(k2, (c,), jnp.float32)
        mean = 0.1 * jax.random.normal(k3, (c,), jnp.float32)
        var = jax.random.uniform(k4, (c,), jnp.float32, 0.5, 1.5)
        return _fold_bn(gamma, beta, mean, var)

    p = {}
    p["wk"] = conv_w(ks[0], hidden, in_channels, ksize, ksize)     # conv_kernel
    p["wk_s"], p["wk_b"] = bn_params(ks[1], hidden)
    p["ws"] = conv_w(ks[2], hidden, in_channels, ksize, ksize)     # conv_search
    p["ws_s"], p["ws_b"] = bn_params(ks[3], hidden)
    p["h1"] = conv_w(ks[4], hidden, hidden, 1, 1)                  # head 1x1
    p["h1_s"], p["h1_b"] = bn_params(ks[5], hidden)
    p["h2"] = conv_w(ks[6], out_channels, hidden, 1, 1)            # head 1x1
    p["h2_bias"] = 0.1 * jax.random.normal(ks[7], (out_channels,), jnp.float32)
    return p


def prepare_depth_corr_params(params):
    """One-time repack: transpose, zero-pad channels to 128 lanes, flatten the
    3x3 taps into the contraction (im2col weights). Off the hot path."""
    hidden, cin = params["wk"].shape[:2]
    cout = params["h2"].shape[0]
    Cp, Hp, Op = _pad_to_lanes(cin), _pad_to_lanes(hidden), _pad_to_lanes(cout)

    def conv_w_flat(w_oihw):
        w = jnp.transpose(w_oihw, (2, 3, 1, 0))                    # OIHW->HWIO
        w = jnp.pad(w, ((0, 0), (0, 0), (0, Cp - cin), (0, Hp - hidden)))
        return w.reshape(KSIZE * KSIZE * Cp, Hp)                   # (9*Cp, Hp)

    def vec(v, width):
        return jnp.pad(v, (0, width - v.shape[0])).reshape(1, width)

    return {
        "wk_flat": conv_w_flat(params["wk"]),
        "wk_s": vec(params["wk_s"], Hp), "wk_b": vec(params["wk_b"], Hp),
        "ws_flat": conv_w_flat(params["ws"]),
        "ws_s": vec(params["ws_s"], Hp), "ws_b": vec(params["ws_b"], Hp),
        "w1": jnp.pad(params["h1"][:, :, 0, 0].T,
                      ((0, Hp - hidden), (0, Hp - hidden))),
        "h1_s": vec(params["h1_s"], Hp), "h1_b": vec(params["h1_b"], Hp),
        "w2": jnp.pad(params["h2"][:, :, 0, 0].T,
                      ((0, Hp - hidden), (0, Op - cout))),
        "b2": vec(params["h2_bias"], Op),
        "out_channels": cout,
    }


# ---------------------------------------------------------------------------
# Full forward (NCHW in / NCHW out, matching PyTorch).
# ---------------------------------------------------------------------------
def depth_corr_forward(prep, kernel_nchw, search_nchw):
    Cp = prep["wk_flat"].shape[0] // (KSIZE * KSIZE)
    Hp = prep["w1"].shape[0]
    Op = prep["w2"].shape[1]
    cout = prep["out_channels"]

    def to_nhwc_padded(x):
        x = jnp.transpose(x, (0, 2, 3, 1))
        return jnp.pad(x, ((0, 0), (0, 0), (0, 0), (0, Cp - x.shape[-1])))

    xk = to_nhwc_padded(kernel_nchw)      # (B, Hk, Wk, Cp)
    xs = to_nhwc_padded(search_nchw)      # (B, Hs, Ws, Cp)
    B, Hk, Wk, _ = xk.shape
    _, Hs, Ws, _ = xs.shape
    nk, ns = Hk * Wk, Hs * Ws
    out_hw = Hs - Hk + 1
    Hko, Wko = Hk - KSIZE + 1, Wk - KSIZE + 1

    rows_k = _round_up8(nk + (KSIZE - 1) * Wk + (KSIZE - 1))
    rows_s = _round_up8(ns + (KSIZE - 1) * Ws + (KSIZE - 1))
    rows_sf = _round_up8(ns + (Hko - 1) * Ws + (Wko - 1))

    def full_spec(arr):
        nd = arr.ndim
        return pl.BlockSpec(arr.shape, lambda b, _nd=nd: (0,) * _nd)

    out = pl.pallas_call(
        _depth_corr_kernel,
        out_shape=jax.ShapeDtypeStruct((B, ns, Op), jnp.float32),
        grid_spec=pltpu.PrefetchScalarGridSpec(
            num_scalar_prefetch=0,
            grid=(B,),
            in_specs=[
                pl.BlockSpec((1, Hk, Wk, Cp), lambda b: (b, 0, 0, 0)),
                pl.BlockSpec((1, Hs, Ws, Cp), lambda b: (b, 0, 0, 0)),
                full_spec(prep["wk_flat"]),
                full_spec(prep["wk_s"]), full_spec(prep["wk_b"]),
                full_spec(prep["ws_flat"]),
                full_spec(prep["ws_s"]), full_spec(prep["ws_b"]),
                full_spec(prep["w1"]),
                full_spec(prep["h1_s"]), full_spec(prep["h1_b"]),
                full_spec(prep["w2"]), full_spec(prep["b2"]),
            ],
            out_specs=pl.BlockSpec((1, ns, Op), lambda b: (b, 0, 0)),
            scratch_shapes=[
                pltpu.VMEM((rows_k, Cp), jnp.float32),   # flattened kernel img
                pltpu.VMEM((rows_s, Cp), jnp.float32),   # flattened search img
                pltpu.VMEM((rows_sf, Hp), jnp.float32),  # search features
            ],
        ),
        compiler_params=pltpu.CompilerParams(
            dimension_semantics=("parallel",),       # batch across TCs on v7x
            vmem_limit_bytes=32 * 1024 * 1024,
        ),
    )(xk, xs,
      prep["wk_flat"], prep["wk_s"], prep["wk_b"],
      prep["ws_flat"], prep["ws_s"], prep["ws_b"],
      prep["w1"], prep["h1_s"], prep["h1_b"],
      prep["w2"], prep["b2"])

    # Boundary glue: drop padded channels / invalid rows, back to NCHW.
    out = out.reshape(B, Hs, Ws, Op)[:, :out_hw, :out_hw, :cout]
    return jnp.transpose(out, (0, 3, 1, 2))


# ---------------------------------------------------------------------------
# Pure-JAX reference (NCHW, lax.conv) for the correctness check.
# ---------------------------------------------------------------------------
def _ref_forward(params, kernel_nchw, search_nchw):
    conv = functools.partial(
        jax.lax.conv_general_dilated, window_strides=(1, 1), padding="VALID",
        dimension_numbers=("NCHW", "OIHW", "NCHW"),
        precision=jax.lax.Precision.HIGHEST)

    def branch(x, w, s, b):
        y = conv(x, w)
        y = y * s[None, :, None, None] + b[None, :, None, None]
        return jnp.maximum(y, 0.0)

    kf = branch(kernel_nchw, params["wk"], params["wk_s"], params["wk_b"])
    sf = branch(search_nchw, params["ws"], params["ws_s"], params["ws_b"])

    B, C, Hk, Wk = kf.shape
    x = sf.reshape(1, B * C, sf.shape[2], sf.shape[3])
    w = kf.reshape(B * C, 1, Hk, Wk)
    corr = jax.lax.conv_general_dilated(
        x, w, (1, 1), "VALID", dimension_numbers=("NCHW", "OIHW", "NCHW"),
        feature_group_count=B * C, precision=jax.lax.Precision.HIGHEST)
    corr = corr.reshape(B, C, corr.shape[2], corr.shape[3])

    y = conv(corr, params["h1"])
    y = jnp.maximum(y * params["h1_s"][None, :, None, None]
                    + params["h1_b"][None, :, None, None], 0.0)
    z = conv(y, params["h2"]) + params["h2_bias"][None, :, None, None]
    return z


if __name__ == "__main__":
    # TODO(synk): init_trt (TensorRT path) and training-mode BatchNorm stats
    # are out of scope; BN is folded as eval-mode affine.
    in_channels, hidden, out_channels = 4, 16, 8
    B = 2

    key = jax.random.PRNGKey(0)
    k_params, k_kern, k_srch = jax.random.split(key, 3)

    params = init_depth_corr_params(k_params, in_channels, hidden, out_channels)
    prep = prepare_depth_corr_params(params)

    kernel_in = jax.random.normal(k_kern, (B, in_channels, 8, 8), jnp.float32)
    search_in = jax.random.normal(k_srch, (B, in_channels, 16, 16), jnp.float32)

    out = jax.block_until_ready(depth_corr_forward(prep, kernel_in, search_in))
    ref = jax.block_until_ready(_ref_forward(params, kernel_in, search_in))

    assert out.shape == ref.shape == (B, out_channels, 9, 9), out.shape
    assert jnp.allclose(out, ref, rtol=2e-3, atol=2e-2), (
        float(jnp.max(jnp.abs(out - ref))))

    print("KERNEL_OK")
</pallas_src>

<mosaic_0001>
module attributes {stable_mosaic.version = 11 : i64} {
  func.func @_depth_corr_kernel(%arg0: i32, %arg1: memref<1x8x8x128xf32, #tpu.memory_space<vmem>>, %arg2: memref<1x16x16x128xf32, #tpu.memory_space<vmem>>, %arg3: memref<1152x128xf32, #tpu.memory_space<vmem>>, %arg4: memref<1x128xf32, #tpu.memory_space<vmem>>, %arg5: memref<1x128xf32, #tpu.memory_space<vmem>>, %arg6: memref<1152x128xf32, #tpu.memory_space<vmem>>, %arg7: memref<1x128xf32, #tpu.memory_space<vmem>>, %arg8: memref<1x128xf32, #tpu.memory_space<vmem>>, %arg9: memref<128x128xf32, #tpu.memory_space<vmem>>, %arg10: memref<1x128xf32, #tpu.memory_space<vmem>>, %arg11: memref<1x128xf32, #tpu.memory_space<vmem>>, %arg12: memref<128x128xf32, #tpu.memory_space<vmem>>, %arg13: memref<1x128xf32, #tpu.memory_space<vmem>>, %arg14: memref<1x256x128xf32, #tpu.memory_space<vmem>>, %arg15: memref<88x128xf32, #tpu.memory_space<vmem>>, %arg16: memref<296x128xf32, #tpu.memory_space<vmem>>, %arg17: memref<344x128xf32, #tpu.memory_space<vmem>>) attributes {dimension_semantics = [#tpu.dimension_semantics<parallel>], iteration_bounds = array<i64: 2>, scalar_prefetch = 0 : i64, scratch_operands = 3 : i64, tpu.core_type = #tpu.core_type<tc>, window_params = [{transform_indices = @transform_0, window_bounds = array<i64: 1, 8, 8, 128>}, {transform_indices = @transform_1, window_bounds = array<i64: 1, 16, 16, 128>}, {pipeline_mode = #tpu.pipeline_mode<synchronous>, transform_indices = @transform_2, window_bounds = array<i64: 1152, 128>}, {pipeline_mode = #tpu.pipeline_mode<synchronous>, transform_indices = @transform_3, window_bounds = array<i64: 1, 128>}, {pipeline_mode = #tpu.pipeline_mode<synchronous>, transform_indices = @transform_4, window_bounds = array<i64: 1, 128>}, {pipeline_mode = #tpu.pipeline_mode<synchronous>, transform_indices = @transform_5, window_bounds = array<i64: 1152, 128>}, {pipeline_mode = #tpu.pipeline_mode<synchronous>, transform_indices = @transform_6, window_bounds = array<i64: 1, 128>}, {pipeline_mode = #tpu.pipeline_mode<synchronous>, transform_indices = @transform_7, window_bounds = array<i64: 1, 128>}, {pipeline_mode = #tpu.pipeline_mode<synchronous>, transform_indices = @transform_8, window_bounds = array<i64: 128, 128>}, {pipeline_mode = #tpu.pipeline_mode<synchronous>, transform_indices = @transform_9, window_bounds = array<i64: 1, 128>}, {pipeline_mode = #tpu.pipeline_mode<synchronous>, transform_indices = @transform_10, window_bounds = array<i64: 1, 128>}, {pipeline_mode = #tpu.pipeline_mode<synchronous>, transform_indices = @transform_11, window_bounds = array<i64: 128, 128>}, {pipeline_mode = #tpu.pipeline_mode<synchronous>, transform_indices = @transform_12, window_bounds = array<i64: 1, 128>}, {transform_indices = @transform_13, window_bounds = array<i64: 1, 256, 128>}]} {
    %c0 = arith.constant 0 : index
    %c0_0 = arith.constant 0 : index
    %c0_1 = arith.constant 0 : index
    %c0_2 = arith.constant 0 : index
    %0 = vector.load %arg1[%c0, %c0_0, %c0_1, %c0_2] : memref<1x8x8x128xf32, #tpu.memory_space<vmem>>, vector<1x8x8x128xf32>
    %1 = vector.shape_cast %0 : vector<1x8x8x128xf32> to vector<8x8x128xf32>
    %2 = vector.shape_cast %1 : vector<8x8x128xf32> to vector<64x128xf32>
    %c0_3 = arith.constant 0 : index
    %c0_4 = arith.constant 0 : index
    %3 = vector.load %arg15[%c0_3, %c0_4] : memref<88x128xf32, #tpu.memory_space<vmem>>, vector<64x128xf32>
    tpu.vector_store %arg15[%c0_3, %c0_4], %2 {strides = array<i32>} : memref<88x128xf32, #tpu.memory_space<vmem>>, vector<64x128xf32>,
    %cst = arith.constant 0.000000e+00 : f32
    %4 = vector.broadcast %cst : f32 to vector<24x128xf32>
    %c64 = arith.constant 64 : index
    %c0_5 = arith.constant 0 : index
    %5 = vector.load %arg15[%c64, %c0_5] : memref<88x128xf32, #tpu.memory_space<vmem>>, vector<24x128xf32>
    tpu.vector_store %arg15[%c64, %c0_5], %4 {strides = array<i32>} : memref<88x128xf32, #tpu.memory_space<vmem>>, vector<24x128xf32>,
    %c0_6 = arith.constant 0 : index
    %c0_7 = arith.constant 0 : index
    %6 = vector.load %arg15[%c0_6, %c0_7] : memref<88x128xf32, #tpu.memory_space<vmem>>, vector<64x128xf32>
    %c1 = arith.constant 1 : index
    %c0_8 = arith.constant 0 : index
    %7 = vector.load %arg15[%c1, %c0_8] : memref<88x128xf32, #tpu.memory_space<vmem>>, vector<64x128xf32>
    %c2 = arith.constant 2 : index
    %c0_9 = arith.constant 0 : index
    %8 = vector.load %arg15[%c2, %c0_9] : memref<88x128xf32, #tpu.memory_space<vmem>>, vector<64x128xf32>
    %c8 = arith.constant 8 : index
    %c0_10 = arith.constant 0 : index
    %9 = vector.load %arg15[%c8, %c0_10] : memref<88x128xf32, #tpu.memory_space<vmem>>, vector<64x128xf32>
    %c9 = arith.constant 9 : index
    %c0_11 = arith.constant 0 : index
    %10 = vector.load %arg15[%c9, %c0_11] : memref<88x128xf32, #tpu.memory_space<vmem>>, vector<64x128xf32>
    %c10 = arith.constant 10 : index
    %c0_12 = arith.constant 0 : index
    %11 = vector.load %arg15[%c10, %c0_12] : memref<88x128xf32, #tpu.memory_space<vmem>>, vector<64x128xf32>
    %c16 = arith.constant 16 : index
    %c0_13 = arith.constant 0 : index
    %12 = vector.load %arg15[%c16, %c0_13] : memref<88x128xf32, #tpu.memory_space<vmem>>, vector<64x128xf32>
    %c17 = arith.constant 17 : index
    %c0_14 = arith.constant 0 : index
    %13 = vector.load %arg15[%c17, %c0_14] : memref<88x128xf32, #tpu.memory_space<vmem>>, vector<64x128xf32>
    %c18 = arith.constant 18 : index
    %c0_15 = arith.constant 0 : index
    %14 = vector.load %arg15[%c18, %c0_15] : memref<88x128xf32, #tpu.memory_space<vmem>>, vector<64x128xf32>
    %15 = tpu.concatenate %6, %7, %8, %9, %10, %11, %12, %13, %14 in 1 : vector<64x128xf32>, vector<64x128xf32>, vector<64x128xf32>, vector<64x128xf32>, vector<64x128xf32>, vector<64x128xf32>, vector<64x128xf32>, vector<64x128xf32>, vector<64x128xf32> -> vector<64x1152xf32>
    %c0_16 = arith.constant 0 : index
    %c0_17 = arith.constant 0 : index
    %16 = vector.load %arg3[%c0_16, %c0_17] : memref<1152x128xf32, #tpu.memory_space<vmem>>, vector<1152x128xf32>
    %cst_18 = arith.constant dense<0.000000e+00> : vector<64x128xf32>
    %17 = tpu.matmul %15, %16, %cst_18 {dimension_numbers = #tpu.dot_dimension_numbers<[1], [0], [0], [1], [0, 0, 1, 1], [], []>} : vector<64x1152xf32>, vector<1152x128xf32>, vector<64x128xf32> -> vector<64x128xf32>
    %c0_19 = arith.constant 0 : index
    %c0_20 = arith.constant 0 : index
    %18 = vector.load %arg4[%c0_19, %c0_20] : memref<1x128xf32, #tpu.memory_space<vmem>>, vector<1x128xf32>
    %19 = vector.broadcast %18 : vector<1x128xf32> to vector<64x128xf32>
    %20 = arith.mulf %17, %19 : vector<64x128xf32>
    %c0_21 = arith.constant 0 : index
    %c0_22 = arith.constant 0 : index
    %21 = vector.load %arg5[%c0_21, %c0_22] : memref<1x128xf32, #tpu.memory_space<vmem>>, vector<1x128xf32>
    %22 = vector.broadcast %21 : vector<1x128xf32> to vector<64x128xf32>
    %23 = arith.addf %20, %22 : vector<64x128xf32>
    %cst_23 = arith.constant 0.000000e+00 : f32
    %24 = vector.broadcast %cst_23 : f32 to vector<64x128xf32>
    %25 = arith.maximumf %23, %24 : vector<64x128xf32>
    %c0_24 = arith.constant 0 : index
    %c0_25 = arith.constant 0 : index
    %c0_26 = arith.constant 0 : index
    %c0_27 = arith.constant 0 : index
    %26 = vector.load %arg2[%c0_24, %c0_25, %c0_26, %c0_27] : memref<1x16x16x128xf32, #tpu.memory_space<vmem>>, vector<1x16x16x128xf32>
    %27 = vector.shape_cast %26 : vector<1x16x16x128xf32> to vector<16x16x128xf32>
    %28 = vector.shape_cast %27 : vector<16x16x128xf32> to vector<256x128xf32>
    %c0_28 = arith.constant 0 : index
    %c0_29 = arith.constant 0 : index
    %29 = vector.load %arg16[%c0_28, %c0_29] : memref<296x128xf32, #tpu.memory_space<vmem>>, vector<256x128xf32>
    tpu.vector_store %arg16[%c0_28, %c0_29], %28 {strides = array<i32>} : memref<296x128xf32, #tpu.memory_space<vmem>>, vector<256x128xf32>,
    %cst_30 = arith.constant 0.000000e+00 : f32
    %30 = vector.broadcast %cst_30 : f32 to vector<40x128xf32>
    %c256 = arith.constant 256 : index
    %c0_31 = arith.constant 0 : index
    %31 = vector.load %arg16[%c256, %c0_31] : memref<296x128xf32, #tpu.memory_space<vmem>>, vector<40x128xf32>
    tpu.vector_store %arg16[%c256, %c0_31], %30 {strides = array<i32>} : memref<296x128xf32, #tpu.memory_space<vmem>>, vector<40x128xf32>,
    %c0_32 = arith.constant 0 : index
    %c0_33 = arith.constant 0 : index
    %32 = vector.load %arg16[%c0_32, %c0_33] : memref<296x128xf32, #tpu.memory_space<vmem>>, vector<256x128xf32>
    %c1_34 = arith.constant 1 : index
    %c0_35 = arith.constant 0 : index
    %33 = vector.load %arg16[%c1_34, %c0_35] : memref<296x128xf32, #tpu.memory_space<vmem>>, vector<256x128xf32>
    %c2_36 = arith.constant 2 : index
    %c0_37 = arith.constant 0 : index
    %34 = vector.load %arg16[%c2_36, %c0_37] : memref<296x128xf32, #tpu.memory_space<vmem>>, vector<256x128xf32>
    %c16_38 = arith.constant 16 : index
    %c0_39 = arith.constant 0 : index
    %35 = vector.load %arg16[%c16_38, %c0_39] : memref<296x128xf32, #tpu.memory_space<vmem>>, vector<256x128xf32>
    %c17_40 = arith.constant 17 : index
    %c0_41 = arith.constant 0 : index
    %36 = vector.load %arg16[%c17_40, %c0_41] : memref<296x128xf32, #tpu.memory_space<vmem>>, vector<256x128xf32>
    %c18_42 = arith.constant 18 : index
    %c0_43 = arith.constant 0 : index
    %37 = vector.load %arg16[%c18_42, %c0_43] : memref<296x128xf32, #tpu.memory_space<vmem>>, vector<256x128xf32>
    %c32 = arith.constant 32 : index
    %c0_44 = arith.constant 0 : index
    %38 = vector.load %arg16[%c32, %c0_44] : memref<296x128xf32, #tpu.memory_space<vmem>>, vector<256x128xf32>
    %c33 = arith.constant 33 : index
    %c0_45 = arith.constant 0 : index
    %39 = vector.load %arg16[%c33, %c0_45] : memref<296x128xf32, #tpu.memory_space<vmem>>, vector<256x128xf32>
    %c34 = arith.constant 34 : index
    %c0_46 = arith.constant 0 : index
    %40 = vector.load %arg16[%c34, %c0_46] : memref<296x128xf32, #tpu.memory_space<vmem>>, vector<256x128xf32>
    %41 = tpu.concatenate %32, %33, %34, %35, %36, %37, %38, %39, %40 in 1 : vector<256x128xf32>, vector<256x128xf32>, vector<256x128xf32>, vector<256x128xf32>, vector<256x128xf32>, vector<256x128xf32>, vector<256x128xf32>, vector<256x128xf32>, vector<256x128xf32> -> vector<256x1152xf32>
    %c0_47 = arith.constant 0 : index
    %c0_48 = arith.constant 0 : index
    %42 = vector.load %arg6[%c0_47, %c0_48] : memref<1152x128xf32, #tpu.memory_space<vmem>>, vector<1152x128xf32>
    %cst_49 = arith.constant dense<0.000000e+00> : vector<256x128xf32>
    %43 = tpu.matmul %41, %42, %cst_49 {dimension_numbers = #tpu.dot_dimension_numbers<[1], [0], [0], [1], [0, 0, 1, 1], [], []>} : vector<256x1152xf32>, vector<1152x128xf32>, vector<256x128xf32> -> vector<256x128xf32>
    %c0_50 = arith.constant 0 : index
    %c0_51 = arith.constant 0 : index
    %44 = vector.load %arg7[%c0_50, %c0_51] : memref<1x128xf32, #tpu.memory_space<vmem>>, vector<1x128xf32>
    %45 = vector.broadcast %44 : vector<1x128xf32> to vector<256x128xf32>
    %46 = arith.mulf %43, %45 : vector<256x128xf32>
    %c0_52 = arith.constant 0 : index
    %c0_53 = arith.constant 0 : index
    %47 = vector.load %arg8[%c0_52, %c0_53] : memref<1x128xf32, #tpu.memory_space<vmem>>, vector<1x128xf32>
    %48 = vector.broadcast %47 : vector<1x128xf32> to vector<256x128xf32>
    %49 = arith.addf %46, %48 : vector<256x128xf32>
    %cst_54 = arith.constant 0.000000e+00 : f32
    %50 = vector.broadcast %cst_54 : f32 to vector<256x128xf32>
    %51 = arith.maximumf %49, %50 : vector<256x128xf32>
    %c0_55 = arith.constant 0 : index
    %c0_56 = arith.constant 0 : index
    %52 = vector.load %arg17[%c0_55, %c0_56] : memref<344x128xf32, #tpu.memory_space<vmem>>, vector<256x128xf32>
    tpu.vector_store %arg17[%c0_55, %c0_56], %51 {strides = array<i32>} : memref<344x128xf32, #tpu.memory_space<vmem>>, vector<256x128xf32>,
    %cst_57 = arith.constant 0.000000e+00 : f32
    %53 = vector.broadcast %cst_57 : f32 to vector<88x128xf32>
    %c256_58 = arith.constant 256 : index
    %c0_59 = arith.constant 0 : index
    %54 = vector.load %arg17[%c256_58, %c0_59] : memref<344x128xf32, #tpu.memory_space<vmem>>, vector<88x128xf32>
    tpu.vector_store %arg17[%c256_58, %c0_59], %53 {strides = array<i32>} : memref<344x128xf32, #tpu.memory_space<vmem>>, vector<88x128xf32>,
    %cst_60 = arith.constant 0.000000e+00 : f32
    %55 = vector.broadcast %cst_60 : f32 to vector<256x128xf32>
    %c0_61 = arith.constant 0 : index
    %c0_62 = arith.constant 0 : index
    %56 = vector.load %arg17[%c0_61, %c0_62] : memref<344x128xf32, #tpu.memory_space<vmem>>, vector<256x128xf32>
    %57 = vector.extract_strided_slice %25 {offsets = [0, 0], sizes = [1, 128], strides = [1, 1]} : vector<64x128xf32> to vector<1x128xf32>
    %58 = vector.broadcast %57 : vector<1x128xf32> to vector<256x128xf32>
    %59 = arith.mulf %56, %58 : vector<256x128xf32>
    %60 = arith.addf %55, %59 : vector<256x128xf32>
    %c1_63 = arith.constant 1 : index
    %c0_64 = arith.constant 0 : index
    %61 = vector.load %arg17[%c1_63, %c0_64] : memref<344x128xf32, #tpu.memory_space<vmem>>, vector<256x128xf32>
    %62 = vector.extract_strided_slice %25 {offsets = [1, 0], sizes = [1, 128], strides = [1, 1]} : vector<64x128xf32> to vector<1x128xf32>
    %63 = vector.broadcast %62 : vector<1x128xf32> to vector<256x128xf32>
    %64 = arith.mulf %61, %63 : vector<256x128xf32>
    %65 = arith.addf %60, %64 : vector<256x128xf32>
    %c2_65 = arith.constant 2 : index
    %c0_66 = arith.constant 0 : index
    %66 = vector.load %arg17[%c2_65, %c0_66] : memref<344x128xf32, #tpu.memory_space<vmem>>, vector<256x128xf32>
    %67 = vector.extract_strided_slice %25 {offsets = [2, 0], sizes = [1, 128], strides = [1, 1]} : vector<64x128xf32> to vector<1x128xf32>
    %68 = vector.broadcast %67 : vector<1x128xf32> to vector<256x128xf32>
    %69 = arith.mulf %66, %68 : vector<256x128xf32>
    %70 = arith.addf %65, %69 : vector<256x128xf32>
    %c3 = arith.constant 3 : index
    %c0_67 = arith.constant 0 : index
    %71 = vector.load %arg17[%c3, %c0_67] : memref<344x128xf32, #tpu.memory_space<vmem>>, vector<256x128xf32>
    %72 = vector.extract_strided_slice %25 {offsets = [3, 0], sizes = [1, 128], strides = [1, 1]} : vector<64x128xf32> to vector<1x128xf32>
    %73 = vector.broadcast %72 : vector<1x128xf32> to vector<256x128xf32>
    %74 = arith.mulf %71, %73 : vector<256x128xf32>
    %75 = arith.addf %70, %74 : vector<256x128xf32>
    %c4 = arith.constant 4 : index
    %c0_68 = arith.constant 0 : index
    %76 = vector.load %arg17[%c4, %c0_68] : memref<344x128xf32, #tpu.memory_space<vmem>>, vector<256x128xf32>
    %77 = vector.extract_strided_slice %25 {offsets = [4, 0], sizes = [1, 128], strides = [1, 1]} : vector<64x128xf32> to vector<1x128xf32>
    %78 = vector.broadcast %77 : vector<1x128xf32> to vector<256x128xf32>
    %79 = arith.mulf %76, %78 : vector<256x128xf32>
    %80 = arith.addf %75, %79 : vector<256x128xf32>
    %c5 = arith.constant 5 : index
    %c0_69 = arith.constant 0 : index
    %81 = vector.load %arg17[%c5, %c0_69] : memref<344x128xf32, #tpu.memory_space<vmem>>, vector<256x128xf32>
    %82 = vector.extract_strided_slice %25 {offsets = [5, 0], sizes = [1, 128], strides = [1, 1]} : vector<64x128xf32> to vector<1x128xf32>
    %83 = vector.broadcast %82 : vector<1x128xf32> to vector<256x128xf32>
    %84 = arith.mulf %81, %83 : vector<256x128xf32>
    %85 = arith.addf %80, %84 : vector<256x128xf32>
    %c16_70 = arith.constant 16 : index
    %c0_71 = arith.constant 0 : index
    %86 = vector.load %arg17[%c16_70, %c0_71] : memref<344x128xf32, #tpu.memory_space<vmem>>, vector<256x128xf32>
    %87 = vector.extract_strided_slice %25 {offsets = [8, 0], sizes = [1, 128], strides = [1, 1]} : vector<64x128xf32> to vector<1x128xf32>
    %88 = vector.broadcast %87 : vector<1x128xf32> to vector<256x128xf32>
    %89 = arith.mulf %86, %88 : vector<256x128xf32>
    %90 = arith.addf %85, %89 : vector<256x128xf32>
    %c17_72 = arith.constant 17 : index
    %c0_73 = arith.constant 0 : index
    %91 = vector.load %arg17[%c17_72, %c0_73] : memref<344x128xf32, #tpu.memory_space<vmem>>, vector<256x128xf32>
    %92 = vector.extract_strided_slice %25 {offsets = [9, 0], sizes = [1, 128], strides = [1, 1]} : vector<64x128xf32> to vector<1x128xf32>
    %93 = vector.broadcast %92 : vector<1x128xf32> to vector<256x128xf32>
    %94 = arith.mulf %91, %93 : vector<256x128xf32>
    %95 = arith.addf %90, %94 : vector<256x128xf32>
    %c18_74 = arith.constant 18 : index
    %c0_75 = arith.constant 0 : index
    %96 = vector.load %arg17[%c18_74, %c0_75] : memref<344x128xf32, #tpu.memory_space<vmem>>, vector<256x128xf32>
    %97 = vector.extract_strided_slice %25 {offsets = [10, 0], sizes = [1, 128], strides = [1, 1]} : vector<64x128xf32> to vector<1x128xf32>
    %98 = vector.broadcast %97 : vector<1x128xf32> to vector<256x128xf32>
    %99 = arith.mulf %96, %98 : vector<256x128xf32>
    %100 = arith.addf %95, %99 : vector<256x128xf32>
    %c19 = arith.constant 19 : index
    %c0_76 = arith.constant 0 : index
    %101 = vector.load %arg17[%c19, %c0_76] : memref<344x128xf32, #tpu.memory_space<vmem>>, vector<256x128xf32>
    %102 = vector.extract_strided_slice %25 {offsets = [11, 0], sizes = [1, 128], strides = [1, 1]} : vector<64x128xf32> to vector<1x128xf32>
    %103 = vector.broadcast %102 : vector<1x128xf32> to vector<256x128xf32>
    %104 = arith.mulf %101, %103 : vector<256x128xf32>
    %105 = arith.addf %100, %104 : vector<256x128xf32>
    %c20 = arith.constant 20 : index
    %c0_77 = arith.constant 0 : index
    %106 = vector.load %arg17[%c20, %c0_77] : memref<344x128xf32, #tpu.memory_space<vmem>>, vector<256x128xf32>
    %107 = vector.extract_strided_slice %25 {offsets = [12, 0], sizes = [1, 128], strides = [1, 1]} : vector<64x128xf32> to vector<1x128xf32>
    %108 = vector.broadcast %107 : vector<1x128xf32> to vector<256x128xf32>
    %109 = arith.mulf %106, %108 : vector<256x128xf32>
    %110 = arith.addf %105, %109 : vector<256x128xf32>
    %c21 = arith.constant 21 : index
    %c0_78 = arith.constant 0 : index
    %111 = vector.load %arg17[%c21, %c0_78] : memref<344x128xf32, #tpu.memory_space<vmem>>, vector<256x128xf32>
    %112 = vector.extract_strided_slice %25 {offsets = [13, 0], sizes = [1, 128], strides = [1, 1]} : vector<64x128xf32> to vector<1x128xf32>
    %113 = vector.broadcast %112 : vector<1x128xf32> to vector<256x128xf32>
    %114 = arith.mulf %111, %113 : vector<256x128xf32>
    %115 = arith.addf %110, %114 : vector<256x128xf32>
    %c32_79 = arith.constant 32 : index
    %c0_80 = arith.constant 0 : index
    %116 = vector.load %arg17[%c32_79, %c0_80] : memref<344x128xf32, #tpu.memory_space<vmem>>, vector<256x128xf32>
    %117 = vector.extract_strided_slice %25 {offsets = [16, 0], sizes = [1, 128], strides = [1, 1]} : vector<64x128xf32> to vector<1x128xf32>
    %118 = vector.broadcast %117 : vector<1x128xf32> to vector<256x128xf32>
    %119 = arith.mulf %116, %118 : vector<256x128xf32>
    %120 = arith.addf %115, %119 : vector<256x128xf32>
    %c33_81 = arith.constant 33 : index
    %c0_82 = arith.constant 0 : index
    %121 = vector.load %arg17[%c33_81, %c0_82] : memref<344x128xf32, #tpu.memory_space<vmem>>, vector<256x128xf32>
    %122 = vector.extract_strided_slice %25 {offsets = [17, 0], sizes = [1, 128], strides = [1, 1]} : vector<64x128xf32> to vector<1x128xf32>
    %123 = vector.broadcast %122 : vector<1x128xf32> to vector<256x128xf32>
    %124 = arith.mulf %121, %123 : vector<256x128xf32>
    %125 = arith.addf %120, %124 : vector<256x128xf32>
    %c34_83 = arith.constant 34 : index
    %c0_84 = arith.constant 0 : index
    %126 = vector.load %arg17[%c34_83, %c0_84] : memref<344x128xf32, #tpu.memory_space<vmem>>, vector<256x128xf32>
    %127 = vector.extract_strided_slice %25 {offsets = [18, 0], sizes = [1, 128], strides = [1, 1]} : vector<64x128xf32> to vector<1x128xf32>
    %128 = vector.broadcast %127 : vector<1x128xf32> to vector<256x128xf32>
    %129 = arith.mulf %126, %128 : vector<256x128xf32>
    %130 = arith.addf %125, %129 : vector<256x128xf32>
    %c35 = arith.constant 35 : index
    %c0_85 = arith.constant 0 : index
    %131 = vector.load %arg17[%c35, %c0_85] : memref<344x128xf32, #tpu.memory_space<vmem>>, vector<256x128xf32>
    %132 = vector.extract_strided_slice %25 {offsets = [19, 0], sizes = [1, 128], strides = [1, 1]} : vector<64x128xf32> to vector<1x128xf32>
    %133 = vector.broadcast %132 : vector<1x128xf32> to vector<256x128xf32>
    %134 = arith.mulf %131, %133 : vector<256x128xf32>
    %135 = arith.addf %130, %134 : vector<256x128xf32>
    %c36 = arith.constant 36 : index
    %c0_86 = arith.constant 0 : index
    %136 = vector.load %arg17[%c36, %c0_86] : memref<344x128xf32, #tpu.memory_space<vmem>>, vector<256x128xf32>
    %137 = vector.extract_strided_slice %25 {offsets = [20, 0], sizes = [1, 128], strides = [1, 1]} : vector<64x128xf32> to vector<1x128xf32>
    %138 = vector.broadcast %137 : vector<1x128xf32> to vector<256x128xf32>
    %139 = arith.mulf %136, %138 : vector<256x128xf32>
    %140 = arith.addf %135, %139 : vector<256x128xf32>
    %c37 = arith.constant 37 : index
    %c0_87 = arith.constant 0 : index
    %141 = vector.load %arg17[%c37, %c0_87] : memref<344x128xf32, #tpu.memory_space<vmem>>, vector<256x128xf32>
    %142 = vector.extract_strided_slice %25 {offsets = [21, 0], sizes = [1, 128], strides = [1, 1]} : vector<64x128xf32> to vector<1x128xf32>
    %143 = vector.broadcast %142 : vector<1x128xf32> to vector<256x128xf32>
    %144 = arith.mulf %141, %143 : vector<256x128xf32>
    %145 = arith.addf %140, %144 : vector<256x128xf32>
    %c48 = arith.constant 48 : index
    %c0_88 = arith.constant 0 : index
    %146 = vector.load %arg17[%c48, %c0_88] : memref<344x128xf32, #tpu.memory_space<vmem>>, vector<256x128xf32>
    %147 = vector.extract_strided_slice %25 {offsets = [24, 0], sizes = [1, 128], strides = [1, 1]} : vector<64x128xf32> to vector<1x128xf32>
    %148 = vector.broadcast %147 : vector<1x128xf32> to vector<256x128xf32>
    %149 = arith.mulf %146, %148 : vector<256x128xf32>
    %150 = arith.addf %145, %149 : vector<256x128xf32>
    %c49 = arith.constant 49 : index
    %c0_89 = arith.constant 0 : index
    %151 = vector.load %arg17[%c49, %c0_89] : memref<344x128xf32, #tpu.memory_space<vmem>>, vector<256x128xf32>
    %152 = vector.extract_strided_slice %25 {offsets = [25, 0], sizes = [1, 128], strides = [1, 1]} : vector<64x128xf32> to vector<1x128xf32>
    %153 = vector.broadcast %152 : vector<1x128xf32> to vector<256x128xf32>
    %154 = arith.mulf %151, %153 : vector<256x128xf32>
    %155 = arith.addf %150, %154 : vector<256x128xf32>
    %c50 = arith.constant 50 : index
    %c0_90 = arith.constant 0 : index
    %156 = vector.load %arg17[%c50, %c0_90] : memref<344x128xf32, #tpu.memory_space<vmem>>, vector<256x128xf32>
    %157 = vector.extract_strided_slice %25 {offsets = [26, 0], sizes = [1, 128], strides = [1, 1]} : vector<64x128xf32> to vector<1x128xf32>
    %158 = vector.broadcast %157 : vector<1x128xf32> to vector<256x128xf32>
    %159 = arith.mulf %156, %158 : vector<256x128xf32>
    %160 = arith.addf %155, %159 : vector<256x128xf32>
    %c51 = arith.constant 51 : index
    %c0_91 = arith.constant 0 : index
    %161 = vector.load %arg17[%c51, %c0_91] : memref<344x128xf32, #tpu.memory_space<vmem>>, vector<256x128xf32>
    %162 = vector.extract_strided_slice %25 {offsets = [27, 0], sizes = [1, 128], strides = [1, 1]} : vector<64x128xf32> to vector<1x128xf32>
    %163 = vector.broadcast %162 : vector<1x128xf32> to vector<256x128xf32>
    %164 = arith.mulf %161, %163 : vector<256x128xf32>
    %165 = arith.addf %160, %164 : vector<256x128xf32>
    %c52 = arith.constant 52 : index
    %c0_92 = arith.constant 0 : index
    %166 = vector.load %arg17[%c52, %c0_92] : memref<344x128xf32, #tpu.memory_space<vmem>>, vector<256x128xf32>
    %167 = vector.extract_strided_slice %25 {offsets = [28, 0], sizes = [1, 128], strides = [1, 1]} : vector<64x128xf32> to vector<1x128xf32>
    %168 = vector.broadcast %167 : vector<1x128xf32> to vector<256x128xf32>
    %169 = arith.mulf %166, %168 : vector<256x128xf32>
    %170 = arith.addf %165, %169 : vector<256x128xf32>
    %c53 = arith.constant 53 : index
    %c0_93 = arith.constant 0 : index
    %171 = vector.load %arg17[%c53, %c0_93] : memref<344x128xf32, #tpu.memory_space<vmem>>, vector<256x128xf32>
    %172 = vector.extract_strided_slice %25 {offsets = [29, 0], sizes = [1, 128], strides = [1, 1]} : vector<64x128xf32> to vector<1x128xf32>
    %173 = vector.broadcast %172 : vector<1x128xf32> to vector<256x128xf32>
    %174 = arith.mulf %171, %173 : vector<256x128xf32>
    %175 = arith.addf %170, %174 : vector<256x128xf32>
    %c64_94 = arith.constant 64 : index
    %c0_95 = arith.constant 0 : index
    %176 = vector.load %arg17[%c64_94, %c0_95] : memref<344x128xf32, #tpu.memory_space<vmem>>, vector<256x128xf32>
    %177 = vector.extract_strided_slice %25 {offsets = [32, 0], sizes = [1, 128], strides = [1, 1]} : vector<64x128xf32> to vector<1x128xf32>
    %178 = vector.broadcast %177 : vector<1x128xf32> to vector<256x128xf32>
    %179 = arith.mulf %176, %178 : vector<256x128xf32>
    %180 = arith.addf %175, %179 : vector<256x128xf32>
    %c65 = arith.constant 65 : index
    %c0_96 = arith.constant 0 : index
    %181 = vector.load %arg17[%c65, %c0_96] : memref<344x128xf32, #tpu.memory_space<vmem>>, vector<256x128xf32>
    %182 = vector.extract_strided_slice %25 {offsets = [33, 0], sizes = [1, 128], strides = [1, 1]} : vector<64x128xf32> to vector<1x128xf32>
    %183 = vector.broadcast %182 : vector<1x128xf32> to vector<256x128xf32>
    %184 = arith.mulf %181, %183 : vector<256x128xf32>
    %185 = arith.addf %180, %184 : vector<256x128xf32>
    %c66 = arith.constant 66 : index
    %c0_97 = arith.constant 0 : index
    %186 = vector.load %arg17[%c66, %c0_97] : memref<344x128xf32, #tpu.memory_space<vmem>>, vector<256x128xf32>
    %187 = vector.extract_strided_slice %25 {offsets = [34, 0], sizes = [1, 128], strides = [1, 1]} : vector<64x128xf32> to vector<1x128xf32>
    %188 = vector.broadcast %187 : vector<1x128xf32> to vector<256x128xf32>
    %189 = arith.mulf %186, %188 : vector<256x128xf32>
    %190 = arith.addf %185, %189 : vector<256x128xf32>
    %c67 = arith.constant 67 : index
    %c0_98 = arith.constant 0 : index
    %191 = vector.load %arg17[%c67, %c0_98] : memref<344x128xf32, #tpu.memory_space<vmem>>, vector<256x128xf32>
    %192 = vector.extract_strided_slice %25 {offsets = [35, 0], sizes = [1, 128], strides = [1, 1]} : vector<64x128xf32> to vector<1x128xf32>
    %193 = vector.broadcast %192 : vector<1x128xf32> to vector<256x128xf32>
    %194 = arith.mulf %191, %193 : vector<256x128xf32>
    %195 = arith.addf %190, %194 : vector<256x128xf32>
    %c68 = arith.constant 68 : index
    %c0_99 = arith.constant 0 : index
    %196 = vector.load %arg17[%c68, %c0_99] : memref<344x128xf32, #tpu.memory_space<vmem>>, vector<256x128xf32>
    %197 = vector.extract_strided_slice %25 {offsets = [36, 0], sizes = [1, 128], strides = [1, 1]} : vector<64x128xf32> to vector<1x128xf32>
    %198 = vector.broadcast %197 : vector<1x128xf32> to vector<256x128xf32>
    %199 = arith.mulf %196, %198 : vector<256x128xf32>
    %200 = arith.addf %195, %199 : vector<256x128xf32>
    %c69 = arith.constant 69 : index
    %c0_100 = arith.constant 0 : index
    %201 = vector.load %arg17[%c69, %c0_100] : memref<344x128xf32, #tpu.memory_space<vmem>>, vector<256x128xf32>
    %202 = vector.extract_strided_slice %25 {offsets = [37, 0], sizes = [1, 128], strides = [1, 1]} : vector<64x128xf32> to vector<1x128xf32>
    %203 = vector.broadcast %202 : vector<1x128xf32> to vector<256x128xf32>
    %204 = arith.mulf %201, %203 : vector<256x128xf32>
    %205 = arith.addf %200, %204 : vector<256x128xf32>
    %c80 = arith.constant 80 : index
    %c0_101 = arith.constant 0 : index
    %206 = vector.load %arg17[%c80, %c0_101] : memref<344x128xf32, #tpu.memory_space<vmem>>, vector<256x128xf32>
    %207 = vector.extract_strided_slice %25 {offsets = [40, 0], sizes = [1, 128], strides = [1, 1]} : vector<64x128xf32> to vector<1x128xf32>
    %208 = vector.broadcast %207 : vector<1x128xf32> to vector<256x128xf32>
    %209 = arith.mulf %206, %208 : vector<256x128xf32>
    %210 = arith.addf %205, %209 : vector<256x128xf32>
    %c81 = arith.constant 81 : index
    %c0_102 = arith.constant 0 : index
    %211 = vector.load %arg17[%c81, %c0_102] : memref<344x128xf32, #tpu.memory_space<vmem>>, vector<256x128xf32>
    %212 = vector.extract_strided_slice %25 {offsets = [41, 0], sizes = [1, 128], strides = [1, 1]} : vector<64x128xf32> to vector<1x128xf32>
    %213 = vector.broadcast %212 : vector<1x128xf32> to vector<256x128xf32>
    %214 = arith.mulf %211, %213 : vector<256x128xf32>
    %215 = arith.addf %210, %214 : vector<256x128xf32>
    %c82 = arith.constant 82 : index
    %c0_103 = arith.constant 0 : index
    %216 = vector.load %arg17[%c82, %c0_103] : memref<344x128xf32, #tpu.memory_space<vmem>>, vector<256x128xf32>
    %217 = vector.extract_strided_slice %25 {offsets = [42, 0], sizes = [1, 128], strides = [1, 1]} : vector<64x128xf32> to vector<1x128xf32>
    %218 = vector.broadcast %217 : vector<1x128xf32> to vector<256x128xf32>
    %219 = arith.mulf %216, %218 : vector<256x128xf32>
    %220 = arith.addf %215, %219 : vector<256x128xf32>
    %c83 = arith.constant 83 : index
    %c0_104 = arith.constant 0 : index
    %221 = vector.load %arg17[%c83, %c0_104] : memref<344x128xf32, #tpu.memory_space<vmem>>, vector<256x128xf32>
    %222 = vector.extract_strided_slice %25 {offsets = [43, 0], sizes = [1, 128], strides = [1, 1]} : vector<64x128xf32> to vector<1x128xf32>
    %223 = vector.broadcast %222 : vector<1x128xf32> to vector<256x128xf32>
    %224 = arith.mulf %221, %223 : vector<256x128xf32>
    %225 = arith.addf %220, %224 : vector<256x128xf32>
    %c84 = arith.constant 84 : index
    %c0_105 = arith.constant 0 : index
    %226 = vector.load %arg17[%c84, %c0_105] : memref<344x128xf32, #tpu.memory_space<vmem>>, vector<256x128xf32>
    %227 = vector.extract_strided_slice %25 {offsets = [44, 0], sizes = [1, 128], strides = [1, 1]} : vector<64x128xf32> to vector<1x128xf32>
    %228 = vector.broadcast %227 : vector<1x128xf32> to vector<256x128xf32>
    %229 = arith.mulf %226, %228 : vector<256x128xf32>
    %230 = arith.addf %225, %229 : vector<256x128xf32>
    %c85 = arith.constant 85 : index
    %c0_106 = arith.constant 0 : index
    %231 = vector.load %arg17[%c85, %c0_106] : memref<344x128xf32, #tpu.memory_space<vmem>>, vector<256x128xf32>
    %232 = vector.extract_strided_slice %25 {offsets = [45, 0], sizes = [1, 128], strides = [1, 1]} : vector<64x128xf32> to vector<1x128xf32>
    %233 = vector.broadcast %232 : vector<1x128xf32> to vector<256x128xf32>
    %234 = arith.mulf %231, %233 : vector<256x128xf32>
    %235 = arith.addf %230, %234 : vector<256x128xf32>
    %c0_107 = arith.constant 0 : index
    %c0_108 = arith.constant 0 : index
    %236 = vector.load %arg9[%c0_107, %c0_108] : memref<128x128xf32, #tpu.memory_space<vmem>>, vector<128x128xf32>
    %cst_109 = arith.constant dense<0.000000e+00> : vector<256x128xf32>
    %237 = tpu.matmul %235, %236, %cst_109 {dimension_numbers = #tpu.dot_dimension_numbers<[1], [0], [0], [1], [0, 0, 1, 1], [], []>} : vector<256x128xf32>, vector<128x128xf32>, vector<256x128xf32> -> vector<256x128xf32>
    %c0_110 = arith.constant 0 : index
    %c0_111 = arith.constant 0 : index
    %238 = vector.load %arg10[%c0_110, %c0_111] : memref<1x128xf32, #tpu.memory_space<vmem>>, vector<1x128xf32>
    %239 = vector.broadcast %238 : vector<1x128xf32> to vector<256x128xf32>
    %240 = arith.mulf %237, %239 : vector<256x128xf32>
    %c0_112 = arith.constant 0 : index
    %c0_113 = arith.constant 0 : index
    %241 = vector.load %arg11[%c0_112, %c0_113] : memref<1x128xf32, #tpu.memory_space<vmem>>, vector<1x128xf32>
    %242 = vector.broadcast %241 : vector<1x128xf32> to vector<256x128xf32>
    %243 = arith.addf %240, %242 : vector<256x128xf32>
    %cst_114 = arith.constant 0.000000e+00 : f32
    %244 = vector.broadcast %cst_114 : f32 to vector<256x128xf32>
    %245 = arith.maximumf %243, %244 : vector<256x128xf32>
    %c0_115 = arith.constant 0 : index
    %c0_116 = arith.constant 0 : index
    %246 = vector.load %arg12[%c0_115, %c0_116] : memref<128x128xf32, #tpu.memory_space<vmem>>, vector<128x128xf32>
    %cst_117 = arith.constant dense<0.000000e+00> : vector<256x128xf32>
    %247 = tpu.matmul %245, %246, %cst_117 {dimension_numbers = #tpu.dot_dimension_numbers<[1], [0], [0], [1], [0, 0, 1, 1], [], []>} : vector<256x128xf32>, vector<128x128xf32>, vector<256x128xf32> -> vector<256x128xf32>
    %c0_118 = arith.constant 0 : index
    %c0_119 = arith.constant 0 : index
    %248 = vector.load %arg13[%c0_118, %c0_119] : memref<1x128xf32, #tpu.memory_space<vmem>>, vector<1x128xf32>
    %249 = vector.broadcast %248 : vector<1x128xf32> to vector<256x128xf32>
    %250 = arith.addf %247, %249 : vector<256x128xf32>
    %c0_120 = arith.constant 0 : index
    %c0_121 = arith.constant 0 : index
    %c0_122 = arith.constant 0 : index
    %251 = vector.load %arg14[%c0_120, %c0_121, %c0_122] : memref<1x256x128xf32, #tpu.memory_space<vmem>>, vector<1x256x128xf32>
    %252 = vector.shape_cast %251 : vector<1x256x128xf32> to vector<256x128xf32>
    %253 = vector.shape_cast %250 : vector<256x128xf32> to vector<1x256x128xf32>
    tpu.vector_store %arg14[%c0_120, %c0_121, %c0_122], %253 {strides = array<i32>} : memref<1x256x128xf32, #tpu.memory_space<vmem>>, vector<1x256x128xf32>,
    return
  }
  func.func @transform_0(%arg0: i32) -> (i32, i32, i32, i32) {
    %c0_i32 = arith.constant 0 : i32
    %c0_i32_0 = arith.constant 0 : i32
    %c0_i32_1 = arith.constant 0 : i32
    %c0_i32_2 = arith.constant 0 : i32
    return %arg0, %c0_i32, %c0_i32_0, %c0_i32_1 : i32, i32, i32, i32
  }
  func.func @transform_1(%arg0: i32) -> (i32, i32, i32, i32) {
    %c0_i32 = arith.constant 0 : i32
    %c0_i32_0 = arith.constant 0 : i32
    %c0_i32_1 = arith.constant 0 : i32
    %c0_i32_2 = arith.constant 0 : i32
    return %arg0, %c0_i32, %c0_i32_0, %c0_i32_1 : i32, i32, i32, i32
  }
  func.func @transform_2(%arg0: i32) -> (i32, i32) {
    %c0_i32 = arith.constant 0 : i32
    %c0_i32_0 = arith.constant 0 : i32
    %c0_i32_1 = arith.constant 0 : i32
    return %c0_i32, %c0_i32_0 : i32, i32
  }
  func.func @transform_3(%arg0: i32) -> (i32, i32) {
    %c0_i32 = arith.constant 0 : i32
    %c0_i32_0 = arith.constant 0 : i32
    %c0_i32_1 = arith.constant 0 : i32
    return %c0_i32, %c0_i32_0 : i32, i32
  }
  func.func @transform_4(%arg0: i32) -> (i32, i32) {
    %c0_i32 = arith.constant 0 : i32
    %c0_i32_0 = arith.constant 0 : i32
    %c0_i32_1 = arith.constant 0 : i32
    return %c0_i32, %c0_i32_0 : i32, i32
  }
  func.func @transform_5(%arg0: i32) -> (i32, i32) {
    %c0_i32 = arith.constant 0 : i32
    %c0_i32_0 = arith.constant 0 : i32
    %c0_i32_1 = arith.constant 0 : i32
    return %c0_i32, %c0_i32_0 : i32, i32
  }
  func.func @transform_6(%arg0: i32) -> (i32, i32) {
    %c0_i32 = arith.constant 0 : i32
    %c0_i32_0 = arith.constant 0 : i32
    %c0_i32_1 = arith.constant 0 : i32
    return %c0_i32, %c0_i32_0 : i32, i32
  }
  func.func @transform_7(%arg0: i32) -> (i32, i32) {
    %c0_i32 = arith.constant 0 : i32
    %c0_i32_0 = arith.constant 0 : i32
    %c0_i32_1 = arith.constant 0 : i32
    return %c0_i32, %c0_i32_0 : i32, i32
  }
  func.func @transform_8(%arg0: i32) -> (i32, i32) {
    %c0_i32 = arith.constant 0 : i32
    %c0_i32_0 = arith.constant 0 : i32
    %c0_i32_1 = arith.constant 0 : i32
    return %c0_i32, %c0_i32_0 : i32, i32
  }
  func.func @transform_9(%arg0: i32) -> (i32, i32) {
    %c0_i32 = arith.constant 0 : i32
    %c0_i32_0 = arith.constant 0 : i32
    %c0_i32_1 = arith.constant 0 : i32
    return %c0_i32, %c0_i32_0 : i32, i32
  }
  func.func @transform_10(%arg0: i32) -> (i32, i32) {
    %c0_i32 = arith.constant 0 : i32
    %c0_i32_0 = arith.constant 0 : i32
    %c0_i32_1 = arith.constant 0 : i32
    return %c0_i32, %c0_i32_0 : i32, i32
  }
  func.func @transform_11(%arg0: i32) -> (i32, i32) {
    %c0_i32 = arith.constant 0 : i32
    %c0_i32_0 = arith.constant 0 : i32
    %c0_i32_1 = arith.constant 0 : i32
    return %c0_i32, %c0_i32_0 : i32, i32
  }
  func.func @transform_12(%arg0: i32) -> (i32, i32) {
    %c0_i32 = arith.constant 0 : i32
    %c0_i32_0 = arith.constant 0 : i32
    %c0_i32_1 = arith.constant 0 : i32
    return %c0_i32, %c0_i32_0 : i32, i32
  }
  func.func @transform_13(%arg0: i32) -> (i32, i32, i32) {
    %c0_i32 = arith.constant 0 : i32
    %c0_i32_0 = arith.constant 0 : i32
    %c0_i32_1 = arith.constant 0 : i32
    return %arg0, %c0_i32, %c0_i32_0 : i32, i32, i32
  }
}

</mosaic_0001>

<bundles_post_ra>
// kernel: tpu_custom_call.1
= control target key start
LH: loop header
LB: loop body
LE: loop exit
PB: predicated region body
PF: predicated region fallthrough
CT: control target
= control target key end

     0   :  { %s13372_s0 = inlined_call_operand.hbm [shape: f32[2,8,8,128], index: 0, kind: input, shape index: {}]   ;;  %s13373_s1 = inlined_call_operand.hbm [shape: f32[2,16,16,128], index: 1, kind: input, shape index: {}]   ;;  %s13374_s2 = inlined_call_operand.hbm [shape: f32[1152,128], index: 2, kind: input, shape index: {}]   ;;  %s13375_s3 = inlined_call_operand.vmem [shape: f32[1,128], index: 3, kind: input, shape index: {}]   ;;  %s13376_s4 = inlined_call_operand.vmem [shape: f32[1,128], index: 4, kind: input, shape index: {}]   ;;  %s13377_s5 = inlined_call_operand.hbm [shape: f32[1152,128], index: 5, kind: input, shape index: {}]   ;;  %s13378_s6 = inlined_call_operand.vmem [shape: f32[1,128], index: 6, kind: input, shape index: {}]   ;;  %s13379_s7 = inlined_call_operand.vmem [shape: f32[1,128], index: 7, kind: input, shape index: {}]   ;;  %s13380_s8 = inlined_call_operand.hbm [shape: f32[128,128], index: 8, kind: input, shape index: {}]   ;;  %s13381_s9 = inlined_call_operand.vmem [shape: f32[1,128], index: 9, kind: input, shape index: {}]   ;;  %s13382_s10 = inlined_call_operand.vmem [shape: f32[1,128], index: 10, kind: input, shape index: {}]   ;;  %s13383_s11 = inlined_call_operand.hbm [shape: f32[128,128], index: 11, kind: input, shape index: {}]   ;;  %s13384_s12 = inlined_call_operand.vmem [shape: f32[1,128], index: 12, kind: input, shape index: {}]   ;;  %s13385_s13 = inlined_call_operand.hbm [shape: f32[2,256,128], index: 13, kind: output, shape index: {}]  }
   0x1   :  { %13740 = sst [smem:[#allocation238_spill]] %s13372_s0 }
   0x2   :  { %13741 = sst [smem:[#allocation239_spill]] %s13374_s2 }
   0x3   :  { %13742 = sst [smem:[#allocation240_spill]] %s13377_s5 }
   0x4   :  { %13743 = sst [smem:[#allocation241_spill]] %s13379_s7 }
   0x5   :  { %13744 = sst [smem:[#allocation242_spill]] %s13380_s8 }
   0x6   :  { %13745 = sst [smem:[#allocation243_spill]] %s13381_s9 }
   0x7   :  { %13746 = sst [smem:[#allocation244_spill]] %s13382_s10 }
   0x8   :  { %13747 = sst [smem:[#allocation245_spill]] %s13384_s12 }
   0x9   :  { %13748 = sst [smem:[#allocation246_spill]] %s13385_s13 }
   0xa   :  { %18 = vsyncpa [#allocation6], 0 }
   0xb   :  { %20 = vsyncpa [#allocation6 + $0x1], 0 }
   0xc   :  { %21 = vsyncpa [#allocation9], 0 }
   0xd   :  { %23 = vsyncpa [#allocation9 + $0x1], 0 }
   0xe   :  { %24 = vsyncpa [#allocation12], 0 }
   0xf   :  { %25 = vsyncpa [#allocation15], 0 }
  0x10   :  { %26 = vsyncpa [#allocation7], 0 }
  0x11   :  { %28 = vsyncpa [#allocation7 + $0x1], 0  ;;  %s8176_s25 = smov 0   ;;  %s8178_s26 = smov 0  }
  0x12   :  { %s8180_s27 = smov 0   ;;  %s8182_s28 = smov 0  }
  0x13 LB: > { %13749 = sst [smem:[#allocation23_spill]] %s8079_s25  ;;  %s8197_s29 = sadd.s32 4294967295, %s8091_s28   ;;  %s8091_s28 = sphi %s8182_s28, %s15017_s28   ;;  %s8087_s27 = sphi %s8180_s27, %s15016_s27   ;;  %s8083_s26 = sphi %s8178_s26, %s15015_s26   ;;  %s8079_s25 = sphi %s8176_s25, %s15014_s25  }
  0x14   : > { %s6375_s30 = sadd.s32 4294967294, %s8091_s28   ;;  %p54_p0 = scmp.ne.s32.totalorder %s8083_s26, %s8079_s25 }
  0x15   : > { %p13389_p1 = scmp.eq.s32.totalorder %s8197_s29, 0  ;;  %p341_p3 = scmp.eq.s32.totalorder %s6375_s30, 1 }
  0x16   : > { %p6376_p5 = scmp.ge.s32.totalorder %s8091_s28, 1  ;;  %p348_p7 = scmp.lt.s32.totalorder %s8091_s28, 3 }
  0x17   : > { %p8206_p4 = por %p13389_p1, %p54_p0  ;;  %p8211_p6 = por %p341_p3, %p54_p0 }
  0x18   : > { %p8216_p8 = pnand %p6376_p5, %p348_p7  ;;  %s8093_s17 = smov [#allocation10]  }
  0x19   : > { %s13750_s14 = scalar_select %p8206_p4, 1, 0 }
  0x1a   : > { %s13751_s15 = scalar_select %p8211_p6, 1, 0 }
  0x1b   : > { %s13753_s16 = scalar_select %p8216_p8, 1, 0 }
  0x1c   : > { %13752 = sst [smem:[#allocation24_spill]] %s13751_s15  ;;  %s360_s18 = sshll.u32 %s8093_s17, 4  ;;  %s8220_s18 = int_to_ptr.vmem [resolvable:$true] %s360_s18 }
  0x1d   : > { %p7717_p9 = pneg %p8216_p8  ;;  %s8094_s20 = smov [#allocation11]  }
  0x1e   : > { %s379_s21 = sshll.u32 %s8094_s20, 4  ;;  %s8095_s22 = smov [#allocation13]   ;;  %s8231_s21 = int_to_ptr.vmem [resolvable:$true] %s379_s21 }
  0x1f   : > { %p8227_p11 = pnand %p7717_p9, %p13389_p1  ;;  %s8233_s23 = sshll.u32 %s8095_s22, 4  ;;  %s399_s23 = int_to_ptr.vmem [resolvable:$true] %s8233_s23 }
  0x20   : > { %s13755_s2 = sld [smem:[#allocation239_spill]] }
  0x21   : > { %p8243_p13 = pneg %p8227_p11 }
  0x26   : > { %s7837_s17 = scalar_lea.hbm %s13755_s2, 18432 }
  0x27   : > { %p7838_p12 = scmp.ne.s32.totalorder %s13755_s2, %s7837_s17  ;;  %p7844_p5 = scmp.lt.u32.totalorder %s7837_s17, %s13755_s2 }
  0x29   : > { %p7840_p0 = pnand %p8243_p13, %p7838_p12 }
  0x2b   : > { %p7841_p3 = pneg %p7840_p0 }
  0x2d   : > { %p7846_p7 = pnand %p7844_p5, %p7841_p3 }
  0x2f   : > { %7849 = shalt.err (!%p7846_p7)
}
  0x30   : > { %s7850_s25 = scalar_lea.vmem %s8220_s18, 18432  ;;  %p7858_p2 = scmp.lt.s32.totalorder %s8220_s18, %s8220_s18 }
  0x31   : > { %p7851_p9 = scmp.ne.s32.totalorder %s8220_s18, %s7850_s25  ;;  %p7859_p6 = scmp.lt.s32.totalorder %s7850_s25, %s7850_s25 }
  0x33   : > { %p7853_p10 = pnand %p7851_p9, %p8243_p13  ;;  %p7860_p12 = por %p7859_p6, %p7858_p2 }
  0x35   : > { %p7854_p1 = pneg %p7853_p10 }
  0x37   : > { %p7861_p0 = pnand %p7860_p12, %p7854_p1 }
  0x39   : > { %7864 = shalt.err (!%p7861_p0)
}
  0x3a   : > { %s13393_s15 = smov 128   ;;  %s13395_s24 = smov 8  }
  0x3b   : > { %7720 = dma.hbm_to_vmem [thread:$0]  (!%p8227_p11), %s13755_s2, 18432, %s8220_s18, [#allocation9], %s13393_s15, %s13393_s15, %s13395_s24  }
  0x3c   : > { %s13757_s5 = sld [smem:[#allocation240_spill]] }
  0x42   : > { %s7865_s25 = scalar_lea.hbm %s13757_s5, 18432 }
  0x43   : > { %p7866_p1 = scmp.ne.s32.totalorder %s13757_s5, %s7865_s25  ;;  %p7872_p10 = scmp.lt.u32.totalorder %s7865_s25, %s13757_s5 }
  0x45   : > { %p7868_p2 = pnand %p7866_p1, %p8243_p13 }
  0x47   : > { %p7869_p6 = pneg %p7868_p2 }
  0x49   : > { %p7874_p3 = pnand %p7872_p10, %p7869_p6 }
  0x4b   : > { %7877 = shalt.err (!%p7874_p3)
}
  0x4c   : > { %s7878_s18 = scalar_lea.vmem %s8231_s21, 18432  ;;  %p7886_p12 = scmp.lt.s32.totalorder %s8231_s21, %s8231_s21 }
  0x4d   : > { %p7879_p5 = scmp.ne.s32.totalorder %s8231_s21, %s7878_s18  ;;  %p7887_p0 = scmp.lt.s32.totalorder %s7878_s18, %s7878_s18 }
  0x4f   : > { %p7881_p7 = pnand %p7879_p5, %p8243_p13  ;;  %p7888_p1 = por %p7887_p0, %p7886_p12 }
  0x51   : > { %p7882_p9 = pneg %p7881_p7 }
  0x53   : > { %p7889_p2 = pnand %p7888_p1, %p7882_p9 }
  0x55   : > { %7892 = shalt.err (!%p7889_p2)
}
  0x56   : > { %7723 = dma.hbm_to_vmem [thread:$0]  (!%p8227_p11), %s13757_s5, 18432, %s8231_s21, [#allocation12], %s13393_s15, %s13393_s15, %s13395_s24  }
  0x57   : > { %s13758_s8 = sld [smem:[#allocation242_spill]] }
  0x5d   : > { %s7893_s30 = scalar_lea.hbm %s13758_s8, 2048 }
  0x5e   : > { %p7894_p6 = scmp.ne.s32.totalorder %s13758_s8, %s7893_s30  ;;  %p7900_p5 = scmp.lt.u32.totalorder %s7893_s30, %s13758_s8 }
  0x60   : > { %p7896_p10 = pnand %p7894_p6, %p8243_p13 }
  0x62   : > { %p7897_p3 = pneg %p7896_p10 }
  0x64   : > { %p7902_p7 = pnand %p7900_p5, %p7897_p3 }
  0x66   : > { %7905 = shalt.err (!%p7902_p7)
}
  0x67   : > { %s7906_s18 = scalar_lea.vmem %s399_s23, 2048  ;;  %p7914_p1 = scmp.lt.s32.totalorder %s399_s23, %s399_s23 }
  0x68   : > { %p7907_p9 = scmp.ne.s32.totalorder %s399_s23, %s7906_s18  ;;  %p7915_p2 = scmp.lt.s32.totalorder %s7906_s18, %s7906_s18 }
  0x6a   : > { %p7909_p12 = pnand %p7907_p9, %p8243_p13  ;;  %p7916_p4 = por %p7915_p2, %p7914_p1 }
  0x6c   : > { %p7910_p0 = pneg %p7909_p12 }
  0x6e   : > { %p7917_p8 = pnand %p7916_p4, %p7910_p0 }
  0x70   : > { %7920 = shalt.err (!%p7917_p8)
}
  0x71   : > { %7726 = dma.hbm_to_vmem [thread:$0]  (!%p8227_p11), %s13758_s8, 2048, %s399_s23, [#allocation12], %s13393_s15, %s13393_s15, %s13395_s24  }
  0x72   : > { %s8098_s9 = smov [#allocation14]   ;;  %s7921_s17 = scalar_lea.hbm %s13383_s11, 2048 }
  0x73   : > { %s417_s10 = sshll.u32 %s8098_s9, 4  ;;  %p7922_p4 = scmp.ne.s32.totalorder %s13383_s11, %s7921_s17  ;;  %s418_s10 = int_to_ptr.vmem [resolvable:$true] %s417_s10 }
  0x74   : > { %p7928_p10 = scmp.lt.u32.totalorder %s7921_s17, %s13383_s11 }
  0x75   : > { %p7924_p8 = pnand %p7922_p4, %p8243_p13 }
  0x77   : > { %p7925_p6 = pneg %p7924_p8 }
  0x79   : > { %p7930_p3 = pnand %p7928_p10, %p7925_p6 }
  0x7b   : > { %7933 = shalt.err (!%p7930_p3)
}
  0x7c   : > { %s7934_s23 = scalar_lea.vmem %s418_s10, 2048  ;;  %p7942_p12 = scmp.lt.s32.totalorder %s418_s10, %s418_s10 }
  0x7d   : > { %p7935_p5 = scmp.ne.s32.totalorder %s418_s10, %s7934_s23  ;;  %p7943_p0 = scmp.lt.s32.totalorder %s7934_s23, %s7934_s23 }
  0x7f   : > { %p7937_p7 = pnand %p7935_p5, %p8243_p13  ;;  %p7944_p1 = por %p7943_p0, %p7942_p12 }
  0x81   : > { %p7938_p9 = pneg %p7937_p7 }
  0x83   : > { %p7945_p2 = pnand %p7944_p1, %p7938_p9 }
  0x85   : > { %7948 = shalt.err (!%p7945_p2)
}
  0x86   : > { %7729 = dma.hbm_to_vmem [thread:$0]  (!%p8227_p11), %s13383_s11, 2048, %s418_s10, [#allocation15], %s13393_s15, %s13393_s15, %s13395_s24  }
  0x87   : > { %s8337_s13 = sadd.s32 1, %s8091_s28   ;;  %s41_s19 = sadd.s32 1, %s8087_s27 }
  0x88   : > { %s38_s9 = ssub.s32 %s8091_s28, %s8337_s13  ;;  %p48_p13 = scmp.ne.s32.totalorder %s8087_s27, %s8083_s26 }
  0x89   : > { %p39_p4 = scmp.eq.s32.totalorder %s38_s9, 0  ;;  %p49_p8 = scmp.eq.s32.totalorder %s8091_s28, 0 }
  0x8a   : > { %p13759_p6 = scmp.eq.s32.totalorder %s8197_s29, 1  ;;  %p7745_p3 = scmp.lt.s32.totalorder %s8091_s28, 2 }
  0x8b   : > { %s8353_s30 = scalar_select %p39_p4, %s8087_s27, %s41_s19  }
  0x8c   : > { %p8347_p10 = por %p13759_p6, %p48_p13  ;;  %p50_p5 = por %p49_p8, %p48_p13 }
  0x8d   : > { %s8356_s17 = sand.u32 1, %s8087_s27   ;;  %s6408_s20 = sshll.u32 %s8091_s28, 10 }
  0x8e   : > { %s6382_s10 = sshll.u32 %s8356_s17, 6  ;;  %s13761_s0 = sld [smem:[#allocation238_spill]] }
  0x8f   : > { %s438_s23 = scalar_lea.vmem [#allocation5], %s6382_s10  ;;  %p8367_p11 = pnand %p7745_p3, %p50_p5 }
  0x90   : > { %s445_s21 = sshll.u32 %s438_s23, 4  ;;  %s6385_s9 = sshll.u32 %s8356_s17, 8  ;;  %s8365_s21 = int_to_ptr.vmem [resolvable:$true] %s445_s21 }
  0x91   : > { %s435_s15 = scalar_lea.sflag [#allocation6], %s8356_s17  ;;  %p7951_p9 = pneg %p8367_p11 }
  0x94   : > { %s8363_s18 = scalar_lea.hbm %s13761_s0, %s6408_s20  ;;  %s7954_s25 = scalar_lea.hbm %s13761_s0, 2048 }
  0x95   : > { %s7949_s22 = scalar_lea.hbm %s8363_s18, 1024  ;;  %p7955_p1 = scmp.lt.u32.totalorder %s8363_s18, %s13761_s0 }
  0x96   : > { %p7950_p7 = scmp.ne.s32.totalorder %s8363_s18, %s7949_s22  ;;  %p7956_p2 = scmp.lt.u32.totalorder %s7954_s25, %s7949_s22 }
  0x97   : > { %p7958_p4 = scmp.lt.u32.totalorder %s7949_s22, %s8363_s18 }
  0x98   : > { %p7952_p12 = pnand %p7951_p9, %p7950_p7  ;;  %p7957_p13 = por %p7956_p2, %p7955_p1 }
  0x9a   : > { %p7953_p0 = pneg %p7952_p12  ;;  %p7959_p8 = por %p7958_p4, %p7957_p13 }
  0x9c   : > { %p7960_p6 = pnand %p7959_p8, %p7953_p0 }
  0x9e   : > { %7963 = shalt.err (!%p7960_p6)
}
  0x9f   : > { %s7964_s19 = scalar_lea.vmem %s8365_s21, 1024  ;;  %s8099_s10 = smov [#allocation5]  }
  0xa0   : > { %p7965_p3 = scmp.ne.s32.totalorder %s8365_s21, %s7964_s19  ;;  %s7969_s20 = sshll.u32 %s8099_s10, 4  ;;  %s7970_s20 = int_to_ptr.vmem [resolvable:$false] %s7969_s20 }
  0xa1   : > { %s7971_s24 = scalar_lea.vmem %s7970_s20, 2048  ;;  %p7972_p12 = scmp.lt.s32.totalorder %s8365_s21, %s7970_s20 }
  0xa2   : > { %p7967_p5 = pnand %p7965_p3, %p7951_p9  ;;  %p7973_p1 = scmp.lt.s32.totalorder %s7971_s24, %s7964_s19 }
  0xa4   : > { %p7968_p7 = pneg %p7967_p5  ;;  %p7974_p2 = por %p7973_p1, %p7972_p12 }
  0xa6   : > { %p7975_p13 = pnand %p7974_p2, %p7968_p7 }
  0xa8   : > { %7978 = shalt.err (!%p7975_p13)
}
  0xa9   : > { %s13763_s22 = smov 8   ;;  %s13764_s25 = smov 128  }
  0xaa   : > { %7733 = dma.hbm_to_vmem [thread:$0]  (!%p8367_p11), %s8363_s18, 1024, %s8365_s21, %s435_s15, %s13764_s25, %s13764_s25, %s13763_s22  }
  0xab   : > { %s6409_s23 = sshll.u32 %s8091_s28, 12  ;;  %s459_s24 = scalar_lea.vmem [#allocation8], %s6385_s9 }
  0xac   : > { %s8408_s20 = scalar_lea.hbm %s13373_s1, %s6409_s23  ;;  %s466_s0 = sshll.u32 %s459_s24, 4  ;;  %s8412_s0 = int_to_ptr.vmem [resolvable:$true] %s466_s0 }
  0xad   : > { %s13765_s2 = sand.u32 1, %s8091_s28   ;;  %s7979_s8 = scalar_lea.hbm %s8408_s20, 4096 }
  0xae   : > { %s8416_s5 = scalar_lea.sflag [#allocation9], %s13765_s2  ;;  %p7980_p0 = scmp.ne.s32.totalorder %s8408_s20, %s7979_s8 }
  0xaf   : > { %s7984_s17 = scalar_lea.hbm %s13373_s1, 8192  ;;  %p7985_p6 = scmp.lt.u32.totalorder %s8408_s20, %s13373_s1 }
  0xb0   : > { %p7982_p4 = pnand %p7980_p0, %p7951_p9  ;;  %p7986_p3 = scmp.lt.u32.totalorder %s7984_s17, %s7979_s8 }
  0xb1   : > { %p7988_p7 = scmp.lt.u32.totalorder %s7979_s8, %s8408_s20 }
  0xb2   : > { %p7983_p8 = pneg %p7982_p4  ;;  %p7987_p5 = por %p7986_p3, %p7985_p6 }
  0xb4   : > { %p7989_p12 = por %p7988_p7, %p7987_p5 }
  0xb6   : > { %p7990_p1 = pnand %p7989_p12, %p7983_p8 }
  0xb8   : > { %7993 = shalt.err (!%p7990_p1)
}
  0xb9   : > { %s7994_s2 = scalar_lea.vmem %s8412_s0, 4096  ;;  %s8100_s9 = smov [#allocation8]  }
  0xba   : > { %p7995_p2 = scmp.ne.s32.totalorder %s8412_s0, %s7994_s2  ;;  %s7999_s10 = sshll.u32 %s8100_s9, 4  ;;  %s8000_s10 = int_to_ptr.vmem [resolvable:$false] %s7999_s10 }
  0xbb   : > { %s8001_s19 = scalar_lea.vmem %s8000_s10, 8192  ;;  %p8002_p4 = scmp.lt.s32.totalorder %s8412_s0, %s8000_s10 }
  0xbc   : > { %p7997_p13 = pnand %p7995_p2, %p7951_p9  ;;  %p8003_p6 = scmp.lt.s32.totalorder %s8001_s19, %s7994_s2 }
  0xbe   : > { %p7998_p0 = pneg %p7997_p13  ;;  %p8004_p3 = por %p8003_p6, %p8002_p4 }
  0xc0   : > { %p8005_p5 = pnand %p8004_p3, %p7998_p0 }
  0xc2   : > { %8008 = shalt.err (!%p8005_p5)
}
  0xc3   : > { %7736 = dma.hbm_to_vmem [thread:$0]  (!%p8367_p11), %s8408_s20, 4096, %s8412_s0, %s8416_s5, %s13764_s25, %s13764_s25, %s13763_s22  }
  0xc4   : > { %p13766_p9 = scmp.ne.s32.totalorder %s13753_s16, 0 }
  0xc6   : > { %478 = sbr.rel (%p13766_p9) target bundleno = 1903 (0x76f), region = 72 }
  0xcd   : > { %s8448_s8 = sand.u32 1, %s8083_s26   ;;  %p13767_p8 = scmp.ne.s32.totalorder %s13750_s14, 0 }
  0xce   : > { %s6389_s24 = sshll.u32 %s8448_s8, 6  ;;  %s481_s15 = scalar_lea.sflag [#allocation6], %s8448_s8 }
  0xcf   : > { %s8452_s18 = scalar_lea.vmem [#allocation5], %s6389_s24 }
  0xd0   : > { %8054 = dma.done.wait (%p13767_p8), %s481_s15, 1024  }
  0xd1   : > { %8056 = vsyncadd (%p13767_p8), %s481_s15, 4294966272  ;;  %s489_s0 = sand.u32 1, %s8197_s29   ;;  %s6390_s5 = sshll.u32 %s8448_s8, 8 }
  0xd2   : > { %s490_s16 = scalar_lea.sflag [#allocation9], %s489_s0  ;;  %s8462_s7 = scalar_lea.vmem [#allocation8], %s6390_s5 }
  0xd3   : > { %8058 = dma.done.wait (%p13767_p8), %s490_s16, 4096  }
  0xd4   : > { %8060 = vsyncadd (%p13767_p8), %s490_s16, 4294963200  ;;  %p13768_p11 = scmp.eq.s32.totalorder %s8197_s29, 0 }
  0xd6   : > { %8062 = dma.done.wait (%p13768_p11), [#allocation9], 18432   ;;  %p13769_p7 = pmov %p13768_p11 }
  0xd8   : > { %8064 = vsyncadd (%p13769_p7), [#allocation9], 4294948864  ;;  %p13770_p12 = pmov %p13769_p7 }
  0xd9   : > { %p13771_p1 = pmov %p13769_p7 }
  0xda   : > { %8066 = dma.done.wait (%p13770_p12), [#allocation12], 20480  }
  0xdb   : > { %8068 = vsyncadd (%p13771_p1), [#allocation12], 4294946816  ;;  %p13772_p2 = pmov %p13771_p1 }
  0xdc   : > { %p13773_p13 = pmov %p13771_p1 }
  0xdd   : > { %8070 = dma.done.wait (%p13772_p2), [#allocation15], 2048  }
  0xde   : > { %8072 = vsyncadd (%p13773_p13), [#allocation15], 4294965248  ;;  %v8101_v0 = vmov 0.0   ;;  %v622_v1 = vld [vmem:[#allocation10 + $0x80] sm:$0xff]  ;;  %v623_v2 = vld [vmem:[#allocation10 + $0x88] sm:$0xff]  ;;  %s13942_s9 = sld [smem:[#allocation241_spill]] }
  0xdf   : > { %573 = vst [vmem:[#allocation2 + $0x40] sm:$0xff] %v8101_v0  ;;  %574 = vst [vmem:[#allocation2 + $0x48] sm:$0xff] %v8101_v0  ;;  %v654_v3 = vld [vmem:[#allocation10 + $0x180] sm:$0xff]  ;;  %v7087_v4 = vpack.c.bf16 %v623_v2, %v622_v1  ;;  %v655_v5 = vld [vmem:[#allocation10 + $0x188] sm:$0xff]  ;;  %s14998_s25 = sld [smem:[#allocation243_spill]]  ;;  %s14999_s21 = sld [smem:[#allocation244_spill]] }
  0xe0   : > { %575 = vst [vmem:[#allocation2 + $0x50] sm:$0xff] %v8101_v0  ;;  %1361 = vst [vmem:[#allocation3 + $0x100] sm:$0xff] %v8101_v0  ;;  %v606_v6 = vld [vmem:[#allocation10] sm:$0xff]  ;;  %v607_v7 = vld [vmem:[#allocation10 + $0x8] sm:$0xff]  ;;  %v7119_v8 = vpack.c.bf16 %v655_v5, %v654_v3  ;;  %s15008_s10 = sld [smem:[#allocation245_spill]]  ;;  %s13257_s19 = scalar_lea.vmem [#allocation16], %s6390_s5 }
  0xe1   : > { %1362 = vst [vmem:[#allocation3 + $0x108] sm:$0xff] %v8101_v0  ;;  %1363 = vst [vmem:[#allocation3 + $0x110] sm:$0xff] %v8101_v0  ;;  %v7089_v9 = vpack.c.bf16 %v607_v7, %v606_v6  ;;  %v638_v10 = vld [vmem:[#allocation10 + $0x100] sm:$0xff]  ;;  %v639_v11 = vld [vmem:[#allocation10 + $0x108] sm:$0xff]  ;;  %7088 = vmatprep.subr.bf16.mxu0 %v7087_v4  ;;  %s6410_s5 = sshll.u32 %s8197_s29, 12  ;;  %s6241_s24 = sshll.u32 %s13257_s19, 4  ;;  %s13325_s24 = int_to_ptr.vmem [resolvable:$true] %s6241_s24 }
  0xe2   : > { %1364 = vst [vmem:[#allocation3 + $0x118] sm:$0xff] %v8101_v0  ;;  %1365 = vst [vmem:[#allocation3 + $0x120] sm:$0xff] %v8101_v0  ;;  %v624_v12 = vld [vmem:[#allocation10 + $0x90] sm:$0xff]  ;;  %v7121_v13 = vpack.c.bf16 %v639_v11, %v638_v10  ;;  %v625_v14 = vld [vmem:[#allocation10 + $0x98] sm:$0xff]  ;;  %7120 = vmatprep.subr.bf16.mxu1 %v7119_v8  ;;  %s15009_s0 = sld [smem:[#allocation246_spill]]  ;;  %s6228_s29 = scalar_lea.sflag [#allocation7], %s8448_s8 }
  0xe3   : > { %2885 = vst [vmem:[#allocation4 + $0x100] sm:$0xff] %v8101_v0  ;;  %2886 = vst [vmem:[#allocation4 + $0x108] sm:$0xff] %v8101_v0  ;;  %v656_v15 = vld [vmem:[#allocation10 + $0x190] sm:$0xff]  ;;  %v657_v16 = vld [vmem:[#allocation10 + $0x198] sm:$0xff]  ;;  %7090 = vmatpush3.bf16.msra.mxu0 %v7089_v9  ;;  %v7091_v17 = vpack.c.bf16 %v625_v14, %v624_v12  ;;  %s8103_s14 = smov [#allocation16]  }
  0xe4   : > { %2887 = vst [vmem:[#allocation4 + $0x110] sm:$0xff] %v8101_v0  ;;  %2888 = vst [vmem:[#allocation4 + $0x118] sm:$0xff] %v8101_v0  ;;  %v7123_v18 = vpack.c.bf16 %v657_v16, %v656_v15  ;;  %v608_v19 = vld [vmem:[#allocation10 + $0x10] sm:$0xff]  ;;  %v609_v20 = vld [vmem:[#allocation10 + $0x18] sm:$0xff]  ;;  %7122 = vmatpush3.bf16.msra.mxu1 %v7121_v13  ;;  %s8013_s22 = sshll.u32 %s8103_s14, 4  ;;  %s8014_s22 = int_to_ptr.vmem [resolvable:$false] %s8013_s22 }
  0xe5   : > { %2889 = vst [vmem:[#allocation4 + $0x120] sm:$0xff] %v8101_v0  ;;  %2890 = vst [vmem:[#allocation4 + $0x128] sm:$0xff] %v8101_v0  ;;  %v640_v21 = vld [vmem:[#allocation10 + $0x110] sm:$0xff]  ;;  %v7093_v22 = vpack.c.bf16 %v609_v20, %v608_v19  ;;  %v641_v23 = vld [vmem:[#allocation10 + $0x118] sm:$0xff]  ;;  %7092 = vmatprep.subr.bf16.mxu0 %v7091_v17  ;;  %p8016_p3 = scmp.lt.s32.totalorder %s13325_s24, %s8014_s22 }
  0xe6   : > { %2891 = vst [vmem:[#allocation4 + $0x130] sm:$0xff] %v8101_v0  ;;  %2892 = vst [vmem:[#allocation4 + $0x138] sm:$0xff] %v8101_v0  ;;  %v626_v24 = vld [vmem:[#allocation10 + $0xa0] sm:$0xff]  ;;  %v627_v25 = vld [vmem:[#allocation10 + $0xa8] sm:$0xff]  ;;  %7124 = vmatprep.subr.bf16.mxu1 %v7123_v18  ;;  %v7125_v26 = vpack.c.bf16 %v641_v23, %v640_v21 }
  0xe7   : > { %2893 = vst [vmem:[#allocation4 + $0x140] sm:$0xff] %v8101_v0  ;;  %2894 = vst [vmem:[#allocation4 + $0x148] sm:$0xff] %v8101_v0  ;;  %v7095_v27 = vpack.c.bf16 %v627_v25, %v626_v24  ;;  %v658_v28 = vld [vmem:[#allocation10 + $0x1a0] sm:$0xff]  ;;  %v659_v29 = vld [vmem:[#allocation10 + $0x1a8] sm:$0xff]  ;;  %7094 = vmatpush3.bf16.msra.mxu0 %v7093_v22 }
  0xe8   : > { %2895 = vst [vmem:[#allocation4 + $0x150] sm:$0xff] %v8101_v0  ;;  %v610_v30 = vld [vmem:[#allocation10 + $0x20] sm:$0xff]  ;;  %v7127_v31 = vpack.c.bf16 %v659_v29, %v658_v28  ;;  %v611_v32 = vld [vmem:[#allocation10 + $0x28] sm:$0xff]  ;;  %v628_v36 = vld [vmem:[#allocation10 + $0xb0] sm:$0xff]  ;;  %7126 = vmatpush3.bf16.msra.mxu1 %v7125_v26  ;;  %s13323_s16 = scalar_lea.hbm %s15009_s0, %s6410_s5 }
  0xe9   : > { %v642_v33 = vld [vmem:[#allocation10 + $0x120] sm:$0xff]  ;;  %v643_v34 = vld [vmem:[#allocation10 + $0x128] sm:$0xff]  ;;  %v7097_v35 = vpack.c.bf16 %v611_v32, %v610_v30  ;;  %v629_v37 = vld [vmem:[#allocation10 + $0xb8] sm:$0xff]  ;;  %7096 = vmatprep.subr.bf16.mxu0 %v7095_v27 }
  0xea   : > { %v660_v38 = vld [vmem:[#allocation10 + $0x1b0] sm:$0xff]  ;;  %v7129_v39 = vpack.c.bf16 %v643_v34, %v642_v33  ;;  %v7099_v40 = vpack.c.bf16 %v629_v37, %v628_v36  ;;  %v661_v41 = vld [vmem:[#allocation10 + $0x1b8] sm:$0xff]  ;;  %7128 = vmatprep.subr.bf16.mxu1 %v7127_v31  ;;  %v630_v47 = vld [vmem:[#allocation10 + $0xc0] sm:$0xff] }
  0xeb   : > { %v612_v42 = vld [vmem:[#allocation10 + $0x30] sm:$0xff]  ;;  %v613_v43 = vld [vmem:[#allocation10 + $0x38] sm:$0xff]  ;;  %v7131_v44 = vpack.c.bf16 %v661_v41, %v660_v38  ;;  %v631_v48 = vld [vmem:[#allocation10 + $0xc8] sm:$0xff]  ;;  %7098 = vmatpush3.bf16.msra.mxu0 %v7097_v35 }
  0xec   : > { %v644_v45 = vld [vmem:[#allocation10 + $0x130] sm:$0xff]  ;;  %v645_v46 = vld [vmem:[#allocation10 + $0x138] sm:$0xff]  ;;  %v662_v49 = vld [vmem:[#allocation10 + $0x1c0] sm:$0xff]  ;;  %v7101_v51 = vpack.c.bf16 %v613_v43, %v612_v42  ;;  %7130 = vmatpush3.bf16.msra.mxu1 %v7129_v39  ;;  %7100 = vmatprep.subr.bf16.mxu0 %v7099_v40  ;;  %v7103_v53 = vpack.c.bf16 %v631_v48, %v630_v47 }
  0xed   : > { %v663_v50 = vld [vmem:[#allocation10 + $0x1c8] sm:$0xff]  ;;  %v7133_v52 = vpack.c.bf16 %v645_v46, %v644_v45  ;;  %v614_v54 = vld [vmem:[#allocation10 + $0x40] sm:$0xff]  ;;  %7132 = vmatprep.subr.bf16.mxu1 %v7131_v44  ;;  %v632_v59 = vld [vmem:[#allocation10 + $0xd0] sm:$0xff] }
  0xee   : > { %v615_v55 = vld [vmem:[#allocation10 + $0x48] sm:$0xff]  ;;  %v646_v56 = vld [vmem:[#allocation10 + $0x140] sm:$0xff]  ;;  %v7135_v57 = vpack.c.bf16 %v663_v50, %v662_v49  ;;  %v633_v60 = vld [vmem:[#allocation10 + $0xd8] sm:$0xff] }
  0xef   : > { %v647_v58 = vld [vmem:[#allocation10 + $0x148] sm:$0xff]  ;;  %v664_v61 = vld [vmem:[#allocation10 + $0x1d0] sm:$0xff]  ;;  %v665_v62 = vld [vmem:[#allocation10 + $0x1d8] sm:$0xff]  ;;  %7102 = vmatpush3.bf16.msra.mxu0 %v7101_v51  ;;  %v7105_v63 = vpack.c.bf16 %v615_v55, %v614_v54  ;;  %v7107_v2 = vpack.c.bf16 %v633_v60, %v632_v59 }
  0xf0   : > { %7134 = vmatpush3.bf16.msra.mxu1 %v7133_v52  ;;  %7104 = vmatprep.subr.bf16.mxu0 %v7103_v53  ;;  %v7137_v1 = vpack.c.bf16 %v647_v58, %v646_v56  ;;  %v616_v3 = vld [vmem:[#allocation10 + $0x50] sm:$0xff]  ;;  %v617_v4 = vld [vmem:[#allocation10 + $0x58] sm:$0xff]  ;;  %v7139_v6 = vpack.c.bf16 %v665_v62, %v664_v61  ;;  %v634_v8 = vld [vmem:[#allocation10 + $0xe0] sm:$0xff] }
  0xf1   : > { %v648_v5 = vld [vmem:[#allocation10 + $0x150] sm:$0xff]  ;;  %7136 = vmatprep.subr.bf16.mxu1 %v7135_v57  ;;  %v649_v7 = vld [vmem:[#allocation10 + $0x158] sm:$0xff]  ;;  %v635_v9 = vld [vmem:[#allocation10 + $0xe8] sm:$0xff]  ;;  %v7109_v12 = vpack.c.bf16 %v617_v4, %v616_v3 }
  0xf2   : > { %v666_v10 = vld [vmem:[#allocation10 + $0x1e0] sm:$0xff]  ;;  %v667_v11 = vld [vmem:[#allocation10 + $0x1e8] sm:$0xff]  ;;  %v7141_v15 = vpack.c.bf16 %v649_v7, %v648_v5  ;;  %v7111_v16 = vpack.c.bf16 %v635_v9, %v634_v8  ;;  %v636_v22 = vld [vmem:[#allocation10 + $0xf0] sm:$0xff] }
  0xf3   : > { %7106 = vmatpush3.bf16.msra.mxu0 %v7105_v63  ;;  %v618_v13 = vld [vmem:[#allocation10 + $0x60] sm:$0xff]  ;;  %v619_v14 = vld [vmem:[#allocation10 + $0x68] sm:$0xff]  ;;  %v7143_v20 = vpack.c.bf16 %v667_v11, %v666_v10  ;;  %v637_v23 = vld [vmem:[#allocation10 + $0xf8] sm:$0xff] }
  0xf4   : > { %7138 = vmatpush3.bf16.msra.mxu1 %v7137_v1  ;;  %7108 = vmatprep.subr.bf16.mxu0 %v7107_v2  ;;  %v650_v17 = vld [vmem:[#allocation10 + $0x160] sm:$0xff]  ;;  %v8503_v19 = vld [vmem:[%s8452_s18 + $0x8] sm:$0xff]  ;;  %v668_v24 = vld [vmem:[#allocation10 + $0x1f0] sm:$0xff]  ;;  %v7113_v26 = vpack.c.bf16 %v619_v14, %v618_v13  ;;  %v7115_v29 = vpack.c.bf16 %v637_v23, %v636_v22 }
  0xf5   : > { %v8500_v18 = vld [vmem:[%s8452_s18] sm:$0xff]  ;;  %7140 = vmatprep.subr.bf16.mxu1 %v7139_v6  ;;  %v651_v21 = vld [vmem:[#allocation10 + $0x168] sm:$0xff]  ;;  %566 = vst [vmem:[#allocation2 + $0x8] sm:$0xff] %v8503_v19  ;;  %917 = vmatprep.mubr.f32.mxu1 %v8503_v19  ;;  %v669_v25 = vld [vmem:[#allocation10 + $0x1f8] sm:$0xff] }
  0xf6   : > { %565 = vst [vmem:[#allocation2] sm:$0xff] %v8500_v18  ;;  %v8509_v27 = vld [vmem:[%s8452_s18 + $0x10] sm:$0xff]  ;;  %v7145_v28 = vpack.c.bf16 %v651_v21, %v650_v17  ;;  %v621_v31 = vld [vmem:[#allocation10 + $0x78] sm:$0xff]  ;;  %v7147_v33 = vpack.c.bf16 %v669_v25, %v668_v24  ;;  %v686_v35 = vld [vmem:[#allocation10 + $0x280] sm:$0xff] }
  0xf7   : > { %7110 = vmatpush3.bf16.msra.mxu0 %v7109_v12  ;;  %v620_v30 = vld [vmem:[#allocation10 + $0x70] sm:$0xff]  ;;  %567 = vst [vmem:[#allocation2 + $0x10] sm:$0xff] %v8509_v27  ;;  %v653_v34 = vld [vmem:[#allocation10 + $0x178] sm:$0xff]  ;;  %v687_v36 = vld [vmem:[#allocation10 + $0x288] sm:$0xff] }
  0xf8   : > { %7142 = vmatpush3.bf16.msra.mxu1 %v7141_v15  ;;  %7112 = vmatprep.subr.bf16.mxu0 %v7111_v16  ;;  %v652_v32 = vld [vmem:[#allocation10 + $0x170] sm:$0xff]  ;;  %v718_v37 = vld [vmem:[#allocation10 + $0x380] sm:$0xff]  ;;  %v719_v38 = vld [vmem:[#allocation10 + $0x388] sm:$0xff]  ;;  %v7117_v40 = vpack.c.bf16 %v621_v31, %v620_v30  ;;  %v7151_v43 = vpack.c.bf16 %v687_v36, %v686_v35 }
  0xf9   : > { %7144 = vmatprep.subr.bf16.mxu1 %v7143_v20  ;;  %v8513_v39 = vld [vmem:[%s8452_s18 + $0x18] sm:$0xff]  ;;  %v7149_v41 = vpack.c.bf16 %v653_v34, %v652_v32  ;;  %v670_v44 = vld [vmem:[#allocation10 + $0x200] sm:$0xff]  ;;  %v671_v45 = vld [vmem:[#allocation10 + $0x208] sm:$0xff]  ;;  %v7183_v46 = vpack.c.bf16 %v719_v38, %v718_v37 }
  0xfa   : > { %568 = vst [vmem:[#allocation2 + $0x18] sm:$0xff] %v8513_v39  ;;  %v702_v47 = vld [vmem:[#allocation10 + $0x300] sm:$0xff]  ;;  %v703_v48 = vld [vmem:[#allocation10 + $0x308] sm:$0xff]  ;;  %v688_v49 = vld [vmem:[#allocation10 + $0x290] sm:$0xff]  ;;  %v7153_v52 = vpack.c.bf16 %v671_v45, %v670_v44 }
  0xfb   : > { %7114 = vmatpush3.bf16.msra.mxu0 %v7113_v26  ;;  %v689_v50 = vld [vmem:[#allocation10 + $0x298] sm:$0xff]  ;;  %v8517_v51 = vld [vmem:[%s8452_s18 + $0x20] sm:$0xff]  ;;  %v720_v53 = vld [vmem:[#allocation10 + $0x390] sm:$0xff]  ;;  %v7185_v56 = vpack.c.bf16 %v703_v48, %v702_v47 }
  0xfc   : > { %7146 = vmatpush3.bf16.msra.mxu1 %v7145_v28  ;;  %7116 = vmatprep.subr.bf16.mxu0 %v7115_v29  ;;  %v721_v54 = vld [vmem:[#allocation10 + $0x398] sm:$0xff]  ;;  %569 = vst [vmem:[#allocation2 + $0x20] sm:$0xff] %v8517_v51  ;;  %v672_v57 = vld [vmem:[#allocation10 + $0x210] sm:$0xff]  ;;  %v7155_v60 = vpack.c.bf16 %v689_v50, %v688_v49  ;;  %v690_v1 = vld [vmem:[#allocation10 + $0x2a0] sm:$0xff] }
  0xfd   : > { %v584_v42 = vld [vmem:[#allocation2 + $0x1] sm:$0xff]  ;;  %7148 = vmatprep.subr.bf16.mxu1 %v7147_v33  ;;  %v673_v58 = vld [vmem:[#allocation10 + $0x218] sm:$0xff]  ;;  %v7187_v63 = vpack.c.bf16 %v721_v54, %v720_v53  ;;  %v722_v5 = vld [vmem:[#allocation10 + $0x3a0] sm:$0xff] }
  0xfe   : > { %814 = vmatprep.mubr.f32.mxu0 %v584_v42  ;;  %v592_v55 = vld [vmem:[#allocation2 + $0x2] sm:$0xff]  ;;  %v705_v62 = vld [vmem:[#allocation10 + $0x318] sm:$0xff]  ;;  %v7157_v4 = vpack.c.bf16 %v673_v58, %v672_v57  ;;  %v674_v7 = vld [vmem:[#allocation10 + $0x220] sm:$0xff] }
  0xff   : > { %7118 = vmatpush3.bf16.msra.mxu0 %v7117_v40  ;;  %v8520_v59 = vld [vmem:[#allocation2 + $0x9] sm:$0xff]  ;;  %v691_v2 = vld [vmem:[#allocation10 + $0x2a8] sm:$0xff]  ;;  %v706_v11 = vld [vmem:[#allocation10 + $0x320] sm:$0xff] }
 0x100   : > { %7150 = vmatpush3.bf16.msra.mxu1 %v7149_v41  ;;  %7152 = vmatprep.subr.bf16.mxu0 %v7151_v43  ;;  %v704_v61 = vld [vmem:[#allocation10 + $0x310] sm:$0xff]  ;;  %v8524_v3 = vld [vmem:[%s8452_s18 + $0x28] sm:$0xff]  ;;  %v7159_v13 = vpack.c.bf16 %v691_v2, %v690_v1  ;;  %v725_v22 = vld [vmem:[#allocation10 + $0x3b8] sm:$0xff] }
 0x101   : > { %7184 = vmatprep.subr.bf16.mxu1 %v7183_v46  ;;  %v723_v6 = vld [vmem:[#allocation10 + $0x3a8] sm:$0xff]  ;;  %570 = vst [vmem:[#allocation2 + $0x28] sm:$0xff] %v8524_v3  ;;  %v8528_v8 = vld [vmem:[#allocation2 + $0xa] sm:$0xff]  ;;  %v7189_v9 = vpack.c.bf16 %v705_v62, %v704_v61  ;;  %v8540_v24 = vld [vmem:[#allocation2 + $0x12] sm:$0xff] }
 0x102   : > { %815 = vmatmul.mubr.f32.vlgmr.msra.gmra.mrb[0].mxu0 %v8500_v18  ;;  %v675_v10 = vld [vmem:[#allocation10 + $0x228] sm:$0xff]  ;;  %v8531_v12 = vld [vmem:[#allocation2 + $0x11] sm:$0xff]  ;;  %v8534_v15 = vld [vmem:[%s8452_s18 + $0x30] sm:$0xff]  ;;  %v7191_v16 = vpack.c.bf16 %v723_v6, %v722_v5 }
 0x103   : > { %918 = vmatmul.mubr.f32.vlgmr.msra.gmra.mrb[0].mxu1 %v592_v55  ;;  %7154 = vmatpush3.bf16.msra.mxu0 %v7153_v52  ;;  %v707_v14 = vld [vmem:[#allocation10 + $0x328] sm:$0xff]  ;;  %v692_v17 = vld [vmem:[#allocation10 + $0x2b0] sm:$0xff]  ;;  %v693_v18 = vld [vmem:[#allocation10 + $0x2b8] sm:$0xff]  ;;  %571 = vst [vmem:[#allocation2 + $0x30] sm:$0xff] %v8534_v15  ;;  %v7161_v20 = vpack.c.bf16 %v675_v10, %v674_v7 }
 0x104   : > { %7186 = vmatpush3.bf16.msra.mxu1 %v7185_v56  ;;  %819 = vmatprep.mubr.f32.mxu0 %v8520_v59  ;;  %v724_v21 = vld [vmem:[#allocation10 + $0x3b0] sm:$0xff]  ;;  %v677_v25 = vld [vmem:[#allocation10 + $0x238] sm:$0xff]  ;;  %v8543_v28 = vld [vmem:[#allocation2 + $0x19] sm:$0xff]  ;;  %v7163_v29 = vpack.c.bf16 %v693_v18, %v692_v17 }
 0x105   : > { %922 = vmatprep.mubr.f32.mxu1 %v8509_v27  ;;  %7156 = vmatprep.subr.bf16.mxu0 %v7155_v60  ;;  %v676_v23 = vld [vmem:[#allocation10 + $0x230] sm:$0xff]  ;;  %v709_v30 = vld [vmem:[#allocation10 + $0x338] sm:$0xff]  ;;  %v7195_v32 = vpack.c.bf16 %v725_v22, %v724_v21  ;;  %v694_v33 = vld [vmem:[#allocation10 + $0x2c0] sm:$0xff] }
 0x106   : > { %820 = vmatmul.mubr.f32.gmra.mrb[2].mxu0 %v8503_v19  ;;  %7188 = vmatprep.subr.bf16.mxu1 %v7187_v63  ;;  %v7193_v19 = vpack.c.bf16 %v707_v14, %v706_v11  ;;  %v708_v26 = vld [vmem:[#allocation10 + $0x330] sm:$0xff]  ;;  %v8546_v31 = vld [vmem:[%s8452_s18 + $0x38] sm:$0xff]  ;;  %v695_v34 = vld [vmem:[#allocation10 + $0x2c8] sm:$0xff]  ;;  %v7165_v35 = vpack.c.bf16 %v677_v25, %v676_v23 }
 0x107   : > { %923 = vmatmul.mubr.f32.gmra.mrb[2].mxu1 %v8528_v8  ;;  %7158 = vmatpush3.bf16.msra.mxu0 %v7157_v4  ;;  %572 = vst [vmem:[#allocation2 + $0x38] sm:$0xff] %v8546_v31  ;;  %v726_v36 = vld [vmem:[#allocation10 + $0x3c0] sm:$0xff]  ;;  %v727_v37 = vld [vmem:[#allocation10 + $0x3c8] sm:$0xff]  ;;  %v7197_v40 = vpack.c.bf16 %v709_v30, %v708_v26  ;;  %v7167_v44 = vpack.c.bf16 %v695_v34, %v694_v33  ;;  %v696_v48 = vld [vmem:[#allocation10 + $0x2d0] sm:$0xff] }
 0x108   : > { %7190 = vmatpush3.bf16.msra.mxu1 %v7189_v9  ;;  %824 = vmatprep.mubr.f32.mxu0 %v8531_v12  ;;  %v8552_v38 = vld [vmem:[#allocation2 + $0x1a] sm:$0xff]  ;;  %v7199_v47 = vpack.c.bf16 %v727_v37, %v726_v36  ;;  %v697_v49 = vld [vmem:[#allocation10 + $0x2d8] sm:$0xff]  ;;  %v728_v52 = vld [vmem:[#allocation10 + $0x3d0] sm:$0xff] }
 0x109   : > { %927 = vmatprep.mubr.f32.mxu1 %v8513_v39  ;;  %7160 = vmatprep.subr.bf16.mxu0 %v7159_v13  ;;  %v678_v41 = vld [vmem:[#allocation10 + $0x240] sm:$0xff]  ;;  %v679_v42 = vld [vmem:[#allocation10 + $0x248] sm:$0xff]  ;;  %v729_v53 = vld [vmem:[#allocation10 + $0x3d8] sm:$0xff]  ;;  %v7171_v60 = vpack.c.bf16 %v697_v49, %v696_v48 }
 0x10a   : > { %825 = vmatmul.mubr.f32.gmra.mrb[4].mxu0 %v8509_v27  ;;  %7192 = vmatprep.subr.bf16.mxu1 %v7191_v16  ;;  %v8555_v43 = vld [vmem:[#allocation2 + $0x21] sm:$0xff]  ;;  %v710_v45 = vld [vmem:[#allocation10 + $0x340] sm:$0xff]  ;;  %v7169_v50 = vpack.c.bf16 %v679_v42, %v678_v41  ;;  %v681_v57 = vld [vmem:[#allocation10 + $0x258] sm:$0xff]  ;;  %v7203_v63 = vpack.c.bf16 %v729_v53, %v728_v52 }
 0x10b   : > { %928 = vmatmul.mubr.f32.gmra.mrb[4].mxu1 %v8540_v24  ;;  %7162 = vmatpush3.bf16.msra.mxu0 %v7161_v20  ;;  %v711_v46 = vld [vmem:[#allocation10 + $0x348] sm:$0xff]  ;;  %v680_v56 = vld [vmem:[#allocation10 + $0x250] sm:$0xff]  ;;  %v713_v62 = vld [vmem:[#allocation10 + $0x358] sm:$0xff] }
 0x10c   : > { %7194 = vmatpush3.bf16.msra.mxu1 %v7193_v19  ;;  %829 = vmatprep.mubr.f32.mxu0 %v8543_v28  ;;  %v8560_v54 = vld [vmem:[#allocation2 + $0x22] sm:$0xff]  ;;  %v7201_v55 = vpack.c.bf16 %v711_v46, %v710_v45  ;;  %v698_v1 = vld [vmem:[#allocation10 + $0x2e0] sm:$0xff]  ;;  %v7173_v4 = vpack.c.bf16 %v681_v57, %v680_v56  ;;  %v8568_v7 = vld [vmem:[#allocation2 + $0x2a] sm:$0xff]  ;;  %v13397_v56 = vmov 0.0|0.0  }
 0x10d   : > { %932 = vmatprep.mubr.f32.mxu1 %v8517_v51  ;;  %7164 = vmatprep.subr.bf16.mxu0 %v7163_v29  ;;  %v8563_v58 = vld [vmem:[#allocation2 + $0x29] sm:$0xff]  ;;  %v699_v2 = vld [vmem:[#allocation10 + $0x2e8] sm:$0xff]  ;;  %v730_v5 = vld [vmem:[#allocation10 + $0x3e0] sm:$0xff] }
 0x10e   : > { %830 = vmatmul.mubr.f32.gmra.mrb[6].mxu0 %v8513_v39  ;;  %7196 = vmatprep.subr.bf16.mxu1 %v7195_v32  ;;  %v712_v61 = vld [vmem:[#allocation10 + $0x350] sm:$0xff]  ;;  %v731_v6 = vld [vmem:[#allocation10 + $0x3e8] sm:$0xff]  ;;  %v682_v10 = vld [vmem:[#allocation10 + $0x260] sm:$0xff]  ;;  %v7175_v14 = vpack.c.bf16 %v699_v2, %v698_v1 }
 0x10f   : > { %933 = vmatmul.mubr.f32.gmra.mrb[6].mxu1 %v8552_v38  ;;  %7166 = vmatpush3.bf16.msra.mxu0 %v7165_v35  ;;  %v7205_v9 = vpack.c.bf16 %v713_v62, %v712_v61  ;;  %v683_v11 = vld [vmem:[#allocation10 + $0x268] sm:$0xff]  ;;  %v8571_v13 = vld [vmem:[#allocation2 + $0x31] sm:$0xff]  ;;  %v7207_v18 = vpack.c.bf16 %v731_v6, %v730_v5  ;;  %v700_v20 = vld [vmem:[#allocation10 + $0x2f0] sm:$0xff] }
 0x110   : > { %7198 = vmatpush3.bf16.msra.mxu1 %v7197_v40  ;;  %834 = vmatprep.mubr.f32.mxu0 %v8555_v43  ;;  %v714_v16 = vld [vmem:[#allocation10 + $0x360] sm:$0xff]  ;;  %v715_v17 = vld [vmem:[#allocation10 + $0x368] sm:$0xff]  ;;  %v701_v21 = vld [vmem:[#allocation10 + $0x2f8] sm:$0xff]  ;;  %v7177_v22 = vpack.c.bf16 %v683_v11, %v682_v10 }
 0x111   : > { %937 = vmatprep.mubr.f32.mxu1 %v8524_v3  ;;  %7168 = vmatprep.subr.bf16.mxu0 %v7167_v44  ;;  %v732_v23 = vld [vmem:[#allocation10 + $0x3f0] sm:$0xff]  ;;  %v733_v19 = vld [vmem:[#allocation10 + $0x3f8] sm:$0xff]  ;;  %v7209_v26 = vpack.c.bf16 %v715_v17, %v714_v16  ;;  %v8579_v32 = vld [vmem:[#allocation2 + $0x39] sm:$0xff]  ;;  %v7179_v33 = vpack.c.bf16 %v701_v21, %v700_v20 }
 0x112   : > { %835 = vmatmul.mubr.f32.gmra.mrb[8].mxu0 %v8517_v51  ;;  %7200 = vmatprep.subr.bf16.mxu1 %v7199_v47  ;;  %v8576_v25 = vld [vmem:[#allocation2 + $0x32] sm:$0xff]  ;;  %v684_v29 = vld [vmem:[#allocation10 + $0x270] sm:$0xff]  ;;  %v7211_v36 = vpack.c.bf16 %v733_v19, %v732_v23  ;;  %v735_v40 = vld [vmem:[#allocation10 + $0x408] sm:$0xff] }
 0x113   : > { %938 = vmatmul.mubr.f32.gmra.mrb[8].mxu1 %v8560_v54  ;;  %7170 = vmatpush3.bf16.msra.mxu0 %v7169_v50  ;;  %v685_v30 = vld [vmem:[#allocation10 + $0x278] sm:$0xff]  ;;  %v716_v34 = vld [vmem:[#allocation10 + $0x370] sm:$0xff]  ;;  %v734_v37 = vld [vmem:[#allocation10 + $0x400] sm:$0xff] }
 0x114   : > { %7202 = vmatpush3.bf16.msra.mxu1 %v7201_v55  ;;  %839 = vmatprep.mubr.f32.mxu0 %v8563_v58  ;;  %v717_v35 = vld [vmem:[#allocation10 + $0x378] sm:$0xff]  ;;  %v7181_v41 = vpack.c.bf16 %v685_v30, %v684_v29  ;;  %v8584_v42 = vld [vmem:[#allocation2 + $0x3a] sm:$0xff]  ;;  %v7215_v45 = vpack.c.bf16 %v735_v40, %v734_v37  ;;  %v736_v48 = vld [vmem:[#allocation10 + $0x410] sm:$0xff] }
 0x115   : > { %942 = vmatprep.mubr.f32.mxu1 %v8534_v15  ;;  %7172 = vmatprep.subr.bf16.mxu0 %v7171_v60  ;;  %v7213_v44 = vpack.c.bf16 %v717_v35, %v716_v34  ;;  %v1506_v46 = vld [vmem:[#allocation11 + $0x100] sm:$0xff]  ;;  %v1507_v47 = vld [vmem:[#allocation11 + $0x108] sm:$0xff]  ;;  %v737_v49 = vld [vmem:[#allocation10 + $0x418] sm:$0xff] }
 0x116   : > { %840 = vmatmul.mubr.f32.gmra.mrb[10].mxu0 %v8524_v3  ;;  %7204 = vmatprep.subr.bf16.mxu1 %v7203_v63  ;;  %v7296_v50 = vpack.c.bf16 %v1507_v47, %v1506_v46  ;;  %v7219_v52 = vpack.c.bf16 %v737_v49, %v736_v48  ;;  %v1508_v53 = vld [vmem:[#allocation11 + $0x110] sm:$0xff]  ;;  %v1509_v55 = vld [vmem:[#allocation11 + $0x118] sm:$0xff]  ;;  %v738_v57 = vld [vmem:[#allocation10 + $0x420] sm:$0xff] }
 0x117   : > { %943 = vmatmul.mubr.f32.gmra.mrb[10].mxu1 %v8568_v7  ;;  %7174 = vmatpush3.bf16.msra.mxu0 %v7173_v4  ;;  %v739_v60 = vld [vmem:[#allocation10 + $0x428] sm:$0xff]  ;;  %v8594_v61 = vld [vmem:[%s8462_s7 + $0x10] sm:$0xff]  ;;  %v8608_v63 = vld [vmem:[%s8462_s7 + $0x18] sm:$0xff] }
 0x118   : > { %7206 = vmatpush3.bf16.msra.mxu1 %v7205_v9  ;;  %844 = vmatprep.mubr.f32.mxu0 %v8571_v13  ;;  %1331 = vst [vmem:[#allocation3 + $0x10] sm:$0xff] %v8594_v61  ;;  %v8602_v62 = vld [vmem:[%s8462_s7 + $0x8] sm:$0xff]  ;;  %v7223_v1 = vpack.c.bf16 %v739_v60, %v738_v57  ;;  %v1510_v2 = vld [vmem:[#allocation11 + $0x120] sm:$0xff]  ;;  %1332 = vst [vmem:[#allocation3 + $0x18] sm:$0xff] %v8608_v63 }
 0x119   : > { %947 = vmatprep.mubr.f32.mxu1 %v8546_v31  ;;  %7176 = vmatprep.subr.bf16.mxu0 %v7175_v14  ;;  %1330 = vst [vmem:[#allocation3 + $0x8] sm:$0xff] %v8602_v62  ;;  %v1511_v4 = vld [vmem:[#allocation11 + $0x128] sm:$0xff]  ;;  %v740_v6 = vld [vmem:[#allocation10 + $0x430] sm:$0xff]  ;;  %v741_v9 = vld [vmem:[#allocation10 + $0x438] sm:$0xff] }
 0x11a   : > { %845 = vmatmul.mubr.f32.gmra.mrb[12].mxu0 %v8534_v15  ;;  %7208 = vmatprep.subr.bf16.mxu1 %v7207_v18  ;;  %v8617_v5 = vld [vmem:[%s8462_s7 + $0x28] sm:$0xff]  ;;  %v8623_v10 = vld [vmem:[%s8462_s7 + $0x30] sm:$0xff]  ;;  %v8628_v11 = vld [vmem:[%s8462_s7 + $0x38] sm:$0xff] }
 0x11b   : > { %948 = vmatmul.mubr.f32.gmra.mrb[12].mxu1 %v8576_v25  ;;  %7178 = vmatpush3.bf16.msra.mxu0 %v7177_v22  ;;  %1334 = vst [vmem:[#allocation3 + $0x28] sm:$0xff] %v8617_v5  ;;  %1335 = vst [vmem:[#allocation3 + $0x30] sm:$0xff] %v8623_v10  ;;  %v8631_v14 = vld [vmem:[%s8462_s7 + $0x40] sm:$0xff]  ;;  %v8637_v16 = vld [vmem:[%s8462_s7 + $0x48] sm:$0xff] }
 0x11c   : > { %7210 = vmatpush3.bf16.msra.mxu1 %v7209_v26  ;;  %848 = vmatprep.mubr.f32.mxu0 %v8579_v32  ;;  %1336 = vst [vmem:[#allocation3 + $0x38] sm:$0xff] %v8628_v11  ;;  %1337 = vst [vmem:[#allocation3 + $0x40] sm:$0xff] %v8631_v14  ;;  %v8640_v17 = vld [vmem:[%s8462_s7 + $0x50] sm:$0xff]  ;;  %v1513_v20 = vld [vmem:[#allocation11 + $0x138] sm:$0xff] }
 0x11d   : > { %951 = vmatprep.mubr.f32.mxu1 %v8101_v0  ;;  %7180 = vmatprep.subr.bf16.mxu0 %v7179_v33  ;;  %v1512_v18 = vld [vmem:[#allocation11 + $0x130] sm:$0xff]  ;;  %1338 = vst [vmem:[#allocation3 + $0x48] sm:$0xff] %v8637_v16  ;;  %1339 = vst [vmem:[#allocation3 + $0x50] sm:$0xff] %v8640_v17  ;;  %v8646_v21 = vld [vmem:[%s8462_s7 + $0x58] sm:$0xff] }
 0x11e   : > { %849 = vmatmul.mubr.f32.gmra.mrb[14].mxu0 %v8546_v31  ;;  %7212 = vmatprep.subr.bf16.mxu1 %v7211_v36  ;;  %v742_v22 = vld [vmem:[#allocation10 + $0x440] sm:$0xff]  ;;  %v743_v23 = vld [vmem:[#allocation10 + $0x448] sm:$0xff]  ;;  %1340 = vst [vmem:[#allocation3 + $0x58] sm:$0xff] %v8646_v21  ;;  %v8662_v29 = vld [vmem:[%s8462_s7 + $0x70] sm:$0xff] }
 0x11f   : > { %952 = vmatmul.mubr.f32.gmra.mrb[14].mxu1 %v8584_v42  ;;  %7182 = vmatpush3.bf16.msra.mxu0 %v7181_v41  ;;  %v8652_v19 = vld [vmem:[%s8462_s7 + $0x60] sm:$0xff]  ;;  %v8657_v26 = vld [vmem:[%s8462_s7 + $0x68] sm:$0xff]  ;;  %v7231_v30 = vpack.c.bf16 %v743_v23, %v742_v22  ;;  %v744_v34 = vld [vmem:[#allocation10 + $0x450] sm:$0xff]  ;;  %1343 = vst [vmem:[#allocation3 + $0x70] sm:$0xff] %v8662_v29 }
 0x120   : > { %7214 = vmatpush3.bf16.msra.mxu1 %v7213_v44  ;;  %1020 = vmatprep.mubr.f32.mxu0 %v8528_v8  ;;  %v8599_v8 = vld [vmem:[%s8462_s7] sm:$0xff]  ;;  %1341 = vst [vmem:[#allocation3 + $0x60] sm:$0xff] %v8652_v19  ;;  %1342 = vst [vmem:[#allocation3 + $0x68] sm:$0xff] %v8657_v26  ;;  %v745_v35 = vld [vmem:[#allocation10 + $0x458] sm:$0xff] }
 0x121   : > { %1123 = vmatprep.mubr.f32.mxu1 %v8531_v12  ;;  %7216 = vmatprep.subr.bf16.mxu0 %v7215_v45  ;;  %1329 = vst [vmem:[#allocation3] sm:$0xff] %v8599_v8  ;;  %v1514_v33 = vld [vmem:[#allocation11 + $0x140] sm:$0xff]  ;;  %v8669_v36 = vld [vmem:[%s8462_s7 + $0x78] sm:$0xff]  ;;  %v1516_v40 = vld [vmem:[#allocation11 + $0x150] sm:$0xff]  ;;  %v7235_v41 = vpack.c.bf16 %v745_v35, %v744_v34 }
 0x122   : > { %1021 = vmatmul.mubr.f32.vlgmr.msra.gmra.mrb[16].mxu0 %v8520_v59  ;;  %7295 = vmatprep.subr.bf16.mxu1 %v13397_v56  ;;  %v7299_v59 = vpack.c.bf16 %v1509_v55, %v1508_v53  ;;  %v8672_v37 = vld [vmem:[%s8462_s7 + $0x80] sm:$0xff]  ;;  %1344 = vst [vmem:[#allocation3 + $0x78] sm:$0xff] %v8669_v36  ;;  %v1517_v44 = vld [vmem:[#allocation11 + $0x158] sm:$0xff]  ;;  %v8683_v46 = vld [vmem:[%s8462_s7 + $0x90] sm:$0xff] }
 0x123   : > { %1124 = vmatmul.mubr.f32.vlgmr.msra.gmra.mrb[16].mxu1 %v8509_v27  ;;  %7218 = vmatpush3.bf16.msra.mxu0 %v7215_v45  ;;  %v8611_v27 = vld [vmem:[%s8462_s7 + $0x20] sm:$0xff]  ;;  %1345 = vst [vmem:[#allocation3 + $0x80] sm:$0xff] %v8672_v37  ;;  %v8680_v45 = vld [vmem:[%s8462_s7 + $0x88] sm:$0xff]  ;;  %1347 = vst [vmem:[#allocation3 + $0x90] sm:$0xff] %v8683_v46  ;;  %v7311_v48 = vpack.c.bf16 %v1517_v44, %v1516_v40 }
 0x124   : > { %7297 = vmatpush1.bf16.msra.mxu1 %v7296_v50  ;;  %1025 = vmatprep.mubr.f32.mxu0 %v8540_v24  ;;  %1333 = vst [vmem:[#allocation3 + $0x20] sm:$0xff] %v8611_v27  ;;  %v747_v47 = vld [vmem:[#allocation10 + $0x468] sm:$0xff]  ;;  %1346 = vst [vmem:[#allocation3 + $0x88] sm:$0xff] %v8680_v45  ;;  %v1518_v49 = vld [vmem:[#allocation11 + $0x160] sm:$0xff] }
 0x125   : > { %7220 = vmatprep.subr.bf16.mxu0 %v7219_v52  ;;  %7298 = vmatprep.subr.bf16.mxu1 %v13397_v56  ;;  %v1519_v50 = vld [vmem:[#allocation11 + $0x168] sm:$0xff]  ;;  %v748_v53 = vld [vmem:[#allocation10 + $0x470] sm:$0xff]  ;;  %v749_v55 = vld [vmem:[#allocation10 + $0x478] sm:$0xff] }
 0x126   : > { %1026 = vmatmul.mubr.f32.gmra.mrb[18].mxu0 %v8531_v12  ;;  %1128 = vmatprep.mubr.f32.mxu1 %v8543_v28  ;;  %v7302_v12 = vpack.c.bf16 %v1511_v4, %v1510_v2  ;;  %v8697_v57 = vld [vmem:[%s8462_s7 + $0xa0] sm:$0xff]  ;;  %v7314_v60 = vpack.c.bf16 %v1519_v50, %v1518_v49  ;;  %v601_v2 = vld [vmem:[#allocation2 + $0x41] sm:$0xff]  ;;  %v1521_v4 = vld [vmem:[#allocation11 + $0x178] sm:$0xff] }
 0x127   : > { %7222 = vmatpush3.bf16.msra.mxu0 %v7219_v52  ;;  %1129 = vmatmul.mubr.f32.gmra.mrb[18].mxu1 %v8513_v39  ;;  %v7227_v39 = vpack.c.bf16 %v741_v9, %v740_v6  ;;  %1349 = vst [vmem:[#allocation3 + $0xa0] sm:$0xff] %v8697_v57  ;;  %v604_v6 = vld [vmem:[#allocation2 + $0x49] sm:$0xff]  ;;  %v1523_v22 = vld [vmem:[#allocation11 + $0x188] sm:$0xff]  ;;  %v1478_v44 = vld [vmem:[#allocation11 + $0x20] sm:$0xff] }
 0x128   : > { %7300 = vmatpush1.bf16.msra.mxu1 %v7299_v59  ;;  %1030 = vmatprep.mubr.f32.mxu0 %v8552_v38  ;;  %v8707_v59 = vld [vmem:[#allocation2 + $0x42] sm:$0xff]  ;;  %v8718_v9 = vld [vmem:[%s8462_s7 + $0xb8] sm:$0xff] }
 0x129   : > { %7224 = vmatprep.subr.bf16.mxu0 %v7223_v1  ;;  %7301 = vmatprep.subr.bf16.mxu1 %v13397_v56  ;;  %1352 = vst [vmem:[#allocation3 + $0xb8] sm:$0xff] %v8718_v9  ;;  %v8728_v23 = vld [vmem:[%s8462_s7 + $0xc8] sm:$0xff]  ;;  %v1524_v34 = vld [vmem:[#allocation11 + $0x190] sm:$0xff]  ;;  %v1525_v35 = vld [vmem:[#allocation11 + $0x198] sm:$0xff] }
 0x12a   : > { %1031 = vmatmul.mubr.f32.gmra.mrb[20].mxu0 %v8543_v28  ;;  %1133 = vmatprep.mubr.f32.mxu1 %v8555_v43  ;;  %v7305_v28 = vpack.c.bf16 %v1513_v20, %v1512_v18  ;;  %v1475_v18 = vld [vmem:[#allocation11 + $0x8] sm:$0xff]  ;;  %v8722_v20 = vld [vmem:[%s8462_s7 + $0xc0] sm:$0xff]  ;;  %1354 = vst [vmem:[#allocation3 + $0xc8] sm:$0xff] %v8728_v23  ;;  %v1480_v50 = vld [vmem:[#allocation11 + $0x30] sm:$0xff] }
 0x12b   : > { %7226 = vmatpush3.bf16.msra.mxu0 %v7223_v1  ;;  %1134 = vmatmul.mubr.f32.gmra.mrb[20].mxu1 %v8517_v51  ;;  %v1515_v51 = vld [vmem:[#allocation11 + $0x148] sm:$0xff]  ;;  %v7243_v1 = vpack.c.bf16 %v749_v55, %v748_v53  ;;  %1353 = vst [vmem:[#allocation3 + $0xc0] sm:$0xff] %v8722_v20  ;;  %v1528_v53 = vld [vmem:[#allocation11 + $0x1b0] sm:$0xff] }
 0x12c   : > { %7303 = vmatpush1.bf16.msra.mxu1 %v7302_v12  ;;  %1035 = vmatprep.mubr.f32.mxu0 %v8560_v54  ;;  %v8760_v55 = vld [vmem:[%s8462_s7 + $0xe8] sm:$0xff] }
 0x12d   : > { %7228 = vmatprep.subr.bf16.mxu0 %v7227_v39  ;;  %7304 = vmatprep.subr.bf16.mxu1 %v13397_v56  ;;  %1358 = vst [vmem:[#allocation3 + $0xe8] sm:$0xff] %v8760_v55 }
 0x12e   : > { %1036 = vmatmul.mubr.f32.gmra.mrb[22].mxu0 %v8555_v43  ;;  %1138 = vmatprep.mubr.f32.mxu1 %v8563_v58  ;;  %v7308_v43 = vpack.c.bf16 %v1515_v51, %v1514_v33  ;;  %v1477_v51 = vld [vmem:[#allocation11 + $0x18] sm:$0xff] }
 0x12f   : > { %7230 = vmatpush3.bf16.msra.mxu0 %v7227_v39  ;;  %1139 = vmatmul.mubr.f32.gmra.mrb[22].mxu1 %v8524_v3  ;;  %v746_v3 = vld [vmem:[#allocation10 + $0x460] sm:$0xff] }
 0x130   : > { %7306 = vmatpush1.bf16.msra.mxu1 %v7305_v28  ;;  %1040 = vmatprep.mubr.f32.mxu0 %v8568_v7  ;;  %v7239_v52 = vpack.c.bf16 %v747_v47, %v746_v3  ;;  %v1474_v39 = vld [vmem:[#allocation11] sm:$0xff]  ;;  %v1479_v3 = vld [vmem:[#allocation11 + $0x28] sm:$0xff] }
 0x131   : > { %7232 = vmatprep.subr.bf16.mxu0 %v7231_v30  ;;  %7307 = vmatprep.subr.bf16.mxu1 %v13397_v56  ;;  %v7248_v28 = vpack.c.bf16 %v1475_v18, %v1474_v39  ;;  %v1527_v47 = vld [vmem:[#allocation11 + $0x1a8] sm:$0xff]  ;;  %v1485_v39 = vld [vmem:[#allocation11 + $0x58] sm:$0xff]  ;;  %v1532_v18 = vld [vmem:[#allocation11 + $0x1d0] sm:$0xff] }
 0x132   : > { %1041 = vmatmul.mubr.f32.gmra.mrb[24].mxu0 %v8563_v58  ;;  %1143 = vmatprep.mubr.f32.mxu1 %v8571_v13  ;;  %v8692_v58 = vld [vmem:[%s8462_s7 + $0x98] sm:$0xff] }
 0x133   : > { %7234 = vmatpush3.bf16.msra.mxu0 %v7231_v30  ;;  %1144 = vmatmul.mubr.f32.gmra.mrb[24].mxu1 %v8534_v15  ;;  %1348 = vst [vmem:[#allocation3 + $0x98] sm:$0xff] %v8692_v58  ;;  %v8704_v15 = vld [vmem:[%s8462_s7 + $0xa8] sm:$0xff]  ;;  %v8733_v30 = vld [vmem:[%s8462_s7 + $0xd0] sm:$0xff] }
 0x134   : > { %7309 = vmatpush1.bf16.msra.mxu1 %v7308_v43  ;;  %1045 = vmatprep.mubr.f32.mxu0 %v8576_v25  ;;  %1350 = vst [vmem:[#allocation3 + $0xa8] sm:$0xff] %v8704_v15  ;;  %1355 = vst [vmem:[#allocation3 + $0xd0] sm:$0xff] %v8733_v30  ;;  %v8738_v43 = vld [vmem:[#allocation2 + $0x40] sm:$0xff] }
 0x135   : > { %7236 = vmatprep.subr.bf16.mxu0 %v7235_v41  ;;  %7310 = vmatprep.subr.bf16.mxu1 %v13397_v56 }
 0x136   : > { %1046 = vmatmul.mubr.f32.gmra.mrb[26].mxu0 %v8571_v13  ;;  %1148 = vmatprep.mubr.f32.mxu1 %v8579_v32  ;;  %v8711_v13 = vld [vmem:[%s8462_s7 + $0xb0] sm:$0xff] }
 0x137   : > { %7238 = vmatpush3.bf16.msra.mxu0 %v7235_v41  ;;  %1149 = vmatmul.mubr.f32.gmra.mrb[26].mxu1 %v8546_v31  ;;  %v1520_v31 = vld [vmem:[#allocation11 + $0x170] sm:$0xff]  ;;  %1351 = vst [vmem:[#allocation3 + $0xb0] sm:$0xff] %v8711_v13  ;;  %v7323_v41 = vpack.c.bf16 %v1525_v35, %v1524_v34  ;;  %v1534_v34 = vld [vmem:[#allocation11 + $0x1e0] sm:$0xff]  ;;  %v1535_v35 = vld [vmem:[#allocation11 + $0x1e8] sm:$0xff] }
 0x138   : > { %7312 = vmatpush1.bf16.msra.mxu1 %v7311_v48  ;;  %1050 = vmatprep.mubr.f32.mxu0 %v8584_v42  ;;  %v7317_v12 = vpack.c.bf16 %v1521_v4, %v1520_v31  ;;  %v8753_v48 = vld [vmem:[%s8462_s7 + $0xe0] sm:$0xff]  ;;  %v1531_v4 = vld [vmem:[#allocation11 + $0x1c8] sm:$0xff] }
 0x139   : > { %7240 = vmatprep.subr.bf16.mxu0 %v7239_v52  ;;  %7313 = vmatprep.subr.bf16.mxu1 %v13397_v56  ;;  %1357 = vst [vmem:[#allocation3 + $0xe0] sm:$0xff] %v8753_v48  ;;  %v1530_v31 = vld [vmem:[#allocation11 + $0x1c0] sm:$0xff] }
 0x13a   : > { %1051 = vmatmul.mubr.f32.gmra.mrb[28].mxu0 %v8579_v32  ;;  %1153 = vmatprep.mubr.f32.mxu1 %v601_v2  ;;  %v1522_v32 = vld [vmem:[#allocation11 + $0x180] sm:$0xff] }
 0x13b   : > { %7242 = vmatpush3.bf16.msra.mxu0 %v7239_v52  ;;  %1054 = vmatprep.mubr.f32.mxu0 %v8707_v59  ;;  %v7320_v33 = vpack.c.bf16 %v1523_v22, %v1522_v32  ;;  %v1481_v52 = vld [vmem:[#allocation11 + $0x38] sm:$0xff] }
 0x13c   : > { %7315 = vmatpush1.bf16.msra.mxu1 %v7314_v60  ;;  %7244 = vmatprep.subr.bf16.mxu0 %v7243_v1  ;;  %v1533_v32 = vld [vmem:[#allocation11 + $0x1d8] sm:$0xff] }
 0x13d   : > { %7316 = vmatprep.subr.bf16.mxu1 %v13397_v56  ;;  %1154 = vmatmul.mubr.f32.gmra.mrb[28].mxu1 %v8101_v0  ;;  %v1476_v0 = vld [vmem:[#allocation11 + $0x10] sm:$0xff]  ;;  %v8773_v22 = vld [vmem:[%s8462_s7 + $0xf8] sm:$0xff] }
 0x13e   : > { %1055 = vmatmul.mubr.f32.gmra.mrb[30].mxu0 %v601_v2  ;;  %1157 = vmatprep.mubr.f32.mxu1 %v604_v6  ;;  %v7251_v40 = vpack.c.bf16 %v1477_v51, %v1476_v0  ;;  %v1483_v2 = vld [vmem:[#allocation11 + $0x48] sm:$0xff]  ;;  %1360 = vst [vmem:[#allocation3 + $0xf8] sm:$0xff] %v8773_v22  ;;  %v1486_v0 = vld [vmem:[#allocation11 + $0x60] sm:$0xff] }
 0x13f   : > { %7246 = vmatpush3.bf16.msra.mxu0 %v7243_v1  ;;  %6835 = vmatprep.mubr.f32.mxu0 %v8540_v24  ;;  %v8744_v24 = vld [vmem:[%s8462_s7 + $0xd8] sm:$0xff]  ;;  %v1482_v1 = vld [vmem:[#allocation11 + $0x40] sm:$0xff]  ;;  %v1487_v51 = vld [vmem:[#allocation11 + $0x68] sm:$0xff] }
 0x140   : > { %7318 = vmatpush1.bf16.msra.mxu1 %v7317_v12  ;;  %7247 = vmatprep.subr.bf16.mxu0 %v13397_v56  ;;  %1356 = vst [vmem:[#allocation3 + $0xd8] sm:$0xff] %v8744_v24  ;;  %v7260_v6 = vpack.c.bf16 %v1483_v2, %v1482_v1  ;;  %v1484_v12 = vld [vmem:[#allocation11 + $0x50] sm:$0xff]  ;;  %v1430_v1 = vld [vmem:[#allocation3 + $0x2] sm:$0xff] }
 0x141   : > { %7319 = vmatprep.subr.bf16.mxu1 %v13397_v56  ;;  %1158 = vmatmul.mubr.f32.gmra.mrb[30].mxu1 %v8738_v43 }
 0x142   : > { %6836 = vmatmul.mubr.f32.vlgmr.msra.gmra.mrb[32].mxu0 %v8552_v38  ;;  %1907 = vmatprep.mubr.f32.mxu1 %v8594_v61  ;;  %v1526_v38 = vld [vmem:[#allocation11 + $0x1a0] sm:$0xff] }
 0x143   : > { %6838 = vmatprep.mubr.f32.mxu0 %v8560_v54  ;;  %7249 = vmatpush1.bf16.msra.mxu0 %v7248_v28  ;;  %v7254_v54 = vpack.c.bf16 %v1479_v3, %v1478_v44  ;;  %v7326_v49 = vpack.c.bf16 %v1527_v47, %v1526_v38  ;;  %v7263_v28 = vpack.c.bf16 %v1485_v39, %v1484_v12  ;;  %v1488_v44 = vld [vmem:[#allocation11 + $0x70] sm:$0xff]  ;;  %v1489_v3 = vld [vmem:[#allocation11 + $0x78] sm:$0xff]  ;;  %v1398_v39 = vld [vmem:[#allocation3 + $0x1] sm:$0xff] }
 0x144   : > { %7321 = vmatpush1.bf16.msra.mxu1 %v7320_v33  ;;  %7250 = vmatprep.subr.bf16.mxu0 %v13397_v56  ;;  %v7335_v33 = vpack.c.bf16 %v1533_v32, %v1532_v18  ;;  %v1536_v38 = vld [vmem:[#allocation11 + $0x1f0] sm:$0xff]  ;;  %v1537_v47 = vld [vmem:[#allocation11 + $0x1f8] sm:$0xff] }
 0x145   : > { %7322 = vmatprep.subr.bf16.mxu1 %v13397_v56  ;;  %v1431_v18 = vld [vmem:[#allocation3 + $0xa] sm:$0xff] }
 0x146   : > { %6839 = vmatmul.mubr.f32.gmra.mrb[34].mxu0 %v8568_v7  ;;  %v1529_v7 = vld [vmem:[#allocation11 + $0x1b8] sm:$0xff] }
 0x147   : > { %6841 = vmatprep.mubr.f32.mxu0 %v8576_v25  ;;  %7252 = vmatpush1.bf16.msra.mxu0 %v7251_v40  ;;  %v7257_v25 = vpack.c.bf16 %v1481_v52, %v1480_v50  ;;  %v7329_v60 = vpack.c.bf16 %v1529_v7, %v1528_v53  ;;  %v7266_v40 = vpack.c.bf16 %v1487_v51, %v1486_v0  ;;  %v1490_v50 = vld [vmem:[#allocation11 + $0x80] sm:$0xff]  ;;  %v1491_v52 = vld [vmem:[#allocation11 + $0x88] sm:$0xff] }
 0x148   : > { %7324 = vmatpush1.bf16.msra.mxu1 %v7323_v41  ;;  %7253 = vmatprep.subr.bf16.mxu0 %v13397_v56  ;;  %v7338_v41 = vpack.c.bf16 %v1535_v35, %v1534_v34  ;;  %v1538_v53 = vld [vmem:[#allocation11 + $0x200] sm:$0xff]  ;;  %v1539_v7 = vld [vmem:[#allocation11 + $0x208] sm:$0xff]  ;;  %v8788_v35 = vld [vmem:[#allocation3 + $0x12] sm:$0xff] }
 0x149   : > { %7325 = vmatprep.subr.bf16.mxu1 %v13397_v56  ;;  %v7344_v2 = vpack.c.bf16 %v1539_v7, %v1538_v53  ;;  %v1542_v0 = vld [vmem:[#allocation11 + $0x220] sm:$0xff]  ;;  %v1543_v51 = vld [vmem:[#allocation11 + $0x228] sm:$0xff] }
 0x14a   : > { %6842 = vmatmul.mubr.f32.gmra.mrb[36].mxu0 %v8584_v42  ;;  %v8767_v42 = vld [vmem:[%s8462_s7 + $0xf0] sm:$0xff]  ;;  %v1546_v53 = vld [vmem:[#allocation11 + $0x240] sm:$0xff]  ;;  %v1547_v7 = vld [vmem:[#allocation11 + $0x248] sm:$0xff]  ;;  %s8009_s7 = scalar_lea.vmem %s13325_s24, 4096 }
 0x14b   : > { %7255 = vmatpush1.bf16.msra.mxu0 %v7254_v54  ;;  %6844 = vmatprep.mubr.f32.mxu0 %v8707_v59  ;;  %1359 = vst [vmem:[#allocation3 + $0xf0] sm:$0xff] %v8767_v42  ;;  %v7332_v59 = vpack.c.bf16 %v1531_v4, %v1530_v31  ;;  %v7269_v54 = vpack.c.bf16 %v1489_v3, %v1488_v44  ;;  %v1492_v31 = vld [vmem:[#allocation11 + $0x90] sm:$0xff]  ;;  %v1493_v4 = vld [vmem:[#allocation11 + $0x98] sm:$0xff]  ;;  %p8010_p0 = scmp.ne.s32.totalorder %s13325_s24, %s8009_s7 }
 0x14c   : > { %7327 = vmatpush1.bf16.msra.mxu1 %v7326_v49  ;;  %7256 = vmatprep.subr.bf16.mxu0 %v13397_v56  ;;  %v7341_v49 = vpack.c.bf16 %v1537_v47, %v1536_v38  ;;  %v7275_v12 = vpack.c.bf16 %v1493_v4, %v1492_v31  ;;  %v1497_v44 = vld [vmem:[#allocation11 + $0xb8] sm:$0xff]  ;;  %v1544_v3 = vld [vmem:[#allocation11 + $0x230] sm:$0xff] }
 0x14d   : > { %7328 = vmatprep.subr.bf16.mxu1 %v13397_v56  ;;  %v1545_v38 = vld [vmem:[#allocation11 + $0x238] sm:$0xff]  ;;  %v1548_v4 = vld [vmem:[#allocation11 + $0x250] sm:$0xff]  ;;  %p8011_p4 = pnand %p8010_p0, %p8347_p10 }
 0x14e   : > { %v1501_v31 = vld [vmem:[#allocation11 + $0xd8] sm:$0xff] }
 0x14f   : > { %7258 = vmatpush1.bf16.msra.mxu0 %v7257_v25  ;;  %v7272_v25 = vpack.c.bf16 %v1491_v52, %v1490_v50  ;;  %v1498_v50 = vld [vmem:[#allocation11 + $0xc0] sm:$0xff]  ;;  %v1499_v52 = vld [vmem:[#allocation11 + $0xc8] sm:$0xff]  ;;  %p8012_p6 = pneg %p8011_p4 }
 0x150   : > { %7330 = vmatpush1.bf16.msra.mxu1 %v7329_v60  ;;  %7259 = vmatprep.subr.bf16.mxu0 %v13397_v56  ;;  %v605_v60 = vld [vmem:[#allocation2 + $0x4a] sm:$0xff] }
 0x151   : > { %7331 = vmatprep.subr.bf16.mxu1 %v13397_v56  ;;  %6845 = vmatmul.mubr.f32.gmra.mrb[38].mxu0 %v605_v60  ;;  %v8800_v60 = vld [vmem:[#allocation3 + $0x22] sm:$0xff] }
 0x152   : > { %1682 = vmatprep.mubr.f32.mxu0 %v1398_v39 }
 0x153   : > { %7261 = vmatpush1.bf16.msra.mxu0 %v7260_v6  ;;  %v1540_v6 = vld [vmem:[#allocation11 + $0x210] sm:$0xff] }
 0x154   : > { %7333 = vmatpush1.bf16.msra.mxu1 %v7332_v59  ;;  %7262 = vmatprep.subr.bf16.mxu0 %v13397_v56  ;;  %v1541_v59 = vld [vmem:[#allocation11 + $0x218] sm:$0xff] }
 0x155   : > { %7334 = vmatprep.subr.bf16.mxu1 %v13397_v56  ;;  %v7347_v32 = vpack.c.bf16 %v1541_v59, %v1540_v6  ;;  %v1549_v6 = vld [vmem:[#allocation11 + $0x258] sm:$0xff] }
 0x156   : > { %v7359_v39 = vpack.c.bf16 %v1549_v6, %v1548_v4  ;;  %v1558_v6 = vld [vmem:[#allocation11 + $0x2a0] sm:$0xff] }
 0x157   : > { %7264 = vmatpush1.bf16.msra.mxu0 %v7263_v28  ;;  %v1494_v28 = vld [vmem:[#allocation11 + $0xa0] sm:$0xff] }
 0x158   : > { %7336 = vmatpush1.bf16.msra.mxu1 %v7335_v33  ;;  %7265 = vmatprep.subr.bf16.mxu0 %v13397_v56  ;;  %v1495_v33 = vld [vmem:[#allocation11 + $0xa8] sm:$0xff] }
 0x159   : > { %7337 = vmatprep.subr.bf16.mxu1 %v13397_v56  ;;  %v7278_v34 = vpack.c.bf16 %v1495_v33, %v1494_v28  ;;  %v1550_v28 = vld [vmem:[#allocation11 + $0x260] sm:$0xff]  ;;  %v1551_v33 = vld [vmem:[#allocation11 + $0x268] sm:$0xff] }
 0x15b   : > { %7267 = vmatpush1.bf16.msra.mxu0 %v7266_v40  ;;  %v7350_v40 = vpack.c.bf16 %v1543_v51, %v1542_v0  ;;  %v8812_v51 = vld [vmem:[#allocation3 + $0x32] sm:$0xff] }
 0x15c   : > { %7339 = vmatpush1.bf16.msra.mxu1 %v7338_v41  ;;  %7268 = vmatprep.subr.bf16.mxu0 %v13397_v56  ;;  %v1496_v41 = vld [vmem:[#allocation11 + $0xb0] sm:$0xff] }
 0x15d   : > { %7340 = vmatprep.subr.bf16.mxu1 %v13397_v56  ;;  %v7281_v47 = vpack.c.bf16 %v1497_v44, %v1496_v41  ;;  %v1505_v41 = vld [vmem:[#allocation11 + $0xf8] sm:$0xff]  ;;  %v1552_v44 = vld [vmem:[#allocation11 + $0x270] sm:$0xff] }
 0x15f   : > { %7270 = vmatpush1.bf16.msra.mxu0 %v7269_v54  ;;  %v8794_v54 = vld [vmem:[#allocation3 + $0x1a] sm:$0xff] }
 0x160   : > { %7342 = vmatpush1.bf16.msra.mxu1 %v7341_v49  ;;  %7271 = vmatprep.subr.bf16.mxu0 %v13397_v56  ;;  %v7353_v49 = vpack.c.bf16 %v1545_v38, %v1544_v3  ;;  %v1553_v3 = vld [vmem:[#allocation11 + $0x278] sm:$0xff] }
 0x161   : > { %7343 = vmatprep.subr.bf16.mxu1 %v13397_v56 }
 0x163   : > { %1908 = vmatmul.mubr.f32.vlgmr.msra.gmra.mrb[32].mxu1 %v1430_v1  ;;  %7273 = vmatpush1.bf16.msra.mxu0 %v7272_v25  ;;  %v7284_v25 = vpack.c.bf16 %v1499_v52, %v1498_v50  ;;  %v7356_v1 = vpack.c.bf16 %v1547_v7, %v1546_v53  ;;  %v1554_v50 = vld [vmem:[#allocation11 + $0x280] sm:$0xff]  ;;  %v1555_v52 = vld [vmem:[#allocation11 + $0x288] sm:$0xff] }
 0x164   : > { %7345 = vmatpush1.bf16.msra.mxu1 %v7344_v2  ;;  %1912 = vmatprep.mubr.f32.mxu1 %v8608_v63  ;;  %v1500_v2 = vld [vmem:[#allocation11 + $0xd0] sm:$0xff]  ;;  %v8824_v53 = vld [vmem:[#allocation3 + $0x42] sm:$0xff]  ;;  %v7368_v7 = vpack.c.bf16 %v1555_v52, %v1554_v50 }
 0x165   : > { %7346 = vmatprep.subr.bf16.mxu1 %v13397_v56  ;;  %7274 = vmatprep.subr.bf16.mxu0 %v13397_v56  ;;  %v7287_v59 = vpack.c.bf16 %v1501_v31, %v1500_v2  ;;  %v1557_v2 = vld [vmem:[#allocation11 + $0x298] sm:$0xff]  ;;  %v8830_v31 = vld [vmem:[#allocation3 + $0x4a] sm:$0xff]  ;;  %v1566_v52 = vld [vmem:[#allocation11 + $0x2e0] sm:$0xff] }
 0x167   : > { %1913 = vmatmul.mubr.f32.gmra.mrb[34].mxu1 %v1431_v18  ;;  %7276 = vmatpush1.bf16.msra.mxu0 %v7275_v12  ;;  %v8806_v12 = vld [vmem:[#allocation3 + $0x2a] sm:$0xff]  ;;  %v1502_v18 = vld [vmem:[#allocation11 + $0xe0] sm:$0xff] }
 0x168   : > { %1917 = vmatprep.mubr.f32.mxu1 %v8611_v27  ;;  %7348 = vmatpush1.bf16.msra.mxu1 %v7347_v32  ;;  %v1503_v32 = vld [vmem:[#allocation11 + $0xe8] sm:$0xff] }
 0x169   : > { %7349 = vmatprep.subr.bf16.mxu1 %v13397_v56  ;;  %7277 = vmatprep.subr.bf16.mxu0 %v13397_v56  ;;  %v7290_v0 = vpack.c.bf16 %v1503_v32, %v1502_v18  ;;  %v1560_v32 = vld [vmem:[#allocation11 + $0x2b0] sm:$0xff] }
 0x16b   : > { %1918 = vmatmul.mubr.f32.gmra.mrb[36].mxu1 %v8788_v35  ;;  %7279 = vmatpush1.bf16.msra.mxu0 %v7278_v34  ;;  %v7362_v34 = vpack.c.bf16 %v1551_v33, %v1550_v28  ;;  %v1561_v28 = vld [vmem:[#allocation11 + $0x2b8] sm:$0xff] }
 0x16c   : > { %1922 = vmatprep.mubr.f32.mxu1 %v8617_v5  ;;  %7351 = vmatpush1.bf16.msra.mxu1 %v7350_v40  ;;  %v1504_v40 = vld [vmem:[#allocation11 + $0xf0] sm:$0xff]  ;;  %v8842_v33 = vld [vmem:[#allocation3 + $0x19] sm:$0xff] }
 0x16d   : > { %7352 = vmatprep.subr.bf16.mxu1 %v13397_v56  ;;  %7280 = vmatprep.subr.bf16.mxu0 %v13397_v56  ;;  %v7293_v38 = vpack.c.bf16 %v1505_v41, %v1504_v40  ;;  %v1563_v40 = vld [vmem:[#allocation11 + $0x2c8] sm:$0xff] }
 0x16e   : > { %v8851_v41 = vld [vmem:[#allocation3 + $0x21] sm:$0xff] }
 0x16f   : > { %1923 = vmatmul.mubr.f32.gmra.mrb[38].mxu1 %v8794_v54  ;;  %7282 = vmatpush1.bf16.msra.mxu0 %v7281_v47  ;;  %v8818_v47 = vld [vmem:[#allocation3 + $0x3a] sm:$0xff] }
 0x170   : > { %1927 = vmatprep.mubr.f32.mxu1 %v8623_v10  ;;  %7354 = vmatpush1.bf16.msra.mxu1 %v7353_v49  ;;  %v7365_v49 = vpack.c.bf16 %v1553_v3, %v1552_v44  ;;  %v1564_v3 = vld [vmem:[#allocation11 + $0x2d0] sm:$0xff] }
 0x171   : > { %7355 = vmatprep.subr.bf16.mxu1 %v13397_v56  ;;  %7283 = vmatprep.subr.bf16.mxu0 %v13397_v56 }
 0x173   : > { %1928 = vmatmul.mubr.f32.gmra.mrb[40].mxu1 %v8800_v60  ;;  %7285 = vmatpush1.bf16.msra.mxu0 %v7284_v25  ;;  %v1399_v25 = vld [vmem:[#allocation3 + $0x9] sm:$0xff] }
 0x174   : > { %1932 = vmatprep.mubr.f32.mxu1 %v8628_v11  ;;  %7357 = vmatpush1.bf16.msra.mxu1 %v7356_v1  ;;  %v1556_v1 = vld [vmem:[#allocation11 + $0x290] sm:$0xff] }
 0x175   : > { %7358 = vmatprep.subr.bf16.mxu1 %v13397_v56  ;;  %7286 = vmatprep.subr.bf16.mxu0 %v13397_v56  ;;  %v7371_v4 = vpack.c.bf16 %v1557_v2, %v1556_v1  ;;  %v1568_v2 = vld [vmem:[#allocation11 + $0x2f0] sm:$0xff] }
 0x177   : > { %1933 = vmatmul.mubr.f32.gmra.mrb[42].mxu1 %v8806_v12  ;;  %7288 = vmatpush1.bf16.msra.mxu0 %v7287_v59  ;;  %v1559_v59 = vld [vmem:[#allocation11 + $0x2a8] sm:$0xff] }
 0x178   : > { %1937 = vmatprep.mubr.f32.mxu1 %v8631_v14  ;;  %7360 = vmatpush1.bf16.msra.mxu1 %v7359_v39  ;;  %v8833_v39 = vld [vmem:[#allocation3 + $0x11] sm:$0xff]  ;;  %v7374_v18 = vpack.c.bf16 %v1559_v59, %v1558_v6  ;;  %v8878_v6 = vld [vmem:[#allocation3 + $0x39] sm:$0xff] }
 0x179   : > { %7361 = vmatprep.subr.bf16.mxu1 %v13397_v56  ;;  %7289 = vmatprep.subr.bf16.mxu0 %v13397_v56 }
 0x17b   : > { %1938 = vmatmul.mubr.f32.gmra.mrb[44].mxu1 %v8812_v51  ;;  %7291 = vmatpush1.bf16.msra.mxu0 %v7290_v0  ;;  %v7377_v0 = vpack.c.bf16 %v1561_v28, %v1560_v32  ;;  %v8896_v32 = vld [vmem:[#allocation3 + $0x49] sm:$0xff]  ;;  %v8904_v28 = vld [vmem:[#allocation3 + $0x51] sm:$0xff] }
 0x17c   : > { %1942 = vmatprep.mubr.f32.mxu1 %v8637_v16  ;;  %7363 = vmatpush1.bf16.msra.mxu1 %v7362_v34  ;;  %v1562_v34 = vld [vmem:[#allocation11 + $0x2c0] sm:$0xff] }
 0x17d   : > { %7364 = vmatprep.subr.bf16.mxu1 %v13397_v56  ;;  %7292 = vmatprep.subr.bf16.mxu0 %v13397_v56  ;;  %v7380_v44 = vpack.c.bf16 %v1563_v40, %v1562_v34  ;;  %v8918_v34 = vld [vmem:[#allocation3 + $0x9a] sm:$0xff] }
 0x17e   : > { %v1602_v40 = vld [vmem:[#allocation11 + $0x400] sm:$0xff] }
 0x17f   : > { %1943 = vmatmul.mubr.f32.gmra.mrb[46].mxu1 %v8818_v47  ;;  %7294 = vmatpush1.bf16.msra.mxu0 %v7293_v38  ;;  %v1565_v38 = vld [vmem:[#allocation11 + $0x2d8] sm:$0xff] }
 0x180   : > { %1947 = vmatprep.mubr.f32.mxu1 %v8640_v17  ;;  %7366 = vmatpush1.bf16.msra.mxu1 %v7365_v49  ;;  %v8860_v49 = vld [vmem:[#allocation3 + $0x29] sm:$0xff]  ;;  %v7383_v50 = vpack.c.bf16 %v1565_v38, %v1564_v3 }
 0x181   : > { %7367 = vmatprep.subr.bf16.mxu1 %v13397_v56  ;;  %v1604_v38 = vld [vmem:[#allocation11 + $0x410] sm:$0xff] }
 0x182   : > { %1683 = vmatmul.mubr.f32.vlgmr.msra.gmra.mrb[40].mxu0 %v8599_v8  ;;  %v8839_v8 = vld [vmem:[#allocation3 + $0x52] sm:$0xff] }
 0x183   : > { %1948 = vmatmul.mubr.f32.gmra.mrb[48].mxu1 %v8824_v53  ;;  %1687 = vmatprep.mubr.f32.mxu0 %v1399_v25  ;;  %v8869_v25 = vld [vmem:[#allocation3 + $0x31] sm:$0xff] }
 0x184   : > { %1952 = vmatprep.mubr.f32.mxu1 %v8646_v21  ;;  %7369 = vmatpush1.bf16.msra.mxu1 %v7368_v7  ;;  %v1567_v7 = vld [vmem:[#allocation11 + $0x2e8] sm:$0xff] }
 0x185   : > { %7370 = vmatprep.subr.bf16.mxu1 %v13397_v56  ;;  %v7386_v1 = vpack.c.bf16 %v1567_v7, %v1566_v52  ;;  %v8928_v52 = vld [vmem:[#allocation3 + $0x69] sm:$0xff] }
 0x186   : > { %1688 = vmatmul.mubr.f32.gmra.mrb[42].mxu0 %v8602_v62  ;;  %v8848_v62 = vld [vmem:[#allocation3 + $0x5a] sm:$0xff] }
 0x187   : > { %1953 = vmatmul.mubr.f32.gmra.mrb[50].mxu1 %v8830_v31  ;;  %1692 = vmatprep.mubr.f32.mxu0 %v8833_v39 }
 0x188   : > { %1957 = vmatprep.mubr.f32.mxu1 %v8652_v19  ;;  %7372 = vmatpush1.bf16.msra.mxu1 %v7371_v4  ;;  %v1569_v4 = vld [vmem:[#allocation11 + $0x2f8] sm:$0xff] }
 0x189   : > { %7373 = vmatprep.subr.bf16.mxu1 %v13397_v56  ;;  %v7389_v59 = vpack.c.bf16 %v1569_v4, %v1568_v2  ;;  %v8944_v2 = vld [vmem:[#allocation3 + $0x79] sm:$0xff]  ;;  %v8952_v4 = vld [vmem:[#allocation3 + $0x81] sm:$0xff] }
 0x18a   : > { %1693 = vmatmul.mubr.f32.gmra.mrb[44].mxu0 %v8594_v61  ;;  %v8857_v61 = vld [vmem:[#allocation3 + $0x62] sm:$0xff] }
 0x18b   : > { %1958 = vmatmul.mubr.f32.gmra.mrb[52].mxu1 %v8839_v8  ;;  %1697 = vmatprep.mubr.f32.mxu0 %v8842_v33 }
 0x18c   : > { %1962 = vmatprep.mubr.f32.mxu1 %v8657_v26  ;;  %7375 = vmatpush1.bf16.msra.mxu1 %v7374_v18  ;;  %v8887_v18 = vld [vmem:[#allocation3 + $0x41] sm:$0xff] }
 0x18d   : > { %7376 = vmatprep.subr.bf16.mxu1 %v13397_v56 }
 0x18e   : > { %1698 = vmatmul.mubr.f32.gmra.mrb[46].mxu0 %v8608_v63  ;;  %v8866_v63 = vld [vmem:[#allocation3 + $0x6a] sm:$0xff] }
 0x18f   : > { %1963 = vmatmul.mubr.f32.gmra.mrb[54].mxu1 %v8848_v62  ;;  %1702 = vmatprep.mubr.f32.mxu0 %v8851_v41 }
 0x190   : > { %1967 = vmatprep.mubr.f32.mxu1 %v8662_v29  ;;  %7378 = vmatpush1.bf16.msra.mxu1 %v7377_v0  ;;  %v8910_v0 = vld [vmem:[#allocation3 + $0x92] sm:$0xff] }
 0x191   : > { %7379 = vmatprep.subr.bf16.mxu1 %v13397_v56 }
 0x192   : > { %1703 = vmatmul.mubr.f32.gmra.mrb[48].mxu0 %v8611_v27  ;;  %v8875_v27 = vld [vmem:[#allocation3 + $0x72] sm:$0xff] }
 0x193   : > { %1968 = vmatmul.mubr.f32.gmra.mrb[56].mxu1 %v8857_v61  ;;  %1707 = vmatprep.mubr.f32.mxu0 %v8860_v49 }
 0x194   : > { %1972 = vmatprep.mubr.f32.mxu1 %v8669_v36  ;;  %7381 = vmatpush1.bf16.msra.mxu1 %v7380_v44  ;;  %v1603_v44 = vld [vmem:[#allocation11 + $0x408] sm:$0xff] }
 0x195   : > { %7382 = vmatprep.subr.bf16.mxu1 %v13397_v56  ;;  %v7439_v3 = vpack.c.bf16 %v1603_v44, %v1602_v40  ;;  %v1607_v40 = vld [vmem:[#allocation11 + $0x428] sm:$0xff] }
 0x196   : > { %1708 = vmatmul.mubr.f32.gmra.mrb[50].mxu0 %v8617_v5  ;;  %v8884_v5 = vld [vmem:[#allocation3 + $0x7a] sm:$0xff] }
 0x197   : > { %1973 = vmatmul.mubr.f32.gmra.mrb[58].mxu1 %v8866_v63  ;;  %1712 = vmatprep.mubr.f32.mxu0 %v8869_v25 }
 0x198   : > { %1977 = vmatprep.mubr.f32.mxu1 %v8672_v37  ;;  %7384 = vmatpush1.bf16.msra.mxu1 %v7383_v50  ;;  %v1605_v50 = vld [vmem:[#allocation11 + $0x418] sm:$0xff] }
 0x199   : > { %7385 = vmatprep.subr.bf16.mxu1 %v13397_v56  ;;  %7440 = vmatprep.subr.bf16.mxu0 %v7439_v3  ;;  %v7443_v7 = vpack.c.bf16 %v1605_v50, %v1604_v38  ;;  %v8968_v38 = vld [vmem:[#allocation3 + $0x91] sm:$0xff]  ;;  %v8976_v50 = vld [vmem:[#allocation3 + $0x99] sm:$0xff] }
 0x19a   : > { %1713 = vmatmul.mubr.f32.gmra.mrb[52].mxu0 %v8623_v10  ;;  %v8893_v10 = vld [vmem:[#allocation3 + $0x82] sm:$0xff]  ;;  %13780 = vst [vmem:[#allocation31_spill] sm:$0xff] %v8968_v38  ;;  %13782 = vst [vmem:[#allocation33_spill] sm:$0xff] %v8976_v50 }
 0x19b   : > { %1978 = vmatmul.mubr.f32.gmra.mrb[60].mxu1 %v8875_v27  ;;  %1717 = vmatprep.mubr.f32.mxu0 %v8878_v6 }
 0x19c   : > { %1982 = vmatprep.mubr.f32.mxu1 %v8680_v45  ;;  %7387 = vmatpush1.bf16.msra.mxu1 %v7386_v1  ;;  %v8936_v1 = vld [vmem:[#allocation3 + $0x71] sm:$0xff] }
 0x19d   : > { %7388 = vmatprep.subr.bf16.mxu1 %v13397_v56  ;;  %7442 = vmatpush3.bf16.msra.mxu0 %v7439_v3  ;;  %v8960_v3 = vld [vmem:[#allocation3 + $0x89] sm:$0xff] }
 0x19e   : > { %1718 = vmatmul.mubr.f32.gmra.mrb[54].mxu0 %v8628_v11  ;;  %v8902_v11 = vld [vmem:[#allocation3 + $0x8a] sm:$0xff]  ;;  %7444 = vmatprep.subr.bf16.mxu0 %v7443_v7 }
 0x19f   : > { %1983 = vmatmul.mubr.f32.gmra.mrb[62].mxu1 %v8884_v5  ;;  %1722 = vmatprep.mubr.f32.mxu0 %v8887_v18 }
 0x1a0   : > { %1987 = vmatprep.mubr.f32.mxu1 %v8683_v46  ;;  %7390 = vmatpush1.bf16.msra.mxu1 %v7389_v59  ;;  %v1606_v59 = vld [vmem:[#allocation11 + $0x420] sm:$0xff] }
 0x1a1   : > { %7391 = vmatprep.subr.bf16.mxu1 %v13397_v56  ;;  %7446 = vmatpush3.bf16.msra.mxu0 %v7443_v7  ;;  %v7447_v44 = vpack.c.bf16 %v1607_v40, %v1606_v59  ;;  %v8982_v7 = vld [vmem:[#allocation3 + $0xda] sm:$0xff]  ;;  %v1608_v59 = vld [vmem:[#allocation11 + $0x430] sm:$0xff] }
 0x1a2   : > { %1723 = vmatmul.mubr.f32.gmra.mrb[56].mxu0 %v8631_v14  ;;  %v8912_v14 = vld [vmem:[#allocation3 + $0x59] sm:$0xff]  ;;  %13783 = vst [vmem:[#allocation34_spill] sm:$0xff] %v8982_v7  ;;  %v8992_v56 = vld [vmem:[#allocation3 + $0xa9] sm:$0xff] }
 0x1a3   : > { %1988 = vmatmul.mubr.f32.gmra.mrb[64].mxu1 %v8893_v10  ;;  %1727 = vmatprep.mubr.f32.mxu0 %v8896_v32  ;;  %v1609_v40 = vld [vmem:[#allocation11 + $0x438] sm:$0xff]  ;;  %13786 = vst [vmem:[#allocation37_spill] sm:$0xff] %v8992_v56 }
 0x1a4   : > { %1992 = vmatprep.mubr.f32.mxu1 %v8692_v58  ;;  %7448 = vmatprep.subr.bf16.mxu0 %v7447_v44 }
 0x1a5   : > { %7450 = vmatpush3.bf16.msra.mxu0 %v7447_v44  ;;  %v7451_v44 = vpack.c.bf16 %v1609_v40, %v1608_v59  ;;  %v9000_v40 = vld [vmem:[#allocation3 + $0xb1] sm:$0xff] }
 0x1a6   : > { %1728 = vmatmul.mubr.f32.gmra.mrb[58].mxu0 %v8637_v16  ;;  %v8920_v16 = vld [vmem:[#allocation3 + $0x61] sm:$0xff]  ;;  %13788 = vst [vmem:[#allocation39_spill] sm:$0xff] %v9000_v40 }
 0x1a7   : > { %1993 = vmatmul.mubr.f32.gmra.mrb[66].mxu1 %v8902_v11  ;;  %1732 = vmatprep.mubr.f32.mxu0 %v8904_v28 }
 0x1a8   : > { %1997 = vmatprep.mubr.f32.mxu1 %v8697_v57  ;;  %7452 = vmatprep.subr.bf16.mxu0 %v7451_v44 }
 0x1a9   : > { %7454 = vmatpush3.bf16.msra.mxu0 %v7451_v44  ;;  %v9006_v44 = vld [vmem:[#allocation3 + $0xf2] sm:$0xff] }
 0x1aa   : > { %1733 = vmatmul.mubr.f32.gmra.mrb[60].mxu0 %v8640_v17  ;;  %v8926_v17 = vld [vmem:[#allocation3 + $0xa2] sm:$0xff]  ;;  %13789 = vst [vmem:[#allocation40_spill] sm:$0xff] %v9006_v44 }
 0x1ab   : > { %1998 = vmatmul.mubr.f32.gmra.mrb[68].mxu1 %v8910_v0  ;;  %1737 = vmatprep.mubr.f32.mxu0 %v8912_v14  ;;  %13774 = vst [vmem:[#allocation25_spill] sm:$0xff] %v8926_v17 }
 0x1ac   : > { %2002 = vmatprep.mubr.f32.mxu1 %v8704_v15 }
 0x1ae   : > { %1738 = vmatmul.mubr.f32.gmra.mrb[62].mxu0 %v8646_v21  ;;  %v8934_v21 = vld [vmem:[#allocation3 + $0xaa] sm:$0xff] }
 0x1af   : > { %2003 = vmatmul.mubr.f32.gmra.mrb[70].mxu1 %v8918_v34  ;;  %1742 = vmatprep.mubr.f32.mxu0 %v8920_v16  ;;  %13775 = vst [vmem:[#allocation26_spill] sm:$0xff] %v8934_v21 }
 0x1b0   : > { %2007 = vmatprep.mubr.f32.mxu1 %v8711_v13 }
 0x1b2   : > { %1743 = vmatmul.mubr.f32.gmra.mrb[64].mxu0 %v8652_v19  ;;  %v8942_v19 = vld [vmem:[#allocation3 + $0xb2] sm:$0xff] }
 0x1b3   : > { %2008 = vmatmul.mubr.f32.gmra.mrb[72].mxu1 %v8926_v17  ;;  %1747 = vmatprep.mubr.f32.mxu0 %v8928_v52  ;;  %13776 = vst [vmem:[#allocation27_spill] sm:$0xff] %v8942_v19 }
 0x1b4   : > { %2012 = vmatprep.mubr.f32.mxu1 %v8718_v9 }
 0x1b6   : > { %1748 = vmatmul.mubr.f32.gmra.mrb[66].mxu0 %v8657_v26  ;;  %v8950_v26 = vld [vmem:[#allocation3 + $0xba] sm:$0xff] }
 0x1b7   : > { %2013 = vmatmul.mubr.f32.gmra.mrb[74].mxu1 %v8934_v21  ;;  %1752 = vmatprep.mubr.f32.mxu0 %v8936_v1  ;;  %13777 = vst [vmem:[#allocation28_spill] sm:$0xff] %v8950_v26 }
 0x1b8   : > { %2017 = vmatprep.mubr.f32.mxu1 %v8722_v20 }
 0x1ba   : > { %1753 = vmatmul.mubr.f32.gmra.mrb[68].mxu0 %v8662_v29  ;;  %v8958_v29 = vld [vmem:[#allocation3 + $0xc2] sm:$0xff] }
 0x1bb   : > { %2018 = vmatmul.mubr.f32.gmra.mrb[76].mxu1 %v8942_v19  ;;  %1757 = vmatprep.mubr.f32.mxu0 %v8944_v2  ;;  %13778 = vst [vmem:[#allocation29_spill] sm:$0xff] %v8958_v29 }
 0x1bc   : > { %2022 = vmatprep.mubr.f32.mxu1 %v8728_v23 }
 0x1be   : > { %1758 = vmatmul.mubr.f32.gmra.mrb[70].mxu0 %v8669_v36  ;;  %v8966_v36 = vld [vmem:[#allocation3 + $0xca] sm:$0xff] }
 0x1bf   : > { %2023 = vmatmul.mubr.f32.gmra.mrb[78].mxu1 %v8950_v26  ;;  %1762 = vmatprep.mubr.f32.mxu0 %v8952_v4  ;;  %13779 = vst [vmem:[#allocation30_spill] sm:$0xff] %v8966_v36 }
 0x1c0   : > { %2027 = vmatprep.mubr.f32.mxu1 %v8733_v30 }
 0x1c2   : > { %1763 = vmatmul.mubr.f32.gmra.mrb[72].mxu0 %v8672_v37  ;;  %v8974_v37 = vld [vmem:[#allocation3 + $0xd2] sm:$0xff] }
 0x1c3   : > { %2028 = vmatmul.mubr.f32.gmra.mrb[80].mxu1 %v8958_v29  ;;  %1767 = vmatprep.mubr.f32.mxu0 %v8960_v3  ;;  %13781 = vst [vmem:[#allocation32_spill] sm:$0xff] %v8974_v37 }
 0x1c4   : > { %2032 = vmatprep.mubr.f32.mxu1 %v8744_v24 }
 0x1c6   : > { %1768 = vmatmul.mubr.f32.gmra.mrb[74].mxu0 %v8680_v45  ;;  %v8984_v45 = vld [vmem:[#allocation3 + $0xa1] sm:$0xff] }
 0x1c7   : > { %2033 = vmatmul.mubr.f32.gmra.mrb[82].mxu1 %v8966_v36  ;;  %1772 = vmatprep.mubr.f32.mxu0 %v8968_v38  ;;  %13784 = vst [vmem:[#allocation35_spill] sm:$0xff] %v8984_v45  ;;  %v9020_v38 = vld [vmem:[#allocation3 + $0xc1] sm:$0xff] }
 0x1c8   : > { %2037 = vmatprep.mubr.f32.mxu1 %v8753_v48  ;;  %13791 = vst [vmem:[#allocation42_spill] sm:$0xff] %v9020_v38 }
 0x1ca   : > { %1773 = vmatmul.mubr.f32.gmra.mrb[76].mxu0 %v8683_v46  ;;  %v8990_v46 = vld [vmem:[#allocation3 + $0xe2] sm:$0xff] }
 0x1cb   : > { %2038 = vmatmul.mubr.f32.gmra.mrb[84].mxu1 %v8974_v37  ;;  %1777 = vmatprep.mubr.f32.mxu0 %v8976_v50  ;;  %13785 = vst [vmem:[#allocation36_spill] sm:$0xff] %v8990_v46  ;;  %v1611_v37 = vld [vmem:[#allocation11 + $0x448] sm:$0xff] }
 0x1cc   : > { %2042 = vmatprep.mubr.f32.mxu1 %v8760_v55 }
 0x1ce   : > { %1778 = vmatmul.mubr.f32.gmra.mrb[78].mxu0 %v8692_v58  ;;  %v1610_v58 = vld [vmem:[#allocation11 + $0x440] sm:$0xff] }
 0x1cf   : > { %2043 = vmatmul.mubr.f32.gmra.mrb[86].mxu1 %v8982_v7  ;;  %1782 = vmatprep.mubr.f32.mxu0 %v8984_v45  ;;  %v8998_v7 = vld [vmem:[#allocation3 + $0xea] sm:$0xff]  ;;  %v7455_v45 = vpack.c.bf16 %v1611_v37, %v1610_v58 }
 0x1d0   : > { %2047 = vmatprep.mubr.f32.mxu1 %v8767_v42  ;;  %13787 = vst [vmem:[#allocation38_spill] sm:$0xff] %v8998_v7 }
 0x1d1   : > { %7456 = vmatprep.subr.bf16.mxu0 %v7455_v45 }
 0x1d2   : > { %1783 = vmatmul.mubr.f32.gmra.mrb[80].mxu0 %v8697_v57 }
 0x1d3   : > { %2048 = vmatmul.mubr.f32.gmra.mrb[88].mxu1 %v8990_v46  ;;  %1787 = vmatprep.mubr.f32.mxu0 %v8992_v56  ;;  %v1612_v46 = vld [vmem:[#allocation11 + $0x450] sm:$0xff]  ;;  %v1613_v56 = vld [vmem:[#allocation11 + $0x458] sm:$0xff] }
 0x1d4   : > { %2052 = vmatprep.mubr.f32.mxu1 %v8773_v22  ;;  %v7459_v37 = vpack.c.bf16 %v1613_v56, %v1612_v46  ;;  %7458 = vmatpush3.bf16.msra.mxu0 %v7455_v45  ;;  %v9016_v56 = vld [vmem:[#allocation3 + $0xfa] sm:$0xff] }
 0x1d5   : > { %v6443_v36 = vpop.f32.mrb[0].mxu0  ;;  %v1570_v46 = vld [vmem:[#allocation11 + $0x300] sm:$0xff] }
 0x1d6   : > { %v6499_v29 = vpop.f32.mrb[0].mxu1  ;;  %v6444_v59 = vpop.f32.mrb[1].mxu0  ;;  %1788 = vmatmul.mubr.f32.gmra.mrb[82].mxu0 %v8704_v15  ;;  %7460 = vmatprep.subr.bf16.mxu0 %v7459_v37 }
 0x1d7   : > { %v6445_v57 = vadd.f32 %v6444_v59, %v6443_v36  ;;  %v6500_v26 = vpop.f32.mrb[1].mxu1  ;;  %2053 = vmatmul.mubr.f32.gmra.mrb[90].mxu1 %v8998_v7  ;;  %1792 = vmatprep.mubr.f32.mxu0 %v9000_v40  ;;  %v9010_v59 = vld [vmem:[#allocation3 + $0xb9] sm:$0xff] }
 0x1d8   : > { %v6501_v50 = vadd.f32 %v6500_v26, %v6499_v29  ;;  %2057 = vmatprep.mubr.f32.mxu1 %v8738_v43  ;;  %13790 = vst [vmem:[#allocation41_spill] sm:$0xff] %v9010_v59  ;;  %v1614_v26 = vld [vmem:[#allocation11 + $0x460] sm:$0xff]  ;;  %7462 = vmatpush3.bf16.msra.mxu0 %v7459_v37 }
 0x1d9   : > { %v6446_v58 = vpop.f32.mrb[2].mxu0 }
 0x1da   : > { %v9008_v19 = vadd.f32 %v6501_v50, %v6445_v57  ;;  %v6502_v15 = vpop.f32.mrb[2].mxu1  ;;  %v6447_v36 = vpop.f32.mrb[3].mxu0  ;;  %1793 = vmatmul.mubr.f32.gmra.mrb[84].mxu0 %v8711_v13  ;;  %v1615_v50 = vld [vmem:[#allocation11 + $0x468] sm:$0xff] }
 0x1db   : > { %v6448_v7 = vadd.f32 %v6447_v36, %v6446_v58  ;;  %v6503_v40 = vpop.f32.mrb[3].mxu1  ;;  %2058 = vmatmul.mubr.f32.gmra.mrb[92].mxu1 %v9006_v44  ;;  %1797 = vmatprep.mubr.f32.mxu0 %v9010_v59  ;;  %v1571_v57 = vld [vmem:[#allocation11 + $0x308] sm:$0xff]  ;;  %v7463_v21 = vpack.c.bf16 %v1615_v50, %v1614_v26  ;;  %v1573_v50 = vld [vmem:[#allocation11 + $0x318] sm:$0xff] }
 0x1dc   : > { %v6504_v29 = vadd.f32 %v6503_v40, %v6502_v15  ;;  %2062 = vmatprep.mubr.f32.mxu1 %v8738_v43  ;;  %v1616_v43 = vld [vmem:[#allocation11 + $0x470] sm:$0xff]  ;;  %v1617_v15 = vld [vmem:[#allocation11 + $0x478] sm:$0xff]  ;;  %v7392_v37 = vpack.c.bf16 %v1571_v57, %v1570_v46  ;;  %v1574_v46 = vld [vmem:[#allocation11 + $0x320] sm:$0xff] }
 0x1dd   : > { %v6449_v45 = vpop.f32.mrb[4].mxu0  ;;  %7464 = vmatprep.subr.bf16.mxu0 %v7463_v21  ;;  %v1575_v57 = vld [vmem:[#allocation11 + $0x328] sm:$0xff] }
 0x1de   : > { %v9018_v13 = vadd.f32 %v6504_v29, %v6448_v7  ;;  %v6505_v58 = vpop.f32.mrb[4].mxu1  ;;  %v6450_v36 = vpop.f32.mrb[5].mxu0  ;;  %1798 = vmatmul.mubr.f32.gmra.mrb[86].mxu0 %v8718_v9  ;;  %v7467_v7 = vpack.c.bf16 %v1617_v15, %v1616_v43  ;;  %v1572_v29 = vld [vmem:[#allocation11 + $0x310] sm:$0xff] }
 0x1df   : > { %v6451_v59 = vadd.f32 %v6450_v36, %v6449_v45  ;;  %v6506_v40 = vpop.f32.mrb[5].mxu1  ;;  %2063 = vmatmul.mubr.f32.gmra.mrb[94].mxu1 %v9016_v56  ;;  %1802 = vmatprep.mubr.f32.mxu0 %v9020_v38  ;;  %v9028_v36 = vld [vmem:[#allocation3 + $0xc9] sm:$0xff]  ;;  %v9037_v15 = vld [vmem:[#allocation3 + $0xd1] sm:$0xff] }
 0x1e0   : > { %v6507_v44 = vadd.f32 %v6506_v40, %v6505_v58  ;;  %2132 = vmatprep.mubr.f32.mxu1 %v8788_v35  ;;  %7466 = vmatpush3.bf16.msra.mxu0 %v7463_v21  ;;  %v7395_v21 = vpack.c.bf16 %v1573_v50, %v1572_v29  ;;  %v1577_v29 = vld [vmem:[#allocation11 + $0x338] sm:$0xff] }
 0x1e1   : > { %v6452_v26 = vpop.f32.mrb[6].mxu0  ;;  %7468 = vmatprep.subr.bf16.mxu0 %v7467_v7 }
 0x1e2   : > { %v9026_v17 = vadd.f32 %v6507_v44, %v6451_v59  ;;  %v6508_v9 = vpop.f32.mrb[6].mxu1  ;;  %v6453_v45 = vpop.f32.mrb[7].mxu0  ;;  %1803 = vmatmul.mubr.f32.gmra.mrb[88].mxu0 %v8722_v20  ;;  %v13792_v59 = vmov 0.0|0.0  }
 0x1e3   : > { %v6454_v38 = vadd.f32 %v6453_v45, %v6452_v26  ;;  %v6509_v58 = vpop.f32.mrb[7].mxu1  ;;  %2133 = vmatmul.mubr.f32.vlgmr.msra.gmra.mrb[32].mxu1 %v8833_v39  ;;  %1807 = vmatprep.mubr.f32.mxu0 %v9028_v36  ;;  %v9046_v45 = vld [vmem:[#allocation3 + $0xd9] sm:$0xff] }
 0x1e4   : > { %v6510_v35 = vadd.f32 %v6509_v58, %v6508_v9  ;;  %7393 = vmatpush1.bf16.msra.mxu1 %v7392_v37  ;;  %2137 = vmatprep.mubr.f32.mxu1 %v8794_v54  ;;  %v7398_v37 = vpack.c.bf16 %v1575_v57, %v1574_v46  ;;  %v1578_v46 = vld [vmem:[#allocation11 + $0x340] sm:$0xff]  ;;  %v1579_v57 = vld [vmem:[#allocation11 + $0x348] sm:$0xff] }
 0x1e5   : > { %v6455_v44 = vpop.f32.mrb[8].mxu0  ;;  %7394 = vmatprep.subr.bf16.mxu1 %v13792_v59  ;;  %7470 = vmatpush3.bf16.msra.mxu0 %v7467_v7 }
 0x1e6   : > { %v9035_v40 = vadd.f32 %v6510_v35, %v6454_v38  ;;  %v6511_v20 = vpop.f32.mrb[8].mxu1  ;;  %v6456_v43 = vpop.f32.mrb[9].mxu0  ;;  %1808 = vmatmul.mubr.f32.gmra.mrb[90].mxu0 %v8728_v23  ;;  %v1576_v38 = vld [vmem:[#allocation11 + $0x330] sm:$0xff] }
 0x1e7   : > { %v6457_v39 = vadd.f32 %v6456_v43, %v6455_v44  ;;  %v6512_v26 = vpop.f32.mrb[9].mxu1  ;;  %2138 = vmatmul.mubr.f32.gmra.mrb[34].mxu1 %v8842_v33  ;;  %1812 = vmatprep.mubr.f32.mxu0 %v9037_v15 }
 0x1e8   : > { %v6513_v54 = vadd.f32 %v6512_v26, %v6511_v20  ;;  %2142 = vmatprep.mubr.f32.mxu1 %v8800_v60  ;;  %7396 = vmatpush1.bf16.msra.mxu1 %v7395_v21  ;;  %v7401_v21 = vpack.c.bf16 %v1577_v29, %v1576_v38  ;;  %v1581_v38 = vld [vmem:[#allocation11 + $0x358] sm:$0xff] }
 0x1e9   : > { %v6458_v7 = vpop.f32.mrb[10].mxu0  ;;  %7397 = vmatprep.subr.bf16.mxu1 %v13792_v59 }
 0x1ea   : > { %v9044_v50 = vadd.f32 %v6513_v54, %v6457_v39  ;;  %v6514_v9 = vpop.f32.mrb[10].mxu1  ;;  %v6459_v23 = vpop.f32.mrb[11].mxu0  ;;  %1813 = vmatmul.mubr.f32.gmra.mrb[92].mxu0 %v8733_v30  ;;  %v9055_v39 = vld [vmem:[#allocation3 + $0xe1] sm:$0xff]  ;;  %v7404_v54 = vpack.c.bf16 %v1579_v57, %v1578_v46  ;;  %v9069_v57 = vld [vmem:[#allocation3 + $0xf1] sm:$0xff] }
 0x1eb   : > { %v6460_v33 = vadd.f32 %v6459_v23, %v6458_v7  ;;  %v6515_v58 = vpop.f32.mrb[11].mxu1  ;;  %2143 = vmatmul.mubr.f32.gmra.mrb[36].mxu1 %v8851_v41  ;;  %1817 = vmatprep.mubr.f32.mxu0 %v9046_v45  ;;  %v1580_v7 = vld [vmem:[#allocation11 + $0x350] sm:$0xff] }
 0x1ec   : > { %v6516_v35 = vadd.f32 %v6515_v58, %v6514_v9  ;;  %2147 = vmatprep.mubr.f32.mxu1 %v8806_v12  ;;  %7399 = vmatpush1.bf16.msra.mxu1 %v7398_v37  ;;  %v9062_v23 = vld [vmem:[#allocation3 + $0xe9] sm:$0xff] }
 0x1ed   : > { %v6461_v44 = vpop.f32.mrb[12].mxu0  ;;  %7400 = vmatprep.subr.bf16.mxu1 %v13792_v59 }
 0x1ee   : > { %v9053_v20 = vadd.f32 %v6516_v35, %v6460_v33  ;;  %v6517_v43 = vpop.f32.mrb[12].mxu1  ;;  %v6462_v30 = vpop.f32.mrb[13].mxu0  ;;  %1818 = vmatmul.mubr.f32.gmra.mrb[94].mxu0 %v8744_v24  ;;  %v7407_v33 = vpack.c.bf16 %v1581_v38, %v1580_v7  ;;  %v1582_v35 = vld [vmem:[#allocation11 + $0x360] sm:$0xff]  ;;  %v1584_v7 = vld [vmem:[#allocation11 + $0x370] sm:$0xff]  ;;  %v1585_v38 = vld [vmem:[#allocation11 + $0x378] sm:$0xff] }
 0x1ef   : > { %v6518_v26 = vpop.f32.mrb[13].mxu1  ;;  %2148 = vmatmul.mubr.f32.gmra.mrb[38].mxu1 %v8860_v49  ;;  %1822 = vmatprep.mubr.f32.mxu0 %v9055_v39 }
 0x1f0   : > { %2152 = vmatprep.mubr.f32.mxu1 %v8812_v51  ;;  %7402 = vmatpush1.bf16.msra.mxu1 %v7401_v21  ;;  %v1583_v21 = vld [vmem:[#allocation11 + $0x368] sm:$0xff] }
 0x1f1   : > { %v6464_v37 = vpop.f32.mrb[14].mxu0  ;;  %7403 = vmatprep.subr.bf16.mxu1 %v13792_v59  ;;  %v7410_v26 = vpack.c.bf16 %v1583_v21, %v1582_v35 }
 0x1f2   : > { %v6520_v29 = vpop.f32.mrb[14].mxu1  ;;  %v6465_v9 = vpop.f32.mrb[15].mxu0  ;;  %1823 = vmatmul.mubr.f32.gmra.mrb[96].mxu0 %v8753_v48 }
 0x1f3   : > { %v6521_v24 = vpop.f32.mrb[15].mxu1  ;;  %2153 = vmatmul.mubr.f32.gmra.mrb[40].mxu1 %v8869_v25  ;;  %1827 = vmatprep.mubr.f32.mxu0 %v9062_v23  ;;  %v9077_v9 = vld [vmem:[#allocation3 + $0xf9] sm:$0xff] }
 0x1f4   : > { %2157 = vmatprep.mubr.f32.mxu1 %v8818_v47  ;;  %7405 = vmatpush1.bf16.msra.mxu1 %v7404_v54 }
 0x1f5   : > { %v6555_v58 = vpop.f32.mrb[16].mxu0  ;;  %7406 = vmatprep.subr.bf16.mxu1 %v13792_v59 }
 0x1f6   : > { %v6611_v44 = vpop.f32.mrb[16].mxu1  ;;  %v6556_v46 = vpop.f32.mrb[17].mxu0  ;;  %1828 = vmatmul.mubr.f32.gmra.mrb[98].mxu0 %v8760_v55 }
 0x1f7   : > { %v6557_v48 = vadd.f32 %v6556_v46, %v6555_v58  ;;  %v6612_v43 = vpop.f32.mrb[17].mxu1  ;;  %2158 = vmatmul.mubr.f32.gmra.mrb[42].mxu1 %v8878_v6  ;;  %1832 = vmatprep.mubr.f32.mxu0 %v9069_v57  ;;  %v1586_v46 = vld [vmem:[#allocation11 + $0x380] sm:$0xff] }
 0x1f8   : > { %v6613_v30 = vadd.f32 %v6612_v43, %v6611_v44  ;;  %2162 = vmatprep.mubr.f32.mxu1 %v8824_v53  ;;  %7408 = vmatpush1.bf16.msra.mxu1 %v7407_v33  ;;  %v7413_v33 = vpack.c.bf16 %v1585_v38, %v1584_v7 }
 0x1f9   : > { %v1023_v54 = vadd.f32 %v6557_v48, %v9008_v19  ;;  %v6558_v37 = vpop.f32.mrb[18].mxu0  ;;  %7409 = vmatprep.subr.bf16.mxu1 %v13792_v59 }
 0x1fa   : > { %v6559_v29 = vpop.f32.mrb[19].mxu0  ;;  %v6614_v55 = vpop.f32.mrb[18].mxu1  ;;  %1833 = vmatmul.mubr.f32.gmra.mrb[100].mxu0 %v8767_v42  ;;  %v1587_v42 = vld [vmem:[#allocation11 + $0x388] sm:$0xff] }
 0x1fb   : > { %v6560_v24 = vadd.f32 %v6559_v29, %v6558_v37  ;;  %2163 = vmatmul.mubr.f32.gmra.mrb[44].mxu1 %v8887_v18  ;;  %v6615_v58 = vpop.f32.mrb[19].mxu1  ;;  %v9081_v44 = vadd.f32 %v6613_v30, %v1023_v54  ;;  %1837 = vmatprep.mubr.f32.mxu0 %v9077_v9  ;;  %v1588_v29 = vld [vmem:[#allocation11 + $0x390] sm:$0xff] }
 0x1fc   : > { %v6616_v19 = vadd.f32 %v6615_v58, %v6614_v55  ;;  %2167 = vmatprep.mubr.f32.mxu1 %v8830_v31  ;;  %7411 = vmatpush1.bf16.msra.mxu1 %v7410_v26 }
 0x1fd   : > { %v1028_v35 = vadd.f32 %v6560_v24, %v9018_v13  ;;  %v6561_v21 = vpop.f32.mrb[20].mxu0  ;;  %7412 = vmatprep.subr.bf16.mxu1 %v13792_v59  ;;  %v7416_v13 = vpack.c.bf16 %v1587_v42, %v1586_v46  ;;  %v1590_v46 = vld [vmem:[#allocation11 + $0x3a0] sm:$0xff] }
 0x1fe   : > { %v6562_v48 = vpop.f32.mrb[21].mxu0  ;;  %v6617_v43 = vpop.f32.mrb[20].mxu1  ;;  %1838 = vmatmul.mubr.f32.gmra.mrb[102].mxu0 %v8773_v22  ;;  %v1589_v22 = vld [vmem:[#allocation11 + $0x398] sm:$0xff] }
 0x1ff   : > { %v6563_v30 = vadd.f32 %v6562_v48, %v6561_v21  ;;  %2168 = vmatmul.mubr.f32.gmra.mrb[46].mxu1 %v8896_v32  ;;  %v6618_v54 = vpop.f32.mrb[21].mxu1  ;;  %v9089_v37 = vadd.f32 %v6616_v19, %v1028_v35  ;;  %6879 = vmatprep.mubr.f32.mxu0 %v8800_v60 }
 0x200   : > { %v6619_v26 = vadd.f32 %v6618_v54, %v6617_v43  ;;  %2172 = vmatprep.mubr.f32.mxu1 %v8839_v8  ;;  %7414 = vmatpush1.bf16.msra.mxu1 %v7413_v33 }
 0x201   : > { %v1033_v7 = vadd.f32 %v6563_v30, %v9026_v17  ;;  %v6564_v38 = vpop.f32.mrb[22].mxu0  ;;  %7415 = vmatprep.subr.bf16.mxu1 %v13792_v59  ;;  %v7419_v17 = vpack.c.bf16 %v1589_v22, %v1588_v29 }
 0x202   : > { %v6565_v55 = vpop.f32.mrb[23].mxu0  ;;  %v6620_v24 = vpop.f32.mrb[22].mxu1  ;;  %6880 = vmatmul.mubr.f32.vlgmr.msra.gmra.mrb[104].mxu0 %v8806_v12  ;;  %v1591_v12 = vld [vmem:[#allocation11 + $0x3a8] sm:$0xff] }
 0x203   : > { %v6566_v58 = vadd.f32 %v6565_v55, %v6564_v38  ;;  %2173 = vmatmul.mubr.f32.gmra.mrb[48].mxu1 %v8904_v28  ;;  %v6621_v60 = vpop.f32.mrb[23].mxu1  ;;  %v9097_v19 = vadd.f32 %v6619_v26, %v1033_v7  ;;  %6882 = vmatprep.mubr.f32.mxu0 %v8812_v51  ;;  %v1592_v7 = vld [vmem:[#allocation11 + $0x3b0] sm:$0xff] }
 0x204   : > { %v6622_v33 = vadd.f32 %v6621_v60, %v6620_v24  ;;  %2177 = vmatprep.mubr.f32.mxu1 %v8848_v62  ;;  %7417 = vmatpush1.bf16.msra.mxu1 %v7416_v13 }
 0x205   : > { %v1038_v35 = vadd.f32 %v6566_v58, %v9035_v40  ;;  %v6567_v21 = vpop.f32.mrb[24].mxu0  ;;  %7418 = vmatprep.subr.bf16.mxu1 %v13792_v59  ;;  %v7422_v40 = vpack.c.bf16 %v1591_v12, %v1590_v46  ;;  %v1596_v12 = vld [vmem:[#allocation11 + $0x3d0] sm:$0xff] }
 0x206   : > { %v6568_v42 = vpop.f32.mrb[25].mxu0  ;;  %v6623_v48 = vpop.f32.mrb[24].mxu1  ;;  %6883 = vmatmul.mubr.f32.gmra.mrb[106].mxu0 %v8818_v47  ;;  %v1593_v47 = vld [vmem:[#allocation11 + $0x3b8] sm:$0xff] }
 0x207   : > { %v6569_v43 = vadd.f32 %v6568_v42, %v6567_v21  ;;  %2178 = vmatmul.mubr.f32.gmra.mrb[50].mxu1 %v8912_v14  ;;  %v6624_v51 = vpop.f32.mrb[25].mxu1  ;;  %v9105_v30 = vadd.f32 %v6622_v33, %v1038_v35  ;;  %6885 = vmatprep.mubr.f32.mxu0 %v8824_v53  ;;  %v1594_v33 = vld [vmem:[#allocation11 + $0x3c0] sm:$0xff]  ;;  %v1597_v42 = vld [vmem:[#allocation11 + $0x3d8] sm:$0xff] }
 0x208   : > { %v6625_v54 = vadd.f32 %v6624_v51, %v6623_v48  ;;  %2182 = vmatprep.mubr.f32.mxu1 %v8857_v61  ;;  %7420 = vmatpush1.bf16.msra.mxu1 %v7419_v17 }
 0x209   : > { %v1043_v26 = vadd.f32 %v6569_v43, %v9044_v50  ;;  %v6570_v13 = vpop.f32.mrb[26].mxu0  ;;  %7421 = vmatprep.subr.bf16.mxu1 %v13792_v59  ;;  %v7425_v50 = vpack.c.bf16 %v1593_v47, %v1592_v7 }
 0x20a   : > { %v6571_v38 = vpop.f32.mrb[27].mxu0  ;;  %v6626_v29 = vpop.f32.mrb[26].mxu1  ;;  %6886 = vmatmul.mubr.f32.gmra.mrb[108].mxu0 %v8830_v31  ;;  %v1595_v31 = vld [vmem:[#allocation11 + $0x3c8] sm:$0xff] }
 0x20b   : > { %v6572_v22 = vadd.f32 %v6571_v38, %v6570_v13  ;;  %2183 = vmatmul.mubr.f32.gmra.mrb[52].mxu1 %v8920_v16  ;;  %v6627_v53 = vpop.f32.mrb[27].mxu1  ;;  %v9113_v55 = vadd.f32 %v6625_v54, %v1043_v26  ;;  %6888 = vmatprep.mubr.f32.mxu0 %v8839_v8  ;;  %v7428_v21 = vpack.c.bf16 %v1595_v31, %v1594_v33  ;;  %v1598_v54 = vld [vmem:[#allocation11 + $0x3e0] sm:$0xff]  ;;  %v1600_v38 = vld [vmem:[#allocation11 + $0x3f0] sm:$0xff]  ;;  %v13802_v33 = vld [vmem:[#allocation32_spill] sm:$0xff] }
 0x20c   : > { %v6628_v24 = vadd.f32 %v6627_v53, %v6626_v29  ;;  %2187 = vmatprep.mubr.f32.mxu1 %v8866_v63  ;;  %7423 = vmatpush1.bf16.msra.mxu1 %v7422_v40  ;;  %v1599_v40 = vld [vmem:[#allocation11 + $0x3e8] sm:$0xff]  ;;  %v13793_v53 = vld [vmem:[#allocation25_spill] sm:$0xff] }
 0x20d   : > { %v1048_v58 = vadd.f32 %v6572_v22, %v9053_v20  ;;  %v6573_v60 = vpop.f32.mrb[28].mxu0  ;;  %7424 = vmatprep.subr.bf16.mxu1 %v13792_v59  ;;  %v13803_v31 = vld [vmem:[#allocation37_spill] sm:$0xff] }
 0x20e   : > { %v6574_v17 = vpop.f32.mrb[29].mxu0  ;;  %6889 = vmatmul.mubr.f32.gmra.mrb[110].mxu0 %v8848_v62  ;;  %v13801_v60 = vld [vmem:[#allocation30_spill] sm:$0xff] }
 0x20f   : > { %2188 = vmatmul.mubr.f32.gmra.mrb[54].mxu1 %v8928_v52  ;;  %v1151_v35 = vadd.f32 %v6628_v24, %v1048_v58  ;;  %6891 = vmatprep.mubr.f32.mxu0 %v8857_v61  ;;  %v7431_v61 = vpack.c.bf16 %v1597_v42, %v1596_v12  ;;  %v13795_v24 = vld [vmem:[#allocation26_spill] sm:$0xff]  ;;  %v13799_v58 = vld [vmem:[#allocation29_spill] sm:$0xff]  ;;  %v13805_v17 = vld [vmem:[#allocation36_spill] sm:$0xff] }
 0x210   : > { %2192 = vmatprep.mubr.f32.mxu1 %v8875_v27  ;;  %v6629_v8 = vpop.f32.mrb[28].mxu1  ;;  %7426 = vmatpush1.bf16.msra.mxu1 %v7425_v50  ;;  %v13797_v50 = vld [vmem:[#allocation33_spill] sm:$0xff] }
 0x211   : > { %v6576_v46 = vpop.f32.mrb[30].mxu0  ;;  %v6630_v20 = vpop.f32.mrb[29].mxu1  ;;  %7427 = vmatprep.subr.bf16.mxu1 %v13792_v59  ;;  %v13809_v12 = vld [vmem:[#allocation41_spill] sm:$0xff] }
 0x212   : > { %v6577_v48 = vpop.f32.mrb[31].mxu0  ;;  %6892 = vmatmul.mubr.f32.gmra.mrb[112].mxu0 %v8866_v63  ;;  %v13808_v20 = vld [vmem:[#allocation40_spill] sm:$0xff]  ;;  %v1466_v42 = vld [vmem:[#allocation3 + $0x102] sm:$0xff] }
 0x213   : > { %2193 = vmatmul.mubr.f32.gmra.mrb[56].mxu1 %v8936_v1  ;;  %6894 = vmatprep.mubr.f32.mxu0 %v8875_v27  ;;  %v7434_v27 = vpack.c.bf16 %v1599_v40, %v1598_v54  ;;  %v13810_v48 = vld [vmem:[#allocation42_spill] sm:$0xff] }
 0x214   : > { %2197 = vmatprep.mubr.f32.mxu1 %v8884_v5  ;;  %v6632_v62 = vpop.f32.mrb[30].mxu1  ;;  %7429 = vmatpush1.bf16.msra.mxu1 %v7428_v21  ;;  %v13807_v21 = vld [vmem:[#allocation38_spill] sm:$0xff] }
 0x215   : > { %v6837_v43 = vpop.f32.mrb[32].mxu0  ;;  %v6633_v51 = vpop.f32.mrb[31].mxu1  ;;  %7430 = vmatprep.subr.bf16.mxu1 %v13792_v59  ;;  %v1467_v62 = vld [vmem:[#allocation3 + $0x10a] sm:$0xff] }
 0x216   : > { %v9130_v26 = vadd.f32 %v6837_v43, %v9089_v37  ;;  %v1228_v13 = vpop.f32.mrb[33].mxu0  ;;  %6895 = vmatmul.mubr.f32.gmra.mrb[114].mxu0 %v8884_v5  ;;  %v1601_v5 = vld [vmem:[#allocation11 + $0x3f8] sm:$0xff]  ;;  %v9201_v54 = vld [vmem:[#allocation3 + $0x109] sm:$0xff] }
 0x217   : > { %v9134_v63 = vadd.f32 %v1228_v13, %v9081_v44  ;;  %2198 = vmatmul.mubr.f32.gmra.mrb[58].mxu1 %v8944_v2  ;;  %6897 = vmatprep.mubr.f32.mxu0 %v8893_v10  ;;  %v1472_v43 = vld [vmem:[#allocation3 + $0x112] sm:$0xff]  ;;  %v1473_v51 = vld [vmem:[#allocation3 + $0x11a] sm:$0xff] }
 0x218   : > { %2202 = vmatprep.mubr.f32.mxu1 %v8893_v10  ;;  %7432 = vmatpush1.bf16.msra.mxu1 %v7431_v61  ;;  %v9198_v61 = vld [vmem:[#allocation3 + $0x101] sm:$0xff] }
 0x219   : > { %v6840_v7 = vpop.f32.mrb[34].mxu0  ;;  %7433 = vmatprep.subr.bf16.mxu1 %v13792_v59 }
 0x21a   : > { %v9141_v37 = vadd.f32 %v6840_v7, %v9105_v30  ;;  %v1238_v47 = vpop.f32.mrb[35].mxu0  ;;  %6898 = vmatmul.mubr.f32.gmra.mrb[116].mxu0 %v8902_v11  ;;  %v7437_v30 = vpack.c.bf16 %v1601_v5, %v1600_v38  ;;  %v7794_v7 = vld [vmem:[#allocation3 + $0x20] sm:$0xff] }
 0x21b   : > { %v9145_v44 = vadd.f32 %v1238_v47, %v9097_v19  ;;  %2203 = vmatmul.mubr.f32.gmra.mrb[60].mxu1 %v8952_v4  ;;  %6900 = vmatprep.mubr.f32.mxu0 %v8910_v0 }
 0x21c   : > { %2207 = vmatprep.mubr.f32.mxu1 %v8902_v11  ;;  %7435 = vmatpush1.bf16.msra.mxu1 %v7434_v27  ;;  %v13794_v11 = vld [vmem:[#allocation31_spill] sm:$0xff] }
 0x21d   : > { %v6843_v10 = vpop.f32.mrb[36].mxu0  ;;  %7436 = vmatprep.subr.bf16.mxu1 %v13792_v59  ;;  %v13796_v59 = vld [vmem:[#allocation27_spill] sm:$0xff] }
 0x21e   : > { %v1248_v29 = vpop.f32.mrb[37].mxu0  ;;  %6901 = vmatmul.mubr.f32.gmra.mrb[118].mxu0 %v8918_v34  ;;  %v9154_v19 = vadd.f32 %v6843_v10, %v1151_v35  ;;  %v13806_v35 = vld [vmem:[#allocation39_spill] sm:$0xff] }
 0x21f   : > { %2208 = vmatmul.mubr.f32.gmra.mrb[62].mxu1 %v8960_v3  ;;  %v9157_v22 = vadd.f32 %v1248_v29, %v9113_v55  ;;  %6903 = vmatprep.mubr.f32.mxu0 %v13793_v53  ;;  %v13800_v55 = vld [vmem:[#allocation35_spill] sm:$0xff] }
 0x220   : > { %2212 = vmatprep.mubr.f32.mxu1 %v8910_v0  ;;  %7438 = vmatpush1.bf16.msra.mxu1 %v7437_v30  ;;  %v13798_v0 = vld [vmem:[#allocation28_spill] sm:$0xff]  ;;  %v7795_v30 = vld [vmem:[#allocation3 + $0x28] sm:$0xff] }
 0x222   : > { %6904 = vmatmul.mubr.f32.gmra.mrb[120].mxu0 %v13795_v24 }
 0x223   : > { %2213 = vmatmul.mubr.f32.gmra.mrb[64].mxu1 %v13794_v11  ;;  %6906 = vmatprep.mubr.f32.mxu0 %v13796_v59 }
 0x224   : > { %2217 = vmatprep.mubr.f32.mxu1 %v8918_v34  ;;  %v13804_v34 = vld [vmem:[#allocation34_spill] sm:$0xff]  ;;  %v6846_v8 = vpop.f32.mrb[38].mxu0 }
 0x225   : > { %v1258_v46 = vpop.f32.mrb[39].mxu0  ;;  %v7799_v8 = vld [vmem:[#allocation3 + $0x48] sm:$0xff] }
 0x226   : > { %6907 = vmatmul.mubr.f32.gmra.mrb[122].mxu0 %v13798_v0  ;;  %v7800_v46 = vld [vmem:[#allocation3 + $0x50] sm:$0xff] }
 0x227   : > { %2218 = vmatmul.mubr.f32.gmra.mrb[66].mxu1 %v13797_v50  ;;  %6909 = vmatprep.mubr.f32.mxu0 %v13799_v58 }
 0x228   : > { %2222 = vmatprep.mubr.f32.mxu1 %v13793_v53 }
 0x22a   : > { %6910 = vmatmul.mubr.f32.gmra.mrb[124].mxu0 %v13801_v60 }
 0x22b   : > { %2223 = vmatmul.mubr.f32.gmra.mrb[68].mxu1 %v13800_v55  ;;  %6912 = vmatprep.mubr.f32.mxu0 %v13802_v33 }
 0x22c   : > { %2227 = vmatprep.mubr.f32.mxu1 %v13795_v24 }
 0x22e   : > { %6913 = vmatmul.mubr.f32.gmra.mrb[126].mxu0 %v13804_v34 }
 0x22f   : > { %2228 = vmatmul.mubr.f32.gmra.mrb[70].mxu1 %v13803_v31  ;;  %6915 = vmatprep.mubr.f32.mxu0 %v13805_v17 }
 0x230   : > { %2232 = vmatprep.mubr.f32.mxu1 %v13796_v59  ;;  %v7796_v59 = vld [vmem:[#allocation3 + $0x30] sm:$0xff] }
 0x232   : > { %6916 = vmatmul.mubr.f32.gmra.mrb[128].mxu0 %v13807_v21 }
 0x233   : > { %2233 = vmatmul.mubr.f32.gmra.mrb[72].mxu1 %v13806_v35  ;;  %6918 = vmatprep.mubr.f32.mxu0 %v13808_v20 }
 0x234   : > { %2237 = vmatprep.mubr.f32.mxu1 %v13798_v0 }
 0x236   : > { %6919 = vmatmul.mubr.f32.gmra.mrb[130].mxu0 %v9016_v56 }
 0x237   : > { %2238 = vmatmul.mubr.f32.gmra.mrb[74].mxu1 %v13809_v12  ;;  %6921 = vmatprep.mubr.f32.mxu0 %v1466_v42 }
 0x238   : > { %2242 = vmatprep.mubr.f32.mxu1 %v13799_v58  ;;  %v7797_v58 = vld [vmem:[#allocation3 + $0x38] sm:$0xff] }
 0x23a   : > { %6922 = vmatmul.mubr.f32.gmra.mrb[132].mxu0 %v1467_v62 }
 0x23b   : > { %2243 = vmatmul.mubr.f32.gmra.mrb[76].mxu1 %v13810_v48  ;;  %6924 = vmatprep.mubr.f32.mxu0 %v1472_v43  ;;  %v7802_v43 = vld [vmem:[#allocation3 + $0x60] sm:$0xff] }
 0x23c   : > { %2247 = vmatprep.mubr.f32.mxu1 %v13801_v60 }
 0x23e   : > { %6925 = vmatmul.mubr.f32.gmra.mrb[134].mxu0 %v1473_v51 }
 0x23f   : > { %2248 = vmatmul.mubr.f32.gmra.mrb[78].mxu1 %v9028_v36 }
 0x240   : > { %2252 = vmatprep.mubr.f32.mxu1 %v13802_v33 }
 0x243   : > { %2253 = vmatmul.mubr.f32.gmra.mrb[80].mxu1 %v9037_v15 }
 0x244   : > { %2257 = vmatprep.mubr.f32.mxu1 %v13804_v34  ;;  %v7798_v34 = vld [vmem:[#allocation3 + $0x40] sm:$0xff] }
 0x247   : > { %2258 = vmatmul.mubr.f32.gmra.mrb[82].mxu1 %v9046_v45 }
 0x248   : > { %2262 = vmatprep.mubr.f32.mxu1 %v13805_v17 }
 0x24b   : > { %2263 = vmatmul.mubr.f32.gmra.mrb[84].mxu1 %v9055_v39 }
 0x24c   : > { %2267 = vmatprep.mubr.f32.mxu1 %v13807_v21 }
 0x24f   : > { %2268 = vmatmul.mubr.f32.gmra.mrb[86].mxu1 %v9062_v23 }
 0x250   : > { %2272 = vmatprep.mubr.f32.mxu1 %v13808_v20 }
 0x253   : > { %2273 = vmatmul.mubr.f32.gmra.mrb[88].mxu1 %v9069_v57 }
 0x254   : > { %2277 = vmatprep.mubr.f32.mxu1 %v9016_v56 }
 0x255   : > { %v9204_v40 = vpop.f32.mrb[40].mxu0 }
 0x256   : > { %v1686_v56 = vpop.f32.mrb[41].mxu0 }
 0x257   : > { %2278 = vmatmul.mubr.f32.gmra.mrb[90].mxu1 %v9077_v9  ;;  %v7803_v56 = vld [vmem:[#allocation3 + $0x68] sm:$0xff] }
 0x258   : > { %2282 = vmatprep.mubr.f32.mxu1 %v1466_v42  ;;  %v7801_v42 = vld [vmem:[#allocation3 + $0x58] sm:$0xff] }
 0x259   : > { %v9207_v13 = vpop.f32.mrb[42].mxu0 }
 0x25a   : > { %v1691_v27 = vpop.f32.mrb[43].mxu0 }
 0x25b   : > { %2283 = vmatmul.mubr.f32.gmra.mrb[92].mxu1 %v9198_v61 }
 0x25c   : > { %2287 = vmatprep.mubr.f32.mxu1 %v1467_v62 }
 0x25d   : > { %v9209_v47 = vpop.f32.mrb[44].mxu0 }
 0x25e   : > { %v1696_v38 = vpop.f32.mrb[45].mxu0 }
 0x25f   : > { %2288 = vmatmul.mubr.f32.gmra.mrb[94].mxu1 %v9201_v54 }
 0x260   : > { %2357 = vmatprep.mubr.f32.mxu1 %v8851_v41 }
 0x261   : > { %v9212_v5 = vpop.f32.mrb[46].mxu0 }
 0x262   : > { %v1701_v10 = vpop.f32.mrb[47].mxu0 }
 0x263   : > { %2358 = vmatmul.mubr.f32.vlgmr.msra.gmra.mrb[32].mxu1 %v7794_v7  ;;  %v7804_v7 = vld [vmem:[#allocation3 + $0x70] sm:$0xff]  ;;  %v7805_v10 = vld [vmem:[#allocation3 + $0x78] sm:$0xff] }
 0x264   : > { %2362 = vmatprep.mubr.f32.mxu1 %v8860_v49 }
 0x265   : > { %v9214_v29 = vpop.f32.mrb[48].mxu0 }
 0x266   : > { %v1706_v41 = vpop.f32.mrb[49].mxu0 }
 0x267   : > { %2363 = vmatmul.mubr.f32.gmra.mrb[34].mxu1 %v7795_v30  ;;  %v7806_v41 = vld [vmem:[#allocation3 + $0x80] sm:$0xff] }
 0x268   : > { %2367 = vmatprep.mubr.f32.mxu1 %v8869_v25 }
 0x269   : > { %v9217_v53 = vpop.f32.mrb[50].mxu0 }
 0x26a   : > { %v1711_v24 = vpop.f32.mrb[51].mxu0 }
 0x26b   : > { %2368 = vmatmul.mubr.f32.gmra.mrb[36].mxu1 %v7796_v59  ;;  %v7807_v59 = vld [vmem:[#allocation3 + $0x88] sm:$0xff] }
 0x26c   : > { %2372 = vmatprep.mubr.f32.mxu1 %v8878_v6 }
 0x26d   : > { %v9220_v0 = vpop.f32.mrb[52].mxu0 }
 0x26e   : > { %13811 = vst [vmem:[#allocation25_spill] sm:$0xff] %v9220_v0  ;;  %v1716_v49 = vpop.f32.mrb[53].mxu0  ;;  %v9498_v0 = vld [vmem:[#allocation4 + $0x10b] sm:$0xff] }
 0x26f   : > { %2373 = vmatmul.mubr.f32.gmra.mrb[38].mxu1 %v7797_v58  ;;  %v7808_v58 = vld [vmem:[#allocation3 + $0x90] sm:$0xff] }
 0x270   : > { %2377 = vmatprep.mubr.f32.mxu1 %v8887_v18 }
 0x271   : > { %v9223_v60 = vpop.f32.mrb[54].mxu0 }
 0x272   : > { %13812 = vst [vmem:[#allocation31_spill] sm:$0xff] %v9223_v60  ;;  %v1721_v33 = vpop.f32.mrb[55].mxu0 }
 0x273   : > { %2378 = vmatmul.mubr.f32.gmra.mrb[40].mxu1 %v7798_v34  ;;  %v7809_v34 = vld [vmem:[#allocation3 + $0x98] sm:$0xff] }
 0x274   : > { %2382 = vmatprep.mubr.f32.mxu1 %v8896_v32 }
 0x275   : > { %v9226_v25 = vpop.f32.mrb[56].mxu0 }
 0x276   : > { %13813 = vst [vmem:[#allocation26_spill] sm:$0xff] %v9226_v25  ;;  %v1726_v17 = vpop.f32.mrb[57].mxu0 }
 0x277   : > { %2383 = vmatmul.mubr.f32.gmra.mrb[42].mxu1 %v7799_v8  ;;  %v7810_v8 = vld [vmem:[#allocation3 + $0xa0] sm:$0xff] }
 0x278   : > { %2387 = vmatprep.mubr.f32.mxu1 %v8904_v28 }
 0x279   : > { %v9229_v6 = vpop.f32.mrb[58].mxu0 }
 0x27a   : > { %13814 = vst [vmem:[#allocation27_spill] sm:$0xff] %v9229_v6  ;;  %v1731_v21 = vpop.f32.mrb[59].mxu0 }
 0x27b   : > { %2388 = vmatmul.mubr.f32.gmra.mrb[44].mxu1 %v7800_v46  ;;  %v7811_v46 = vld [vmem:[#allocation3 + $0xa8] sm:$0xff] }
 0x27c   : > { %2392 = vmatprep.mubr.f32.mxu1 %v8912_v14 }
 0x27d   : > { %v9232_v18 = vpop.f32.mrb[60].mxu0 }
 0x27e   : > { %13815 = vst [vmem:[#allocation33_spill] sm:$0xff] %v9232_v18  ;;  %v1736_v20 = vpop.f32.mrb[61].mxu0 }
 0x27f   : > { %2393 = vmatmul.mubr.f32.gmra.mrb[46].mxu1 %v7801_v42  ;;  %v7812_v42 = vld [vmem:[#allocation3 + $0xb0] sm:$0xff] }
 0x280   : > { %2397 = vmatprep.mubr.f32.mxu1 %v8920_v16 }
 0x281   : > { %v9235_v32 = vpop.f32.mrb[62].mxu0 }
 0x282   : > { %13816 = vst [vmem:[#allocation28_spill] sm:$0xff] %v9235_v32  ;;  %v1741_v62 = vpop.f32.mrb[63].mxu0 }
 0x283   : > { %2398 = vmatmul.mubr.f32.gmra.mrb[48].mxu1 %v7802_v43  ;;  %v7813_v43 = vld [vmem:[#allocation3 + $0xb8] sm:$0xff] }
 0x284   : > { %2402 = vmatprep.mubr.f32.mxu1 %v8928_v52 }
 0x285   : > { %v9238_v28 = vpop.f32.mrb[64].mxu0 }
 0x286   : > { %13817 = vst [vmem:[#allocation29_spill] sm:$0xff] %v9238_v28  ;;  %v1746_v51 = vpop.f32.mrb[65].mxu0 }
 0x287   : > { %2403 = vmatmul.mubr.f32.gmra.mrb[50].mxu1 %v7803_v56  ;;  %v7814_v56 = vld [vmem:[#allocation3 + $0xc0] sm:$0xff] }
 0x288   : > { %2407 = vmatprep.mubr.f32.mxu1 %v8936_v1 }
 0x289   : > { %v9241_v14 = vpop.f32.mrb[66].mxu0 }
 0x28a   : > { %13818 = vst [vmem:[#allocation35_spill] sm:$0xff] %v9241_v14  ;;  %v1751_v27 = vpop.f32.mrb[67].mxu0  ;;  %v5610_v14 = vld [vmem:[#allocation13 + $0x70] sm:$0xff] }
 0x28b   : > { %2408 = vmatmul.mubr.f32.gmra.mrb[52].mxu1 %v7804_v7  ;;  %v7815_v7 = vld [vmem:[#allocation3 + $0xc8] sm:$0xff] }
 0x28c   : > { %2412 = vmatprep.mubr.f32.mxu1 %v8944_v2 }
 0x28d   : > { %v9244_v16 = vpop.f32.mrb[68].mxu0 }
 0x28e   : > { %13819 = vst [vmem:[#allocation30_spill] sm:$0xff] %v9244_v16  ;;  %v1756_v38 = vpop.f32.mrb[69].mxu0 }
 0x28f   : > { %2413 = vmatmul.mubr.f32.gmra.mrb[54].mxu1 %v7805_v10  ;;  %v7816_v10 = vld [vmem:[#allocation3 + $0xd0] sm:$0xff] }
 0x290   : > { %2417 = vmatprep.mubr.f32.mxu1 %v8952_v4 }
 0x291   : > { %v9247_v52 = vpop.f32.mrb[70].mxu0 }
 0x292   : > { %13820 = vst [vmem:[#allocation32_spill] sm:$0xff] %v9247_v52  ;;  %v1761_v30 = vpop.f32.mrb[71].mxu0 }
 0x293   : > { %2418 = vmatmul.mubr.f32.gmra.mrb[56].mxu1 %v7806_v41  ;;  %v7817_v41 = vld [vmem:[#allocation3 + $0xd8] sm:$0xff] }
 0x294   : > { %2422 = vmatprep.mubr.f32.mxu1 %v8960_v3 }
 0x295   : > { %v9250_v1 = vpop.f32.mrb[72].mxu0 }
 0x296   : > { %13821 = vst [vmem:[#allocation37_spill] sm:$0xff] %v9250_v1  ;;  %v1766_v24 = vpop.f32.mrb[73].mxu0 }
 0x297   : > { %2423 = vmatmul.mubr.f32.gmra.mrb[58].mxu1 %v7807_v59  ;;  %v7818_v59 = vld [vmem:[#allocation3 + $0xe0] sm:$0xff] }
 0x298   : > { %2427 = vmatprep.mubr.f32.mxu1 %v13794_v11 }
 0x299   : > { %v9253_v2 = vpop.f32.mrb[74].mxu0 }
 0x29a   : > { %13822 = vst [vmem:[#allocation34_spill] sm:$0xff] %v9253_v2  ;;  %v1771_v49 = vpop.f32.mrb[75].mxu0 }
 0x29b   : > { %2428 = vmatmul.mubr.f32.gmra.mrb[60].mxu1 %v7808_v58  ;;  %v7819_v58 = vld [vmem:[#allocation3 + $0xe8] sm:$0xff] }
 0x29c   : > { %2432 = vmatprep.mubr.f32.mxu1 %v13797_v50 }
 0x29d   : > { %v9256_v4 = vpop.f32.mrb[76].mxu0 }
 0x29e   : > { %13823 = vst [vmem:[#allocation36_spill] sm:$0xff] %v9256_v4  ;;  %v1776_v33 = vpop.f32.mrb[77].mxu0 }
 0x29f   : > { %2433 = vmatmul.mubr.f32.gmra.mrb[62].mxu1 %v7809_v34  ;;  %v7820_v34 = vld [vmem:[#allocation3 + $0xf0] sm:$0xff] }
 0x2a0   : > { %2437 = vmatprep.mubr.f32.mxu1 %v13800_v55 }
 0x2a1   : > { %v9259_v3 = vpop.f32.mrb[78].mxu0 }
 0x2a2   : > { %13824 = vst [vmem:[#allocation39_spill] sm:$0xff] %v9259_v3  ;;  %v1781_v17 = vpop.f32.mrb[79].mxu0 }
 0x2a3   : > { %2438 = vmatmul.mubr.f32.gmra.mrb[64].mxu1 %v7810_v8  ;;  %v7821_v8 = vld [vmem:[#allocation3 + $0xf8] sm:$0xff] }
 0x2a4   : > { %2442 = vmatprep.mubr.f32.mxu1 %v13803_v31 }
 0x2a5   : > { %v9262_v11 = vpop.f32.mrb[80].mxu0 }
 0x2a6   : > { %13825 = vst [vmem:[#allocation38_spill] sm:$0xff] %v9262_v11  ;;  %v1786_v21 = vpop.f32.mrb[81].mxu0 }
 0x2a7   : > { %2443 = vmatmul.mubr.f32.gmra.mrb[66].mxu1 %v7811_v46  ;;  %v9297_v46 = vld [vmem:[#allocation2 + $0x40] sm:$0xff] }
 0x2a8   : > { %2447 = vmatprep.mubr.f32.mxu1 %v13806_v35 }
 0x2a9   : > { %v9265_v50 = vpop.f32.mrb[82].mxu0 }
 0x2aa   : > { %13826 = vst [vmem:[#allocation40_spill] sm:$0xff] %v9265_v50  ;;  %v1791_v20 = vpop.f32.mrb[83].mxu0 }
 0x2ab   : > { %2448 = vmatmul.mubr.f32.gmra.mrb[68].mxu1 %v7812_v42  ;;  %v1471_v42 = vld [vmem:[#allocation3 + $0x119] sm:$0xff] }
 0x2ac   : > { %2452 = vmatprep.mubr.f32.mxu1 %v13809_v12 }
 0x2ad   : > { %v9268_v55 = vpop.f32.mrb[84].mxu0 }
 0x2ae   : > { %13827 = vst [vmem:[#allocation41_spill] sm:$0xff] %v9268_v55  ;;  %v1796_v62 = vpop.f32.mrb[85].mxu0 }
 0x2af   : > { %2453 = vmatmul.mubr.f32.gmra.mrb[70].mxu1 %v7813_v43 }
 0x2b0   : > { %2457 = vmatprep.mubr.f32.mxu1 %v13810_v48 }
 0x2b1   : > { %v9271_v31 = vpop.f32.mrb[86].mxu0 }
 0x2b2   : > { %13828 = vst [vmem:[#allocation42_spill] sm:$0xff] %v9271_v31  ;;  %v1801_v51 = vpop.f32.mrb[87].mxu0 }
 0x2b3   : > { %2458 = vmatmul.mubr.f32.gmra.mrb[72].mxu1 %v7814_v56 }
 0x2b4   : > { %2462 = vmatprep.mubr.f32.mxu1 %v9028_v36 }
 0x2b5   : > { %v9274_v35 = vpop.f32.mrb[88].mxu0 }
 0x2b6   : > { %13829 = vst [vmem:[#allocation43_spill] sm:$0xff] %v9274_v35  ;;  %v1806_v27 = vpop.f32.mrb[89].mxu0 }
 0x2b7   : > { %2463 = vmatmul.mubr.f32.gmra.mrb[74].mxu1 %v7815_v7 }
 0x2b8   : > { %2467 = vmatprep.mubr.f32.mxu1 %v9037_v15 }
 0x2b9   : > { %v9277_v12 = vpop.f32.mrb[90].mxu0 }
 0x2ba   : > { %13830 = vst [vmem:[#allocation44_spill] sm:$0xff] %v9277_v12  ;;  %v1811_v38 = vpop.f32.mrb[91].mxu0  ;;  %v6397_v12 = vld [vmem:[%s13376_s4] ss:$0 sm:$0xff] }
 0x2bb   : > { %2468 = vmatmul.mubr.f32.gmra.mrb[76].mxu1 %v7816_v10 }
 0x2bc   : > { %2472 = vmatprep.mubr.f32.mxu1 %v9046_v45 }
 0x2bd   : > { %v9280_v48 = vpop.f32.mrb[92].mxu0 }
 0x2be   : > { %13831 = vst [vmem:[#allocation45_spill] sm:$0xff] %v9280_v48  ;;  %v1816_v30 = vpop.f32.mrb[93].mxu0 }
 0x2bf   : > { %2473 = vmatmul.mubr.f32.gmra.mrb[78].mxu1 %v7817_v41 }
 0x2c0   : > { %2477 = vmatprep.mubr.f32.mxu1 %v9055_v39 }
 0x2c1   : > { %v9283_v36 = vpop.f32.mrb[94].mxu0 }
 0x2c2   : > { %13832 = vst [vmem:[#allocation46_spill] sm:$0xff] %v9283_v36  ;;  %v1821_v24 = vpop.f32.mrb[95].mxu0 }
 0x2c3   : > { %2478 = vmatmul.mubr.f32.gmra.mrb[80].mxu1 %v7818_v59 }
 0x2c4   : > { %2482 = vmatprep.mubr.f32.mxu1 %v9062_v23 }
 0x2c5   : > { %v9286_v15 = vpop.f32.mrb[96].mxu0 }
 0x2c6   : > { %13833 = vst [vmem:[#allocation47_spill] sm:$0xff] %v9286_v15  ;;  %v1826_v49 = vpop.f32.mrb[97].mxu0  ;;  %v2928_v15 = vlaneseq }
 0x2c7   : > { %2483 = vmatmul.mubr.f32.gmra.mrb[82].mxu1 %v7819_v58  ;;  %v5596_v58 = vld [vmem:[#allocation13] sm:$0xff] }
 0x2c8   : > { %2487 = vmatprep.mubr.f32.mxu1 %v9069_v57  ;;  %v1470_v57 = vld [vmem:[#allocation3 + $0x111] sm:$0xff]  ;;  %v2929_v55 = vshrl.u32 %v2928_v15, 7 }
 0x2c9   : > { %v9289_v45 = vpop.f32.mrb[98].mxu0 }
 0x2ca   : > { %13834 = vst [vmem:[#allocation48_spill] sm:$0xff] %v9289_v45  ;;  %v1831_v33 = vpop.f32.mrb[99].mxu0  ;;  %v5601_v45 = vld [vmem:[#allocation13 + $0x28] sm:$0xff]  ;;  %v9362_v3 = vsub.s32 0, %v2929_v55 }
 0x2cb   : > { %2488 = vmatmul.mubr.f32.gmra.mrb[84].mxu1 %v7820_v34  ;;  %v5597_v33 = vld [vmem:[#allocation13 + $0x8] sm:$0xff]  ;;  %v5598_v34 = vld [vmem:[#allocation13 + $0x10] sm:$0xff] }
 0x2cc   : > { %2492 = vmatprep.mubr.f32.mxu1 %v9077_v9 }
 0x2cd   : > { %v9292_v39 = vpop.f32.mrb[100].mxu0 }
 0x2ce   : > { %13835 = vst [vmem:[#allocation49_spill] sm:$0xff] %v9292_v39  ;;  %v1836_v17 = vpop.f32.mrb[101].mxu0  ;;  %v5600_v39 = vld [vmem:[#allocation13 + $0x20] sm:$0xff] }
 0x2cf   : > { %2493 = vmatmul.mubr.f32.gmra.mrb[86].mxu1 %v7821_v8  ;;  %v6396_v17 = vld [vmem:[%s13375_s3] ss:$0 sm:$0xff]  ;;  %v7479_v35 = vpack.c.bf16 %v5601_v45, %v5600_v39 }
 0x2d0   : > { %2497 = vmatprep.mubr.f32.mxu1 %v9198_v61  ;;  %v1273_v48 = vmul.f32 %v6396_v17, %v9130_v26  ;;  %v1275_v26 = vmul.f32 %v6396_v17, %v9141_v37  ;;  %v1274_v39 = vmul.f32 %v6396_v17, %v9145_v44 }
 0x2d1   : > { %v9295_v23 = vpop.f32.mrb[102].mxu0 }
 0x2d2   : > { %13836 = vst [vmem:[#allocation50_spill] sm:$0xff] %v9295_v23  ;;  %v1841_v21 = vpop.f32.mrb[103].mxu0  ;;  %v1286_v50 = vadd.f32 %v6397_v12, %v1273_v48  ;;  %v9367_v48 = vsub.s32 2, %v2929_v55  ;;  %v1288_v37 = vadd.f32 %v6397_v12, %v1275_v26 }
 0x2d3   : > { %2498 = vmatmul.mubr.f32.gmra.mrb[88].mxu1 %v9297_v46  ;;  %v7471_v21 = vpack.c.bf16 %v5597_v33, %v5596_v58  ;;  %v1272_v33 = vmul.f32 %v6396_v17, %v9134_v63  ;;  %v5605_v63 = vld [vmem:[#allocation13 + $0x48] sm:$0xff] }
 0x2d4   : > { %2502 = vmatprep.mubr.f32.mxu1 %v9201_v54  ;;  %v1292_v15 = vmax.f32 %v1286_v50, 0.0  ;;  %v5607_v50 = vld [vmem:[#allocation13 + $0x58] sm:$0xff]  ;;  %v1294_v4 = vmax.f32 %v1288_v37, 0.0  ;;  %v5609_v37 = vld [vmem:[#allocation13 + $0x68] sm:$0xff] }
 0x2d5   : > { %v9301_v20 = vpop.f32.mrb[104].mxu0  ;;  %7472 = vmatprep.subr.bf16.mxu0 %v7471_v21  ;;  %v1285_v45 = vadd.f32 %v6397_v12, %v1272_v33  ;;  %v1276_v33 = vmul.f32 %v6396_v17, %v9157_v22 }
 0x2d6   : > { %v9303_v9 = vpop.f32.mrb[105].mxu0  ;;  %7474 = vmatpush3.bf16.msra.mxu0 %v7471_v21  ;;  %v9383_v26 = vrot.slane %v1292_v15, %v9367_v48 }
 0x2d7   : > { %2503 = vmatmul.mubr.f32.gmra.mrb[90].mxu1 %v9297_v46 }
 0x2d8   : > { %2507 = vmatprep.mubr.f32.mxu1 %v1470_v57  ;;  %v5599_v57 = vld [vmem:[#allocation13 + $0x18] sm:$0xff]  ;;  %13858 = vst [vmem:[#allocation72_spill] sm:$0xff] %v9383_v26 }
 0x2d9   : > { %v9306_v62 = vpop.f32.mrb[106].mxu0 }
 0x2da   : > { %v9308_v61 = vpop.f32.mrb[107].mxu0 }
 0x2db   : > { %2508 = vmatmul.mubr.f32.gmra.mrb[92].mxu1 %v9297_v46 }
 0x2dc   : > { %2512 = vmatprep.mubr.f32.mxu1 %v1471_v42  ;;  %v7475_v42 = vpack.c.bf16 %v5599_v57, %v5598_v34  ;;  %v5602_v34 = vld [vmem:[#allocation13 + $0x30] sm:$0xff]  ;;  %v5603_v57 = vld [vmem:[#allocation13 + $0x38] sm:$0xff] }
 0x2dd   : > { %v9311_v43 = vpop.f32.mrb[108].mxu0  ;;  %v7483_v11 = vpack.c.bf16 %v5603_v57, %v5602_v34  ;;  %v9374_v34 = vsub.s32 5, %v2929_v55  ;;  %v1291_v57 = vmax.f32 %v1285_v45, 0.0 }
 0x2de   : > { %13837 = vst [vmem:[#allocation51_spill] sm:$0xff] %v9311_v43  ;;  %v9313_v51 = vpop.f32.mrb[109].mxu0  ;;  %7476 = vmatprep.subr.bf16.mxu0 %v7475_v42 }
 0x2df   : > { %2513 = vmatmul.mubr.f32.gmra.mrb[94].mxu1 %v9297_v46  ;;  %7478 = vmatpush3.bf16.msra.mxu0 %v7475_v42  ;;  %v9369_v42 = vsub.s32 3, %v2929_v55  ;;  %v9395_v45 = vrot.slane %v1291_v57, %v9362_v3  ;;  %v9401_v2 = vrot.slane %v1291_v57, %v9367_v48 }
 0x2e0   : > { %7480 = vmatprep.subr.bf16.mxu0 %v7479_v35 }
 0x2e1   : > { %v9316_v54 = vpop.f32.mrb[110].mxu0  ;;  %v9386_v22 = vrot.slane %v1292_v15, %v9369_v42  ;;  %13862 = vst [vmem:[#allocation76_spill] sm:$0xff] %v9395_v45  ;;  %13864 = vst [vmem:[#allocation78_spill] sm:$0xff] %v9401_v2  ;;  %v9404_v1 = vrot.slane %v1291_v57, %v9369_v42 }
 0x2e2   : > { %13838 = vst [vmem:[#allocation52_spill] sm:$0xff] %v9316_v54  ;;  %v9318_v56 = vpop.f32.mrb[111].mxu0 }
 0x2e3   : > { %13839 = vst [vmem:[#allocation53_spill] sm:$0xff] %v9318_v56  ;;  %7482 = vmatpush3.bf16.msra.mxu0 %v7479_v35  ;;  %13859 = vst [vmem:[#allocation73_spill] sm:$0xff] %v9386_v22  ;;  %v9480_v56 = vld [vmem:[#allocation4 + $0x105] sm:$0xff] }
 0x2e4   : > { %7484 = vmatprep.subr.bf16.mxu0 %v7483_v11  ;;  %13865 = vst [vmem:[#allocation79_spill] sm:$0xff] %v9404_v1 }
 0x2e5   : > { %v9320_v27 = vpop.f32.mrb[112].mxu0 }
 0x2e6   : > { %13840 = vst [vmem:[#allocation54_spill] sm:$0xff] %v9320_v27  ;;  %v9322_v7 = vpop.f32.mrb[113].mxu0  ;;  %v9467_v27 = vld [vmem:[#allocation4 + $0x103] sm:$0xff] }
 0x2e7   : > { %13841 = vst [vmem:[#allocation55_spill] sm:$0xff] %v9322_v7  ;;  %7486 = vmatpush3.bf16.msra.mxu0 %v7483_v11  ;;  %v5608_v11 = vld [vmem:[#allocation13 + $0x60] sm:$0xff]  ;;  %v9469_v7 = vld [vmem:[#allocation4 + $0x104] sm:$0xff] }
 0x2e9   : > { %v9324_v38 = vpop.f32.mrb[114].mxu0 }
 0x2ea   : > { %13842 = vst [vmem:[#allocation56_spill] sm:$0xff] %v9324_v38  ;;  %v9326_v10 = vpop.f32.mrb[115].mxu0 }
 0x2eb   : > { %13843 = vst [vmem:[#allocation57_spill] sm:$0xff] %v9326_v10 }
 0x2ed   : > { %v9328_v30 = vpop.f32.mrb[116].mxu0 }
 0x2ee   : > { %13844 = vst [vmem:[#allocation58_spill] sm:$0xff] %v9328_v30  ;;  %v9330_v41 = vpop.f32.mrb[117].mxu0  ;;  %v9428_v30 = vrot.slane %v1294_v4, %v9374_v34 }
 0x2ef   : > { %13845 = vst [vmem:[#allocation59_spill] sm:$0xff] %v9330_v41  ;;  %v5611_v41 = vld [vmem:[#allocation13 + $0x78] sm:$0xff] }
 0x2f0   : > { %13873 = vst [vmem:[#allocation87_spill] sm:$0xff] %v9428_v30  ;;  %v7499_v60 = vpack.c.bf16 %v5611_v41, %v5610_v14 }
 0x2f1   : > { %v9332_v24 = vpop.f32.mrb[118].mxu0 }
 0x2f2   : > { %13846 = vst [vmem:[#allocation60_spill] sm:$0xff] %v9332_v24  ;;  %v9334_v59 = vpop.f32.mrb[119].mxu0  ;;  %v9422_v24 = vrot.slane %v1294_v4, %v9369_v42 }
 0x2f3   : > { %13847 = vst [vmem:[#allocation61_spill] sm:$0xff] %v9334_v59 }
 0x2f4   : > { %13871 = vst [vmem:[#allocation85_spill] sm:$0xff] %v9422_v24 }
 0x2f5   : > { %v9336_v49 = vpop.f32.mrb[120].mxu0 }
 0x2f6   : > { %13848 = vst [vmem:[#allocation62_spill] sm:$0xff] %v9336_v49  ;;  %v9341_v8 = vpop.f32.mrb[121].mxu0 }
 0x2f7   : > { %13849 = vst [vmem:[#allocation63_spill] sm:$0xff] %v9341_v8  ;;  %v9377_v8 = vrot.slane %v1292_v15, %v9362_v3 }
 0x2f9   : > { %v9343_v23 = vpop.f32.mrb[122].mxu0  ;;  %13856 = vst [vmem:[#allocation70_spill] sm:$0xff] %v9377_v8  ;;  %v9502_v14 = vmul.f32 %v9297_v46, %v9377_v8 }
 0x2fa   : > { %13850 = vst [vmem:[#allocation64_spill] sm:$0xff] %v9343_v23  ;;  %v9345_v36 = vpop.f32.mrb[123].mxu0 }
 0x2fb   : > { %13851 = vst [vmem:[#allocation65_spill] sm:$0xff] %v9345_v36  ;;  %v9365_v36 = vsub.s32 1, %v2929_v55  ;;  %13892 = vst [vmem:[#allocation106_spill] sm:$0xff] %v9502_v14 }
 0x2fd   : > { %v9351_v58 = vpop.f32.mrb[124].mxu0  ;;  %v9380_v35 = vrot.slane %v1292_v15, %v9365_v36 }
 0x2fe   : > { %13852 = vst [vmem:[#allocation66_spill] sm:$0xff] %v9351_v58  ;;  %v9354_v31 = vpop.f32.mrb[125].mxu0  ;;  %v5604_v58 = vld [vmem:[#allocation13 + $0x40] sm:$0xff] }
 0x2ff   : > { %13853 = vst [vmem:[#allocation67_spill] sm:$0xff] %v9354_v31  ;;  %v1277_v31 = vmul.f32 %v6396_v17, %v9154_v19  ;;  %v7487_v44 = vpack.c.bf16 %v5605_v63, %v5604_v58  ;;  %v5606_v19 = vld [vmem:[#allocation13 + $0x50] sm:$0xff]  ;;  %13857 = vst [vmem:[#allocation71_spill] sm:$0xff] %v9380_v35  ;;  %v1289_v17 = vadd.f32 %v6397_v12, %v1276_v33 }
 0x300   : > { %v9392_v58 = vrot.slane %v1292_v15, %v9374_v34  ;;  %v9410_v33 = vrot.slane %v1291_v57, %v9374_v34 }
 0x301   : > { %v9356_v23 = vpop.f32.mrb[126].mxu0  ;;  %v1290_v49 = vadd.f32 %v6397_v12, %v1277_v31  ;;  %7488 = vmatprep.subr.bf16.mxu0 %v7487_v44  ;;  %v7491_v31 = vpack.c.bf16 %v5607_v50, %v5606_v19  ;;  %v9413_v19 = vrot.slane %v1294_v4, %v9362_v3  ;;  %v9419_v50 = vrot.slane %v1294_v4, %v9367_v48 }
 0x302   : > { %13854 = vst [vmem:[#allocation68_spill] sm:$0xff] %v9356_v23  ;;  %v9359_v21 = vpop.f32.mrb[127].mxu0  ;;  %v9371_v23 = vsub.s32 4, %v2929_v55  ;;  %13861 = vst [vmem:[#allocation75_spill] sm:$0xff] %v9392_v58  ;;  %7490 = vmatpush3.bf16.msra.mxu0 %v7487_v44 }
 0x303   : > { %13855 = vst [vmem:[#allocation69_spill] sm:$0xff] %v9359_v21  ;;  %v1287_v21 = vadd.f32 %v6397_v12, %v1274_v39  ;;  %v9398_v39 = vrot.slane %v1291_v57, %v9365_v36  ;;  %13867 = vst [vmem:[#allocation81_spill] sm:$0xff] %v9410_v33  ;;  %7492 = vmatprep.subr.bf16.mxu0 %v7491_v31  ;;  %v9484_v33 = vld [vmem:[#allocation4 + $0x10a] sm:$0xff] }
 0x304   : > { %v9389_v55 = vrot.slane %v1292_v15, %v9371_v23  ;;  %v9407_v12 = vrot.slane %v1291_v57, %v9371_v23  ;;  %v1296_v15 = vmax.f32 %v1290_v49, 0.0  ;;  %13868 = vst [vmem:[#allocation82_spill] sm:$0xff] %v9413_v19  ;;  %13870 = vst [vmem:[#allocation84_spill] sm:$0xff] %v9419_v50  ;;  %v9425_v59 = vrot.slane %v1294_v4, %v9371_v23 }
 0x305   : > { %13863 = vst [vmem:[#allocation77_spill] sm:$0xff] %v9398_v39  ;;  %v1293_v63 = vmax.f32 %v1287_v21, 0.0  ;;  %v9416_v21 = vrot.slane %v1294_v4, %v9365_v36  ;;  %v1295_v49 = vmax.f32 %v1289_v17, 0.0  ;;  %v7495_v57 = vpack.c.bf16 %v5609_v37, %v5608_v11  ;;  %v9451_v37 = vld [vmem:[#allocation4 + $0x101] sm:$0xff] }
 0x306   : > { %13860 = vst [vmem:[#allocation74_spill] sm:$0xff] %v9389_v55  ;;  %13866 = vst [vmem:[#allocation80_spill] sm:$0xff] %v9407_v12  ;;  %v9449_v11 = vrot.slane %v1296_v15, %v9362_v3  ;;  %v9454_v28 = vrot.slane %v1296_v15, %v9365_v36  ;;  %v9457_v10 = vrot.slane %v1296_v15, %v9367_v48  ;;  %7494 = vmatpush3.bf16.msra.mxu0 %v7491_v31  ;;  %v9482_v31 = vld [vmem:[#allocation4 + $0x109] sm:$0xff] }
 0x307   : > { %13869 = vst [vmem:[#allocation83_spill] sm:$0xff] %v9416_v21  ;;  %13872 = vst [vmem:[#allocation86_spill] sm:$0xff] %v9425_v59  ;;  %v9431_v52 = vrot.slane %v1293_v63, %v9362_v3  ;;  %v9434_v16 = vrot.slane %v1293_v63, %v9365_v36  ;;  %v9437_v44 = vrot.slane %v1293_v63, %v9367_v48  ;;  %7496 = vmatprep.subr.bf16.mxu0 %v7495_v57 }
 0x308   : > { %v9440_v38 = vrot.slane %v1293_v63, %v9369_v42  ;;  %v9443_v17 = vrot.slane %v1293_v63, %v9371_v23  ;;  %v9446_v4 = vrot.slane %v1293_v63, %v9374_v34  ;;  %13880 = vst [vmem:[#allocation94_spill] sm:$0xff] %v9449_v11  ;;  %13881 = vst [vmem:[#allocation95_spill] sm:$0xff] %v9454_v28  ;;  %v9465_v63 = vld [vmem:[#allocation4 + $0x102] sm:$0xff] }
 0x309   : > { %13874 = vst [vmem:[#allocation88_spill] sm:$0xff] %v9431_v52  ;;  %13875 = vst [vmem:[#allocation89_spill] sm:$0xff] %v9434_v16  ;;  %v9460_v32 = vrot.slane %v1296_v15, %v9369_v42  ;;  %v9463_v18 = vrot.slane %v1296_v15, %v9371_v23  ;;  %v9472_v6 = vrot.slane %v1296_v15, %v9374_v34 }
 0x30a   : > { %13876 = vst [vmem:[#allocation90_spill] sm:$0xff] %v9437_v44  ;;  %13877 = vst [vmem:[#allocation91_spill] sm:$0xff] %v9440_v38  ;;  %v9475_v25 = vrot.slane %v1295_v49, %v9362_v3  ;;  %v9478_v54 = vrot.slane %v1295_v49, %v9365_v36  ;;  %v9487_v12 = vrot.slane %v1295_v49, %v9367_v48  ;;  %7498 = vmatpush3.bf16.msra.mxu0 %v7495_v57 }
 0x30b   : > { %13878 = vst [vmem:[#allocation92_spill] sm:$0xff] %v9443_v17  ;;  %13879 = vst [vmem:[#allocation93_spill] sm:$0xff] %v9446_v4  ;;  %v9490_v15 = vrot.slane %v1295_v49, %v9369_v42  ;;  %v9493_v3 = vrot.slane %v1295_v49, %v9371_v23  ;;  %v9496_v36 = vrot.slane %v1295_v49, %v9374_v34  ;;  %7500 = vmatprep.subr.bf16.mxu0 %v7499_v60 }
 0x30c   : > { %13882 = vst [vmem:[#allocation96_spill] sm:$0xff] %v9457_v10  ;;  %13883 = vst [vmem:[#allocation97_spill] sm:$0xff] %v9460_v32  ;;  %v9506_v41 = vmul.f32 %v9380_v35, %v9451_v37  ;;  %v9510_v48 = vmul.f32 %v9383_v26, %v9465_v63  ;;  %v9514_v23 = vmul.f32 %v9386_v22, %v9467_v27 }
 0x30d   : > { %13884 = vst [vmem:[#allocation98_spill] sm:$0xff] %v9463_v18  ;;  %13885 = vst [vmem:[#allocation99_spill] sm:$0xff] %v9472_v6  ;;  %v9518_v42 = vmul.f32 %v9389_v55, %v9469_v7  ;;  %v9522_v34 = vmul.f32 %v9392_v58, %v9480_v56  ;;  %v9526_v49 = vmul.f32 %v9380_v35, %v9482_v31  ;;  %v9689_v35 = vld [vmem:[#allocation4 + $0x11a] sm:$0xff] }
 0x30e   : > { %13886 = vst [vmem:[#allocation100_spill] sm:$0xff] %v9475_v25  ;;  %13887 = vst [vmem:[#allocation101_spill] sm:$0xff] %v9478_v54  ;;  %v9534_v57 = vmul.f32 %v9297_v46, %v9413_v19  ;;  %v9574_v14 = vmul.f32 %v9443_v17, %v9469_v7  ;;  %7502 = vmatpush3.bf16.msra.mxu0 %v7499_v60  ;;  %v9606_v60 = vmul.f32 %v9437_v44, %v9484_v33  ;;  %v9654_v19 = vld [vmem:[#allocation4 + $0x114] sm:$0xff] }
 0x30f   : > { %13888 = vst [vmem:[#allocation102_spill] sm:$0xff] %v9487_v12  ;;  %13889 = vst [vmem:[#allocation103_spill] sm:$0xff] %v9490_v15  ;;  %v9719_v43 = vmul.f32 %v9425_v59, %v9654_v19 }
 0x310   : > { %13890 = vst [vmem:[#allocation104_spill] sm:$0xff] %v9493_v3  ;;  %13891 = vst [vmem:[#allocation105_spill] sm:$0xff] %v9496_v36 }
 0x311   : > { %13893 = vst [vmem:[#allocation107_spill] sm:$0xff] %v9506_v41  ;;  %13894 = vst [vmem:[#allocation108_spill] sm:$0xff] %v9510_v48  ;;  %v9530_v48 = vmul.f32 %v9383_v26, %v9484_v33  ;;  %v9554_v41 = vmul.f32 %v9297_v46, %v9431_v52  ;;  %v9693_v52 = vld [vmem:[#allocation4 + $0x11c] sm:$0xff] }
 0x312   : > { %13895 = vst [vmem:[#allocation109_spill] sm:$0xff] %v9514_v23  ;;  %13896 = vst [vmem:[#allocation110_spill] sm:$0xff] %v9518_v42  ;;  %v9538_v42 = vmul.f32 %v9416_v21, %v9451_v37  ;;  %v9548_v23 = vld [vmem:[#allocation4 + $0x10c] sm:$0xff] }
 0x313   : > { %13897 = vst [vmem:[#allocation111_spill] sm:$0xff] %v9522_v34  ;;  %13898 = vst [vmem:[#allocation112_spill] sm:$0xff] %v9526_v49  ;;  %v9542_v34 = vmul.f32 %v9419_v50, %v9465_v63  ;;  %v9546_v49 = vmul.f32 %v9386_v22, %v9498_v0 }
 0x314   : > { %13899 = vst [vmem:[#allocation113_spill] sm:$0xff] %v9530_v48  ;;  %13900 = vst [vmem:[#allocation114_spill] sm:$0xff] %v9534_v57  ;;  %v9550_v48 = vld [vmem:[#allocation4 + $0x10d] sm:$0xff]  ;;  %v9558_v57 = vmul.f32 %v9434_v16, %v9451_v37 }
 0x315   : > { %13901 = vst [vmem:[#allocation115_spill] sm:$0xff] %v9538_v42  ;;  %13902 = vst [vmem:[#allocation116_spill] sm:$0xff] %v9542_v34  ;;  %v9562_v42 = vmul.f32 %v9437_v44, %v9465_v63  ;;  %v9566_v34 = vmul.f32 %v9422_v24, %v9467_v27 }
 0x316   : > { %13903 = vst [vmem:[#allocation117_spill] sm:$0xff] %v9546_v49  ;;  %13904 = vst [vmem:[#allocation118_spill] sm:$0xff] %v9554_v41  ;;  %v9570_v49 = vmul.f32 %v9440_v38, %v9467_v27  ;;  %v9578_v41 = vmul.f32 %v9446_v4, %v9480_v56 }
 0x317   : > { %13905 = vst [vmem:[#allocation119_spill] sm:$0xff] %v9558_v57  ;;  %13906 = vst [vmem:[#allocation120_spill] sm:$0xff] %v9562_v42  ;;  %v9582_v57 = vmul.f32 %v9425_v59, %v9469_v7  ;;  %v9634_v42 = vld [vmem:[#allocation4 + $0x112] sm:$0xff] }
 0x318   : > { %13907 = vst [vmem:[#allocation121_spill] sm:$0xff] %v9566_v34  ;;  %13908 = vst [vmem:[#allocation122_spill] sm:$0xff] %v9570_v49  ;;  %v9586_v34 = vmul.f32 %v9428_v30, %v9480_v56  ;;  %v9590_v49 = vmul.f32 %v9389_v55, %v9548_v23 }
 0x319   : > { %13909 = vst [vmem:[#allocation123_spill] sm:$0xff] %v9574_v14  ;;  %13910 = vst [vmem:[#allocation124_spill] sm:$0xff] %v9578_v41  ;;  %v9594_v14 = vmul.f32 %v9392_v58, %v9550_v48  ;;  %v9598_v41 = vmul.f32 %v9416_v21, %v9482_v31  ;;  %v9656_v58 = vld [vmem:[#allocation4 + $0x115] sm:$0xff] }
 0x31a   : > { %13911 = vst [vmem:[#allocation125_spill] sm:$0xff] %v9582_v57  ;;  %13912 = vst [vmem:[#allocation126_spill] sm:$0xff] %v9586_v34  ;;  %v9602_v57 = vmul.f32 %v9434_v16, %v9482_v31  ;;  %v9610_v34 = vmul.f32 %v9440_v38, %v9498_v0 }
 0x31b   : > { %13913 = vst [vmem:[#allocation127_spill] sm:$0xff] %v9590_v49  ;;  %13914 = vst [vmem:[#allocation128_spill] sm:$0xff] %v9594_v14  ;;  %v9614_v49 = vmul.f32 %v9419_v50, %v9484_v33  ;;  %v9618_v14 = vmul.f32 %v9443_v17, %v9548_v23 }
 0x31c   : > { %13915 = vst [vmem:[#allocation129_spill] sm:$0xff] %v9598_v41  ;;  %13916 = vst [vmem:[#allocation130_spill] sm:$0xff] %v9602_v57  ;;  %v9622_v41 = vmul.f32 %v9446_v4, %v9550_v48  ;;  %v9626_v57 = vmul.f32 %v9422_v24, %v9498_v0 }
 0x31d   : > { %13917 = vst [vmem:[#allocation131_spill] sm:$0xff] %v9606_v60  ;;  %13918 = vst [vmem:[#allocation132_spill] sm:$0xff] %v9610_v34  ;;  %v9630_v60 = vmul.f32 %v9425_v59, %v9548_v23  ;;  %v9632_v34 = vld [vmem:[#allocation4 + $0x111] sm:$0xff] }
 0x31e   : > { %13919 = vst [vmem:[#allocation133_spill] sm:$0xff] %v9614_v49  ;;  %13920 = vst [vmem:[#allocation134_spill] sm:$0xff] %v9618_v14  ;;  %v9636_v49 = vld [vmem:[#allocation4 + $0x113] sm:$0xff]  ;;  %v9640_v14 = vmul.f32 %v9297_v46, %v9449_v11 }
 0x31f   : > { %13921 = vst [vmem:[#allocation135_spill] sm:$0xff] %v9622_v41  ;;  %13922 = vst [vmem:[#allocation136_spill] sm:$0xff] %v9626_v57  ;;  %v9644_v41 = vmul.f32 %v9454_v28, %v9451_v37  ;;  %v9648_v57 = vmul.f32 %v9457_v10, %v9465_v63  ;;  %v9674_v11 = vld [vmem:[#allocation4 + $0x119] sm:$0xff] }
 0x320   : > { %13923 = vst [vmem:[#allocation137_spill] sm:$0xff] %v9630_v60  ;;  %13924 = vst [vmem:[#allocation138_spill] sm:$0xff] %v9640_v14  ;;  %v9652_v60 = vmul.f32 %v9428_v30, %v9550_v48  ;;  %v9660_v14 = vmul.f32 %v9460_v32, %v9467_v27 }
 0x321   : > { %13925 = vst [vmem:[#allocation139_spill] sm:$0xff] %v9644_v41  ;;  %13926 = vst [vmem:[#allocation140_spill] sm:$0xff] %v9648_v57  ;;  %v9664_v41 = vmul.f32 %v9463_v18, %v9469_v7  ;;  %v9668_v57 = vmul.f32 %v9472_v6, %v9480_v56 }
 0x322   : > { %13927 = vst [vmem:[#allocation141_spill] sm:$0xff] %v9652_v60  ;;  %13928 = vst [vmem:[#allocation142_spill] sm:$0xff] %v9660_v14  ;;  %v9672_v60 = vmul.f32 %v9416_v21, %v9632_v34  ;;  %v9679_v14 = vmul.f32 %v9434_v16, %v9632_v34 }
 0x323   : > { %13929 = vst [vmem:[#allocation143_spill] sm:$0xff] %v9664_v41  ;;  %13930 = vst [vmem:[#allocation144_spill] sm:$0xff] %v9668_v57  ;;  %v9683_v41 = vmul.f32 %v9419_v50, %v9634_v42  ;;  %v9687_v57 = vmul.f32 %v9422_v24, %v9636_v49 }
 0x324   : > { %13931 = vst [vmem:[#allocation145_spill] sm:$0xff] %v9672_v60  ;;  %13932 = vst [vmem:[#allocation146_spill] sm:$0xff] %v9679_v14  ;;  %v9691_v60 = vld [vmem:[#allocation4 + $0x11b] sm:$0xff] }
 0x325   : > { %13933 = vst [vmem:[#allocation147_spill] sm:$0xff] %v9683_v41  ;;  %13934 = vst [vmem:[#allocation148_spill] sm:$0xff] %v9687_v57  ;;  %v9710_v57 = vmul.f32 %v9443_v17, %v9654_v19  ;;  %v9714_v41 = vmul.f32 %v9446_v4, %v9656_v58 }
 0x326   : > { %13939 = vst [vmem:[#allocation153_spill] sm:$0xff] %v9719_v43  ;;  %v9748_v43 = vmul.f32 %v9443_v17, %v9693_v52 }
 0x327   : > { %13937 = vst [vmem:[#allocation151_spill] sm:$0xff] %v9710_v57  ;;  %13938 = vst [vmem:[#allocation152_spill] sm:$0xff] %v9714_v41  ;;  %v9732_v57 = vld [vmem:[%s13942_s9] ss:$0 sm:$0xff] }
 0x328   : > { %13946 = vst [vmem:[#allocation159_spill] sm:$0xff] %v9748_v43  ;;  %v9766_v43 = vmul.f32 %v9472_v6, %v9550_v48 }
 0x32a   : > { %13950 = vst [vmem:[#allocation163_spill] sm:$0xff] %v9766_v43 }
 0x336   : > { %v2359_v55 = vpop.f32.mrb[32].mxu1 }
 0x337   : > { %v7535_v22 = vadd.f32 %v2359_v55, %v9204_v40  ;;  %v2361_v26 = vpop.f32.mrb[33].mxu1  ;;  %v9698_v40 = vld [vmem:[%s13378_s6] ss:$0 sm:$0xff]  ;;  %v9706_v55 = vmul.f32 %v9440_v38, %v9636_v49 }
 0x338   : > { %v9702_v26 = vmul.f32 %v9437_v44, %v9634_v42 }
 0x339   : > { %13936 = vst [vmem:[#allocation150_spill] sm:$0xff] %v9706_v55  ;;  %v2585_v14 = vadd.f32 %v7535_v22, %v9303_v9  ;;  %v9727_v55 = vmul.f32 %v9434_v16, %v9674_v11  ;;  %v9736_v9 = vmul.f32 %v9454_v28, %v9482_v31  ;;  %v9740_v22 = vmul.f32 %v9437_v44, %v9689_v35 }
 0x33a   : > { %13935 = vst [vmem:[#allocation149_spill] sm:$0xff] %v9702_v26  ;;  %v9723_v26 = vmul.f32 %v9428_v30, %v9656_v58  ;;  %v2364_v41 = vpop.f32.mrb[34].mxu1 }
 0x33b   : > { %13941 = vst [vmem:[#allocation155_spill] sm:$0xff] %v9727_v55  ;;  %13943 = vst [vmem:[#allocation156_spill] sm:$0xff] %v9736_v9  ;;  %v2750_v55 = vmul.f32 %v9698_v40, %v2585_v14  ;;  %v7536_v16 = vadd.f32 %v2364_v41, %v9207_v13  ;;  %v2366_v1 = vpop.f32.mrb[35].mxu1  ;;  %v9754_v9 = vmul.f32 %v9457_v10, %v9484_v33 }
 0x33c   : > { %13940 = vst [vmem:[#allocation154_spill] sm:$0xff] %v9723_v26  ;;  %13944 = vst [vmem:[#allocation157_spill] sm:$0xff] %v9740_v22  ;;  %v9744_v26 = vmul.f32 %v9440_v38, %v9691_v60  ;;  %v9758_v22 = vmul.f32 %v9460_v32, %v9498_v0  ;;  %v9770_v13 = vmul.f32 %v9297_v46, %v9475_v25 }
 0x33d   : > { %13947 = vst [vmem:[#allocation160_spill] sm:$0xff] %v9754_v9  ;;  %v9774_v1 = vmul.f32 %v9478_v54, %v9451_v37  ;;  %v2789_v14 = vadd.f32 %v9732_v57, %v2750_v55  ;;  %v2590_v41 = vadd.f32 %v7536_v16, %v9301_v20  ;;  %v9788_v46 = vmul.f32 %v9487_v12, %v9634_v42 }
 0x33e   : > { %13945 = vst [vmem:[#allocation158_spill] sm:$0xff] %v9744_v26  ;;  %13948 = vst [vmem:[#allocation161_spill] sm:$0xff] %v9758_v22  ;;  %v9762_v26 = vmul.f32 %v9463_v18, %v9548_v23  ;;  %v9780_v22 = vmul.f32 %v9478_v54, %v9632_v34  ;;  %v2369_v43 = vpop.f32.mrb[36].mxu1  ;;  %v9792_v37 = vmul.f32 %v9490_v15, %v9467_v27  ;;  %v4267_v27 = vld [vmem:[#allocation4 + $0x11d] sm:$0xff] }
 0x33f   : > { %13951 = vst [vmem:[#allocation164_spill] sm:$0xff] %v9770_v13  ;;  %13952 = vst [vmem:[#allocation165_spill] sm:$0xff] %v9774_v1  ;;  %v9796_v16 = vmul.f32 %v9490_v15, %v9636_v49  ;;  %v9800_v20 = vmul.f32 %v9493_v3, %v9469_v7  ;;  %v2821_v55 = vmax.f32 %v2789_v14, 0.0  ;;  %v7537_v9 = vadd.f32 %v2369_v43, %v9209_v47  ;;  %v14006_v1 = vld [vmem:[#allocation53_spill] sm:$0xff] }
 0x340   : > { %13949 = vst [vmem:[#allocation162_spill] sm:$0xff] %v9762_v26  ;;  %13953 = vst [vmem:[#allocation166_spill] sm:$0xff] %v9780_v22  ;;  %v9784_v26 = vmul.f32 %v9487_v12, %v9465_v63  ;;  %v2751_v63 = vmul.f32 %v9698_v40, %v2590_v41  ;;  %v2371_v22 = vpop.f32.mrb[37].mxu1  ;;  %v9818_v7 = vmul.f32 %v9454_v28, %v9632_v34 }
 0x341   : > { %13955 = vst [vmem:[#allocation168_spill] sm:$0xff] %v9788_v46  ;;  %13956 = vst [vmem:[#allocation169_spill] sm:$0xff] %v9792_v37  ;;  %v9806_v46 = vmul.f32 %v9493_v3, %v9654_v19  ;;  %v9810_v37 = vmul.f32 %v9496_v36, %v9480_v56  ;;  %v9822_v47 = vmul.f32 %v9457_v10, %v9634_v42 }
 0x342   : > { %13954 = vst [vmem:[#allocation167_spill] sm:$0xff] %v9784_v26  ;;  %13957 = vst [vmem:[#allocation170_spill] sm:$0xff] %v9796_v16  ;;  %v9814_v16 = vmul.f32 %v9496_v36, %v9656_v58  ;;  %v2790_v43 = vadd.f32 %v9732_v57, %v2751_v63  ;;  %v2595_v22 = vadd.f32 %v7537_v9, %v9308_v61  ;;  %v2374_v41 = vpop.f32.mrb[38].mxu1 }
 0x343   : > { %13958 = vst [vmem:[#allocation171_spill] sm:$0xff] %v9800_v20  ;;  %13959 = vst [vmem:[#allocation172_spill] sm:$0xff] %v9806_v46  ;;  %v9828_v56 = vmul.f32 %v9460_v32, %v9636_v49  ;;  %v9832_v14 = vmul.f32 %v9463_v18, %v9654_v19  ;;  %v9836_v34 = vmul.f32 %v9472_v6, %v9656_v58 }
 0x344   : > { %13960 = vst [vmem:[#allocation173_spill] sm:$0xff] %v9810_v37  ;;  %13961 = vst [vmem:[#allocation174_spill] sm:$0xff] %v9814_v16  ;;  %v9839_v42 = vmul.f32 %v9446_v4, %v4267_v27  ;;  %v9843_v63 = vmul.f32 %v9416_v21, %v9674_v11  ;;  %v9847_v61 = vmul.f32 %v9419_v50, %v9689_v35  ;;  %v2822_v19 = vmax.f32 %v2790_v43, 0.0  ;;  %v14000_v37 = vld [vmem:[#allocation25_spill] sm:$0xff] }
 0x345   : > { %13962 = vst [vmem:[#allocation175_spill] sm:$0xff] %v9818_v7  ;;  %13963 = vst [vmem:[#allocation176_spill] sm:$0xff] %v9822_v47  ;;  %v9850_v49 = vmul.f32 %v9395_v45, %v2821_v55  ;;  %v2752_v9 = vmul.f32 %v9698_v40, %v2595_v22  ;;  %v7538_v58 = vadd.f32 %v2374_v41, %v9212_v5  ;;  %v4406_v7 = vld [vmem:[#allocation4 + $0x121] sm:$0xff] }
 0x346   : > { %2853 = vst [vmem:[#allocation4] sm:$0xff] %v2821_v55  ;;  %13964 = vst [vmem:[#allocation177_spill] sm:$0xff] %v9828_v56  ;;  %v9860_v16 = vmul.f32 %v9425_v59, %v9693_v52  ;;  %v9863_v56 = vmul.f32 %v9428_v30, %v4267_v27  ;;  %v9867_v55 = vmul.f32 %v9478_v54, %v9482_v31 }
 0x347   : > { %13965 = vst [vmem:[#allocation178_spill] sm:$0xff] %v9832_v14  ;;  %13966 = vst [vmem:[#allocation179_spill] sm:$0xff] %v9836_v34  ;;  %v2376_v34 = vpop.f32.mrb[39].mxu1  ;;  %v9856_v14 = vmul.f32 %v9422_v24, %v9691_v60  ;;  %v2791_v43 = vadd.f32 %v9732_v57, %v2752_v9  ;;  %v2600_v5 = vadd.f32 %v7538_v58, %v9306_v62 }
 0x348   : > { %13967 = vst [vmem:[#allocation180_spill] sm:$0xff] %v9839_v42  ;;  %13968 = vst [vmem:[#allocation181_spill] sm:$0xff] %v9843_v63  ;;  %v9873_v22 = vmul.f32 %v9478_v54, %v9674_v11  ;;  %v9877_v41 = vmul.f32 %v9487_v12, %v9484_v33  ;;  %v2379_v34 = vpop.f32.mrb[40].mxu1  ;;  %v9881_v46 = vmul.f32 %v9487_v12, %v9689_v35 }
 0x349   : > { %13969 = vst [vmem:[#allocation182_spill] sm:$0xff] %v9847_v61  ;;  %13970 = vst [vmem:[#allocation183_spill] sm:$0xff] %v9856_v14  ;;  %v9885_v31 = vmul.f32 %v9490_v15, %v9498_v0  ;;  %v9889_v62 = vmul.f32 %v9490_v15, %v9691_v60  ;;  %v9893_v9 = vmul.f32 %v9493_v3, %v9548_v23  ;;  %v2823_v58 = vmax.f32 %v2791_v43, 0.0  ;;  %v2381_v47 = vpop.f32.mrb[41].mxu1  ;;  %v4476_v0 = vld [vmem:[#allocation4 + $0x122] sm:$0xff]  ;;  %v14005_v61 = vld [vmem:[#allocation88_spill] sm:$0xff] }
 0x34a   : > { %13971 = vst [vmem:[#allocation184_spill] sm:$0xff] %v9860_v16  ;;  %13972 = vst [vmem:[#allocation185_spill] sm:$0xff] %v9863_v56  ;;  %v9896_v33 = vmul.f32 %v9395_v45, %v2822_v19  ;;  %v9902_v56 = vmul.f32 %v9493_v3, %v9693_v52  ;;  %v9909_v23 = vmul.f32 %v9496_v36, %v4267_v27  ;;  %v14001_v16 = vld [vmem:[#allocation80_spill] sm:$0xff] }
 0x34b   : > { %13973 = vst [vmem:[#allocation186_spill] sm:$0xff] %v9867_v55  ;;  %2854 = vst [vmem:[#allocation4 + $0x8] sm:$0xff] %v2822_v19  ;;  %v9913_v19 = vmul.f32 %v9454_v28, %v9674_v11  ;;  %v9919_v43 = vmul.f32 %v9457_v10, %v9689_v35  ;;  %v9927_v11 = vmul.f32 %v9463_v18, %v9693_v52  ;;  %v14013_v10 = vld [vmem:[#allocation74_spill] sm:$0xff] }
 0x34c   : > { %13974 = vst [vmem:[#allocation187_spill] sm:$0xff] %v9873_v22  ;;  %13975 = vst [vmem:[#allocation188_spill] sm:$0xff] %v9877_v41  ;;  %v2753_v22 = vmul.f32 %v9698_v40, %v2600_v5  ;;  %v4546_v5 = vld [vmem:[#allocation4 + $0x123] sm:$0xff]  ;;  %v9936_v35 = vmul.f32 %v9419_v50, %v4476_v0 }
 0x34d   : > { %13976 = vst [vmem:[#allocation189_spill] sm:$0xff] %v9881_v46  ;;  %13977 = vst [vmem:[#allocation190_spill] sm:$0xff] %v9885_v31  ;;  %v7539_v46 = vadd.f32 %v2379_v34, %v9214_v29  ;;  %v4616_v34 = vld [vmem:[#allocation4 + $0x124] sm:$0xff]  ;;  %v14002_v31 = vld [vmem:[#allocation81_spill] sm:$0xff] }
 0x34e   : > { %13978 = vst [vmem:[#allocation191_spill] sm:$0xff] %v9889_v62  ;;  %13979 = vst [vmem:[#allocation192_spill] sm:$0xff] %v9893_v9  ;;  %v9906_v62 = vmul.f32 %v9496_v36, %v9550_v48  ;;  %v2792_v29 = vadd.f32 %v9732_v57, %v2753_v22  ;;  %v9923_v48 = vmul.f32 %v9460_v32, %v9691_v60  ;;  %v14014_v36 = vld [vmem:[#allocation75_spill] sm:$0xff] }
 0x34f   : > { %13980 = vst [vmem:[#allocation193_spill] sm:$0xff] %v9902_v56  ;;  %13982 = vst [vmem:[#allocation195_spill] sm:$0xff] %v9909_v23  ;;  %v2605_v47 = vadd.f32 %v7539_v46, %v9313_v51  ;;  %v4686_v23 = vld [vmem:[#allocation4 + $0x125] sm:$0xff]  ;;  %v2384_v56 = vpop.f32.mrb[42].mxu1  ;;  %v9930_v22 = vmul.f32 %v9472_v6, %v4267_v27  ;;  %v9933_v51 = vmul.f32 %v9416_v21, %v4406_v7 }
 0x350   : > { %13981 = vst [vmem:[#allocation194_spill] sm:$0xff] %v9906_v62  ;;  %13983 = vst [vmem:[#allocation196_spill] sm:$0xff] %v9913_v19  ;;  %v9939_v60 = vmul.f32 %v9395_v45, %v2823_v58  ;;  %v2824_v46 = vmax.f32 %v2792_v29, 0.0  ;;  %v2386_v19 = vpop.f32.mrb[43].mxu1  ;;  %v9944_v27 = vmul.f32 %v9377_v8, %v2823_v58 }
 0x351   : > { %2855 = vst [vmem:[#allocation4 + $0x10] sm:$0xff] %v2823_v58  ;;  %13984 = vst [vmem:[#allocation197_spill] sm:$0xff] %v9919_v43  ;;  %v7540_v43 = vadd.f32 %v2384_v56, %v9217_v53  ;;  %v9957_v56 = vmul.f32 %v9478_v54, %v4406_v7  ;;  %v9960_v58 = vmul.f32 %v9487_v12, %v4476_v0  ;;  %v13999_v0 = vld [vmem:[#allocation51_spill] sm:$0xff] }
 0x352   : > { %13985 = vst [vmem:[#allocation198_spill] sm:$0xff] %v9923_v48  ;;  %13986 = vst [vmem:[#allocation199_spill] sm:$0xff] %v9927_v11  ;;  %v2754_v48 = vmul.f32 %v9698_v40, %v2605_v47  ;;  %v2996_v52 = vld [vmem:[#allocation4 + $0x1] sm:$0xff]  ;;  %v9963_v19 = vmul.f32 %v9490_v15, %v4546_v5 }
 0x353   : > { %13987 = vst [vmem:[#allocation200_spill] sm:$0xff] %v9930_v22  ;;  %13988 = vst [vmem:[#allocation201_spill] sm:$0xff] %v9933_v51  ;;  %v3096_v11 = vld [vmem:[#allocation4 + $0x2] sm:$0xff]  ;;  %v9947_v22 = vmul.f32 %v9422_v24, %v4546_v5  ;;  %v9953_v51 = vmul.f32 %v9428_v30, %v4686_v23  ;;  %v3032_v29 = vmul.f32 %v9398_v39, %v2996_v52  ;;  %v2389_v23 = vpop.f32.mrb[44].mxu1 }
 0x354   : > { %13989 = vst [vmem:[#allocation202_spill] sm:$0xff] %v9936_v35  ;;  %v3196_v62 = vld [vmem:[#allocation4 + $0x3] sm:$0xff]  ;;  %v9950_v35 = vmul.f32 %v9425_v59, %v4616_v34  ;;  %2856 = vst [vmem:[#allocation4 + $0x18] sm:$0xff] %v2824_v46  ;;  %v9971_v52 = vmul.f32 %v9454_v28, %v4406_v7  ;;  %v7541_v5 = vadd.f32 %v2389_v23, %v14000_v37 }
 0x355   : > { %13990 = vst [vmem:[#allocation203_spill] sm:$0xff] %v9947_v22  ;;  %13992 = vst [vmem:[#allocation205_spill] sm:$0xff] %v9953_v51  ;;  %v3296_v47 = vld [vmem:[#allocation4 + $0x4] sm:$0xff]  ;;  %v3132_v22 = vmul.f32 %v9401_v2, %v3096_v11  ;;  %v9968_v51 = vmul.f32 %v9493_v3, %v4616_v34  ;;  %v3064_v9 = vadd.f32 %v3032_v29, %v9850_v49 }
 0x356   : > { %13991 = vst [vmem:[#allocation204_spill] sm:$0xff] %v9950_v35  ;;  %v3396_v53 = vld [vmem:[#allocation4 + $0x5] sm:$0xff]  ;;  %13993 = vst [vmem:[#allocation206_spill] sm:$0xff] %v9957_v56  ;;  %v2793_v35 = vadd.f32 %v9732_v57, %v2754_v48  ;;  %v3332_v11 = vmul.f32 %v14001_v16, %v3296_v47  ;;  %v9987_v47 = vmul.f32 %v9377_v8, %v2824_v46 }
 0x357   : > { %13994 = vst [vmem:[#allocation207_spill] sm:$0xff] %v9960_v58  ;;  %13995 = vst [vmem:[#allocation208_spill] sm:$0xff] %v9963_v19  ;;  %v13998_v56 = vld [vmem:[#allocation79_spill] sm:$0xff]  ;;  %v2610_v58 = vadd.f32 %v7540_v43, %v13999_v0  ;;  %v2391_v19 = vpop.f32.mrb[45].mxu1  ;;  %v3432_v48 = vmul.f32 %v14002_v31, %v3396_v53  ;;  %v3164_v49 = vadd.f32 %v3132_v22, %v3064_v9 }
 0x358   : > { %13996 = vst [vmem:[#allocation209_spill] sm:$0xff] %v9968_v51  ;;  %13997 = vst [vmem:[#allocation210_spill] sm:$0xff] %v9971_v52  ;;  %v3232_v42 = vmul.f32 %v13998_v56, %v3196_v62  ;;  %v2997_v20 = vld [vmem:[#allocation4 + $0x9] sm:$0xff]  ;;  %v9980_v51 = vmul.f32 %v9395_v45, %v2824_v46  ;;  %v2825_v7 = vmax.f32 %v2793_v35, 0.0  ;;  %v9982_v52 = vpop.f32.mrb[128].mxu0  ;;  %v2615_v13 = vadd.f32 %v7541_v5, %v14006_v1 }
 0x359   : > { %v3097_v14 = vld [vmem:[#allocation4 + $0xa] sm:$0xff]  ;;  %14003 = vst [vmem:[#allocation51_spill] sm:$0xff] %v9982_v52  ;;  %v3033_v62 = vmul.f32 %v9398_v39, %v2997_v20  ;;  %v9989_v53 = vpop.f32.mrb[129].mxu0  ;;  %v2394_v20 = vpop.f32.mrb[46].mxu1 }
 0x35a   : > { %v3197_v34 = vld [vmem:[#allocation4 + $0xb] sm:$0xff]  ;;  %v3133_v43 = vmul.f32 %v9401_v2, %v3097_v14  ;;  %14004 = vst [vmem:[#allocation25_spill] sm:$0xff] %v9989_v53  ;;  %2857 = vst [vmem:[#allocation4 + $0x20] sm:$0xff] %v2825_v7  ;;  %v9995_v9 = vmul.f32 %v9395_v45, %v2825_v7  ;;  %v3264_v22 = vadd.f32 %v3232_v42, %v3164_v49 }
 0x35b   : > { %v3297_v37 = vld [vmem:[#allocation4 + $0xc] sm:$0xff]  ;;  %v3233_v23 = vmul.f32 %v13998_v56, %v3197_v34  ;;  %v3065_v41 = vadd.f32 %v3033_v62, %v9896_v33  ;;  %v9999_v46 = vmul.f32 %v9377_v8, %v2825_v7  ;;  %v10002_v55 = vmul.f32 %v14005_v61, %v2825_v7  ;;  %v2396_v34 = vpop.f32.mrb[47].mxu1  ;;  %v3298_v6 = vld [vmem:[#allocation4 + $0x14] sm:$0xff] }
 0x35c   : > { %v3397_v29 = vld [vmem:[#allocation4 + $0xd] sm:$0xff]  ;;  %v3333_v0 = vmul.f32 %v14001_v16, %v3297_v37  ;;  %v3364_v33 = vadd.f32 %v3332_v11, %v3264_v22  ;;  %v3398_v7 = vld [vmem:[#allocation4 + $0x15] sm:$0xff]  ;;  %v3334_v1 = vmul.f32 %v14001_v16, %v3298_v6  ;;  %v2399_v5 = vpop.f32.mrb[48].mxu1  ;;  %v3782_v28 = vmul.f32 %v14013_v10, %v3298_v6 }
 0x35d   : > { %v4407_v19 = vld [vmem:[#allocation4 + $0x129] sm:$0xff]  ;;  %v3433_v35 = vmul.f32 %v14002_v31, %v3397_v29  ;;  %v2998_v26 = vld [vmem:[#allocation4 + $0x11] sm:$0xff]  ;;  %v2755_v29 = vmul.f32 %v9698_v40, %v2610_v58  ;;  %v3165_v49 = vadd.f32 %v3133_v43, %v3065_v41  ;;  %v2401_v22 = vpop.f32.mrb[49].mxu1  ;;  %v3852_v3 = vmul.f32 %v14014_v36, %v3398_v7 }
 0x35e   : > { %v4477_v14 = vld [vmem:[#allocation4 + $0x12a] sm:$0xff]  ;;  %v3098_v37 = vld [vmem:[#allocation4 + $0x12] sm:$0xff]  ;;  %v10008_v42 = vmul.f32 %v9416_v21, %v4407_v19  ;;  %v3034_v62 = vmul.f32 %v9398_v39, %v2998_v26  ;;  %v2756_v6 = vmul.f32 %v9698_v40, %v2615_v13 }
 0x35f   : > { %v3198_v63 = vld [vmem:[#allocation4 + $0x13] sm:$0xff]  ;;  %v14007_v52 = vld [vmem:[#allocation31_spill] sm:$0xff]  ;;  %v10012_v34 = vmul.f32 %v9419_v50, %v4477_v14  ;;  %v3134_v18 = vmul.f32 %v9401_v2, %v3098_v37  ;;  %v3265_v19 = vadd.f32 %v3233_v23, %v3165_v49 }
 0x360   : > { %v7542_v53 = vadd.f32 %v2394_v20, %v14007_v52  ;;  %14008 = vst [vmem:[#allocation53_spill] sm:$0xff] %v10008_v42  ;;  %v3234_v58 = vmul.f32 %v13998_v56, %v3198_v63  ;;  %v3434_v52 = vmul.f32 %v14002_v31, %v3398_v7  ;;  %v3464_v20 = vadd.f32 %v3432_v48, %v3364_v33  ;;  %v14010_v11 = vld [vmem:[#allocation71_spill] sm:$0xff]  ;;  %v14011_v42 = vld [vmem:[#allocation72_spill] sm:$0xff]  ;;  %v14012_v14 = vld [vmem:[#allocation73_spill] sm:$0xff] }
 0x361   : > { %14009 = vst [vmem:[#allocation31_spill] sm:$0xff] %v10012_v34  ;;  %v3066_v41 = vadd.f32 %v3034_v62, %v9939_v60  ;;  %v3572_v43 = vmul.f32 %v14010_v11, %v2998_v26  ;;  %v3642_v32 = vmul.f32 %v14011_v42, %v3098_v37  ;;  %v3712_v34 = vmul.f32 %v14012_v14, %v3198_v63  ;;  %v2999_v25 = vld [vmem:[#allocation4 + $0x19] sm:$0xff]  ;;  %v2404_v62 = vpop.f32.mrb[50].mxu1 }
 0x362   : > { %v3365_v15 = vadd.f32 %v3333_v0, %v3265_v19  ;;  %v3534_v12 = vadd.f32 %v9944_v27, %v3464_v20  ;;  %v3099_v23 = vld [vmem:[#allocation4 + $0x1a] sm:$0xff]  ;;  %v2794_v60 = vadd.f32 %v9732_v57, %v2755_v29  ;;  %v3035_v26 = vmul.f32 %v9398_v39, %v2999_v25  ;;  %v2406_v19 = vpop.f32.mrb[51].mxu1 }
 0x363   : > { %v3166_v54 = vadd.f32 %v3134_v18, %v3066_v41  ;;  %v3199_v48 = vld [vmem:[#allocation4 + $0x1b] sm:$0xff]  ;;  %v3135_v33 = vmul.f32 %v9401_v2, %v3099_v23  ;;  %v3573_v18 = vmul.f32 %v14010_v11, %v2999_v25  ;;  %v3643_v22 = vmul.f32 %v14011_v42, %v3099_v23 }
 0x364   : > { %v3235_v37 = vmul.f32 %v13998_v56, %v3199_v48  ;;  %v3299_v63 = vld [vmem:[#allocation4 + $0x1c] sm:$0xff]  ;;  %v3465_v0 = vadd.f32 %v3433_v35, %v3365_v15  ;;  %v3604_v27 = vadd.f32 %v3572_v43, %v3534_v12  ;;  %v3067_v20 = vadd.f32 %v3035_v26, %v9980_v51  ;;  %v2409_v35 = vpop.f32.mrb[52].mxu1  ;;  %v14015_v26 = vld [vmem:[#allocation52_spill] sm:$0xff] }
 0x365   : > { %v3399_v49 = vld [vmem:[#allocation4 + $0x1d] sm:$0xff]  ;;  %v3266_v7 = vadd.f32 %v3234_v58, %v3166_v54  ;;  %v3335_v29 = vmul.f32 %v14001_v16, %v3299_v63  ;;  %v3713_v13 = vmul.f32 %v14012_v14, %v3199_v48  ;;  %v3783_v54 = vmul.f32 %v14013_v10, %v3299_v63  ;;  %v2411_v50 = vpop.f32.mrb[53].mxu1 }
 0x366   : > { %v3435_v41 = vmul.f32 %v14002_v31, %v3399_v49  ;;  %v3674_v59 = vadd.f32 %v3642_v32, %v3604_v27  ;;  %v3535_v24 = vadd.f32 %v9987_v47, %v3465_v0  ;;  %v3167_v15 = vadd.f32 %v3135_v33, %v3067_v20  ;;  %v14020_v20 = vld [vmem:[#allocation54_spill] sm:$0xff] }
 0x367   : > { %v3366_v30 = vadd.f32 %v3334_v1, %v3266_v7  ;;  %v2826_v12 = vmax.f32 %v2794_v60, 0.0  ;;  %v2795_v25 = vadd.f32 %v9732_v57, %v2756_v6  ;;  %v2620_v19 = vadd.f32 %v7542_v53, %v14015_v26  ;;  %v14018_v53 = vld [vmem:[#allocation27_spill] sm:$0xff] }
 0x368   : > { %v3744_v58 = vadd.f32 %v3712_v34, %v3674_v59  ;;  %v3605_v43 = vadd.f32 %v3573_v18, %v3535_v24  ;;  %v3267_v23 = vadd.f32 %v3235_v37, %v3167_v15  ;;  %v3853_v32 = vmul.f32 %v14014_v36, %v3399_v49  ;;  %v14017_v59 = vld [vmem:[#allocation26_spill] sm:$0xff] }
 0x369   : > { %v3466_v51 = vadd.f32 %v3434_v52, %v3366_v30  ;;  %2858 = vst [vmem:[#allocation4 + $0x28] sm:$0xff] %v2826_v12  ;;  %v10042_v47 = vmul.f32 %v9395_v45, %v2826_v12  ;;  %v3505_v1 = vmul.f32 %v9377_v8, %v2826_v12  ;;  %v10046_v63 = vmax.f32 %v2795_v25, 0.0  ;;  %v2414_v52 = vpop.f32.mrb[54].mxu1  ;;  %v14022_v25 = vld [vmem:[#allocation28_spill] sm:$0xff] }
 0x36a   : > { %v3814_v48 = vadd.f32 %v3782_v28, %v3744_v58  ;;  %v3675_v33 = vadd.f32 %v3643_v22, %v3605_v43  ;;  %v3367_v30 = vadd.f32 %v3335_v29, %v3267_v23  ;;  %v2757_v24 = vmul.f32 %v9698_v40, %v2620_v19  ;;  %v14021_v22 = vld [vmem:[#allocation33_spill] sm:$0xff] }
 0x36b   : > { %v3536_v60 = vadd.f32 %v9999_v46, %v3466_v51  ;;  %14016 = vst [vmem:[#allocation52_spill] sm:$0xff] %v10046_v63  ;;  %v7543_v50 = vadd.f32 %v2399_v5, %v14017_v59  ;;  %v7544_v34 = vadd.f32 %v2404_v62, %v14018_v53  ;;  %v10052_v6 = vmul.f32 %v14005_v61, %v2826_v12  ;;  %v2416_v46 = vpop.f32.mrb[55].mxu1  ;;  %v14019_v62 = vld [vmem:[#allocation55_spill] sm:$0xff]  ;;  %v14023_v23 = vld [vmem:[#allocation57_spill] sm:$0xff] }
 0x36c   : > { %v3884_v37 = vadd.f32 %v3852_v3, %v3814_v48  ;;  %v3745_v49 = vadd.f32 %v3713_v13, %v3675_v33  ;;  %2859 = vst [vmem:[#allocation4 + $0x30] sm:$0xff] %v10046_v63  ;;  %v10057_v28 = vmul.f32 %v9395_v45, %v10046_v63  ;;  %v3467_v0 = vadd.f32 %v3435_v41, %v3367_v30  ;;  %v2419_v58 = vpop.f32.mrb[56].mxu1 }
 0x36d   : > { %v10061_v7 = vmul.f32 %v9377_v8, %v10046_v63  ;;  %v2796_v5 = vadd.f32 %v9732_v57, %v2757_v24  ;;  %v2625_v3 = vadd.f32 %v7543_v50, %v14019_v62  ;;  %v2630_v29 = vadd.f32 %v7544_v34, %v14020_v20  ;;  %v2421_v33 = vpop.f32.mrb[57].mxu1 }
 0x36e   : > { %v3815_v27 = vadd.f32 %v3783_v54, %v3745_v49  ;;  %v3954_v18 = vadd.f32 %v10002_v55, %v3884_v37  ;;  %v7545_v13 = vadd.f32 %v2409_v35, %v14021_v22  ;;  %v3537_v15 = vadd.f32 %v3505_v1, %v3467_v0  ;;  %v14024_v1 = vld [vmem:[#allocation29_spill] sm:$0xff] }
 0x36f   : > { %v10070_v12 = vmul.f32 %v14005_v61, %v10046_v63  ;;  %v10072_v41 = vmax.f32 %v2796_v5, 0.0  ;;  %v10075_v51 = vadd.f32 %v2414_v52, %v14022_v25  ;;  %v10078_v55 = vmul.f32 %v9698_v40, %v2625_v3 }
 0x370   : > { %v3885_v43 = vadd.f32 %v3853_v32, %v3815_v27  ;;  %v3000_v26 = vld [vmem:[#allocation4 + $0x21] sm:$0xff]  ;;  %v10081_v35 = vadd.f32 %v7545_v13, %v14023_v23  ;;  %v10084_v48 = vadd.f32 %v2419_v58, %v14024_v1  ;;  %v10093_v53 = vmul.f32 %v9698_v40, %v2630_v29  ;;  %v10103_v29 = vpop.f32.mrb[58].mxu1  ;;  %v14027_v13 = vld [vmem:[#allocation89_spill] sm:$0xff] }
 0x371   : > { %v3100_v54 = vld [vmem:[#allocation4 + $0x22] sm:$0xff]  ;;  %v3036_v30 = vmul.f32 %v9398_v39, %v3000_v26  ;;  %v3574_v32 = vmul.f32 %v14010_v11, %v3000_v26  ;;  %2860 = vst [vmem:[#allocation4 + $0x38] sm:$0xff] %v10072_v41  ;;  %14026 = vst [vmem:[#allocation27_spill] sm:$0xff] %v10103_v29  ;;  %v3992_v25 = vmul.f32 %v14027_v13, %v3000_v26 }
 0x372   : > { %v3200_v19 = vld [vmem:[#allocation4 + $0x23] sm:$0xff]  ;;  %v3136_v24 = vmul.f32 %v9401_v2, %v3100_v54  ;;  %v3644_v49 = vmul.f32 %v14011_v42, %v3100_v54  ;;  %v4062_v58 = vmul.f32 %v9437_v44, %v3100_v54 }
 0x373   : > { %v3300_v59 = vld [vmem:[#allocation4 + $0x24] sm:$0xff]  ;;  %v3236_v34 = vmul.f32 %v13998_v56, %v3200_v19  ;;  %v3068_v46 = vadd.f32 %v3036_v30, %v9995_v9  ;;  %v3606_v0 = vadd.f32 %v3574_v32, %v3536_v60  ;;  %v3714_v5 = vmul.f32 %v14012_v14, %v3200_v19  ;;  %v3301_v9 = vld [vmem:[#allocation4 + $0x2c] sm:$0xff]  ;;  %v2426_v60 = vpop.f32.mrb[59].mxu1 }
 0x374   : > { %v10088_v50 = vld [vmem:[#allocation4 + $0x25] sm:$0xff]  ;;  %v3336_v52 = vmul.f32 %v14001_v16, %v3300_v59  ;;  %v3784_v62 = vmul.f32 %v14013_v10, %v3300_v59  ;;  %v10110_v23 = vmul.f32 %v9440_v38, %v3200_v19  ;;  %v10113_v30 = vmul.f32 %v9443_v17, %v3300_v59  ;;  %v3401_v63 = vld [vmem:[#allocation4 + $0x2d] sm:$0xff] }
 0x375   : > { %14025 = vst [vmem:[#allocation26_spill] sm:$0xff] %v10088_v50  ;;  %v3436_v37 = vmul.f32 %v14002_v31, %v10088_v50  ;;  %v3001_v3 = vld [vmem:[#allocation4 + $0x29] sm:$0xff]  ;;  %v3854_v22 = vmul.f32 %v14014_v36, %v10088_v50  ;;  %v3168_v1 = vadd.f32 %v3136_v24, %v3068_v46  ;;  %v3676_v33 = vadd.f32 %v3644_v49, %v3606_v0  ;;  %v10121_v49 = vpop.f32.mrb[60].mxu1 }
 0x376   : > { %v3101_v27 = vld [vmem:[#allocation4 + $0x2a] sm:$0xff]  ;;  %14028 = vst [vmem:[#allocation55_spill] sm:$0xff] %v10110_v23  ;;  %14029 = vst [vmem:[#allocation54_spill] sm:$0xff] %v10113_v30  ;;  %v3037_v32 = vmul.f32 %v9398_v39, %v3001_v3  ;;  %v4024_v21 = vadd.f32 %v3992_v25, %v3954_v18  ;;  %v3337_v54 = vmul.f32 %v14001_v16, %v3301_v9  ;;  %v2431_v25 = vpop.f32.mrb[61].mxu1 }
 0x377   : > { %v3201_v20 = vld [vmem:[#allocation4 + $0x2b] sm:$0xff]  ;;  %v3137_v50 = vmul.f32 %v9401_v2, %v3101_v27  ;;  %v3268_v29 = vadd.f32 %v3236_v34, %v3168_v1  ;;  %v3746_v19 = vadd.f32 %v3714_v5, %v3676_v33  ;;  %v3575_v24 = vmul.f32 %v14010_v11, %v3001_v3 }
 0x378   : > { %v3237_v26 = vmul.f32 %v13998_v56, %v3201_v20  ;;  %v3069_v23 = vadd.f32 %v3037_v32, %v10042_v47  ;;  %v10123_v59 = vadd.f32 %v4062_v58, %v4024_v21  ;;  %v3437_v46 = vmul.f32 %v14002_v31, %v3401_v63 }
 0x379   : > { %v3645_v18 = vmul.f32 %v14011_v42, %v3101_v27  ;;  %v3715_v0 = vmul.f32 %v14012_v14, %v3201_v20  ;;  %v3368_v60 = vadd.f32 %v3336_v52, %v3268_v29  ;;  %v3816_v30 = vadd.f32 %v3784_v62, %v3746_v19  ;;  %v10132_v42 = vld [vmem:[#allocation4 + $0x31] sm:$0xff]  ;;  %v2434_v14 = vpop.f32.mrb[62].mxu1 }
 0x37a   : > { %14030 = vst [vmem:[#allocation33_spill] sm:$0xff] %v10123_v59  ;;  %v3169_v16 = vadd.f32 %v3137_v50, %v3069_v23  ;;  %v3607_v34 = vadd.f32 %v3575_v24, %v3537_v15  ;;  %v3785_v5 = vmul.f32 %v14013_v10, %v3301_v9  ;;  %v3855_v47 = vmul.f32 %v14014_v36, %v3401_v63  ;;  %v2436_v62 = vpop.f32.mrb[63].mxu1 }
 0x37b   : > { %v3955_v1 = vadd.f32 %v10052_v6, %v3885_v43  ;;  %v3993_v21 = vmul.f32 %v14027_v13, %v3001_v3  ;;  %v3468_v58 = vadd.f32 %v3436_v37, %v3368_v60  ;;  %v3886_v33 = vadd.f32 %v3854_v22, %v3816_v30  ;;  %14031 = vst [vmem:[#allocation28_spill] sm:$0xff] %v10132_v42  ;;  %v2439_v30 = vpop.f32.mrb[64].mxu1 }
 0x37c   : > { %v3269_v32 = vadd.f32 %v3237_v26, %v3169_v16  ;;  %v3677_v59 = vadd.f32 %v3645_v18, %v3607_v34  ;;  %v4063_v52 = vmul.f32 %v9437_v44, %v3101_v27  ;;  %v4133_v15 = vmul.f32 %v9440_v38, %v3201_v20  ;;  %v2441_v19 = vpop.f32.mrb[65].mxu1 }
 0x37d   : > { %v4025_v25 = vadd.f32 %v3993_v21, %v3955_v1  ;;  %v4203_v50 = vmul.f32 %v9443_v17, %v3301_v9  ;;  %v3538_v6 = vadd.f32 %v10061_v7, %v3468_v58  ;;  %v4273_v37 = vmul.f32 %v9446_v4, %v3401_v63  ;;  %v14036_v58 = vld [vmem:[#allocation59_spill] sm:$0xff]  ;;  %v14048_v19 = vld [vmem:[#allocation37_spill] sm:$0xff] }
 0x37e   : > { %v3369_v29 = vadd.f32 %v3337_v54, %v3269_v32  ;;  %v3747_v43 = vadd.f32 %v3715_v0, %v3677_v59  ;;  %v3956_v16 = vadd.f32 %v10070_v12, %v3886_v33  ;;  %v10142_v22 = vmul.f32 %v9395_v45, %v10072_v41  ;;  %v14032_v59 = vld [vmem:[#allocation82_spill] sm:$0xff]  ;;  %v2444_v33 = vpop.f32.mrb[66].mxu1 }
 0x37f   : > { %v4095_v3 = vadd.f32 %v4063_v52, %v4025_v25  ;;  %v3038_v27 = vmul.f32 %v9398_v39, %v10132_v42  ;;  %v3507_v9 = vmul.f32 %v9377_v8, %v10072_v41  ;;  %v3576_v7 = vmul.f32 %v14010_v11, %v10132_v42  ;;  %v14039_v52 = vld [vmem:[#allocation35_spill] sm:$0xff] }
 0x380   : > { %v3469_v20 = vadd.f32 %v3437_v46, %v3369_v29  ;;  %v3817_v23 = vadd.f32 %v3785_v5, %v3747_v43  ;;  %v3925_v26 = vmul.f32 %v14005_v61, %v10072_v41  ;;  %v3994_v54 = vmul.f32 %v14027_v13, %v10132_v42  ;;  %v14041_v29 = vld [vmem:[#allocation30_spill] sm:$0xff]  ;;  %v14069_v42 = vld [vmem:[#allocation84_spill] sm:$0xff] }
 0x381   : > { %v4165_v63 = vadd.f32 %v4133_v15, %v4095_v3  ;;  %v10151_v12 = vadd.f32 %v3038_v27, %v10057_v28  ;;  %v10159_v46 = vmul.f32 %v14032_v59, %v10072_v41  ;;  %v2797_v18 = vadd.f32 %v9732_v57, %v10078_v55  ;;  %v14035_v41 = vld [vmem:[#allocation56_spill] sm:$0xff]  ;;  %v14040_v15 = vld [vmem:[#allocation27_spill] sm:$0xff] }
 0x382   : > { %v3887_v24 = vadd.f32 %v3855_v47, %v3817_v23  ;;  %v10163_v0 = vadd.f32 %v3507_v9, %v3469_v20  ;;  %v10165_v28 = vadd.f32 %v3576_v7, %v3538_v6  ;;  %v2798_v34 = vadd.f32 %v9732_v57, %v10093_v53  ;;  %v14042_v6 = vld [vmem:[#allocation32_spill] sm:$0xff]  ;;  %v14045_v9 = vld [vmem:[#allocation58_spill] sm:$0xff] }
 0x383   : > { %14033 = vst [vmem:[#allocation57_spill] sm:$0xff] %v10159_v46  ;;  %v4235_v60 = vadd.f32 %v4203_v50, %v4165_v63  ;;  %v2760_v5 = vmul.f32 %v9698_v40, %v10081_v35  ;;  %v10171_v1 = vmax.f32 %v2797_v18, 0.0  ;;  %v2640_v21 = vadd.f32 %v10075_v51, %v14035_v41  ;;  %v2446_v50 = vpop.f32.mrb[67].mxu1  ;;  %v14049_v18 = vld [vmem:[#allocation34_spill] sm:$0xff] }
 0x384   : > { %v10173_v47 = vadd.f32 %v3925_v26, %v3887_v24  ;;  %v2645_v55 = vadd.f32 %v10084_v48, %v14036_v58  ;;  %v10179_v32 = vadd.f32 %v3994_v54, %v3956_v16  ;;  %v10181_v25 = vmax.f32 %v2798_v34, 0.0  ;;  %v2449_v63 = vpop.f32.mrb[68].mxu1  ;;  %v14047_v26 = vld [vmem:[#allocation60_spill] sm:$0xff] }
 0x385   : > { %14034 = vst [vmem:[#allocation29_spill] sm:$0xff] %v10171_v1  ;;  %v2799_v53 = vadd.f32 %v9732_v57, %v2760_v5  ;;  %v7548_v35 = vadd.f32 %v14040_v15, %v14039_v52  ;;  %2861 = vst [vmem:[#allocation4 + $0x40] sm:$0xff] %v10171_v1  ;;  %v2761_v62 = vmul.f32 %v9698_v40, %v2640_v21  ;;  %v14050_v34 = vld [vmem:[#allocation36_spill] sm:$0xff]  ;;  %v2451_v41 = vpop.f32.mrb[69].mxu1  ;;  %v10214_v21 = vpop.f32.mrb[130].mxu0 }
 0x386   : > { %14037 = vst [vmem:[#allocation56_spill] sm:$0xff] %v10179_v32  ;;  %14038 = vst [vmem:[#allocation59_spill] sm:$0xff] %v10181_v25  ;;  %v2762_v51 = vmul.f32 %v9698_v40, %v2645_v55  ;;  %v7549_v48 = vadd.f32 %v10121_v49, %v14041_v29  ;;  %v7550_v43 = vadd.f32 %v2434_v14, %v14042_v6  ;;  %v10222_v15 = vpop.f32.mrb[131].mxu0 }
 0x387   : > { %v10192_v16 = vadd.f32 %v4273_v37, %v4235_v60  ;;  %2862 = vst [vmem:[#allocation4 + $0x48] sm:$0xff] %v10181_v25  ;;  %v10197_v3 = vmul.f32 %v9395_v45, %v10181_v25  ;;  %v10201_v27 = vmul.f32 %v9377_v8, %v10181_v25  ;;  %v10203_v20 = vmax.f32 %v2799_v53, 0.0  ;;  %v14046_v37 = vld [vmem:[#allocation61_spill] sm:$0xff]  ;;  %14051 = vst [vmem:[#allocation30_spill] sm:$0xff] %v10214_v21 }
 0x388   : > { %v2800_v23 = vadd.f32 %v9732_v57, %v2761_v62  ;;  %v2801_v49 = vadd.f32 %v9732_v57, %v2762_v51  ;;  %v2650_v14 = vadd.f32 %v7548_v35, %v14045_v9  ;;  %v2655_v7 = vadd.f32 %v7549_v48, %v14046_v37  ;;  %14054 = vst [vmem:[#allocation61_spill] sm:$0xff] %v10222_v15  ;;  %v14057_v51 = vld [vmem:[#allocation65_spill] sm:$0xff] }
 0x389   : > { %14043 = vst [vmem:[#allocation35_spill] sm:$0xff] %v10192_v16  ;;  %14044 = vst [vmem:[#allocation27_spill] sm:$0xff] %v10203_v20  ;;  %v2660_v54 = vadd.f32 %v7550_v43, %v14047_v26  ;;  %v7551_v24 = vadd.f32 %v2439_v30, %v14048_v19  ;;  %v7552_v60 = vadd.f32 %v2444_v33, %v14049_v18  ;;  %v14055_v30 = vld [vmem:[#allocation63_spill] sm:$0xff]  ;;  %v14056_v33 = vld [vmem:[#allocation62_spill] sm:$0xff] }
 0x38a   : > { %2863 = vst [vmem:[#allocation4 + $0x50] sm:$0xff] %v10203_v20  ;;  %v7553_v5 = vadd.f32 %v2449_v63, %v14050_v34  ;;  %v10216_v58 = vmax.f32 %v2800_v23, 0.0  ;;  %v10218_v55 = vmax.f32 %v2801_v49, 0.0  ;;  %v2763_v53 = vmul.f32 %v9698_v40, %v2650_v14  ;;  %v2454_v23 = vpop.f32.mrb[70].mxu1 }
 0x38b   : > { %v2764_v52 = vmul.f32 %v9698_v40, %v2655_v7  ;;  %v2765_v35 = vmul.f32 %v9698_v40, %v2660_v54  ;;  %v2665_v50 = vadd.f32 %v7551_v24, %v14055_v30  ;;  %v2670_v62 = vadd.f32 %v7552_v60, %v14056_v33  ;;  %v2456_v54 = vpop.f32.mrb[71].mxu1 }
 0x38c   : > { %14052 = vst [vmem:[#allocation32_spill] sm:$0xff] %v10216_v58  ;;  %14053 = vst [vmem:[#allocation58_spill] sm:$0xff] %v10218_v55  ;;  %v2675_v29 = vadd.f32 %v7553_v5, %v14057_v51  ;;  %v10230_v48 = vmul.f32 %v14005_v61, %v10181_v25  ;;  %v2802_v6 = vadd.f32 %v9732_v57, %v2763_v53  ;;  %v3003_v9 = vld [vmem:[#allocation4 + $0x39] sm:$0xff]  ;;  %v2459_v32 = vpop.f32.mrb[72].mxu1 }
 0x38d   : > { %2864 = vst [vmem:[#allocation4 + $0x58] sm:$0xff] %v10216_v58  ;;  %2865 = vst [vmem:[#allocation4 + $0x60] sm:$0xff] %v10218_v55  ;;  %v2803_v43 = vadd.f32 %v9732_v57, %v2764_v52  ;;  %v10238_v49 = vmul.f32 %v9395_v45, %v10171_v1  ;;  %v3103_v14 = vld [vmem:[#allocation4 + $0x3a] sm:$0xff]  ;;  %v2804_v7 = vadd.f32 %v9732_v57, %v2765_v35  ;;  %v14061_v52 = vld [vmem:[#allocation80_spill] sm:$0xff] }
 0x38e   : > { %v10240_v37 = vld [vmem:[#allocation4 + $0x3b] sm:$0xff]  ;;  %v2766_v63 = vmul.f32 %v9698_v40, %v2665_v50  ;;  %v2767_v26 = vmul.f32 %v9698_v40, %v2670_v62  ;;  %v10247_v19 = vmul.f32 %v9395_v45, %v10203_v20  ;;  %v3039_v24 = vmul.f32 %v9398_v39, %v3003_v9  ;;  %v14062_v50 = vld [vmem:[#allocation72_spill] sm:$0xff]  ;;  %v14067_v45 = vld [vmem:[#allocation83_spill] sm:$0xff] }
 0x38f   : > { %14058 = vst [vmem:[#allocation60_spill] sm:$0xff] %v10240_v37  ;;  %v3139_v18 = vmul.f32 %v9401_v2, %v3103_v14  ;;  %v10251_v60 = vld [vmem:[#allocation4 + $0x3c] sm:$0xff]  ;;  %v3577_v5 = vmul.f32 %v14010_v11, %v3003_v9  ;;  %v2768_v41 = vmul.f32 %v9698_v40, %v2675_v29  ;;  %v3239_v53 = vmul.f32 %v13998_v56, %v10240_v37 }
 0x390   : > { %14059 = vst [vmem:[#allocation37_spill] sm:$0xff] %v10251_v60  ;;  %v10253_v34 = vld [vmem:[#allocation4 + $0x3d] sm:$0xff]  ;;  %v3339_v35 = vmul.f32 %v14061_v52, %v10251_v60  ;;  %v3647_v33 = vmul.f32 %v14062_v50, %v3103_v14  ;;  %v3071_v62 = vadd.f32 %v3039_v24, %v10142_v22  ;;  %v3787_v29 = vmul.f32 %v14013_v10, %v10251_v60 }
 0x391   : > { %14060 = vst [vmem:[#allocation34_spill] sm:$0xff] %v10253_v34  ;;  %v3439_v30 = vmul.f32 %v14002_v31, %v10253_v34  ;;  %v3609_v51 = vadd.f32 %v3577_v5, %v10163_v0  ;;  %v14063_v54 = vld [vmem:[#allocation73_spill] sm:$0xff]  ;;  %v10270_v15 = vld [vmem:[#allocation4 + $0x49] sm:$0xff]  ;;  %v3857_v55 = vmul.f32 %v14014_v36, %v10253_v34  ;;  %v3995_v25 = vmul.f32 %v14027_v13, %v3003_v9  ;;  %v2461_v0 = vpop.f32.mrb[73].mxu1 }
 0x392   : > { %v3717_v21 = vmul.f32 %v14063_v54, %v10240_v37  ;;  %14064 = vst [vmem:[#allocation36_spill] sm:$0xff] %v10270_v15  ;;  %v4065_v46 = vmul.f32 %v9437_v44, %v3103_v14  ;;  %v10278_v22 = vmul.f32 %v9440_v38, %v10240_v37  ;;  %v3171_v24 = vadd.f32 %v3139_v18, %v3071_v62 }
 0x393   : > { %v3679_v5 = vadd.f32 %v3647_v33, %v3609_v51  ;;  %v10282_v16 = vmul.f32 %v9443_v17, %v10251_v60  ;;  %v10285_v58 = vmul.f32 %v14067_v45, %v3003_v9  ;;  %v4027_v34 = vadd.f32 %v3995_v25, %v10173_v47 }
 0x394   : > { %14065 = vst [vmem:[#allocation63_spill] sm:$0xff] %v10278_v22  ;;  %v10289_v59 = vmul.f32 %v14069_v42, %v3103_v14  ;;  %v3041_v4 = vmul.f32 %v9398_v39, %v10270_v15  ;;  %v3579_v0 = vmul.f32 %v14010_v11, %v10270_v15  ;;  %v3271_v18 = vadd.f32 %v3239_v53, %v3171_v24  ;;  %v14074_v53 = vld [vmem:[#allocation38_spill] sm:$0xff] }
 0x395   : > { %14066 = vst [vmem:[#allocation62_spill] sm:$0xff] %v10282_v16  ;;  %14068 = vst [vmem:[#allocation65_spill] sm:$0xff] %v10285_v58  ;;  %v3749_v33 = vadd.f32 %v3717_v21, %v3679_v5  ;;  %v10295_v62 = vmax.f32 %v2802_v6, 0.0  ;;  %v2835_v51 = vmax.f32 %v2803_v43, 0.0  ;;  %v2464_v16 = vpop.f32.mrb[74].mxu1  ;;  %v10297_v22 = vadd.f32 %v4065_v46, %v4027_v34  ;;  %v14073_v43 = vld [vmem:[#allocation39_spill] sm:$0xff] }
 0x396   : > { %14070 = vst [vmem:[#allocation211_spill] sm:$0xff] %v10289_v59  ;;  %v10301_v47 = vmul.f32 %v14027_v13, %v10270_v15  ;;  %v2836_v25 = vmax.f32 %v2804_v7, 0.0  ;;  %v2805_v9 = vadd.f32 %v9732_v57, %v2766_v63  ;;  %v2466_v14 = vpop.f32.mrb[75].mxu1  ;;  %v3371_v59 = vadd.f32 %v3339_v35, %v3271_v18  ;;  %v14075_v5 = vld [vmem:[#allocation40_spill] sm:$0xff] }
 0x397   : > { %14071 = vst [vmem:[#allocation212_spill] sm:$0xff] %v10295_v62  ;;  %14072 = vst [vmem:[#allocation213_spill] sm:$0xff] %v10297_v22  ;;  %v3819_v60 = vadd.f32 %v3787_v29, %v3749_v33  ;;  %v2806_v21 = vadd.f32 %v9732_v57, %v2767_v26  ;;  %v2807_v6 = vadd.f32 %v9732_v57, %v2768_v41  ;;  %v10310_v22 = vld [vmem:[#allocation4 + $0x41] sm:$0xff]  ;;  %v10312_v63 = vld [vmem:[#allocation4 + $0x51] sm:$0xff] }
 0x398   : > { %2866 = vst [vmem:[#allocation4 + $0x68] sm:$0xff] %v10295_v62  ;;  %2867 = vst [vmem:[#allocation4 + $0x70] sm:$0xff] %v2835_v51  ;;  %v2837_v46 = vmax.f32 %v2805_v9, 0.0  ;;  %v7554_v34 = vadd.f32 %v2454_v23, %v14073_v43  ;;  %v7555_v24 = vadd.f32 %v2459_v32, %v14074_v53  ;;  %v7556_v7 = vadd.f32 %v2464_v16, %v14075_v5  ;;  %v2469_v51 = vpop.f32.mrb[76].mxu1  ;;  %v14078_v26 = vld [vmem:[#allocation64_spill] sm:$0xff]  ;;  %v14080_v14 = vld [vmem:[#allocation66_spill] sm:$0xff] }
 0x399   : > { %2868 = vst [vmem:[#allocation4 + $0x78] sm:$0xff] %v2836_v25  ;;  %14076 = vst [vmem:[#allocation39_spill] sm:$0xff] %v10310_v22  ;;  %v3471_v35 = vadd.f32 %v3439_v30, %v3371_v59  ;;  %v3889_v29 = vadd.f32 %v3857_v55, %v3819_v60  ;;  %v2838_v18 = vmax.f32 %v2806_v21, 0.0  ;;  %v2839_v33 = vmax.f32 %v2807_v6, 0.0  ;;  %v14079_v25 = vld [vmem:[#allocation67_spill] sm:$0xff]  ;;  %v14081_v43 = vld [vmem:[#allocation41_spill] sm:$0xff] }
 0x39a   : > { %14077 = vst [vmem:[#allocation38_spill] sm:$0xff] %v10312_v63  ;;  %2869 = vst [vmem:[#allocation4 + $0x80] sm:$0xff] %v2837_v46  ;;  %v2680_v41 = vadd.f32 %v7554_v34, %v14078_v26  ;;  %v2685_v9 = vadd.f32 %v7555_v24, %v14079_v25  ;;  %v2690_v23 = vadd.f32 %v7556_v7, %v14080_v14  ;;  %v2471_v53 = vpop.f32.mrb[77].mxu1  ;;  %v14082_v6 = vld [vmem:[#allocation69_spill] sm:$0xff] }
 0x39b   : > { %v7557_v32 = vadd.f32 %v2469_v51, %v14081_v43  ;;  %v10319_v16 = vadd.f32 %v3041_v4, %v10197_v3  ;;  %v3541_v5 = vadd.f32 %v10201_v27, %v3471_v35  ;;  %2870 = vst [vmem:[#allocation4 + $0x88] sm:$0xff] %v2838_v18  ;;  %2871 = vst [vmem:[#allocation4 + $0x90] sm:$0xff] %v2839_v33  ;;  %v10330_v4 = vld [vmem:[#allocation4 + $0x32] sm:$0xff]  ;;  %v10332_v3 = vld [vmem:[#allocation4 + $0x42] sm:$0xff]  ;;  %v2474_v7 = vpop.f32.mrb[78].mxu1 }
 0x39c   : > { %v3040_v59 = vmul.f32 %v9398_v39, %v10310_v22  ;;  %v3042_v55 = vmul.f32 %v9398_v39, %v10312_v63  ;;  %v2769_v60 = vmul.f32 %v9698_v40, %v2680_v41  ;;  %v2770_v30 = vmul.f32 %v9698_v40, %v2685_v9  ;;  %14083 = vst [vmem:[#allocation40_spill] sm:$0xff] %v10332_v3  ;;  %v10334_v27 = vld [vmem:[#allocation4 + $0x52] sm:$0xff]  ;;  %v2476_v25 = vpop.f32.mrb[79].mxu1  ;;  %v14085_v9 = vld [vmem:[#allocation42_spill] sm:$0xff] }
 0x39d   : > { %v2771_v21 = vmul.f32 %v9698_v40, %v2690_v23  ;;  %v2695_v46 = vadd.f32 %v7557_v32, %v14082_v6  ;;  %14084 = vst [vmem:[#allocation64_spill] sm:$0xff] %v10334_v27  ;;  %v10336_v34 = vadd.f32 %v3579_v0, %v3541_v5  ;;  %v3959_v24 = vadd.f32 %v10230_v48, %v3889_v29  ;;  %v10354_v29 = vld [vmem:[#allocation4 + $0x43] sm:$0xff]  ;;  %v10356_v23 = vld [vmem:[#allocation4 + $0x53] sm:$0xff] }
 0x39e   : > { %v3072_v35 = vadd.f32 %v3040_v59, %v10238_v49  ;;  %v3074_v18 = vadd.f32 %v3042_v55, %v10247_v19  ;;  %v2808_v33 = vadd.f32 %v9732_v57, %v2769_v60  ;;  %v2809_v51 = vadd.f32 %v9732_v57, %v2770_v30  ;;  %v10352_v19 = vld [vmem:[#allocation4 + $0x33] sm:$0xff]  ;;  %14086 = vst [vmem:[#allocation67_spill] sm:$0xff] %v10354_v29  ;;  %v10361_v59 = vld [vmem:[#allocation4 + $0x44] sm:$0xff] }
 0x39f   : > { %v2810_v26 = vadd.f32 %v9732_v57, %v2771_v21  ;;  %v2772_v41 = vmul.f32 %v9698_v40, %v2695_v46  ;;  %v7558_v14 = vadd.f32 %v2474_v7, %v14085_v9  ;;  %v3138_v0 = vmul.f32 %v9401_v2, %v10330_v4  ;;  %14087 = vst [vmem:[#allocation66_spill] sm:$0xff] %v10356_v23  ;;  %v10359_v5 = vld [vmem:[#allocation4 + $0x34] sm:$0xff]  ;;  %v10367_v7 = vpop.f32.mrb[80].mxu1  ;;  %v10387_v9 = vld [vmem:[%s13378_s6] ss:$0 sm:$0xff] }
 0x3a0   : > { %v3140_v48 = vmul.f32 %v9401_v2, %v10332_v3  ;;  %v3142_v49 = vmul.f32 %v9401_v2, %v10334_v27  ;;  %v2840_v43 = vmax.f32 %v2808_v33, 0.0  ;;  %v2841_v40 = vmax.f32 %v2809_v51, 0.0  ;;  %14088 = vst [vmem:[#allocation41_spill] sm:$0xff] %v10361_v59  ;;  %v14089_v55 = vld [vmem:[#allocation68_spill] sm:$0xff]  ;;  %14094 = vst [vmem:[#allocation215_spill] sm:$0xff] %v10387_v9 }
 0x3a1   : > { %v2842_v32 = vmax.f32 %v2810_v26, 0.0  ;;  %v2811_v53 = vadd.f32 %v9732_v57, %v2772_v41  ;;  %v2700_v60 = vadd.f32 %v7558_v14, %v14089_v55  ;;  %v3170_v30 = vadd.f32 %v3138_v0, %v10151_v12  ;;  %v10365_v46 = vld [vmem:[#allocation4 + $0x54] sm:$0xff]  ;;  %v2481_v41 = vpop.f32.mrb[81].mxu1 }
 0x3a2   : > { %v3172_v21 = vadd.f32 %v3140_v48, %v3072_v35  ;;  %v3174_v6 = vadd.f32 %v3142_v49, %v3074_v18  ;;  %14090 = vst [vmem:[#allocation69_spill] sm:$0xff] %v10365_v46  ;;  %2872 = vst [vmem:[#allocation4 + $0x98] sm:$0xff] %v2840_v43  ;;  %v3238_v57 = vmul.f32 %v13998_v56, %v10352_v19  ;;  %v10375_v12 = vld [vmem:[#allocation4 + $0x35] sm:$0xff]  ;;  %v10377_v35 = vld [vmem:[#allocation4 + $0x45] sm:$0xff] }
 0x3a3   : > { %2873 = vst [vmem:[#allocation4 + $0xa0] sm:$0xff] %v2841_v40  ;;  %2874 = vst [vmem:[#allocation4 + $0xa8] sm:$0xff] %v2842_v32  ;;  %v2843_v33 = vmax.f32 %v2811_v53, 0.0  ;;  %v3240_v51 = vmul.f32 %v13998_v56, %v10354_v29  ;;  %v3242_v26 = vmul.f32 %v13998_v56, %v10356_v23  ;;  %v10379_v18 = vld [vmem:[#allocation4 + $0x55] sm:$0xff]  ;;  %v10382_v25 = vadd.f32 %v10301_v47, %v3959_v24  ;;  %v10399_v24 = vld [vmem:[%s13942_s9] ss:$0 sm:$0xff] }
 0x3a4   : > { %14091 = vst [vmem:[#allocation42_spill] sm:$0xff] %v10377_v35  ;;  %14092 = vst [vmem:[#allocation68_spill] sm:$0xff] %v10379_v18  ;;  %v2773_v14 = vmul.f32 %v10387_v9, %v2700_v60  ;;  %v3338_v0 = vmul.f32 %v14061_v52, %v10359_v5  ;;  %v3340_v48 = vmul.f32 %v14061_v52, %v10361_v59 }
 0x3a5   : > { %14093 = vst [vmem:[#allocation214_spill] sm:$0xff] %v10382_v25  ;;  %2875 = vst [vmem:[#allocation4 + $0xb0] sm:$0xff] %v2843_v33  ;;  %v3270_v49 = vadd.f32 %v3238_v57, %v3170_v30  ;;  %v3272_v43 = vadd.f32 %v3240_v51, %v3172_v21  ;;  %v3274_v40 = vadd.f32 %v3242_v26, %v3174_v6  ;;  %v10408_v30 = vpop.f32.mrb[82].mxu1 }
 0x3a6   : > { %v3342_v47 = vmul.f32 %v14061_v52, %v10365_v46  ;;  %v2812_v32 = vadd.f32 %v10399_v24, %v2773_v14  ;;  %v3438_v53 = vmul.f32 %v14002_v31, %v10375_v12  ;;  %v3440_v55 = vmul.f32 %v14002_v31, %v10377_v35  ;;  %14095 = vst [vmem:[#allocation216_spill] sm:$0xff] %v10408_v30  ;;  %v2486_v51 = vpop.f32.mrb[83].mxu1 }
 0x3a7   : > { %v3442_v60 = vmul.f32 %v14002_v31, %v10379_v18  ;;  %v3370_v21 = vadd.f32 %v3338_v0, %v3270_v49  ;;  %v3372_v6 = vadd.f32 %v3340_v48, %v3272_v43  ;;  %v3508_v57 = vmul.f32 %v9377_v8, %v10171_v1  ;;  %v10441_v51 = vpop.f32.mrb[132].mxu0 }
 0x3a8   : > { %v3374_v33 = vadd.f32 %v3342_v47, %v3274_v40  ;;  %v2844_v26 = vmax.f32 %v2812_v32, 0.0  ;;  %v3510_v41 = vmul.f32 %v9377_v8, %v10203_v20  ;;  %v3578_v14 = vmul.f32 %v14010_v11, %v10310_v22  ;;  %v10429_v47 = vpop.f32.mrb[84].mxu1  ;;  %14098 = vst [vmem:[#allocation219_spill] sm:$0xff] %v10441_v51 }
 0x3a9   : > { %v3646_v25 = vmul.f32 %v14062_v50, %v10330_v4  ;;  %v3470_v62 = vadd.f32 %v3438_v53, %v3370_v21  ;;  %v3472_v15 = vadd.f32 %v3440_v55, %v3372_v6  ;;  %v3580_v0 = vmul.f32 %v14010_v11, %v10312_v63  ;;  %14097 = vst [vmem:[#allocation218_spill] sm:$0xff] %v10429_v47  ;;  %v2491_v21 = vpop.f32.mrb[85].mxu1 }
 0x3aa   : > { %v10418_v30 = vadd.f32 %v3442_v60, %v3374_v33  ;;  %2876 = vst [vmem:[#allocation4 + $0xb8] sm:$0xff] %v2844_v26  ;;  %v3648_v48 = vmul.f32 %v14062_v50, %v10332_v3  ;;  %v3650_v49 = vmul.f32 %v14062_v50, %v10334_v27  ;;  %v3716_v40 = vmul.f32 %v14063_v54, %v10352_v19 }
 0x3ab   : > { %v3678_v43 = vadd.f32 %v3646_v25, %v10165_v28  ;;  %v3540_v32 = vadd.f32 %v3508_v57, %v3470_v62  ;;  %v3542_v53 = vadd.f32 %v3510_v41, %v3472_v15  ;;  %v3718_v55 = vmul.f32 %v14063_v54, %v10354_v29  ;;  %v10447_v41 = vpop.f32.mrb[133].mxu0 }
 0x3ac   : > { %14096 = vst [vmem:[#allocation217_spill] sm:$0xff] %v10418_v30  ;;  %v3720_v60 = vmul.f32 %v14063_v54, %v10356_v23  ;;  %v3786_v33 = vmul.f32 %v14013_v10, %v10359_v5  ;;  %v3788_v28 = vmul.f32 %v14013_v10, %v10361_v59  ;;  %v3790_v25 = vmul.f32 %v14013_v10, %v10365_v46 }
 0x3ad   : > { %v3748_v6 = vadd.f32 %v3716_v40, %v3678_v43  ;;  %v3610_v15 = vadd.f32 %v3578_v14, %v3540_v32  ;;  %v3612_v62 = vadd.f32 %v3580_v0, %v3542_v53  ;;  %v3856_v57 = vmul.f32 %v14014_v36, %v10375_v12  ;;  %14099 = vst [vmem:[#allocation220_spill] sm:$0xff] %v10447_v41  ;;  %v10455_v14 = vpop.f32.mrb[86].mxu1 }
 0x3ae   : > { %v3858_v26 = vmul.f32 %v14014_v36, %v10377_v35  ;;  %v3860_v40 = vmul.f32 %v14014_v36, %v10379_v18  ;;  %v3926_v21 = vmul.f32 %v14005_v61, %v10171_v1  ;;  %v3928_v51 = vmul.f32 %v14005_v61, %v10203_v20  ;;  %14100 = vst [vmem:[#allocation221_spill] sm:$0xff] %v10455_v14 }
 0x3af   : > { %v3818_v43 = vadd.f32 %v3786_v33, %v3748_v6  ;;  %v3680_v0 = vadd.f32 %v3648_v48, %v3610_v15  ;;  %v3682_v32 = vadd.f32 %v3650_v49, %v3612_v62  ;;  %v3996_v53 = vmul.f32 %v14027_v13, %v10310_v22  ;;  %v2496_v6 = vpop.f32.mrb[87].mxu1 }
 0x3b0   : > { %v3998_v41 = vmul.f32 %v14027_v13, %v10312_v63  ;;  %v10463_v47 = vmul.f32 %v9437_v44, %v10330_v4  ;;  %v4066_v30 = vmul.f32 %v9437_v44, %v10332_v3  ;;  %v4068_v14 = vmul.f32 %v9437_v44, %v10334_v27  ;;  %v14103_v6 = vld [vmem:[#allocation33_spill] sm:$0xff]  ;;  %v14108_v13 = vld [vmem:[#allocation26_spill] sm:$0xff] }
 0x3b1   : > { %v3888_v33 = vadd.f32 %v3856_v57, %v3818_v43  ;;  %v3750_v48 = vadd.f32 %v3718_v55, %v3680_v0  ;;  %v3752_v49 = vadd.f32 %v3720_v60, %v3682_v32  ;;  %v10471_v15 = vmul.f32 %v9440_v38, %v10352_v19  ;;  %v10483_v55 = vpop.f32.mrb[88].mxu1 }
 0x3b2   : > { %14101 = vst [vmem:[#allocation222_spill] sm:$0xff] %v10463_v47  ;;  %v4136_v62 = vmul.f32 %v9440_v38, %v10354_v29  ;;  %v4138_v43 = vmul.f32 %v9440_v38, %v10356_v23  ;;  %v14104_v47 = vld [vmem:[#allocation55_spill] sm:$0xff]  ;;  %v10481_v37 = vmul.f32 %v9443_v17, %v10359_v5  ;;  %v4206_v32 = vmul.f32 %v9443_v17, %v10361_v59  ;;  %v14107_v38 = vld [vmem:[#allocation54_spill] sm:$0xff] }
 0x3b3   : > { %14102 = vst [vmem:[#allocation223_spill] sm:$0xff] %v10471_v15  ;;  %v3958_v57 = vadd.f32 %v3926_v21, %v3888_v33  ;;  %v4164_v58 = vadd.f32 %v14104_v47, %v14103_v6  ;;  %14106 = vst [vmem:[#allocation55_spill] sm:$0xff] %v10483_v55  ;;  %v3820_v60 = vadd.f32 %v3788_v28, %v3750_v48  ;;  %v2501_v33 = vpop.f32.mrb[89].mxu1  ;;  %v14109_v47 = vld [vmem:[#allocation93_spill] sm:$0xff] }
 0x3b4   : > { %14105 = vst [vmem:[#allocation33_spill] sm:$0xff] %v10481_v37  ;;  %v3822_v0 = vadd.f32 %v3790_v25, %v3752_v49  ;;  %v4208_v21 = vmul.f32 %v9443_v17, %v10365_v46  ;;  %v4272_v6 = vmul.f32 %v14109_v47, %v14108_v13  ;;  %v10494_v37 = vmul.f32 %v14109_v47, %v10375_v12  ;;  %v14114_v17 = vld [vmem:[#allocation28_spill] sm:$0xff] }
 0x3b5   : > { %v4028_v15 = vadd.f32 %v3996_v53, %v3958_v57  ;;  %v4234_v44 = vadd.f32 %v14107_v38, %v4164_v58  ;;  %v3890_v55 = vadd.f32 %v3858_v26, %v3820_v60  ;;  %v4276_v25 = vmul.f32 %v14109_v47, %v10377_v35  ;;  %v14112_v57 = vld [vmem:[#allocation52_spill] sm:$0xff]  ;;  %v14113_v38 = vld [vmem:[#allocation82_spill] sm:$0xff] }
 0x3b6   : > { %14110 = vst [vmem:[#allocation54_spill] sm:$0xff] %v10494_v37  ;;  %v10496_v28 = vadd.f32 %v3860_v40, %v3822_v0  ;;  %v4278_v48 = vmul.f32 %v14109_v47, %v10379_v18  ;;  %v4342_v58 = vmul.f32 %v14113_v38, %v14112_v57  ;;  %v4346_v13 = vmul.f32 %v14113_v38, %v10203_v20 }
 0x3b7   : > { %v4098_v49 = vadd.f32 %v4066_v30, %v4028_v15  ;;  %v4304_v53 = vadd.f32 %v4272_v6, %v4234_v44  ;;  %v3960_v33 = vadd.f32 %v3928_v51, %v3890_v55  ;;  %v4412_v26 = vmul.f32 %v14067_v45, %v14114_v17  ;;  %v14115_v30 = vld [vmem:[#allocation85_spill] sm:$0xff]  ;;  %v14116_v17 = vld [vmem:[#allocation86_spill] sm:$0xff] }
 0x3b8   : > { %14111 = vst [vmem:[#allocation26_spill] sm:$0xff] %v10496_v28  ;;  %v4416_v40 = vmul.f32 %v14067_v45, %v10312_v63  ;;  %v4482_v60 = vmul.f32 %v14069_v42, %v10330_v4  ;;  %v4486_v44 = vmul.f32 %v14069_v42, %v10334_v27  ;;  %v4552_v15 = vmul.f32 %v14115_v30, %v10352_v19 }
 0x3b9   : > { %v4168_v0 = vadd.f32 %v4136_v62, %v4098_v49  ;;  %v4374_v37 = vadd.f32 %v4342_v58, %v4304_v53  ;;  %v4030_v6 = vadd.f32 %v3998_v41, %v3960_v33  ;;  %v4556_v51 = vmul.f32 %v14115_v30, %v10356_v23  ;;  %v14117_v62 = vld [vmem:[#allocation87_spill] sm:$0xff]  ;;  %v14118_v41 = vld [vmem:[#allocation100_spill] sm:$0xff]  ;;  %v14119_v33 = vld [vmem:[#allocation101_spill] sm:$0xff] }
 0x3ba   : > { %v4622_v55 = vmul.f32 %v14116_v17, %v10359_v5  ;;  %v4626_v57 = vmul.f32 %v14116_v17, %v10365_v46  ;;  %v4692_v49 = vmul.f32 %v14117_v62, %v10375_v12  ;;  %v10526_v53 = vmul.f32 %v14117_v62, %v10379_v18  ;;  %v14120_v5 = vld [vmem:[#allocation102_spill] sm:$0xff]  ;;  %v14122_v12 = vld [vmem:[#allocation104_spill] sm:$0xff] }
 0x3bb   : > { %v4238_v45 = vadd.f32 %v4206_v32, %v4168_v0  ;;  %v4444_v4 = vadd.f32 %v4412_v26, %v4374_v37  ;;  %v4100_v19 = vadd.f32 %v4068_v14, %v4030_v6  ;;  %v4762_v58 = vmul.f32 %v14118_v41, %v10171_v1  ;;  %v14121_v37 = vld [vmem:[#allocation103_spill] sm:$0xff]  ;;  %v14123_v6 = vld [vmem:[#allocation105_spill] sm:$0xff] }
 0x3bc   : > { %v4832_v42 = vmul.f32 %v14119_v33, %v10310_v22  ;;  %v4902_v38 = vmul.f32 %v14120_v5, %v10332_v3  ;;  %v10536_v26 = vmul.f32 %v14121_v37, %v10354_v29  ;;  %v10540_v0 = vmul.f32 %v14122_v12, %v10361_v59  ;;  %v14124_v22 = vld [vmem:[#allocation94_spill] sm:$0xff]  ;;  %v14136_v12 = vld [vmem:[#allocation43_spill] sm:$0xff] }
 0x3bd   : > { %v4308_v28 = vadd.f32 %v4276_v25, %v4238_v45  ;;  %v4514_v32 = vadd.f32 %v4482_v60, %v4444_v4  ;;  %v4170_v14 = vadd.f32 %v4138_v43, %v4100_v19  ;;  %v10544_v1 = vmul.f32 %v14123_v6, %v10377_v35  ;;  %v14125_v45 = vld [vmem:[#allocation95_spill] sm:$0xff]  ;;  %v10554_v60 = vld [vmem:[#allocation4 + $0x59] sm:$0xff]  ;;  %v14128_v43 = vld [vmem:[#allocation96_spill] sm:$0xff] }
 0x3be   : > { %v10548_v33 = vmul.f32 %v14124_v22, %v10203_v20  ;;  %v10552_v25 = vmul.f32 %v14125_v45, %v10312_v63  ;;  %14126 = vst [vmem:[#allocation52_spill] sm:$0xff] %v10554_v60  ;;  %v10556_v4 = vld [vmem:[#allocation4 + $0x4a] sm:$0xff]  ;;  %v10560_v19 = vmul.f32 %v14128_v43, %v10334_v27  ;;  %v14130_v35 = vld [vmem:[#allocation97_spill] sm:$0xff]  ;;  %v14134_v45 = vld [vmem:[#allocation98_spill] sm:$0xff] }
 0x3bf   : > { %14127 = vst [vmem:[#allocation28_spill] sm:$0xff] %v10556_v4  ;;  %v4378_v29 = vadd.f32 %v4346_v13, %v4308_v28  ;;  %v4584_v59 = vadd.f32 %v4552_v15, %v4514_v32  ;;  %v10564_v3 = vmul.f32 %v14130_v35, %v10356_v23  ;;  %v10566_v20 = vld [vmem:[#allocation4 + $0x5a] sm:$0xff]  ;;  %v10568_v22 = vld [vmem:[#allocation4 + $0x4b] sm:$0xff]  ;;  %v4240_v63 = vadd.f32 %v4208_v21, %v4170_v14 }
 0x3c0   : > { %14129 = vst [vmem:[#allocation102_spill] sm:$0xff] %v10560_v19  ;;  %14132 = vst [vmem:[#allocation224_spill] sm:$0xff] %v10566_v20  ;;  %v10572_v6 = vmul.f32 %v14134_v45, %v10365_v46  ;;  %v7559_v28 = vadd.f32 %v10367_v7, %v14136_v12  ;;  %v14137_v13 = vld [vmem:[#allocation32_spill] sm:$0xff]  ;;  %v3043_v23 = vmul.f32 %v9398_v39, %v10554_v60  ;;  %v14141_v14 = vld [vmem:[#allocation99_spill] sm:$0xff] }
 0x3c1   : > { %14131 = vst [vmem:[#allocation103_spill] sm:$0xff] %v10564_v3  ;;  %14133 = vst [vmem:[#allocation225_spill] sm:$0xff] %v10568_v22  ;;  %v14138_v15 = vld [vmem:[#allocation76_spill] sm:$0xff]  ;;  %v4448_v27 = vadd.f32 %v4416_v40, %v4378_v29  ;;  %v4654_v43 = vadd.f32 %v4622_v55, %v4584_v59  ;;  %v3141_v35 = vmul.f32 %v9401_v2, %v10556_v4  ;;  %v10582_v3 = vld [vmem:[#allocation4 + $0x5b] sm:$0xff] }
 0x3c2   : > { %14135 = vst [vmem:[#allocation226_spill] sm:$0xff] %v10572_v6  ;;  %v2943_v32 = vmul.f32 %v14138_v15, %v14137_v13  ;;  %14139 = vst [vmem:[#allocation43_spill] sm:$0xff] %v10582_v3  ;;  %v10584_v21 = vld [vmem:[#allocation4 + $0x4c] sm:$0xff]  ;;  %v10588_v46 = vmul.f32 %v14141_v14, %v10379_v18  ;;  %v14143_v7 = vld [vmem:[#allocation25_spill] sm:$0xff]  ;;  %v3143_v29 = vmul.f32 %v9401_v2, %v10566_v20 }
 0x3c3   : > { %14140 = vst [vmem:[#allocation32_spill] sm:$0xff] %v10584_v21  ;;  %v2705_v12 = vadd.f32 %v7559_v28, %v14143_v7  ;;  %v3241_v59 = vmul.f32 %v13998_v56, %v10568_v22  ;;  %v4518_v40 = vadd.f32 %v4486_v44, %v4448_v27  ;;  %v4724_v55 = vadd.f32 %v4692_v49, %v4654_v43  ;;  %v10596_v6 = vld [vmem:[#allocation4 + $0x5c] sm:$0xff]  ;;  %v10598_v45 = vld [vmem:[#allocation4 + $0x4d] sm:$0xff] }
 0x3c4   : > { %14142 = vst [vmem:[#allocation227_spill] sm:$0xff] %v10588_v46  ;;  %v3075_v39 = vadd.f32 %v3043_v23, %v2943_v32  ;;  %v3173_v15 = vadd.f32 %v3141_v35, %v10319_v16  ;;  %14144 = vst [vmem:[#allocation25_spill] sm:$0xff] %v10596_v6  ;;  %v10600_v19 = vld [vmem:[#allocation4 + $0x5d] sm:$0xff]  ;;  %v10602_v18 = vadd.f32 %v4278_v48, %v4240_v63 }
 0x3c5   : > { %14145 = vst [vmem:[#allocation228_spill] sm:$0xff] %v10598_v45  ;;  %14146 = vst [vmem:[#allocation229_spill] sm:$0xff] %v10600_v19  ;;  %v2774_v28 = vmul.f32 %v10387_v9, %v2705_v12  ;;  %v3243_v7 = vmul.f32 %v13998_v56, %v10582_v3  ;;  %v3341_v27 = vmul.f32 %v14061_v52, %v10584_v21 }
 0x3c6   : > { %14147 = vst [vmem:[#allocation230_spill] sm:$0xff] %v10602_v18  ;;  %v4588_v44 = vadd.f32 %v4556_v51, %v4518_v40  ;;  %v4794_v23 = vadd.f32 %v4762_v58, %v4724_v55  ;;  %v3175_v49 = vadd.f32 %v3143_v29, %v3075_v39  ;;  %v3273_v16 = vadd.f32 %v3241_v59, %v3173_v15 }
 0x3c7   : > { %v2813_v35 = vadd.f32 %v10399_v24, %v2774_v28  ;;  %v3343_v43 = vmul.f32 %v14061_v52, %v10596_v6  ;;  %v3441_v63 = vmul.f32 %v14002_v31, %v10598_v45  ;;  %v3443_v48 = vmul.f32 %v14002_v31, %v10600_v19 }
 0x3c8   : > { %v4658_v32 = vadd.f32 %v4626_v57, %v4588_v44  ;;  %v4864_v12 = vadd.f32 %v4832_v42, %v4794_v23  ;;  %v3275_v18 = vadd.f32 %v3243_v7, %v3175_v49  ;;  %v3373_v9 = vadd.f32 %v3341_v27, %v3273_v16  ;;  %v14150_v49 = vld [vmem:[#allocation89_spill] sm:$0xff] }
 0x3c9   : > { %v2845_v46 = vmax.f32 %v2813_v35, 0.0  ;;  %v3511_v39 = vmul.f32 %v9377_v8, %v14137_v13  ;;  %v3581_v51 = vmul.f32 %v14010_v11, %v10554_v60  ;;  %v3649_v58 = vmul.f32 %v14062_v50, %v10556_v4 }
 0x3ca   : > { %v4934_v15 = vadd.f32 %v4902_v38, %v4864_v12  ;;  %v3375_v29 = vadd.f32 %v3343_v43, %v3275_v18  ;;  %v3473_v59 = vadd.f32 %v3441_v63, %v3373_v9  ;;  %v3651_v40 = vmul.f32 %v14062_v50, %v10566_v20  ;;  %v14151_v43 = vld [vmem:[#allocation90_spill] sm:$0xff] }
 0x3cb   : > { %v10625_v42 = vadd.f32 %v10526_v53, %v4658_v32  ;;  %2877 = vst [vmem:[#allocation4 + $0xc0] sm:$0xff] %v2845_v46  ;;  %v3681_v57 = vadd.f32 %v3649_v58, %v10336_v34  ;;  %v3719_v55 = vmul.f32 %v14063_v54, %v10568_v22  ;;  %v3721_v28 = vmul.f32 %v14063_v54, %v10582_v3  ;;  %v14153_v32 = vld [vmem:[#allocation91_spill] sm:$0xff] }
 0x3cc   : > { %v5004_v7 = vadd.f32 %v10536_v26, %v4934_v15  ;;  %v10633_v38 = vadd.f32 %v3443_v48, %v3375_v29  ;;  %v3543_v18 = vadd.f32 %v3511_v39, %v3473_v59  ;;  %v3789_v9 = vmul.f32 %v14013_v10, %v10584_v21  ;;  %v14156_v15 = vld [vmem:[#allocation92_spill] sm:$0xff] }
 0x3cd   : > { %14148 = vst [vmem:[#allocation231_spill] sm:$0xff] %v10625_v42  ;;  %v3751_v27 = vadd.f32 %v3719_v55, %v3681_v57  ;;  %v3791_v46 = vmul.f32 %v14013_v10, %v10596_v6  ;;  %v3859_v34 = vmul.f32 %v14014_v36, %v10598_v45  ;;  %v3861_v53 = vmul.f32 %v14014_v36, %v10600_v19 }
 0x3ce   : > { %14149 = vst [vmem:[#allocation232_spill] sm:$0xff] %v10633_v38  ;;  %v5074_v44 = vadd.f32 %v10540_v0, %v5004_v7  ;;  %v3613_v23 = vadd.f32 %v3581_v51, %v3543_v18  ;;  %v3929_v26 = vmul.f32 %v14005_v61, %v14137_v13  ;;  %v3999_v16 = vmul.f32 %v14150_v49, %v10554_v60  ;;  %v10658_v0 = vpop.f32.mrb[90].mxu1  ;;  %v14159_v18 = vld [vmem:[#allocation35_spill] sm:$0xff] }
 0x3cf   : > { %v3821_v35 = vadd.f32 %v3789_v9, %v3751_v27  ;;  %v10650_v63 = vmul.f32 %v14151_v43, %v10556_v4  ;;  %v4069_v48 = vmul.f32 %v14151_v43, %v10566_v20  ;;  %v10656_v12 = vmul.f32 %v14153_v32, %v10568_v22  ;;  %14155 = vst [vmem:[#allocation235_spill] sm:$0xff] %v10658_v0  ;;  %v2506_v59 = vpop.f32.mrb[91].mxu1  ;;  %v14160_v9 = vld [vmem:[#allocation57_spill] sm:$0xff] }
 0x3d0   : > { %v5144_v39 = vadd.f32 %v10544_v1, %v5074_v44  ;;  %v3683_v51 = vadd.f32 %v3651_v40, %v3613_v23  ;;  %v4139_v58 = vmul.f32 %v14153_v32, %v10582_v3  ;;  %v10665_v29 = vmul.f32 %v14156_v15, %v10584_v21  ;;  %v14161_v23 = vld [vmem:[#allocation60_spill] sm:$0xff] }
 0x3d1   : > { %14152 = vst [vmem:[#allocation233_spill] sm:$0xff] %v10650_v63  ;;  %14154 = vst [vmem:[#allocation234_spill] sm:$0xff] %v10656_v12  ;;  %v3891_v57 = vadd.f32 %v3859_v34, %v3821_v35  ;;  %v4209_v55 = vmul.f32 %v14156_v15, %v10596_v6  ;;  %v10671_v7 = vmul.f32 %v14109_v47, %v10598_v45  ;;  %v14162_v35 = vld [vmem:[#allocation65_spill] sm:$0xff]  ;;  %v14164_v63 = vld [vmem:[#allocation34_spill] sm:$0xff] }
 0x3d2   : > { %14157 = vst [vmem:[#allocation236_spill] sm:$0xff] %v10665_v29  ;;  %v4375_v1 = vadd.f32 %v14160_v9, %v14159_v18  ;;  %v5214_v40 = vadd.f32 %v10548_v33, %v5144_v39  ;;  %v3753_v27 = vadd.f32 %v3721_v28, %v3683_v51  ;;  %v4279_v44 = vmul.f32 %v14109_v47, %v10600_v19  ;;  %v14163_v29 = vld [vmem:[#allocation37_spill] sm:$0xff]  ;;  %v14165_v33 = vld [vmem:[#allocation59_spill] sm:$0xff]  ;;  %v14166_v39 = vld [vmem:[#allocation36_spill] sm:$0xff] }
 0x3d3   : > { %14158 = vst [vmem:[#allocation237_spill] sm:$0xff] %v10671_v7  ;;  %v4553_v59 = vmul.f32 %v14115_v30, %v14161_v23  ;;  %v3961_v34 = vadd.f32 %v3929_v26, %v3891_v57  ;;  %v4623_v12 = vmul.f32 %v14116_v17, %v14163_v29  ;;  %v4693_v7 = vmul.f32 %v14117_v62, %v14164_v63  ;;  %v14167_v51 = vld [vmem:[#allocation101_spill] sm:$0xff]  ;;  %v14168_v23 = vld [vmem:[#allocation211_spill] sm:$0xff] }
 0x3d4   : > { %v4445_v0 = vadd.f32 %v14162_v35, %v4375_v1  ;;  %v5284_v18 = vadd.f32 %v10552_v25, %v5214_v40  ;;  %v3823_v9 = vadd.f32 %v3791_v46, %v3753_v27  ;;  %v4763_v28 = vmul.f32 %v14118_v41, %v14165_v33  ;;  %v14169_v1 = vld [vmem:[#allocation102_spill] sm:$0xff]  ;;  %v14171_v46 = vld [vmem:[#allocation104_spill] sm:$0xff]  ;;  %v14172_v27 = vld [vmem:[#allocation105_spill] sm:$0xff] }
 0x3d5   : > { %v4833_v42 = vmul.f32 %v14167_v51, %v14166_v39  ;;  %v4031_v38 = vadd.f32 %v3999_v16, %v3961_v34  ;;  %v4903_v57 = vmul.f32 %v14120_v5, %v10556_v4  ;;  %v10695_v29 = vmul.f32 %v14121_v37, %v10568_v22  ;;  %v14173_v33 = vld [vmem:[#allocation94_spill] sm:$0xff]  ;;  %v14174_v22 = vld [vmem:[#allocation95_spill] sm:$0xff]  ;;  %v10737_v39 = vpop.f32.mrb[134].mxu0 }
 0x3d6   : > { %v4515_v26 = vadd.f32 %v14168_v23, %v4445_v0  ;;  %v5354_v35 = vadd.f32 %v14169_v1, %v5284_v18  ;;  %v10698_v25 = vadd.f32 %v3861_v53, %v3823_v9  ;;  %v10702_v40 = vmul.f32 %v14171_v46, %v10584_v21  ;;  %v10716_v53 = vld [vmem:[#allocation4 + $0x61] sm:$0xff]  ;;  %v14178_v21 = vld [vmem:[#allocation96_spill] sm:$0xff]  ;;  %14185 = vst [vmem:[#allocation102_spill] sm:$0xff] %v10737_v39 }
 0x3d7   : > { %v10706_v16 = vmul.f32 %v14172_v27, %v10598_v45  ;;  %v4101_v0 = vadd.f32 %v4069_v48, %v4031_v38  ;;  %v10710_v23 = vmul.f32 %v14173_v33, %v14137_v13  ;;  %v10714_v4 = vmul.f32 %v14174_v22, %v10554_v60  ;;  %14175 = vst [vmem:[#allocation57_spill] sm:$0xff] %v10716_v53  ;;  %v10718_v18 = vld [vmem:[#allocation4 + $0x62] sm:$0xff]  ;;  %v14179_v38 = vld [vmem:[#allocation97_spill] sm:$0xff]  ;;  %v10735_v60 = vpop.f32.mrb[92].mxu1 }
 0x3d8   : > { %14170 = vst [vmem:[#allocation35_spill] sm:$0xff] %v10698_v25  ;;  %v4585_v34 = vadd.f32 %v4553_v59, %v4515_v26  ;;  %14176 = vst [vmem:[#allocation60_spill] sm:$0xff] %v10718_v18  ;;  %v14177_v9 = vld [vmem:[#allocation103_spill] sm:$0xff]  ;;  %v10723_v45 = vmul.f32 %v14178_v21, %v10566_v20  ;;  %v10727_v48 = vmul.f32 %v14179_v38, %v10582_v3  ;;  %v14181_v13 = vld [vmem:[#allocation98_spill] sm:$0xff]  ;;  %v2511_v21 = vpop.f32.mrb[93].mxu1 }
 0x3d9   : > { %v5424_v1 = vadd.f32 %v14177_v9, %v5354_v35  ;;  %v10731_v59 = vmul.f32 %v14181_v13, %v10596_v6  ;;  %v10733_v26 = vld [vmem:[#allocation4 + $0x63] sm:$0xff]  ;;  %14184 = vst [vmem:[#allocation211_spill] sm:$0xff] %v10735_v60  ;;  %v4171_v63 = vadd.f32 %v4139_v58, %v4101_v0  ;;  %v10741_v9 = vmul.f32 %v14141_v14, %v10600_v19  ;;  %v14187_v20 = vld [vmem:[#allocation44_spill] sm:$0xff]  ;;  %v10747_v6 = vpop.f32.mrb[135].mxu0  ;;  %v14194_v58 = vld [vmem:[#allocation77_spill] sm:$0xff] }
 0x3da   : > { %14180 = vst [vmem:[#allocation65_spill] sm:$0xff] %v10727_v48  ;;  %14183 = vst [vmem:[#allocation59_spill] sm:$0xff] %v10733_v26  ;;  %v4655_v35 = vadd.f32 %v4623_v12, %v4585_v34  ;;  %v14188_v25 = vld [vmem:[#allocation216_spill] sm:$0xff]  ;;  %v10745_v38 = vld [vmem:[#allocation4 + $0x64] sm:$0xff]  ;;  %v3044_v12 = vmul.f32 %v14194_v58, %v10716_v53  ;;  %v3144_v0 = vmul.f32 %v9401_v2, %v10718_v18 }
 0x3db   : > { %14182 = vst [vmem:[#allocation37_spill] sm:$0xff] %v10731_v59  ;;  %14186 = vst [vmem:[#allocation104_spill] sm:$0xff] %v10741_v9  ;;  %v7560_v3 = vadd.f32 %v14188_v25, %v14187_v20  ;;  %v14191_v59 = vld [vmem:[#allocation226_spill] sm:$0xff]  ;;  %v14193_v60 = vld [vmem:[#allocation76_spill] sm:$0xff]  ;;  %v4241_v39 = vadd.f32 %v4209_v55, %v4171_v63  ;;  %v3244_v21 = vmul.f32 %v13998_v56, %v10733_v26 }
 0x3dc   : > { %14189 = vst [vmem:[#allocation105_spill] sm:$0xff] %v10745_v38  ;;  %14190 = vst [vmem:[#allocation94_spill] sm:$0xff] %v10747_v6  ;;  %v5494_v13 = vadd.f32 %v14191_v59, %v5424_v1  ;;  %v14192_v48 = vld [vmem:[#allocation58_spill] sm:$0xff]  ;;  %v4725_v20 = vadd.f32 %v4693_v7, %v4655_v35  ;;  %v14196_v25 = vld [vmem:[#allocation51_spill] sm:$0xff]  ;;  %v3344_v9 = vmul.f32 %v14061_v52, %v10745_v38 }
 0x3dd   : > { %v2944_v22 = vmul.f32 %v14193_v60, %v14192_v48  ;;  %v10756_v34 = vld [vmem:[#allocation4 + $0x65] sm:$0xff]  ;;  %v2710_v19 = vadd.f32 %v7560_v3, %v14196_v25  ;;  %v3512_v58 = vmul.f32 %v9377_v8, %v14192_v48  ;;  %v10766_v60 = vadd.f32 %v4279_v44, %v4241_v39  ;;  %v14200_v7 = vld [vmem:[#allocation217_spill] sm:$0xff] }
 0x3de   : > { %14195 = vst [vmem:[#allocation103_spill] sm:$0xff] %v10756_v34  ;;  %v14197_v6 = vld [vmem:[#allocation227_spill] sm:$0xff]  ;;  %v4795_v2 = vadd.f32 %v4763_v28, %v4725_v20  ;;  %v3444_v3 = vmul.f32 %v14002_v31, %v10756_v34  ;;  %v3722_v28 = vmul.f32 %v14063_v54, %v10733_v26 }
 0x3df   : > { %v5564_v1 = vadd.f32 %v14197_v6, %v5494_v13  ;;  %v3076_v59 = vadd.f32 %v3044_v12, %v2944_v22  ;;  %14198 = vst [vmem:[#allocation44_spill] sm:$0xff] %v10766_v60  ;;  %v14199_v14 = vld [vmem:[#allocation215_spill] sm:$0xff]  ;;  %v3544_v35 = vadd.f32 %v3512_v58, %v14200_v7  ;;  %v3582_v22 = vmul.f32 %v14010_v11, %v10716_v53  ;;  %v14203_v60 = vld [vmem:[#allocation26_spill] sm:$0xff] }
 0x3e0   : > { %v2775_v63 = vmul.f32 %v14199_v14, %v2710_v19  ;;  %v3652_v6 = vmul.f32 %v14062_v50, %v10718_v18  ;;  %v4865_v13 = vadd.f32 %v4833_v42, %v4795_v2  ;;  %v3792_v19 = vmul.f32 %v14013_v10, %v10745_v38  ;;  %v14201_v42 = vld [vmem:[#allocation56_spill] sm:$0xff] }
 0x3e1   : > { %6959 = vmatprep.mubr.f32.mxu0 %v5564_v1  ;;  %v3176_v55 = vadd.f32 %v3144_v0, %v3076_v59  ;;  %v3614_v12 = vadd.f32 %v3582_v22, %v3544_v35  ;;  %v3862_v58 = vmul.f32 %v14014_v36, %v10756_v34  ;;  %v3930_v0 = vmul.f32 %v14005_v61, %v14192_v48  ;;  %v14202_v1 = vld [vmem:[#allocation222_spill] sm:$0xff]  ;;  %v14204_v35 = vld [vmem:[#allocation223_spill] sm:$0xff] }
 0x3e2   : > { %v2814_v44 = vadd.f32 %v10399_v24, %v2775_v63  ;;  %v4935_v20 = vadd.f32 %v4903_v57, %v4865_v13  ;;  %v4000_v2 = vmul.f32 %v14150_v49, %v10716_v53  ;;  %v4096_v59 = vadd.f32 %v14202_v1, %v14201_v42 }
 0x3e3   : > { %v3276_v39 = vadd.f32 %v3244_v21, %v3176_v55  ;;  %v3684_v7 = vadd.f32 %v3652_v6, %v3614_v12  ;;  %v3962_v10 = vadd.f32 %v3930_v0, %v14203_v60  ;;  %v4070_v21 = vmul.f32 %v14151_v43, %v10718_v18  ;;  %v14206_v12 = vld [vmem:[#allocation33_spill] sm:$0xff] }
 0x3e4   : > { %v2846_v25 = vmax.f32 %v2814_v44, 0.0  ;;  %v5005_v55 = vadd.f32 %v10695_v29, %v4935_v20  ;;  %v4140_v57 = vmul.f32 %v14153_v32, %v10733_v26  ;;  %v4166_v22 = vadd.f32 %v14204_v35, %v4096_v59  ;;  %v14207_v0 = vld [vmem:[#allocation29_spill] sm:$0xff]  ;;  %v14208_v20 = vld [vmem:[#allocation82_spill] sm:$0xff]  ;;  %v14209_v35 = vld [vmem:[#allocation39_spill] sm:$0xff] }
 0x3e5   : > { %v3376_v63 = vadd.f32 %v3344_v9, %v3276_v39  ;;  %v4210_v13 = vmul.f32 %v14156_v15, %v10745_v38  ;;  %v3754_v9 = vadd.f32 %v3722_v28, %v3684_v7  ;;  %v4032_v6 = vadd.f32 %v4000_v2, %v3962_v10  ;;  %v14211_v2 = vld [vmem:[#allocation54_spill] sm:$0xff] }
 0x3e6   : > { %2878 = vst [vmem:[#allocation4 + $0xc8] sm:$0xff] %v2846_v25  ;;  %v4280_v60 = vmul.f32 %v14109_v47, %v10756_v34  ;;  %v5075_v39 = vadd.f32 %v10702_v40, %v5005_v55  ;;  %v4236_v29 = vadd.f32 %v14206_v12, %v4166_v22  ;;  %v4344_v25 = vmul.f32 %v14208_v20, %v14207_v0  ;;  %v14212_v7 = vld [vmem:[#allocation230_spill] sm:$0xff]  ;;  %v14213_v22 = vld [vmem:[#allocation40_spill] sm:$0xff] }
 0x3e7   : > { %v10798_v44 = vadd.f32 %v3444_v3, %v3376_v63  ;;  %v4348_v42 = vmul.f32 %v14208_v20, %v14192_v48  ;;  %v3824_v1 = vadd.f32 %v3792_v19, %v3754_v9  ;;  %v4102_v59 = vadd.f32 %v4070_v21, %v4032_v6  ;;  %v14210_v3 = vld [vmem:[#allocation83_spill] sm:$0xff]  ;;  %v14214_v12 = vld [vmem:[#allocation84_spill] sm:$0xff] }
 0x3e8   : > { %v4414_v63 = vmul.f32 %v14210_v3, %v14209_v35  ;;  %v4418_v10 = vmul.f32 %v14210_v3, %v10716_v53  ;;  %v5145_v28 = vadd.f32 %v10706_v16, %v5075_v39  ;;  %v4306_v40 = vadd.f32 %v14211_v2, %v4236_v29  ;;  %v14216_v21 = vld [vmem:[#allocation67_spill] sm:$0xff] }
 0x3e9   : > { %14205 = vst [vmem:[#allocation216_spill] sm:$0xff] %v10798_v44  ;;  %v4380_v55 = vadd.f32 %v4348_v42, %v14212_v7  ;;  %v4484_v0 = vmul.f32 %v14214_v12, %v14213_v22  ;;  %v10817_v44 = vadd.f32 %v3862_v58, %v3824_v1  ;;  %v4172_v20 = vadd.f32 %v4140_v57, %v4102_v59  ;;  %v14217_v42 = vld [vmem:[#allocation41_spill] sm:$0xff]  ;;  %v14218_v57 = vld [vmem:[#allocation42_spill] sm:$0xff] }
 0x3ea   : > { %v4488_v19 = vmul.f32 %v14214_v12, %v10718_v18  ;;  %v4554_v9 = vmul.f32 %v14115_v30, %v14216_v21  ;;  %v5215_v6 = vadd.f32 %v10710_v23, %v5145_v28  ;;  %v4376_v35 = vadd.f32 %v4344_v25, %v4306_v40  ;;  %v14222_v40 = vld [vmem:[#allocation64_spill] sm:$0xff] }
 0x3eb   : > { %14215 = vst [vmem:[#allocation226_spill] sm:$0xff] %v10817_v44  ;;  %v4450_v16 = vadd.f32 %v4418_v10, %v4380_v55  ;;  %v4558_v39 = vmul.f32 %v14115_v30, %v10733_v26  ;;  %v4242_v29 = vadd.f32 %v4210_v13, %v4172_v20  ;;  %v4624_v2 = vmul.f32 %v14116_v17, %v14217_v42  ;;  %v14220_v10 = vld [vmem:[#allocation27_spill] sm:$0xff]  ;;  %v14221_v20 = vld [vmem:[#allocation38_spill] sm:$0xff] }
 0x3ec   : > { %v4628_v58 = vmul.f32 %v14116_v17, %v10745_v38  ;;  %v4694_v1 = vmul.f32 %v14117_v62, %v14218_v57  ;;  %v5285_v59 = vadd.f32 %v10714_v4, %v5215_v6  ;;  %v4446_v7 = vadd.f32 %v4414_v63, %v4376_v35  ;;  %v14223_v63 = vld [vmem:[#allocation66_spill] sm:$0xff]  ;;  %v10846_v6 = vpop.f32.mrb[94].mxu1 }
 0x3ed   : > { %v4520_v22 = vadd.f32 %v4488_v19, %v4450_v16  ;;  %v4698_v23 = vmul.f32 %v14117_v62, %v10756_v34  ;;  %v10835_v25 = vadd.f32 %v4280_v60, %v4242_v29  ;;  %v4764_v13 = vmul.f32 %v14118_v41, %v14220_v10  ;;  %14224 = vst [vmem:[#allocation51_spill] sm:$0xff] %v10846_v6  ;;  %v14225_v60 = vld [vmem:[#allocation69_spill] sm:$0xff]  ;;  %v14226_v16 = vld [vmem:[#allocation68_spill] sm:$0xff] }
 0x3ee   : > { %v4834_v28 = vmul.f32 %v14167_v51, %v14221_v20  ;;  %v4904_v55 = vmul.f32 %v14120_v5, %v14222_v40  ;;  %v5355_v21 = vadd.f32 %v10723_v45, %v5285_v59  ;;  %v4516_v42 = vadd.f32 %v4484_v0, %v4446_v7  ;;  %v14227_v45 = vld [vmem:[#allocation95_spill] sm:$0xff]  ;;  %v2516_v59 = vpop.f32.mrb[95].mxu1  ;;  %v14229_v7 = vld [vmem:[#allocation65_spill] sm:$0xff]  ;;  %v14230_v40 = vld [vmem:[#allocation96_spill] sm:$0xff] }
 0x3ef   : > { %14219 = vst [vmem:[#allocation58_spill] sm:$0xff] %v10835_v25  ;;  %v4590_v4 = vadd.f32 %v4558_v39, %v4520_v22  ;;  %v4974_v19 = vmul.f32 %v14121_v37, %v14223_v63  ;;  %v10850_v35 = vmul.f32 %v14171_v46, %v14225_v60  ;;  %v10854_v29 = vmul.f32 %v14172_v27, %v14226_v16  ;;  %v10864_v39 = vld [vmem:[#allocation4 + $0x69] sm:$0xff] }
 0x3f0   : > { %v10858_v57 = vmul.f32 %v14173_v33, %v14192_v48  ;;  %v10862_v0 = vmul.f32 %v14227_v45, %v10716_v53  ;;  %14228 = vst [vmem:[#allocation227_spill] sm:$0xff] %v10864_v39  ;;  %v5425_v22 = vadd.f32 %v14229_v7, %v5355_v21  ;;  %v4586_v10 = vadd.f32 %v4554_v9, %v4516_v42  ;;  %v10871_v60 = vld [vmem:[#allocation4 + $0x6a] sm:$0xff]  ;;  %v14233_v48 = vld [vmem:[#allocation97_spill] sm:$0xff]  ;;  %v14235_v53 = vld [vmem:[#allocation98_spill] sm:$0xff] }
 0x3f1   : > { %v4660_v20 = vadd.f32 %v4628_v58, %v4590_v4  ;;  %v10869_v63 = vmul.f32 %v14230_v40, %v10718_v18  ;;  %14231 = vst [vmem:[#allocation215_spill] sm:$0xff] %v10871_v60  ;;  %v10873_v16 = vld [vmem:[#allocation4 + $0x6b] sm:$0xff]  ;;  %v10877_v6 = vmul.f32 %v14233_v48, %v10733_v26  ;;  %v10881_v25 = vmul.f32 %v14235_v53, %v10745_v38  ;;  %v14239_v58 = vld [vmem:[#allocation45_spill] sm:$0xff]  ;;  %v14240_v42 = vld [vmem:[#allocation218_spill] sm:$0xff] }
 0x3f2   : > { %14232 = vst [vmem:[#allocation217_spill] sm:$0xff] %v10873_v16  ;;  %v14237_v21 = vld [vmem:[#allocation99_spill] sm:$0xff]  ;;  %v7561_v4 = vadd.f32 %v14240_v42, %v14239_v58  ;;  %v14242_v7 = vld [vmem:[#allocation37_spill] sm:$0xff]  ;;  %v4656_v44 = vadd.f32 %v4624_v2, %v4586_v10  ;;  %v14243_v40 = vld [vmem:[#allocation212_spill] sm:$0xff]  ;;  %v3245_v42 = vmul.f32 %v13998_v56, %v10873_v16 }
 0x3f3   : > { %14234 = vst [vmem:[#allocation56_spill] sm:$0xff] %v10877_v6  ;;  %14236 = vst [vmem:[#allocation222_spill] sm:$0xff] %v10881_v25  ;;  %v10885_v9 = vmul.f32 %v14237_v21, %v10756_v34  ;;  %v10889_v59 = vld [vmem:[#allocation4 + $0x6c] sm:$0xff]  ;;  %v5495_v18 = vadd.f32 %v14242_v7, %v5425_v22  ;;  %v14245_v6 = vld [vmem:[#allocation77_spill] sm:$0xff]  ;;  %v10898_v25 = vadd.f32 %v4698_v23, %v4660_v20 }
 0x3f4   : > { %14241 = vst [vmem:[#allocation223_spill] sm:$0xff] %v10889_v59  ;;  %v14244_v45 = vld [vmem:[#allocation76_spill] sm:$0xff]  ;;  %v3045_v48 = vmul.f32 %v14245_v6, %v10864_v39  ;;  %v14248_v34 = vld [vmem:[#allocation61_spill] sm:$0xff]  ;;  %v14249_v21 = vld [vmem:[#allocation78_spill] sm:$0xff]  ;;  %v4726_v10 = vadd.f32 %v4694_v1, %v4656_v44  ;;  %v3583_v20 = vmul.f32 %v14010_v11, %v10864_v39 }
 0x3f5   : > { %14238 = vst [vmem:[#allocation26_spill] sm:$0xff] %v10885_v9  ;;  %v2945_v26 = vmul.f32 %v14244_v45, %v14243_v40  ;;  %v10896_v38 = vld [vmem:[#allocation4 + $0x6d] sm:$0xff]  ;;  %14247 = vst [vmem:[#allocation29_spill] sm:$0xff] %v10898_v25  ;;  %v2715_v9 = vadd.f32 %v7561_v4, %v14248_v34  ;;  %v3145_v58 = vmul.f32 %v14249_v21, %v10871_v60 }
 0x3f6   : > { %14246 = vst [vmem:[#allocation33_spill] sm:$0xff] %v10896_v38  ;;  %v14250_v22 = vld [vmem:[#allocation104_spill] sm:$0xff]  ;;  %v3345_v45 = vmul.f32 %v14061_v52, %v10889_v59  ;;  %v3445_v23 = vmul.f32 %v14002_v31, %v10896_v38  ;;  %v3513_v34 = vmul.f32 %v9377_v8, %v14243_v40  ;;  %v4796_v4 = vadd.f32 %v4764_v13, %v4726_v10 }
 0x3f7   : > { %v5565_v2 = vadd.f32 %v14250_v22, %v5495_v18  ;;  %v3077_v7 = vadd.f32 %v3045_v48, %v2945_v26  ;;  %v2776_v6 = vmul.f32 %v14199_v14, %v2715_v9  ;;  %v3653_v18 = vmul.f32 %v14062_v50, %v10871_v60  ;;  %v14251_v1 = vld [vmem:[#allocation232_spill] sm:$0xff]  ;;  %v14252_v9 = vld [vmem:[#allocation74_spill] sm:$0xff] }
 0x3f8   : > { %v3723_v26 = vmul.f32 %v14063_v54, %v10873_v16  ;;  %v3545_v48 = vadd.f32 %v3513_v34, %v14251_v1  ;;  %v3793_v22 = vmul.f32 %v14252_v9, %v10889_v59  ;;  %v3931_v31 = vmul.f32 %v14005_v61, %v14243_v40  ;;  %v14253_v54 = vld [vmem:[#allocation35_spill] sm:$0xff] }
 0x3f9   : > { %6960 = vmatmul.mubr.f32.vlgmr.msra.gmra.mrb[136].mxu0 %v5565_v2  ;;  %v3177_v25 = vadd.f32 %v3145_v58, %v3077_v7  ;;  %v2815_v44 = vadd.f32 %v10399_v24, %v2776_v6  ;;  %v4866_v11 = vadd.f32 %v4834_v28, %v4796_v4  ;;  %v3863_v13 = vmul.f32 %v14014_v36, %v10896_v38  ;;  %v14254_v28 = vld [vmem:[#allocation213_spill] sm:$0xff] }
 0x3fa   : > { %v4001_v58 = vmul.f32 %v14150_v49, %v10864_v39  ;;  %v3615_v7 = vadd.f32 %v3583_v20, %v3545_v48  ;;  %v3963_v6 = vadd.f32 %v3931_v31, %v14253_v54  ;;  %v4071_v34 = vmul.f32 %v14151_v43, %v10871_v60  ;;  %v14256_v20 = vld [vmem:[#allocation34_spill] sm:$0xff] }
 0x3fb   : > { %v3277_v2 = vadd.f32 %v3245_v42, %v3177_v25  ;;  %v2847_v10 = vmax.f32 %v2815_v44, 0.0  ;;  %v4936_v1 = vadd.f32 %v4904_v55, %v4866_v11  ;;  %v4141_v61 = vmul.f32 %v14153_v32, %v10873_v16  ;;  %v14255_v25 = vld [vmem:[#allocation63_spill] sm:$0xff]  ;;  %v14258_v11 = vld [vmem:[#allocation62_spill] sm:$0xff] }
 0x3fc   : > { %v4167_v42 = vadd.f32 %v14255_v25, %v14254_v28  ;;  %v3685_v4 = vadd.f32 %v3653_v18, %v3615_v7  ;;  %v4033_v36 = vadd.f32 %v4001_v58, %v3963_v6  ;;  %v4211_v44 = vmul.f32 %v14156_v15, %v10889_v59  ;;  %v7825_v28 = vld [vmem:[#allocation4 + $0x48] sm:$0xff]  ;;  %v14260_v25 = vld [vmem:[#allocation36_spill] sm:$0xff] }
 0x3fd   : > { %v3377_v9 = vadd.f32 %v3345_v45, %v3277_v2  ;;  %2879 = vst [vmem:[#allocation4 + $0xd0] sm:$0xff] %v2847_v10  ;;  %v4275_v31 = vmul.f32 %v14109_v47, %v14256_v20  ;;  %v5006_v54 = vadd.f32 %v4974_v19, %v4936_v1  ;;  %v4281_v45 = vmul.f32 %v14109_v47, %v10896_v38  ;;  %v14259_v10 = vld [vmem:[#allocation82_spill] sm:$0xff] }
 0x3fe   : > { %v4237_v55 = vadd.f32 %v14258_v11, %v4167_v42  ;;  %v3755_v2 = vadd.f32 %v3723_v26, %v3685_v4  ;;  %v4103_v32 = vadd.f32 %v4071_v34, %v4033_v36  ;;  %v4345_v18 = vmul.f32 %v7825_v28, %v14259_v10  ;;  %v14261_v42 = vld [vmem:[#allocation44_spill] sm:$0xff] }
 0x3ff   : > { %v10940_v48 = vadd.f32 %v3445_v23, %v3377_v9  ;;  %v4349_v58 = vmul.f32 %v14259_v10, %v14243_v40  ;;  %v5076_v7 = vadd.f32 %v10850_v35, %v5006_v54  ;;  %v4415_v19 = vmul.f32 %v14210_v3, %v14260_v25  ;;  %v14262_v36 = vld [vmem:[#allocation28_spill] sm:$0xff] }
 0x400   : > { %v4307_v6 = vadd.f32 %v4275_v31, %v4237_v55  ;;  %v4419_v23 = vmul.f32 %v14210_v3, %v10864_v39  ;;  %v3825_v9 = vadd.f32 %v3793_v22, %v3755_v2  ;;  %v4173_v1 = vadd.f32 %v4141_v61, %v4103_v32  ;;  %v14263_v31 = vld [vmem:[#allocation225_spill] sm:$0xff]  ;;  %v14265_v2 = vld [vmem:[#allocation32_spill] sm:$0xff] }
 0x401   : > { %14257 = vst [vmem:[#allocation39_spill] sm:$0xff] %v10940_v48  ;;  %v4381_v26 = vadd.f32 %v4349_v58, %v14261_v42  ;;  %v4485_v34 = vmul.f32 %v14214_v12, %v14262_v36  ;;  %v5146_v4 = vadd.f32 %v10854_v29, %v5076_v7  ;;  %v4489_v35 = vmul.f32 %v14214_v12, %v10871_v60  ;;  %v14270_v42 = vld [vmem:[#allocation224_spill] sm:$0xff]  ;;  %v14271_v36 = vld [vmem:[#allocation43_spill] sm:$0xff] }
 0x402   : > { %v4377_v20 = vadd.f32 %v4345_v18, %v4307_v6  ;;  %v4555_v54 = vmul.f32 %v14115_v30, %v14263_v31  ;;  %v10961_v11 = vadd.f32 %v3863_v13, %v3825_v9  ;;  %v4243_v55 = vadd.f32 %v4211_v44, %v4173_v1  ;;  %v14267_v6 = vld [vmem:[#allocation228_spill] sm:$0xff]  ;;  %v14273_v31 = vld [vmem:[#allocation229_spill] sm:$0xff] }
 0x403   : > { %v4451_v28 = vadd.f32 %v4419_v23, %v4381_v26  ;;  %v4559_v61 = vmul.f32 %v14115_v30, %v10873_v16  ;;  %v5216_v32 = vadd.f32 %v10858_v57, %v5146_v4  ;;  %v4625_v29 = vmul.f32 %v14116_v17, %v14265_v2  ;;  %v10977_v57 = vld [vmem:[#allocation4 + $0x58] sm:$0xff]  ;;  %v14269_v9 = vld [vmem:[#allocation52_spill] sm:$0xff]  ;;  %v14276_v2 = vld [vmem:[#allocation95_spill] sm:$0xff] }
 0x404   : > { %14264 = vst [vmem:[#allocation54_spill] sm:$0xff] %v10961_v11  ;;  %v4447_v22 = vadd.f32 %v4415_v19, %v4377_v20  ;;  %v4629_v18 = vmul.f32 %v14116_v17, %v10889_v59  ;;  %v10970_v58 = vadd.f32 %v4281_v45, %v4243_v55  ;;  %v4695_v13 = vmul.f32 %v14117_v62, %v14267_v6  ;;  %v14272_v20 = vld [vmem:[#allocation25_spill] sm:$0xff]  ;;  %v14294_v11 = vld [vmem:[#allocation30_spill] sm:$0xff] }
 0x405   : > { %v4521_v7 = vadd.f32 %v4489_v35, %v4451_v28  ;;  %v4699_v44 = vmul.f32 %v14117_v62, %v10896_v38  ;;  %v5286_v25 = vadd.f32 %v10862_v0, %v5216_v32  ;;  %14268 = vst [vmem:[#allocation40_spill] sm:$0xff] %v10977_v57  ;;  %v4765_v19 = vmul.f32 %v10977_v57, %v14118_v41  ;;  %v11002_v32 = vld [vmem:[#allocation4 + $0x71] sm:$0xff]  ;;  %v14293_v57 = vld [vmem:[#allocation222_spill] sm:$0xff] }
 0x406   : > { %14266 = vst [vmem:[#allocation230_spill] sm:$0xff] %v10970_v58  ;;  %v4517_v23 = vadd.f32 %v4485_v34, %v4447_v22  ;;  %v4835_v1 = vmul.f32 %v14167_v51, %v14269_v9  ;;  %v4905_v26 = vmul.f32 %v14120_v5, %v14270_v42  ;;  %v4975_v4 = vmul.f32 %v14121_v37, %v14271_v36  ;;  %v14278_v6 = vld [vmem:[#allocation97_spill] sm:$0xff] }
 0x407   : > { %v4591_v45 = vadd.f32 %v4559_v61, %v4521_v7  ;;  %v10989_v35 = vmul.f32 %v14171_v46, %v14272_v20  ;;  %v5356_v0 = vadd.f32 %v10869_v63, %v5286_v25  ;;  %v10994_v55 = vmul.f32 %v14172_v27, %v14273_v31  ;;  %v11000_v61 = vld [vmem:[#allocation4 + $0x70] sm:$0xff]  ;;  %14275 = vst [vmem:[#allocation41_spill] sm:$0xff] %v11002_v32 }
 0x408   : > { %v4587_v34 = vadd.f32 %v4555_v54, %v4517_v23  ;;  %v10998_v28 = vmul.f32 %v14173_v33, %v14243_v40  ;;  %14274 = vst [vmem:[#allocation67_spill] sm:$0xff] %v11000_v61  ;;  %v11006_v7 = vmul.f32 %v14276_v2, %v10864_v39  ;;  %v14277_v63 = vld [vmem:[#allocation96_spill] sm:$0xff]  ;;  %v11014_v25 = vmul.f32 %v14278_v6, %v10873_v16  ;;  %v14284_v39 = vld [vmem:[#allocation221_spill] sm:$0xff]  ;;  %v14288_v16 = vld [vmem:[#allocation99_spill] sm:$0xff] }
 0x409   : > { %v4661_v22 = vadd.f32 %v4629_v18, %v4591_v45  ;;  %v11010_v54 = vmul.f32 %v14277_v63, %v10871_v60  ;;  %v11016_v23 = vld [vmem:[#allocation4 + $0x72] sm:$0xff]  ;;  %v11021_v18 = vmul.f32 %v14235_v53, %v10889_v59  ;;  %v14283_v45 = vld [vmem:[#allocation46_spill] sm:$0xff]  ;;  %v11033_v9 = vmul.f32 %v14288_v16, %v10896_v38 }
 0x40a   : > { %14279 = vst [vmem:[#allocation42_spill] sm:$0xff] %v11014_v25  ;;  %14280 = vst [vmem:[#allocation27_spill] sm:$0xff] %v11016_v23  ;;  %v14281_v40 = vld [vmem:[#allocation56_spill] sm:$0xff]  ;;  %v4657_v20 = vadd.f32 %v4625_v29, %v4587_v34  ;;  %v7562_v36 = vadd.f32 %v14284_v39, %v14283_v45  ;;  %v14291_v34 = vld [vmem:[#allocation77_spill] sm:$0xff] }
 0x40b   : > { %v5426_v31 = vadd.f32 %v14281_v40, %v5356_v0  ;;  %14282 = vst [vmem:[#allocation38_spill] sm:$0xff] %v11021_v18  ;;  %v11025_v42 = vld [vmem:[#allocation4 + $0x73] sm:$0xff]  ;;  %v11029_v58 = vadd.f32 %v4699_v44, %v4661_v22  ;;  %14289 = vst [vmem:[#allocation68_spill] sm:$0xff] %v11033_v9  ;;  %v3046_v40 = vmul.f32 %v14291_v34, %v11002_v32  ;;  %v14295_v18 = vld [vmem:[#allocation26_spill] sm:$0xff] }
 0x40c   : > { %14285 = vst [vmem:[#allocation64_spill] sm:$0xff] %v11025_v42  ;;  %v11027_v60 = vld [vmem:[#allocation4 + $0x74] sm:$0xff]  ;;  %v4727_v45 = vadd.f32 %v4695_v13, %v4657_v20  ;;  %v2720_v48 = vadd.f32 %v7562_v36, %v14294_v11  ;;  %v3146_v44 = vmul.f32 %v14249_v21, %v11016_v23  ;;  %v3514_v9 = vmul.f32 %v9377_v8, %v11000_v61 }
 0x40d   : > { %14286 = vst [vmem:[#allocation66_spill] sm:$0xff] %v11027_v60  ;;  %14287 = vst [vmem:[#allocation69_spill] sm:$0xff] %v11029_v58  ;;  %v14290_v0 = vld [vmem:[#allocation76_spill] sm:$0xff]  ;;  %v5496_v39 = vadd.f32 %v14293_v57, %v5426_v31  ;;  %v3246_v58 = vmul.f32 %v13998_v56, %v11025_v42  ;;  %v3346_v38 = vmul.f32 %v14061_v52, %v11027_v60  ;;  %v14296_v11 = vld [vmem:[#allocation81_spill] sm:$0xff] }
 0x40e   : > { %v2946_v29 = vmul.f32 %v14290_v0, %v11000_v61  ;;  %v11039_v59 = vld [vmem:[#allocation4 + $0x75] sm:$0xff]  ;;  %v4797_v34 = vadd.f32 %v4765_v19, %v4727_v45  ;;  %v2777_v13 = vmul.f32 %v14199_v14, %v2720_v48  ;;  %v3654_v52 = vmul.f32 %v14062_v50, %v11016_v23  ;;  %v14300_v14 = vld [vmem:[#allocation74_spill] sm:$0xff] }
 0x40f   : > { %14292 = vst [vmem:[#allocation65_spill] sm:$0xff] %v11039_v59  ;;  %v5566_v25 = vadd.f32 %v14295_v18, %v5496_v39  ;;  %v3446_v57 = vmul.f32 %v14296_v11, %v11039_v59  ;;  %v14297_v20 = vld [vmem:[#allocation216_spill] sm:$0xff]  ;;  %v14299_v19 = vld [vmem:[#allocation73_spill] sm:$0xff]  ;;  %v3794_v48 = vmul.f32 %v14300_v14, %v11027_v60 }
 0x410   : > { %v3078_v22 = vadd.f32 %v3046_v40, %v2946_v29  ;;  %v3546_v31 = vadd.f32 %v3514_v9, %v14297_v20  ;;  %v14298_v29 = vld [vmem:[#allocation71_spill] sm:$0xff]  ;;  %v4867_v56 = vadd.f32 %v4835_v1, %v4797_v34  ;;  %v2816_v8 = vadd.f32 %v10399_v24, %v2777_v13  ;;  %v14303_v13 = vld [vmem:[#allocation226_spill] sm:$0xff] }
 0x411   : > { %v3584_v40 = vmul.f32 %v14298_v29, %v11002_v32  ;;  %6962 = vmatprep.mubr.f32.mxu0 %v5566_v25  ;;  %v3724_v18 = vmul.f32 %v14299_v19, %v11025_v42  ;;  %v14301_v9 = vld [vmem:[#allocation75_spill] sm:$0xff]  ;;  %v4002_v1 = vmul.f32 %v14150_v49, %v11002_v32  ;;  %v4072_v24 = vmul.f32 %v14151_v43, %v11016_v23 }
 0x412   : > { %v3178_v36 = vadd.f32 %v3146_v44, %v3078_v22  ;;  %v3864_v44 = vmul.f32 %v14301_v9, %v11039_v59  ;;  %v14302_v22 = vld [vmem:[#allocation88_spill] sm:$0xff]  ;;  %v4937_v29 = vadd.f32 %v4905_v26, %v4867_v56  ;;  %v2848_v50 = vmax.f32 %v2816_v8, 0.0 }
 0x413   : > { %v3616_v45 = vadd.f32 %v3584_v40, %v3546_v31  ;;  %v3932_v20 = vmul.f32 %v14302_v22, %v11000_v61  ;;  %v4212_v40 = vmul.f32 %v14156_v15, %v11027_v60  ;;  %v4282_v8 = vmul.f32 %v14109_v47, %v11039_v59 }
 0x414   : > { %v3278_v39 = vadd.f32 %v3246_v58, %v3178_v36  ;;  %v14304_v58 = vld [vmem:[#allocation91_spill] sm:$0xff]  ;;  %v5007_v31 = vadd.f32 %v4975_v4, %v4937_v29  ;;  %2880 = vst [vmem:[#allocation4 + $0xd8] sm:$0xff] %v2848_v50  ;;  %v4350_v56 = vmul.f32 %v14259_v10, %v11000_v61  ;;  %v14306_v4 = vld [vmem:[#allocation58_spill] sm:$0xff]  ;;  %v4490_v29 = vmul.f32 %v14214_v12, %v11016_v23 }
 0x415   : > { %v3686_v34 = vadd.f32 %v3654_v52, %v3616_v45  ;;  %v3964_v14 = vadd.f32 %v3932_v20, %v14303_v13  ;;  %v4142_v36 = vmul.f32 %v14304_v58, %v11025_v42  ;;  %v4560_v20 = vmul.f32 %v14115_v30, %v11025_v42 }
 0x416   : > { %v3378_v25 = vadd.f32 %v3346_v38, %v3278_v39  ;;  %v4420_v39 = vmul.f32 %v14210_v3, %v11002_v32  ;;  %v5077_v45 = vadd.f32 %v10989_v35, %v5007_v31  ;;  %v4382_v50 = vadd.f32 %v4350_v56, %v14306_v4 }
 0x417   : > { %v3756_v38 = vadd.f32 %v3724_v18, %v3686_v34  ;;  %v4034_v52 = vadd.f32 %v4002_v1, %v3964_v14  ;;  %v7827_v18 = vld [vmem:[#allocation4 + $0x60] sm:$0xff]  ;;  %v4700_v35 = vmul.f32 %v14117_v62, %v11039_v59  ;;  %v14307_v34 = vld [vmem:[#allocation57_spill] sm:$0xff] }
 0x418   : > { %v11082_v26 = vadd.f32 %v3446_v57, %v3378_v25  ;;  %v4630_v57 = vmul.f32 %v14116_v17, %v11027_v60  ;;  %v4766_v14 = vmul.f32 %v7827_v18, %v14118_v41  ;;  %v5147_v1 = vadd.f32 %v10994_v55, %v5077_v45  ;;  %v14311_v41 = vld [vmem:[#allocation59_spill] sm:$0xff] }
 0x419   : > { %v3826_v13 = vadd.f32 %v3794_v48, %v3756_v38  ;;  %v4104_v47 = vadd.f32 %v4072_v24, %v4034_v52  ;;  %v4452_v25 = vadd.f32 %v4420_v39, %v4382_v50  ;;  %v4836_v31 = vmul.f32 %v14167_v51, %v14307_v34  ;;  %v14309_v48 = vld [vmem:[#allocation231_spill] sm:$0xff]  ;;  %v14310_v38 = vld [vmem:[#allocation60_spill] sm:$0xff]  ;;  %v14312_v39 = vld [vmem:[#allocation105_spill] sm:$0xff] }
 0x41a   : > { %14305 = vst [vmem:[#allocation98_spill] sm:$0xff] %v11082_v26  ;;  %v4798_v24 = vadd.f32 %v4766_v14, %v14309_v48  ;;  %v4906_v52 = vmul.f32 %v14120_v5, %v14310_v38  ;;  %v5217_v26 = vadd.f32 %v10998_v28, %v5147_v1  ;;  %v4976_v55 = vmul.f32 %v14121_v37, %v14311_v41  ;;  %v14313_v34 = vld [vmem:[#allocation103_spill] sm:$0xff]  ;;  %v11121_v14 = vld [vmem:[#allocation4 + $0x79] sm:$0xff] }
 0x41b   : > { %v11100_v56 = vadd.f32 %v3864_v44, %v3826_v13  ;;  %v4174_v4 = vadd.f32 %v4142_v36, %v4104_v47  ;;  %v4522_v18 = vadd.f32 %v4490_v29, %v4452_v25  ;;  %v5046_v45 = vmul.f32 %v14171_v46, %v14312_v39  ;;  %v11119_v29 = vld [vmem:[#allocation4 + $0x78] sm:$0xff]  ;;  %14315 = vst [vmem:[#allocation37_spill] sm:$0xff] %v11121_v14 }
 0x41c   : > { %v4868_v62 = vadd.f32 %v4836_v31, %v4798_v24  ;;  %v5116_v44 = vmul.f32 %v14172_v27, %v14313_v34  ;;  %v5186_v47 = vmul.f32 %v14173_v33, %v11000_v61  ;;  %v5287_v36 = vadd.f32 %v11006_v7, %v5217_v26  ;;  %14314 = vst [vmem:[#allocation218_spill] sm:$0xff] %v11119_v29  ;;  %v11133_v26 = vld [vmem:[#allocation4 + $0x7b] sm:$0xff]  ;;  %v14319_v24 = vld [vmem:[#allocation47_spill] sm:$0xff] }
 0x41d   : > { %14308 = vst [vmem:[#allocation45_spill] sm:$0xff] %v11100_v56  ;;  %v4244_v50 = vadd.f32 %v4212_v40, %v4174_v4  ;;  %v4592_v13 = vadd.f32 %v4560_v20, %v4522_v18  ;;  %v5256_v28 = vmul.f32 %v14276_v2, %v11002_v32  ;;  %v5326_v41 = vmul.f32 %v14277_v63, %v11016_v23  ;;  %v11123_v40 = vld [vmem:[#allocation4 + $0x7a] sm:$0xff] }
 0x41e   : > { %14316 = vst [vmem:[#allocation212_spill] sm:$0xff] %v11123_v40  ;;  %v4938_v25 = vadd.f32 %v4906_v52, %v4868_v62  ;;  %v5396_v31 = vmul.f32 %v14278_v6, %v11025_v42  ;;  %v11131_v7 = vmul.f32 %v14235_v53, %v11027_v60  ;;  %14318 = vst [vmem:[#allocation104_spill] sm:$0xff] %v11133_v26  ;;  %v11142_v62 = vld [vmem:[#allocation4 + $0x7c] sm:$0xff]  ;;  %v14328_v42 = vld [vmem:[#allocation80_spill] sm:$0xff] }
 0x41f   : > { %v11125_v1 = vadd.f32 %v4282_v8, %v4244_v50  ;;  %v5357_v20 = vadd.f32 %v11010_v54, %v5287_v36  ;;  %v4662_v4 = vadd.f32 %v4630_v57, %v4592_v13  ;;  %v11138_v48 = vmul.f32 %v14288_v16, %v11039_v59  ;;  %v14320_v8 = vld [vmem:[#allocation55_spill] sm:$0xff]  ;;  %14321 = vst [vmem:[#allocation232_spill] sm:$0xff] %v11142_v62  ;;  %v14322_v39 = vld [vmem:[#allocation77_spill] sm:$0xff]  ;;  %v14324_v34 = vld [vmem:[#allocation42_spill] sm:$0xff] }
 0x420   : > { %v7563_v38 = vadd.f32 %v14320_v8, %v14319_v24  ;;  %v5008_v52 = vadd.f32 %v4976_v55, %v4938_v25  ;;  %v2947_v18 = vmul.f32 %v14290_v0, %v11119_v29  ;;  %v3047_v50 = vmul.f32 %v14322_v39, %v11121_v14  ;;  %v11150_v57 = vld [vmem:[#allocation4 + $0x7d] sm:$0xff]  ;;  %v14326_v59 = vld [vmem:[#allocation220_spill] sm:$0xff]  ;;  %v14327_v8 = vld [vmem:[#allocation79_spill] sm:$0xff] }
 0x421   : > { %14317 = vst [vmem:[#allocation61_spill] sm:$0xff] %v11125_v1  ;;  %v3147_v54 = vmul.f32 %v14249_v21, %v11123_v40  ;;  %14323 = vst [vmem:[#allocation35_spill] sm:$0xff] %v11150_v57  ;;  %v5427_v36 = vadd.f32 %v14324_v34, %v5357_v20  ;;  %v11153_v13 = vadd.f32 %v4700_v35, %v4662_v4  ;;  %v14329_v32 = vld [vmem:[#allocation70_spill] sm:$0xff]  ;;  %v14334_v34 = vld [vmem:[#allocation72_spill] sm:$0xff] }
 0x422   : > { %v2725_v24 = vadd.f32 %v7563_v38, %v14326_v59  ;;  %v3247_v55 = vmul.f32 %v14327_v8, %v11133_v26  ;;  %v5078_v25 = vadd.f32 %v5046_v45, %v5008_v52  ;;  %v3079_v60 = vadd.f32 %v3047_v50, %v2947_v18  ;;  %v14330_v1 = vld [vmem:[#allocation38_spill] sm:$0xff]  ;;  %v14332_v45 = vld [vmem:[#allocation71_spill] sm:$0xff] }
 0x423   : > { %14325 = vst [vmem:[#allocation213_spill] sm:$0xff] %v11153_v13  ;;  %v3347_v23 = vmul.f32 %v14328_v42, %v11142_v62  ;;  %v3515_v61 = vmul.f32 %v14329_v32, %v11119_v29  ;;  %v5497_v56 = vadd.f32 %v14330_v1, %v5427_v36  ;;  %v11166_v35 = vld [vmem:[%s13378_s6] ss:$0 sm:$0xff]  ;;  %v3447_v20 = vmul.f32 %v14296_v11, %v11150_v57  ;;  %v14333_v18 = vld [vmem:[#allocation39_spill] sm:$0xff]  ;;  %v14335_v36 = vld [vmem:[#allocation68_spill] sm:$0xff] }
 0x424   : > { %14331 = vst [vmem:[#allocation63_spill] sm:$0xff] %v11166_v35  ;;  %v2778_v59 = vmul.f32 %v11166_v35, %v2725_v24  ;;  %v3585_v4 = vmul.f32 %v14332_v45, %v11121_v14  ;;  %v5148_v38 = vadd.f32 %v5116_v44, %v5078_v25  ;;  %v3179_v52 = vadd.f32 %v3147_v54, %v3079_v60  ;;  %v11180_v32 = vld [vmem:[%s13942_s9] ss:$0 sm:$0xff] }
 0x425   : > { %v3547_v50 = vadd.f32 %v3515_v61, %v14333_v18  ;;  %v3655_v1 = vmul.f32 %v14334_v34, %v11123_v40  ;;  %v5567_v13 = vadd.f32 %v14335_v36, %v5497_v56  ;;  %14336 = vst [vmem:[#allocation34_spill] sm:$0xff] %v11180_v32  ;;  %v3725_v35 = vmul.f32 %v14299_v19, %v11133_v26  ;;  %v14337_v44 = vld [vmem:[#allocation74_spill] sm:$0xff]  ;;  %v14339_v34 = vld [vmem:[#allocation233_spill] sm:$0xff] }
 0x426   : > { %v2817_v24 = vadd.f32 %v11180_v32, %v2778_v59  ;;  %v3795_v60 = vmul.f32 %v14337_v44, %v11142_v62  ;;  %v5218_v54 = vadd.f32 %v5186_v47, %v5148_v38  ;;  %v3279_v61 = vadd.f32 %v3247_v55, %v3179_v52  ;;  %v14338_v32 = vld [vmem:[#allocation214_spill] sm:$0xff] }
 0x427   : > { %v3617_v25 = vadd.f32 %v3585_v4, %v3547_v50  ;;  %v3933_v18 = vmul.f32 %v14302_v22, %v11119_v29  ;;  %6963 = vmatmul.mubr.f32.gmra.mrb[138].mxu0 %v5567_v13  ;;  %v3865_v36 = vmul.f32 %v14301_v9, %v11150_v57  ;;  %v4003_v59 = vmul.f32 %v14150_v49, %v11121_v14  ;;  %v14340_v47 = vld [vmem:[#allocation54_spill] sm:$0xff] }
 0x428   : > { %v2849_v56 = vmax.f32 %v2817_v24, 0.0  ;;  %v4099_v19 = vadd.f32 %v14339_v34, %v14338_v32  ;;  %v5288_v45 = vadd.f32 %v5256_v28, %v5218_v54  ;;  %v3379_v11 = vadd.f32 %v3347_v23, %v3279_v61  ;;  %v14341_v38 = vld [vmem:[#allocation234_spill] sm:$0xff]  ;;  %v14343_v28 = vld [vmem:[#allocation236_spill] sm:$0xff] }
 0x429   : > { %v3687_v44 = vadd.f32 %v3655_v1, %v3617_v25  ;;  %v3965_v55 = vadd.f32 %v3933_v18, %v14340_v47  ;;  %v4073_v4 = vmul.f32 %v14151_v43, %v11123_v40  ;;  %v4143_v13 = vmul.f32 %v14304_v58, %v11133_v26  ;;  %v14344_v1 = vld [vmem:[#allocation93_spill] sm:$0xff]  ;;  %v14345_v61 = vld [vmem:[#allocation40_spill] sm:$0xff] }
 0x42a   : > { %2881 = vst [vmem:[#allocation4 + $0xe0] sm:$0xff] %v2849_v56  ;;  %v4169_v52 = vadd.f32 %v14341_v38, %v4099_v19  ;;  %v4213_v50 = vmul.f32 %v14156_v15, %v11142_v62  ;;  %v5358_v24 = vadd.f32 %v5326_v41, %v5288_v45  ;;  %v11203_v49 = vadd.f32 %v3447_v20, %v3379_v11  ;;  %v14346_v38 = vld [vmem:[#allocation52_spill] sm:$0xff]  ;;  %v14347_v41 = vld [vmem:[#allocation237_spill] sm:$0xff]  ;;  %v14348_v20 = vld [vmem:[#allocation230_spill] sm:$0xff] }
 0x42b   : > { %v3757_v32 = vadd.f32 %v3725_v35, %v3687_v44  ;;  %v4035_v23 = vadd.f32 %v4003_v59, %v3965_v55  ;;  %v4283_v54 = vmul.f32 %v14344_v1, %v11150_v57  ;;  %v4347_v25 = vmul.f32 %v14345_v61, %v14259_v10  ;;  %v14349_v59 = vld [vmem:[#allocation224_spill] sm:$0xff] }
 0x42c   : > { %14342 = vst [vmem:[#allocation62_spill] sm:$0xff] %v11203_v49  ;;  %v4239_v34 = vadd.f32 %v14343_v28, %v4169_v52  ;;  %v4351_v18 = vmul.f32 %v14259_v10, %v11119_v29  ;;  %v5428_v19 = vadd.f32 %v5396_v31, %v5358_v24  ;;  %v4417_v11 = vmul.f32 %v14210_v3, %v14346_v38  ;;  %v14352_v38 = vld [vmem:[#allocation25_spill] sm:$0xff] }
 0x42d   : > { %v3827_v56 = vadd.f32 %v3795_v60, %v3757_v32  ;;  %v4105_v47 = vadd.f32 %v4073_v4, %v4035_v23  ;;  %v4421_v44 = vmul.f32 %v14210_v3, %v11121_v14  ;;  %v4487_v55 = vmul.f32 %v14214_v12, %v14349_v59  ;;  %v14351_v32 = vld [vmem:[#allocation43_spill] sm:$0xff] }
 0x42e   : > { %v4309_v35 = vadd.f32 %v14347_v41, %v4239_v34  ;;  %v4383_v45 = vadd.f32 %v4351_v18, %v14348_v20  ;;  %v5498_v52 = vadd.f32 %v11131_v7, %v5428_v19  ;;  %v4491_v60 = vmul.f32 %v14214_v12, %v11123_v40  ;;  %v7830_v20 = vld [vmem:[#allocation4 + $0x68] sm:$0xff] }
 0x42f   : > { %v11221_v28 = vadd.f32 %v3865_v36, %v3827_v56  ;;  %v4175_v31 = vadd.f32 %v4143_v13, %v4105_v47  ;;  %v4557_v23 = vmul.f32 %v14115_v30, %v14351_v32  ;;  %v4561_v34 = vmul.f32 %v14115_v30, %v11133_v26  ;;  %v14353_v56 = vld [vmem:[#allocation229_spill] sm:$0xff]  ;;  %v14358_v59 = vld [vmem:[#allocation215_spill] sm:$0xff] }
 0x430   : > { %v4379_v4 = vadd.f32 %v4347_v25, %v4309_v35  ;;  %v4453_v24 = vadd.f32 %v4421_v44, %v4383_v45  ;;  %v5568_v61 = vadd.f32 %v11138_v48, %v5498_v52  ;;  %v4627_v7 = vmul.f32 %v14116_v17, %v14352_v38  ;;  %v14354_v25 = vld [vmem:[#allocation87_spill] sm:$0xff]  ;;  %v14356_v48 = vld [vmem:[#allocation100_spill] sm:$0xff] }
 0x431   : > { %14350 = vst [vmem:[#allocation36_spill] sm:$0xff] %v11221_v28  ;;  %v4245_v18 = vadd.f32 %v4213_v50, %v4175_v31  ;;  %v4631_v36 = vmul.f32 %v14116_v17, %v11142_v62  ;;  %v4697_v47 = vmul.f32 %v14354_v25, %v14353_v56  ;;  %v4701_v41 = vmul.f32 %v14354_v25, %v11150_v57  ;;  %v14357_v45 = vld [vmem:[#allocation227_spill] sm:$0xff] }
 0x432   : > { %v4449_v13 = vadd.f32 %v4417_v11, %v4379_v4  ;;  %v4523_v19 = vadd.f32 %v4491_v60, %v4453_v24  ;;  %6965 = vmatprep.mubr.f32.mxu0 %v5568_v61  ;;  %v4767_v50 = vmul.f32 %v7830_v20, %v14356_v48  ;;  %v4837_v44 = vmul.f32 %v14167_v51, %v14357_v45  ;;  %v14359_v60 = vld [vmem:[#allocation217_spill] sm:$0xff]  ;;  %v14360_v24 = vld [vmem:[#allocation223_spill] sm:$0xff] }
 0x433   : > { %v11238_v35 = vadd.f32 %v4283_v54, %v4245_v18  ;;  %v4907_v52 = vmul.f32 %v14120_v5, %v14358_v59  ;;  %v4977_v4 = vmul.f32 %v14121_v37, %v14359_v60  ;;  %v11249_v32 = vmul.f32 %v14171_v46, %v14360_v24  ;;  %v11251_v54 = vld [vmem:[#allocation4 + $0x80] sm:$0xff]  ;;  %v14363_v18 = vld [vmem:[#allocation33_spill] sm:$0xff] }
 0x434   : > { %v4519_v11 = vadd.f32 %v4487_v55, %v4449_v13  ;;  %v4593_v31 = vadd.f32 %v4561_v34, %v4523_v19  ;;  %14361 = vst [vmem:[#allocation28_spill] sm:$0xff] %v11251_v54  ;;  %v11253_v61 = vld [vmem:[#allocation4 + $0x81] sm:$0xff]  ;;  %v11257_v38 = vmul.f32 %v14172_v27, %v14363_v18  ;;  %v11261_v56 = vmul.f32 %v14173_v33, %v11119_v29 }
 0x435   : > { %14355 = vst [vmem:[#allocation44_spill] sm:$0xff] %v11238_v35  ;;  %14362 = vst [vmem:[#allocation225_spill] sm:$0xff] %v11253_v61  ;;  %v11265_v55 = vmul.f32 %v14276_v2, %v11121_v14  ;;  %v11269_v34 = vmul.f32 %v14277_v63, %v11123_v40  ;;  %v11271_v13 = vld [vmem:[#allocation4 + $0x82] sm:$0xff]  ;;  %v11277_v59 = vmul.f32 %v14278_v6, %v11133_v26  ;;  %v14371_v40 = vld [vmem:[#allocation48_spill] sm:$0xff] }
 0x436   : > { %14365 = vst [vmem:[#allocation228_spill] sm:$0xff] %v11271_v13  ;;  %v11273_v19 = vld [vmem:[#allocation4 + $0x83] sm:$0xff]  ;;  %v4589_v20 = vadd.f32 %v4557_v23, %v4519_v11  ;;  %v4663_v45 = vadd.f32 %v4631_v36, %v4593_v31  ;;  %v11281_v60 = vmul.f32 %v14235_v53, %v11142_v62  ;;  %v11287_v18 = vmul.f32 %v14288_v16, %v11150_v57 }
 0x437   : > { %14364 = vst [vmem:[#allocation32_spill] sm:$0xff] %v11269_v34  ;;  %14366 = vst [vmem:[#allocation95_spill] sm:$0xff] %v11273_v19  ;;  %v11283_v24 = vld [vmem:[#allocation4 + $0x84] sm:$0xff]  ;;  %v2948_v23 = vmul.f32 %v14290_v0, %v11251_v54  ;;  %v3048_v36 = vmul.f32 %v14322_v39, %v11253_v61  ;;  %v3148_v26 = vmul.f32 %v14249_v21, %v11271_v13 }
 0x438   : > { %14367 = vst [vmem:[#allocation96_spill] sm:$0xff] %v11277_v59  ;;  %14368 = vst [vmem:[#allocation97_spill] sm:$0xff] %v11281_v60  ;;  %v14372_v14 = vld [vmem:[#allocation235_spill] sm:$0xff]  ;;  %v4659_v31 = vadd.f32 %v4627_v7, %v4589_v20  ;;  %v11297_v62 = vadd.f32 %v4701_v41, %v4663_v45  ;;  %v3248_v57 = vmul.f32 %v14327_v8, %v11273_v19  ;;  %v14377_v7 = vld [vmem:[#allocation81_spill] sm:$0xff] }
 0x439   : > { %14369 = vst [vmem:[#allocation56_spill] sm:$0xff] %v11283_v24  ;;  %14370 = vst [vmem:[#allocation46_spill] sm:$0xff] %v11287_v18  ;;  %v7564_v29 = vadd.f32 %v14372_v14, %v14371_v40  ;;  %v11295_v11 = vld [vmem:[#allocation4 + $0x85] sm:$0xff]  ;;  %v3080_v14 = vadd.f32 %v3048_v36, %v2948_v23  ;;  %v3348_v40 = vmul.f32 %v14328_v42, %v11283_v24  ;;  %v14382_v36 = vld [vmem:[#allocation73_spill] sm:$0xff] }
 0x43a   : > { %14373 = vst [vmem:[#allocation221_spill] sm:$0xff] %v11295_v11  ;;  %14374 = vst [vmem:[#allocation76_spill] sm:$0xff] %v11297_v62  ;;  %v14375_v35 = vld [vmem:[#allocation219_spill] sm:$0xff]  ;;  %v14376_v18 = vld [vmem:[#allocation70_spill] sm:$0xff]  ;;  %v4729_v49 = vadd.f32 %v4697_v47, %v4659_v31  ;;  %v3448_v41 = vmul.f32 %v14377_v7, %v11295_v11  ;;  %v3726_v42 = vmul.f32 %v14382_v36, %v11273_v19 }
 0x43b   : > { %v2730_v28 = vadd.f32 %v7564_v29, %v14375_v35  ;;  %v3516_v60 = vmul.f32 %v14376_v18, %v11251_v54  ;;  %v14378_v20 = vld [vmem:[#allocation71_spill] sm:$0xff]  ;;  %v14379_v62 = vld [vmem:[#allocation72_spill] sm:$0xff]  ;;  %v3180_v29 = vadd.f32 %v3148_v26, %v3080_v14  ;;  %v14381_v35 = vld [vmem:[#allocation98_spill] sm:$0xff]  ;;  %v3866_v7 = vmul.f32 %v14301_v9, %v11295_v11 }
 0x43c   : > { %v3586_v45 = vmul.f32 %v14378_v20, %v11253_v61  ;;  %v3656_v59 = vmul.f32 %v14379_v62, %v11271_v13  ;;  %v14380_v8 = vld [vmem:[#allocation63_spill] sm:$0xff]  ;;  %v4799_v21 = vadd.f32 %v4767_v50, %v4729_v49  ;;  %v14383_v47 = vld [vmem:[#allocation74_spill] sm:$0xff]  ;;  %v3934_v20 = vmul.f32 %v14302_v22, %v11251_v54  ;;  %v14385_v26 = vld [vmem:[#allocation89_spill] sm:$0xff] }
 0x43d   : > { %v2779_v34 = vmul.f32 %v14380_v8, %v2730_v28  ;;  %v3548_v23 = vadd.f32 %v3516_v60, %v14381_v35  ;;  %v3796_v31 = vmul.f32 %v14383_v47, %v11283_v24  ;;  %v14384_v18 = vld [vmem:[#allocation34_spill] sm:$0xff]  ;;  %v3280_v16 = vadd.f32 %v3248_v57, %v3180_v29  ;;  %v14386_v35 = vld [vmem:[#allocation45_spill] sm:$0xff] }
 0x43e   : > { %v4004_v60 = vmul.f32 %v14385_v26, %v11253_v61  ;;  %v4869_v14 = vadd.f32 %v4837_v44, %v4799_v21  ;;  %v3966_v36 = vadd.f32 %v3934_v20, %v14386_v35  ;;  %v4074_v49 = vmul.f32 %v14151_v43, %v11271_v13 }
 0x43f   : > { %v2818_v62 = vadd.f32 %v14384_v18, %v2779_v34  ;;  %v3618_v28 = vadd.f32 %v3586_v45, %v3548_v23  ;;  %v4144_v50 = vmul.f32 %v14304_v58, %v11273_v19  ;;  %v3380_v47 = vadd.f32 %v3348_v40, %v3280_v16 }
 0x440   : > { %v4214_v34 = vmul.f32 %v14156_v15, %v11283_v24  ;;  %v4939_v57 = vadd.f32 %v4907_v52, %v4869_v14  ;;  %v4036_v45 = vadd.f32 %v4004_v60, %v3966_v36  ;;  %v4284_v29 = vmul.f32 %v14344_v1, %v11295_v11  ;;  %v14388_v52 = vld [vmem:[#allocation61_spill] sm:$0xff] }
 0x441   : > { %v2850_v9 = vmax.f32 %v2818_v62, 0.0  ;;  %v3688_v8 = vadd.f32 %v3656_v59, %v3618_v28  ;;  %v4352_v21 = vmul.f32 %v14259_v10, %v11251_v54  ;;  %v11338_v44 = vadd.f32 %v3448_v41, %v3380_v47  ;;  %v14390_v14 = vld [vmem:[#allocation41_spill] sm:$0xff] }
 0x442   : > { %v4422_v62 = vmul.f32 %v14210_v3, %v11253_v61  ;;  %v4492_v16 = vmul.f32 %v14214_v12, %v11271_v13  ;;  %v5009_v59 = vadd.f32 %v4977_v4, %v4939_v57  ;;  %v4106_v40 = vadd.f32 %v4074_v49, %v4036_v45  ;;  %v14392_v57 = vld [vmem:[#allocation29_spill] sm:$0xff]  ;;  %v14393_v45 = vld [vmem:[#allocation27_spill] sm:$0xff] }
 0x443   : > { %2882 = vst [vmem:[#allocation4 + $0xe8] sm:$0xff] %v2850_v9  ;;  %14387 = vst [vmem:[#allocation222_spill] sm:$0xff] %v11338_v44  ;;  %v3758_v20 = vadd.f32 %v3726_v42, %v3688_v8  ;;  %v4384_v23 = vadd.f32 %v4352_v21, %v14388_v52  ;;  %v4562_v36 = vmul.f32 %v14115_v30, %v11273_v19  ;;  %v14389_v8 = vld [vmem:[#allocation67_spill] sm:$0xff] }
 0x444   : > { %v4632_v9 = vmul.f32 %v14116_v17, %v11283_v24  ;;  %v4702_v42 = vmul.f32 %v14354_v25, %v11295_v11  ;;  %v4768_v41 = vmul.f32 %v14356_v48, %v14389_v8  ;;  %v5079_v47 = vadd.f32 %v11249_v32, %v5009_v59  ;;  %v14395_v32 = vld [vmem:[#allocation66_spill] sm:$0xff]  ;;  %v14396_v59 = vld [vmem:[#allocation65_spill] sm:$0xff] }
 0x445   : > { %v3828_v28 = vadd.f32 %v3796_v31, %v3758_v20  ;;  %v4176_v60 = vadd.f32 %v4144_v50, %v4106_v40  ;;  %v4454_v4 = vadd.f32 %v4422_v62, %v4384_v23  ;;  %v4838_v35 = vmul.f32 %v14167_v51, %v14390_v14  ;;  %v14394_v20 = vld [vmem:[#allocation64_spill] sm:$0xff] }
 0x446   : > { %v4800_v31 = vadd.f32 %v4768_v41, %v14392_v57  ;;  %v4908_v21 = vmul.f32 %v14120_v5, %v14393_v45  ;;  %v4978_v52 = vmul.f32 %v14121_v37, %v14394_v20  ;;  %v5149_v44 = vadd.f32 %v11257_v38, %v5079_v47  ;;  %v11374_v41 = vld [vmem:[#allocation4 + $0x89] sm:$0xff]  ;;  %v14401_v57 = vld [vmem:[#allocation49_spill] sm:$0xff] }
 0x447   : > { %v11356_v49 = vadd.f32 %v3866_v7, %v3828_v28  ;;  %v4246_v8 = vadd.f32 %v4214_v34, %v4176_v60  ;;  %v4524_v48 = vadd.f32 %v4492_v16, %v4454_v4  ;;  %v5048_v50 = vmul.f32 %v14171_v46, %v14395_v32  ;;  %v11372_v28 = vld [vmem:[#allocation4 + $0x88] sm:$0xff]  ;;  %14398 = vst [vmem:[#allocation216_spill] sm:$0xff] %v11374_v41 }
 0x448   : > { %v4870_v62 = vadd.f32 %v4838_v35, %v4800_v31  ;;  %v5118_v7 = vmul.f32 %v14172_v27, %v14396_v59  ;;  %v5188_v40 = vmul.f32 %v14173_v33, %v11251_v54  ;;  %v5258_v23 = vmul.f32 %v14276_v2, %v11253_v61  ;;  %14397 = vst [vmem:[#allocation26_spill] sm:$0xff] %v11372_v28  ;;  %v11381_v60 = vld [vmem:[#allocation4 + $0x8a] sm:$0xff] }
 0x449   : > { %14391 = vst [vmem:[#allocation30_spill] sm:$0xff] %v11356_v49  ;;  %v5219_v38 = vadd.f32 %v11261_v56, %v5149_v44  ;;  %v11377_v34 = vadd.f32 %v4284_v29, %v4246_v8  ;;  %v4594_v16 = vadd.f32 %v4562_v36, %v4524_v48  ;;  %v5328_v47 = vmul.f32 %v14277_v63, %v11271_v13  ;;  %v14402_v31 = vld [vmem:[#allocation211_spill] sm:$0xff] }
 0x44a   : > { %14400 = vst [vmem:[#allocation58_spill] sm:$0xff] %v11381_v60  ;;  %v4940_v4 = vadd.f32 %v4908_v21, %v4870_v62  ;;  %v5398_v14 = vmul.f32 %v14278_v6, %v11273_v19  ;;  %v11387_v35 = vmul.f32 %v14235_v53, %v11283_v24  ;;  %v7565_v45 = vadd.f32 %v14402_v31, %v14401_v57  ;;  %v11391_v56 = vld [vmem:[#allocation4 + $0x8b] sm:$0xff]  ;;  %v14406_v62 = vld [vmem:[#allocation94_spill] sm:$0xff] }
 0x44b   : > { %14399 = vst [vmem:[#allocation226_spill] sm:$0xff] %v11377_v34  ;;  %14403 = vst [vmem:[#allocation57_spill] sm:$0xff] %v11391_v56  ;;  %v5289_v48 = vadd.f32 %v11265_v55, %v5219_v38  ;;  %v4664_v29 = vadd.f32 %v4632_v9, %v4594_v16  ;;  %v2949_v44 = vmul.f32 %v14290_v0, %v11372_v28  ;;  %v11398_v21 = vld [vmem:[#allocation4 + $0x8c] sm:$0xff]  ;;  %v14407_v57 = vld [vmem:[#allocation78_spill] sm:$0xff] }
 0x44c   : > { %v3049_v36 = vmul.f32 %v14322_v39, %v11374_v41  ;;  %14404 = vst [vmem:[#allocation231_spill] sm:$0xff] %v11398_v21  ;;  %v5010_v20 = vadd.f32 %v4978_v52, %v4940_v4  ;;  %v14405_v8 = vld [vmem:[#allocation99_spill] sm:$0xff]  ;;  %v2735_v59 = vadd.f32 %v7565_v45, %v14406_v62  ;;  %v3149_v31 = vmul.f32 %v14407_v57, %v11381_v60  ;;  %v14409_v9 = vld [vmem:[#allocation32_spill] sm:$0xff]  ;;  %v14414_v45 = vld [vmem:[#allocation70_spill] sm:$0xff] }
 0x44d   : > { %v11402_v32 = vmul.f32 %v14405_v8, %v11295_v11  ;;  %v11407_v55 = vld [vmem:[#allocation4 + $0x8d] sm:$0xff]  ;;  %v5359_v38 = vadd.f32 %v14409_v9, %v5289_v48  ;;  %v11410_v16 = vadd.f32 %v4702_v42, %v4664_v29  ;;  %v3517_v62 = vmul.f32 %v14414_v45, %v11372_v28  ;;  %v14416_v48 = vld [vmem:[#allocation81_spill] sm:$0xff] }
 0x44e   : > { %14408 = vst [vmem:[#allocation60_spill] sm:$0xff] %v11407_v55  ;;  %v3081_v24 = vadd.f32 %v3049_v36, %v2949_v44  ;;  %v14411_v19 = vld [vmem:[#allocation79_spill] sm:$0xff]  ;;  %v5080_v52 = vadd.f32 %v5048_v50, %v5010_v20  ;;  %v14413_v11 = vld [vmem:[#allocation80_spill] sm:$0xff]  ;;  %v3449_v42 = vmul.f32 %v14416_v48, %v11407_v55  ;;  %v14418_v20 = vld [vmem:[#allocation62_spill] sm:$0xff] }
 0x44f   : > { %14410 = vst [vmem:[#allocation59_spill] sm:$0xff] %v11410_v16  ;;  %v3249_v13 = vmul.f32 %v14411_v19, %v11391_v56  ;;  %v14412_v4 = vld [vmem:[#allocation63_spill] sm:$0xff]  ;;  %v3349_v54 = vmul.f32 %v14413_v11, %v11398_v21  ;;  %v14415_v34 = vld [vmem:[#allocation96_spill] sm:$0xff] }
 0x450   : > { %v2780_v61 = vmul.f32 %v14412_v4, %v2735_v59  ;;  %v5429_v49 = vadd.f32 %v14415_v34, %v5359_v38  ;;  %v3181_v57 = vadd.f32 %v3149_v31, %v3081_v24  ;;  %v14417_v29 = vld [vmem:[#allocation71_spill] sm:$0xff]  ;;  %v5150_v36 = vadd.f32 %v5118_v7, %v5080_v52  ;;  %v14419_v9 = vld [vmem:[#allocation72_spill] sm:$0xff]  ;;  %v14420_v4 = vld [vmem:[#allocation97_spill] sm:$0xff] }
 0x451   : > { %v3587_v44 = vmul.f32 %v14417_v29, %v11374_v41  ;;  %v3549_v59 = vadd.f32 %v3517_v62, %v14418_v20  ;;  %v3657_v16 = vmul.f32 %v14419_v9, %v11381_v60  ;;  %v14421_v34 = vld [vmem:[#allocation73_spill] sm:$0xff]  ;;  %v14422_v31 = vld [vmem:[#allocation74_spill] sm:$0xff]  ;;  %v14424_v20 = vld [vmem:[#allocation75_spill] sm:$0xff] }
 0x452   : > { %v2819_v50 = vadd.f32 %v14384_v18, %v2780_v61  ;;  %v5499_v11 = vadd.f32 %v14420_v4, %v5429_v49  ;;  %v3281_v45 = vadd.f32 %v3249_v13, %v3181_v57  ;;  %v3727_v24 = vmul.f32 %v14421_v34, %v11391_v56  ;;  %v14423_v7 = vld [vmem:[#allocation46_spill] sm:$0xff]  ;;  %v14425_v4 = vld [vmem:[#allocation36_spill] sm:$0xff] }
 0x453   : > { %v3797_v38 = vmul.f32 %v14422_v31, %v11398_v21  ;;  %v5220_v48 = vadd.f32 %v5188_v40, %v5150_v36  ;;  %v3619_v29 = vadd.f32 %v3587_v44, %v3549_v59  ;;  %v3935_v61 = vmul.f32 %v14302_v22, %v11372_v28 }
 0x454   : > { %v2851_v19 = vmax.f32 %v2819_v50, 0.0  ;;  %v5569_v52 = vadd.f32 %v14423_v7, %v5499_v11  ;;  %v3381_v62 = vadd.f32 %v3349_v54, %v3281_v45  ;;  %v3867_v18 = vmul.f32 %v14424_v20, %v11407_v55 }
 0x455   : > { %v4005_v13 = vmul.f32 %v14385_v26, %v11374_v41  ;;  %v5290_v49 = vadd.f32 %v5258_v23, %v5220_v48  ;;  %v3689_v57 = vadd.f32 %v3657_v16, %v3619_v29  ;;  %v3967_v31 = vadd.f32 %v3935_v61, %v14425_v4  ;;  %v14427_v29 = vld [vmem:[#allocation44_spill] sm:$0xff] }
 0x456   : > { %2883 = vst [vmem:[#allocation4 + $0xf0] sm:$0xff] %v2851_v19  ;;  %v4075_v40 = vmul.f32 %v14151_v43, %v11381_v60  ;;  %6966 = vmatmul.mubr.f32.gmra.mrb[140].mxu0 %v5569_v52  ;;  %v11443_v44 = vadd.f32 %v3449_v42, %v3381_v62  ;;  %v4145_v54 = vmul.f32 %v14304_v58, %v11391_v56  ;;  %v14428_v62 = vld [vmem:[#allocation218_spill] sm:$0xff] }
 0x457   : > { %v4215_v11 = vmul.f32 %v14156_v15, %v11398_v21  ;;  %v4353_v45 = vmul.f32 %v14259_v10, %v11372_v28  ;;  %v5360_v23 = vadd.f32 %v5328_v47, %v5290_v49  ;;  %v3759_v19 = vadd.f32 %v3727_v24, %v3689_v57  ;;  %v14430_v57 = vld [vmem:[#allocation37_spill] sm:$0xff] }
 0x458   : > { %14426 = vst [vmem:[#allocation105_spill] sm:$0xff] %v11443_v44  ;;  %v4037_v16 = vadd.f32 %v4005_v13, %v3967_v31  ;;  %v4285_v48 = vmul.f32 %v14344_v1, %v11407_v55  ;;  %v4423_v42 = vmul.f32 %v14210_v3, %v11374_v41  ;;  %v4493_v50 = vmul.f32 %v14214_v12, %v11381_v60  ;;  %v14429_v13 = vld [vmem:[#allocation100_spill] sm:$0xff] }
 0x459   : > { %v4385_v36 = vadd.f32 %v4353_v45, %v14427_v29  ;;  %v4563_v59 = vmul.f32 %v14115_v30, %v11391_v56  ;;  %v5430_v61 = vadd.f32 %v5398_v14, %v5360_v23  ;;  %v3829_v7 = vadd.f32 %v3797_v38, %v3759_v19  ;;  %v14432_v38 = vld [vmem:[#allocation212_spill] sm:$0xff]  ;;  %v14433_v19 = vld [vmem:[#allocation69_spill] sm:$0xff] }
 0x45a   : > { %v4107_v52 = vadd.f32 %v4075_v40, %v4037_v16  ;;  %v4633_v47 = vmul.f32 %v14116_v17, %v11398_v21  ;;  %v4703_v31 = vmul.f32 %v14354_v25, %v11407_v55  ;;  %v4769_v49 = vmul.f32 %v14429_v13, %v14428_v62  ;;  %v14435_v44 = vld [vmem:[#allocation232_spill] sm:$0xff] }
 0x45b   : > { %v4455_v24 = vadd.f32 %v4423_v42, %v4385_v36  ;;  %v4839_v4 = vmul.f32 %v14167_v51, %v14430_v57  ;;  %v5500_v45 = vadd.f32 %v11387_v35, %v5430_v61  ;;  %v11469_v29 = vadd.f32 %v3867_v18, %v3829_v7  ;;  %v14434_v36 = vld [vmem:[#allocation104_spill] sm:$0xff]  ;;  %v14436_v51 = vld [vmem:[#allocation35_spill] sm:$0xff] }
 0x45c   : > { %v4177_v14 = vadd.f32 %v4145_v54, %v4107_v52  ;;  %v4909_v40 = vmul.f32 %v14120_v5, %v14432_v38  ;;  %v4801_v16 = vadd.f32 %v4769_v49, %v14433_v19  ;;  %v4979_v42 = vmul.f32 %v14121_v37, %v14434_v36  ;;  %v11483_v54 = vld [vmem:[#allocation4 + $0x90] sm:$0xff]  ;;  %v14442_v49 = vld [vmem:[#allocation50_spill] sm:$0xff] }
 0x45d   : > { %14431 = vst [vmem:[#allocation103_spill] sm:$0xff] %v11469_v29  ;;  %v4525_v23 = vadd.f32 %v4493_v50, %v4455_v24  ;;  %v5049_v62 = vmul.f32 %v14171_v46, %v14435_v44  ;;  %v5570_v13 = vadd.f32 %v11402_v32, %v5500_v45  ;;  %v5119_v18 = vmul.f32 %v14172_v27, %v14436_v51  ;;  %v11485_v50 = vld [vmem:[#allocation4 + $0x91] sm:$0xff]  ;;  %v14446_v36 = vld [vmem:[#allocation102_spill] sm:$0xff]  ;;  %v14454_v29 = vld [vmem:[#allocation71_spill] sm:$0xff] }
 0x45e   : > { %v4247_v57 = vadd.f32 %v4215_v11, %v4177_v14  ;;  %v5189_v35 = vmul.f32 %v14173_v33, %v11372_v28  ;;  %14437 = vst [vmem:[#allocation47_spill] sm:$0xff] %v11483_v54  ;;  %14438 = vst [vmem:[#allocation55_spill] sm:$0xff] %v11485_v50  ;;  %v4871_v7 = vadd.f32 %v4839_v4, %v4801_v16  ;;  %v11491_v32 = vld [vmem:[#allocation4 + $0x92] sm:$0xff]  ;;  %v14443_v4 = vld [vmem:[#allocation51_spill] sm:$0xff] }
 0x45f   : > { %v4595_v61 = vadd.f32 %v4563_v59, %v4525_v23  ;;  %v5259_v52 = vmul.f32 %v14276_v2, %v11374_v41  ;;  %v5329_v44 = vmul.f32 %v14277_v63, %v11381_v60  ;;  %14439 = vst [vmem:[#allocation42_spill] sm:$0xff] %v11491_v32  ;;  %v11493_v11 = vld [vmem:[#allocation4 + $0x93] sm:$0xff]  ;;  %6968 = vmatprep.mubr.f32.mxu0 %v5570_v13  ;;  %v14451_v41 = vld [vmem:[#allocation63_spill] sm:$0xff] }
 0x460   : > { %14440 = vst [vmem:[#allocation220_spill] sm:$0xff] %v11493_v11  ;;  %v11495_v51 = vadd.f32 %v4285_v48, %v4247_v57  ;;  %v5399_v24 = vmul.f32 %v14278_v6, %v11391_v56  ;;  %v11501_v59 = vmul.f32 %v14235_v53, %v11398_v21  ;;  %v7566_v45 = vadd.f32 %v14443_v4, %v14442_v49  ;;  %v11505_v14 = vld [vmem:[#allocation4 + $0x94] sm:$0xff]  ;;  %v14447_v49 = vld [vmem:[#allocation78_spill] sm:$0xff] }
 0x461   : > { %14444 = vst [vmem:[#allocation39_spill] sm:$0xff] %v11505_v14  ;;  %v4665_v38 = vadd.f32 %v4633_v47, %v4595_v61  ;;  %v4941_v23 = vadd.f32 %v4909_v40, %v4871_v7  ;;  %v2950_v19 = vmul.f32 %v14290_v0, %v11483_v54  ;;  %v3050_v48 = vmul.f32 %v14322_v39, %v11485_v50  ;;  %v11511_v13 = vld [vmem:[#allocation4 + $0x95] sm:$0xff]  ;;  %v14448_v47 = vld [vmem:[#allocation79_spill] sm:$0xff] }
 0x462   : > { %14441 = vst [vmem:[#allocation38_spill] sm:$0xff] %v11495_v51  ;;  %14445 = vst [vmem:[#allocation68_spill] sm:$0xff] %v11511_v13  ;;  %v11515_v16 = vmul.f32 %v14405_v8, %v11407_v55  ;;  %v2740_v57 = vadd.f32 %v7566_v45, %v14446_v36  ;;  %v3150_v4 = vmul.f32 %v14447_v49, %v11491_v32  ;;  %v14450_v56 = vld [vmem:[#allocation80_spill] sm:$0xff]  ;;  %v14452_v55 = vld [vmem:[#allocation81_spill] sm:$0xff] }
 0x463   : > { %v3250_v40 = vmul.f32 %v14448_v47, %v11493_v11  ;;  %v11522_v61 = vadd.f32 %v4703_v31, %v4665_v38  ;;  %v5011_v7 = vadd.f32 %v4979_v42, %v4941_v23  ;;  %v3082_v21 = vadd.f32 %v3050_v48, %v2950_v19  ;;  %v14453_v45 = vld [vmem:[#allocation70_spill] sm:$0xff] }
 0x464   : > { %v3350_v60 = vmul.f32 %v14450_v56, %v11505_v14  ;;  %v2781_v28 = vmul.f32 %v14451_v41, %v2740_v57  ;;  %v3450_v51 = vmul.f32 %v14452_v55, %v11511_v13  ;;  %v3518_v36 = vmul.f32 %v14453_v45, %v11483_v54  ;;  %v14455_v38 = vld [vmem:[#allocation34_spill] sm:$0xff] }
 0x465   : > { %14449 = vst [vmem:[#allocation214_spill] sm:$0xff] %v11522_v61  ;;  %v3588_v49 = vmul.f32 %v14454_v29, %v11485_v50  ;;  %v5081_v39 = vadd.f32 %v5049_v62, %v5011_v7  ;;  %v3182_v47 = vadd.f32 %v3150_v4, %v3082_v21  ;;  %v3658_v31 = vmul.f32 %v14419_v9, %v11491_v32  ;;  %v14456_v41 = vld [vmem:[#allocation222_spill] sm:$0xff] }
 0x466   : > { %v3728_v42 = vmul.f32 %v14421_v34, %v11493_v11  ;;  %v2820_v23 = vadd.f32 %v14455_v38, %v2781_v28  ;;  %v3550_v19 = vadd.f32 %v3518_v36, %v14456_v41  ;;  %v14457_v48 = vld [vmem:[#allocation74_spill] sm:$0xff]  ;;  %v3936_v61 = vmul.f32 %v14302_v22, %v11483_v54 }
 0x467   : > { %v3798_v57 = vmul.f32 %v14457_v48, %v11505_v14  ;;  %v5151_v45 = vadd.f32 %v5119_v18, %v5081_v39  ;;  %v3282_v29 = vadd.f32 %v3250_v40, %v3182_v47  ;;  %v3868_v21 = vmul.f32 %v14424_v20, %v11511_v13  ;;  %v14458_v34 = vld [vmem:[#allocation30_spill] sm:$0xff] }
 0x468   : > { %v4006_v62 = vmul.f32 %v14385_v26, %v11485_v50  ;;  %v2852_v4 = vmax.f32 %v2820_v23, 0.0  ;;  %v3620_v7 = vadd.f32 %v3588_v49, %v3550_v19  ;;  %v3968_v28 = vadd.f32 %v3936_v61, %v14458_v34  ;;  %v14460_v23 = vld [vmem:[#allocation226_spill] sm:$0xff] }
 0x469   : > { %v4076_v36 = vmul.f32 %v14151_v43, %v11491_v32  ;;  %v5221_v38 = vadd.f32 %v5189_v35, %v5151_v45  ;;  %v3382_v41 = vadd.f32 %v3350_v60, %v3282_v29  ;;  %v4146_v22 = vmul.f32 %v14304_v58, %v11493_v11 }
 0x46a   : > { %v4216_v39 = vmul.f32 %v14156_v15, %v11505_v14  ;;  %2884 = vst [vmem:[#allocation4 + $0xf8] sm:$0xff] %v2852_v4  ;;  %v3690_v18 = vadd.f32 %v3658_v31, %v3620_v7  ;;  %v4038_v47 = vadd.f32 %v4006_v62, %v3968_v28  ;;  %v4286_v40 = vmul.f32 %v14344_v1, %v11511_v13  ;;  %v14462_v7 = vld [vmem:[#allocation100_spill] sm:$0xff] }
 0x46b   : > { %v4354_v34 = vmul.f32 %v14259_v10, %v11483_v54  ;;  %v5291_v49 = vadd.f32 %v5259_v52, %v5221_v38  ;;  %v11558_v61 = vadd.f32 %v3450_v51, %v3382_v41  ;;  %v4424_v60 = vmul.f32 %v14210_v3, %v11485_v50  ;;  %v14461_v51 = vld [vmem:[#allocation28_spill] sm:$0xff] }
 0x46c   : > { %v4494_v29 = vmul.f32 %v14214_v12, %v11491_v32  ;;  %v3760_v35 = vadd.f32 %v3728_v42, %v3690_v18  ;;  %v4108_v45 = vadd.f32 %v4076_v36, %v4038_v47  ;;  %v4564_v19 = vmul.f32 %v14115_v30, %v11493_v11  ;;  %v14463_v42 = vld [vmem:[#allocation225_spill] sm:$0xff]  ;;  %v14466_v30 = vld [vmem:[#allocation228_spill] sm:$0xff] }
 0x46d   : > { %14459 = vst [vmem:[#allocation233_spill] sm:$0xff] %v11558_v61  ;;  %v4386_v31 = vadd.f32 %v4354_v34, %v14460_v23  ;;  %v5361_v62 = vadd.f32 %v5329_v44, %v5291_v49  ;;  %v4634_v4 = vmul.f32 %v14116_v17, %v11505_v14  ;;  %v4704_v52 = vmul.f32 %v14354_v25, %v11511_v13  ;;  %v14464_v36 = vld [vmem:[#allocation101_spill] sm:$0xff]  ;;  %v14467_v49 = vld [vmem:[#allocation95_spill] sm:$0xff] }
 0x46e   : > { %v4770_v28 = vmul.f32 %v14462_v7, %v14461_v51  ;;  %v3830_v38 = vadd.f32 %v3798_v57, %v3760_v35  ;;  %v4178_v41 = vadd.f32 %v4146_v22, %v4108_v45  ;;  %v4840_v18 = vmul.f32 %v14464_v36, %v14463_v42  ;;  %v14465_v34 = vld [vmem:[#allocation213_spill] sm:$0xff]  ;;  %v14469_v51 = vld [vmem:[#allocation56_spill] sm:$0xff] }
 0x46f   : > { %v4456_v61 = vadd.f32 %v4424_v60, %v4386_v31  ;;  %v5431_v47 = vadd.f32 %v5399_v24, %v5361_v62  ;;  %v4910_v44 = vmul.f32 %v14120_v5, %v14466_v30  ;;  %v4980_v17 = vmul.f32 %v14121_v37, %v14467_v49  ;;  %v14470_v35 = vld [vmem:[#allocation221_spill] sm:$0xff]  ;;  %v14480_v49 = vld [vmem:[#allocation79_spill] sm:$0xff] }
 0x470   : > { %v4802_v23 = vadd.f32 %v4770_v28, %v14465_v34  ;;  %v11580_v12 = vadd.f32 %v3868_v21, %v3830_v38  ;;  %v4248_v25 = vadd.f32 %v4216_v39, %v4178_v41  ;;  %v5050_v22 = vmul.f32 %v14171_v46, %v14469_v51  ;;  %v11589_v30 = vld [vmem:[#allocation4 + $0x98] sm:$0xff] }
 0x471   : > { %v4526_v3 = vadd.f32 %v4494_v29, %v4456_v61  ;;  %v5501_v57 = vadd.f32 %v11501_v59, %v5431_v47  ;;  %v5120_v24 = vmul.f32 %v14172_v27, %v14470_v35  ;;  %v5190_v45 = vmul.f32 %v14173_v33, %v11483_v54  ;;  %14471 = vst [vmem:[#allocation234_spill] sm:$0xff] %v11589_v30  ;;  %v11591_v31 = vld [vmem:[#allocation4 + $0x99] sm:$0xff] }
 0x472   : > { %14468 = vst [vmem:[#allocation54_spill] sm:$0xff] %v11580_v12  ;;  %v4872_v60 = vadd.f32 %v4840_v18, %v4802_v23  ;;  %14472 = vst [vmem:[#allocation236_spill] sm:$0xff] %v11591_v31  ;;  %v11593_v21 = vadd.f32 %v4286_v40, %v4248_v25  ;;  %v5260_v61 = vmul.f32 %v14276_v2, %v11485_v50  ;;  %v11599_v29 = vld [vmem:[#allocation4 + $0x9a] sm:$0xff] }
 0x473   : > { %v4596_v39 = vadd.f32 %v4564_v19, %v4526_v3  ;;  %v5330_v59 = vmul.f32 %v14277_v63, %v11491_v32  ;;  %14474 = vst [vmem:[#allocation52_spill] sm:$0xff] %v11599_v29  ;;  %v11601_v62 = vld [vmem:[#allocation4 + $0x9b] sm:$0xff]  ;;  %v5571_v38 = vadd.f32 %v11515_v16, %v5501_v57  ;;  %v5400_v25 = vmul.f32 %v14278_v6, %v11493_v11 }
 0x474   : > { %14473 = vst [vmem:[#allocation40_spill] sm:$0xff] %v11593_v21  ;;  %14475 = vst [vmem:[#allocation237_spill] sm:$0xff] %v11601_v62  ;;  %v11603_v28 = vld [vmem:[#allocation4 + $0x9c] sm:$0xff]  ;;  %v4942_v41 = vadd.f32 %v4910_v44, %v4872_v60  ;;  %v11610_v3 = vmul.f32 %v14235_v53, %v11505_v14  ;;  %v11616_v42 = vmul.f32 %v14405_v8, %v11511_v13 }
 0x475   : > { %14476 = vst [vmem:[#allocation230_spill] sm:$0xff] %v11603_v28  ;;  %v11612_v40 = vld [vmem:[#allocation4 + $0x9d] sm:$0xff]  ;;  %v4666_v19 = vadd.f32 %v4634_v4, %v4596_v39  ;;  %v2951_v18 = vmul.f32 %v14290_v0, %v11589_v30  ;;  %6969 = vmatmul.mubr.f32.gmra.mrb[142].mxu0 %v5571_v38  ;;  %v3251_v51 = vmul.f32 %v14480_v49, %v11601_v62 }
 0x476   : > { %14477 = vst [vmem:[#allocation224_spill] sm:$0xff] %v11612_v40  ;;  %v14478_v16 = vld [vmem:[#allocation77_spill] sm:$0xff]  ;;  %v5012_v34 = vadd.f32 %v4980_v17, %v4942_v41  ;;  %v14479_v23 = vld [vmem:[#allocation78_spill] sm:$0xff]  ;;  %v3351_v4 = vmul.f32 %v14450_v56, %v11603_v28  ;;  %v3451_v35 = vmul.f32 %v14452_v55, %v11612_v40  ;;  %v14483_v17 = vld [vmem:[#allocation71_spill] sm:$0xff]  ;;  %v3659_v14 = vmul.f32 %v14419_v9, %v11599_v29 }
 0x477   : > { %v3051_v47 = vmul.f32 %v14478_v16, %v11591_v31  ;;  %v3151_v44 = vmul.f32 %v14479_v23, %v11599_v29  ;;  %v11628_v57 = vadd.f32 %v4704_v52, %v4666_v19  ;;  %v14482_v39 = vld [vmem:[#allocation70_spill] sm:$0xff]  ;;  %v3589_v41 = vmul.f32 %v14483_v17, %v11591_v31  ;;  %v14484_v11 = vld [vmem:[#allocation73_spill] sm:$0xff] }
 0x478   : > { %v3519_v13 = vmul.f32 %v14482_v39, %v11589_v30  ;;  %v5082_v38 = vadd.f32 %v5050_v22, %v5012_v34  ;;  %v3729_v32 = vmul.f32 %v14484_v11, %v11601_v62  ;;  %v14485_v52 = vld [vmem:[#allocation105_spill] sm:$0xff]  ;;  %v3869_v22 = vmul.f32 %v14424_v20, %v11612_v40 }
 0x479   : > { %14481 = vst [vmem:[#allocation43_spill] sm:$0xff] %v11628_v57  ;;  %v3083_v60 = vadd.f32 %v3051_v47, %v2951_v18  ;;  %v3799_v18 = vmul.f32 %v14457_v48, %v11603_v28  ;;  %v14486_v47 = vld [vmem:[#allocation88_spill] sm:$0xff]  ;;  %v4007_v34 = vmul.f32 %v14385_v26, %v11591_v31  ;;  %v4077_v21 = vmul.f32 %v14151_v43, %v11599_v29 }
 0x47a   : > { %v3551_v19 = vadd.f32 %v3519_v13, %v14485_v52  ;;  %v3937_v57 = vmul.f32 %v14486_v47, %v11589_v30  ;;  %v5152_v54 = vadd.f32 %v5120_v24, %v5082_v38  ;;  %v4147_v52 = vmul.f32 %v14304_v58, %v11601_v62 }
 0x47b   : > { %v3183_v50 = vadd.f32 %v3151_v44, %v3083_v60  ;;  %v14487_v60 = vld [vmem:[#allocation103_spill] sm:$0xff]  ;;  %v4217_v24 = vmul.f32 %v14156_v15, %v11603_v28  ;;  %v4287_v38 = vmul.f32 %v14344_v1, %v11612_v40  ;;  %v4355_v26 = vmul.f32 %v14259_v10, %v11589_v30 }
 0x47c   : > { %v3621_v44 = vadd.f32 %v3589_v41, %v3551_v19  ;;  %v3969_v13 = vadd.f32 %v3937_v57, %v14487_v60  ;;  %v5222_v48 = vadd.f32 %v5190_v45, %v5152_v54  ;;  %v14489_v41 = vld [vmem:[#allocation38_spill] sm:$0xff]  ;;  %v14490_v54 = vld [vmem:[#allocation84_spill] sm:$0xff]  ;;  %v14491_v60 = vld [vmem:[#allocation85_spill] sm:$0xff] }
 0x47d   : > { %v3283_v12 = vadd.f32 %v3251_v51, %v3183_v50  ;;  %v14488_v50 = vld [vmem:[#allocation83_spill] sm:$0xff]  ;;  %v4387_v19 = vadd.f32 %v4355_v26, %v14489_v41  ;;  %v4495_v45 = vmul.f32 %v14490_v54, %v11599_v29  ;;  %v4565_v15 = vmul.f32 %v14491_v60, %v11601_v62  ;;  %v14496_v54 = vld [vmem:[#allocation216_spill] sm:$0xff] }
 0x47e   : > { %v3691_v20 = vadd.f32 %v3659_v14, %v3621_v44  ;;  %v4039_v43 = vadd.f32 %v4007_v34, %v3969_v13  ;;  %v4425_v51 = vmul.f32 %v14488_v50, %v11591_v31  ;;  %v5292_v57 = vadd.f32 %v5260_v61, %v5222_v48  ;;  %v14494_v44 = vld [vmem:[#allocation87_spill] sm:$0xff]  ;;  %v14495_v61 = vld [vmem:[#allocation26_spill] sm:$0xff] }
 0x47f   : > { %v3383_v47 = vadd.f32 %v3351_v4, %v3283_v12  ;;  %v14493_v12 = vld [vmem:[#allocation86_spill] sm:$0xff]  ;;  %v4705_v48 = vmul.f32 %v14494_v44, %v11612_v40  ;;  %v4771_v26 = vmul.f32 %v14462_v7, %v14495_v61  ;;  %v4841_v60 = vmul.f32 %v14464_v36, %v14496_v54 }
 0x480   : > { %v3761_v1 = vadd.f32 %v3729_v32, %v3691_v20  ;;  %v4109_v11 = vadd.f32 %v4077_v21, %v4039_v43  ;;  %v4635_v14 = vmul.f32 %v14493_v12, %v11603_v28  ;;  %v5362_v4 = vadd.f32 %v5330_v59, %v5292_v57  ;;  %v14498_v21 = vld [vmem:[#allocation76_spill] sm:$0xff]  ;;  %v14499_v59 = vld [vmem:[#allocation57_spill] sm:$0xff] }
 0x481   : > { %v11667_v58 = vadd.f32 %v3451_v35, %v3383_v47  ;;  %v4457_v34 = vadd.f32 %v4425_v51, %v4387_v19  ;;  %v14497_v35 = vld [vmem:[#allocation58_spill] sm:$0xff]  ;;  %v4803_v47 = vadd.f32 %v4771_v26, %v14498_v21  ;;  %v4981_v51 = vmul.f32 %v14121_v37, %v14499_v59 }
 0x482   : > { %v3831_v13 = vadd.f32 %v3799_v18, %v3761_v1  ;;  %v4179_v41 = vadd.f32 %v4147_v52, %v4109_v11  ;;  %v4911_v20 = vmul.f32 %v14120_v5, %v14497_v35  ;;  %v5432_v43 = vadd.f32 %v5400_v25, %v5362_v4  ;;  %v14502_v11 = vld [vmem:[#allocation60_spill] sm:$0xff]  ;;  %v11693_v4 = vld [vmem:[#allocation4 + $0xa1] sm:$0xff] }
 0x483   : > { %14492 = vst [vmem:[#allocation25_spill] sm:$0xff] %v11667_v58  ;;  %v4527_v32 = vadd.f32 %v4495_v45, %v4457_v34  ;;  %v14501_v58 = vld [vmem:[#allocation231_spill] sm:$0xff]  ;;  %v5121_v18 = vmul.f32 %v14172_v27, %v14502_v11  ;;  %v4873_v61 = vadd.f32 %v4841_v60, %v4803_v47  ;;  %v5191_v25 = vmul.f32 %v14173_v33, %v11589_v30  ;;  %v11691_v45 = vld [vmem:[#allocation4 + $0xa0] sm:$0xff] }
 0x484   : > { %v11682_v57 = vadd.f32 %v3869_v22, %v3831_v13  ;;  %v4249_v19 = vadd.f32 %v4217_v24, %v4179_v41  ;;  %v5051_v1 = vmul.f32 %v14171_v46, %v14501_v58  ;;  %v5502_v52 = vadd.f32 %v11610_v3, %v5432_v43  ;;  %14503 = vst [vmem:[#allocation227_spill] sm:$0xff] %v11691_v45  ;;  %v11695_v22 = vld [vmem:[#allocation4 + $0xa2] sm:$0xff] }
 0x485   : > { %v4597_v54 = vadd.f32 %v4565_v15, %v4527_v32  ;;  %14504 = vst [vmem:[#allocation215_spill] sm:$0xff] %v11693_v4  ;;  %14505 = vst [vmem:[#allocation217_spill] sm:$0xff] %v11695_v22  ;;  %v5261_v58 = vmul.f32 %v14276_v2, %v11591_v31  ;;  %v5331_v34 = vmul.f32 %v14277_v63, %v11599_v29  ;;  %v11705_v3 = vld [vmem:[#allocation4 + $0xa3] sm:$0xff] }
 0x486   : > { %14500 = vst [vmem:[#allocation229_spill] sm:$0xff] %v11682_v57  ;;  %v11697_v24 = vadd.f32 %v4287_v38, %v4249_v19  ;;  %v5401_v15 = vmul.f32 %v14278_v6, %v11601_v62  ;;  %14507 = vst [vmem:[#allocation33_spill] sm:$0xff] %v11705_v3  ;;  %v11707_v60 = vld [vmem:[#allocation4 + $0xa4] sm:$0xff]  ;;  %v5572_v26 = vadd.f32 %v11616_v42, %v5502_v52  ;;  %v14515_v62 = vld [vmem:[#allocation88_spill] sm:$0xff] }
 0x487   : > { %14508 = vst [vmem:[#allocation48_spill] sm:$0xff] %v11707_v60  ;;  %v4667_v13 = vadd.f32 %v4635_v14, %v4597_v54  ;;  %v4943_v41 = vadd.f32 %v4911_v20, %v4873_v61  ;;  %v11712_v38 = vmul.f32 %v14235_v53, %v11603_v28  ;;  %v11714_v35 = vld [vmem:[#allocation4 + $0xa5] sm:$0xff]  ;;  %v11718_v43 = vmul.f32 %v14405_v8, %v11612_v40 }
 0x488   : > { %14506 = vst [vmem:[#allocation223_spill] sm:$0xff] %v11697_v24  ;;  %14509 = vst [vmem:[#allocation235_spill] sm:$0xff] %v11714_v35  ;;  %v2952_v32 = vmul.f32 %v14290_v0, %v11691_v45  ;;  %v3052_v21 = vmul.f32 %v14478_v16, %v11693_v4  ;;  %v3152_v42 = vmul.f32 %v14479_v23, %v11695_v22  ;;  %6971 = vmatprep.mubr.f32.mxu0 %v5572_v26  ;;  %v14514_v40 = vld [vmem:[#allocation75_spill] sm:$0xff]  ;;  %v14517_v30 = vld [vmem:[#allocation90_spill] sm:$0xff] }
 0x489   : > { %v11726_v14 = vadd.f32 %v4705_v48, %v4667_v13  ;;  %v5013_v20 = vadd.f32 %v4981_v51, %v4943_v41  ;;  %v3252_v47 = vmul.f32 %v14480_v49, %v11705_v3  ;;  %v3352_v59 = vmul.f32 %v14450_v56, %v11707_v60  ;;  %v14511_v51 = vld [vmem:[#allocation73_spill] sm:$0xff]  ;;  %v14512_v13 = vld [vmem:[#allocation74_spill] sm:$0xff]  ;;  %v14518_v57 = vld [vmem:[#allocation91_spill] sm:$0xff] }
 0x48a   : > { %v3084_v19 = vadd.f32 %v3052_v21, %v2952_v32  ;;  %v3452_v11 = vmul.f32 %v14452_v55, %v11714_v35  ;;  %v3520_v52 = vmul.f32 %v14482_v39, %v11691_v45  ;;  %v3590_v54 = vmul.f32 %v14483_v17, %v11693_v4  ;;  %v14513_v21 = vld [vmem:[#allocation233_spill] sm:$0xff] }
 0x48b   : > { %14510 = vst [vmem:[#allocation219_spill] sm:$0xff] %v11726_v14  ;;  %v5083_v61 = vadd.f32 %v5051_v1, %v5013_v20  ;;  %v3660_v48 = vmul.f32 %v14419_v9, %v11695_v22  ;;  %v3730_v26 = vmul.f32 %v14511_v51, %v11705_v3  ;;  %v3800_v41 = vmul.f32 %v14512_v13, %v11707_v60  ;;  %v14516_v1 = vld [vmem:[#allocation89_spill] sm:$0xff] }
 0x48c   : > { %v3184_v32 = vadd.f32 %v3152_v42, %v3084_v19  ;;  %v3552_v14 = vadd.f32 %v3520_v52, %v14513_v21  ;;  %v3870_v28 = vmul.f32 %v14514_v40, %v11714_v35  ;;  %v3938_v29 = vmul.f32 %v14515_v62, %v11691_v45  ;;  %v14519_v19 = vld [vmem:[#allocation54_spill] sm:$0xff]  ;;  %v14520_v21 = vld [vmem:[#allocation92_spill] sm:$0xff]  ;;  %v14521_v62 = vld [vmem:[#allocation93_spill] sm:$0xff] }
 0x48d   : > { %v5153_v31 = vadd.f32 %v5121_v18, %v5083_v61  ;;  %v4008_v20 = vmul.f32 %v14516_v1, %v11693_v4  ;;  %v4078_v24 = vmul.f32 %v14517_v30, %v11695_v22  ;;  %v4148_v51 = vmul.f32 %v14518_v57, %v11705_v3 }
 0x48e   : > { %v3284_v13 = vadd.f32 %v3252_v47, %v3184_v32  ;;  %v3622_v42 = vadd.f32 %v3590_v54, %v3552_v14  ;;  %v3970_v52 = vadd.f32 %v3938_v29, %v14519_v19  ;;  %v4218_v40 = vmul.f32 %v14520_v21, %v11707_v60  ;;  %v14522_v14 = vld [vmem:[#allocation84_spill] sm:$0xff] }
 0x48f   : > { %v5223_v9 = vadd.f32 %v5191_v25, %v5153_v31  ;;  %v4288_v18 = vmul.f32 %v14521_v62, %v11714_v35  ;;  %v4356_v61 = vmul.f32 %v14259_v10, %v11691_v45  ;;  %v4426_v30 = vmul.f32 %v14488_v50, %v11693_v4  ;;  %v14523_v54 = vld [vmem:[#allocation40_spill] sm:$0xff]  ;;  %v14524_v31 = vld [vmem:[#allocation85_spill] sm:$0xff]  ;;  %v14526_v50 = vld [vmem:[#allocation47_spill] sm:$0xff] }
 0x490   : > { %v3384_v1 = vadd.f32 %v3352_v59, %v3284_v13  ;;  %v3692_v17 = vadd.f32 %v3660_v48, %v3622_v42  ;;  %v4040_v57 = vadd.f32 %v4008_v20, %v3970_v52  ;;  %v4496_v47 = vmul.f32 %v14522_v14, %v11695_v22 }
 0x491   : > { %v5293_v29 = vadd.f32 %v5261_v58, %v5223_v9  ;;  %v4388_v32 = vadd.f32 %v4356_v61, %v14523_v54  ;;  %v4566_v25 = vmul.f32 %v14524_v31, %v11705_v3  ;;  %v4636_v19 = vmul.f32 %v14493_v12, %v11707_v60  ;;  %v14527_v58 = vld [vmem:[#allocation55_spill] sm:$0xff]  ;;  %v14529_v12 = vld [vmem:[#allocation42_spill] sm:$0xff] }
 0x492   : > { %v11771_v62 = vadd.f32 %v3452_v11, %v3384_v1  ;;  %v3762_v10 = vadd.f32 %v3730_v26, %v3692_v17  ;;  %v4110_v21 = vadd.f32 %v4078_v24, %v4040_v57  ;;  %v4772_v59 = vmul.f32 %v14462_v7, %v14526_v50  ;;  %v14528_v61 = vld [vmem:[#allocation59_spill] sm:$0xff]  ;;  %v14530_v24 = vld [vmem:[#allocation220_spill] sm:$0xff] }
 0x493   : > { %v5363_v48 = vadd.f32 %v5331_v34, %v5293_v29  ;;  %v4458_v13 = vadd.f32 %v4426_v30, %v4388_v32  ;;  %v4706_v9 = vmul.f32 %v14494_v44, %v11714_v35  ;;  %v4842_v20 = vmul.f32 %v14464_v36, %v14527_v58  ;;  %v14531_v34 = vld [vmem:[#allocation39_spill] sm:$0xff]  ;;  %v14533_v32 = vld [vmem:[#allocation68_spill] sm:$0xff] }
 0x494   : > { %14525 = vst [vmem:[#allocation98_spill] sm:$0xff] %v11771_v62  ;;  %v3832_v42 = vadd.f32 %v3800_v41, %v3762_v10  ;;  %v4180_v52 = vadd.f32 %v4148_v51, %v4110_v21  ;;  %v4804_v54 = vadd.f32 %v4772_v59, %v14528_v61  ;;  %v4912_v11 = vmul.f32 %v14120_v5, %v14529_v12  ;;  %v11795_v21 = vld [vmem:[#allocation4 + $0xa8] sm:$0xff] }
 0x495   : > { %v5433_v17 = vadd.f32 %v5401_v15, %v5363_v48  ;;  %v4528_v57 = vadd.f32 %v4496_v47, %v4458_v13  ;;  %v4982_v50 = vmul.f32 %v14121_v37, %v14530_v24  ;;  %v5052_v30 = vmul.f32 %v14171_v46, %v14531_v34  ;;  %14534 = vst [vmem:[#allocation61_spill] sm:$0xff] %v11795_v21  ;;  %v11797_v47 = vld [vmem:[#allocation4 + $0xa9] sm:$0xff] }
 0x496   : > { %v11786_v26 = vadd.f32 %v3870_v28, %v3832_v42  ;;  %v4250_v1 = vadd.f32 %v4218_v40, %v4180_v52  ;;  %v4874_v29 = vadd.f32 %v4842_v20, %v4804_v54  ;;  %v5122_v10 = vmul.f32 %v14172_v27, %v14533_v32  ;;  %14535 = vst [vmem:[#allocation67_spill] sm:$0xff] %v11797_v47  ;;  %v11799_v28 = vld [vmem:[#allocation4 + $0xaa] sm:$0xff] }
 0x497   : > { %v5503_v51 = vadd.f32 %v11712_v38, %v5433_v17  ;;  %v4598_v41 = vadd.f32 %v4566_v25, %v4528_v57  ;;  %v5192_v12 = vmul.f32 %v14173_v33, %v11691_v45  ;;  %v5262_v15 = vmul.f32 %v14276_v2, %v11693_v4  ;;  %14536 = vst [vmem:[#allocation41_spill] sm:$0xff] %v11799_v28  ;;  %v11807_v25 = vld [vmem:[#allocation4 + $0xab] sm:$0xff]  ;;  %v14550_v4 = vld [vmem:[#allocation90_spill] sm:$0xff] }
 0x498   : > { %14532 = vst [vmem:[#allocation45_spill] sm:$0xff] %v11786_v26  ;;  %v11801_v40 = vadd.f32 %v4288_v18, %v4250_v1  ;;  %v4944_v59 = vadd.f32 %v4912_v11, %v4874_v29  ;;  %v5332_v48 = vmul.f32 %v14277_v63, %v11695_v22  ;;  %v5402_v38 = vmul.f32 %v14278_v6, %v11705_v3  ;;  %v11809_v13 = vld [vmem:[#allocation4 + $0xac] sm:$0xff] }
 0x499   : > { %14538 = vst [vmem:[#allocation27_spill] sm:$0xff] %v11807_v25  ;;  %14539 = vst [vmem:[#allocation64_spill] sm:$0xff] %v11809_v13  ;;  %v5573_v58 = vadd.f32 %v11718_v43, %v5503_v51  ;;  %v4668_v20 = vadd.f32 %v4636_v19, %v4598_v41  ;;  %v5472_v42 = vmul.f32 %v14235_v53, %v11707_v60  ;;  %v11818_v52 = vld [vmem:[#allocation4 + $0xad] sm:$0xff]  ;;  %v14543_v51 = vld [vmem:[#allocation25_spill] sm:$0xff] }
 0x49a   : > { %14537 = vst [vmem:[#allocation29_spill] sm:$0xff] %v11801_v40  ;;  %v11816_v18 = vmul.f32 %v14405_v8, %v11714_v35  ;;  %14540 = vst [vmem:[#allocation66_spill] sm:$0xff] %v11818_v52  ;;  %v5014_v61 = vadd.f32 %v4982_v50, %v4944_v59  ;;  %v2953_v54 = vmul.f32 %v14290_v0, %v11795_v21  ;;  %v14542_v29 = vld [vmem:[#allocation71_spill] sm:$0xff]  ;;  %v14544_v41 = vld [vmem:[#allocation72_spill] sm:$0xff] }
 0x49b   : > { %v3053_v11 = vmul.f32 %v14478_v16, %v11797_v47  ;;  %v3153_v43 = vmul.f32 %v14479_v23, %v11799_v28  ;;  %6972 = vmatmul.mubr.f32.gmra.mrb[144].mxu0 %v5573_v58  ;;  %v11826_v19 = vadd.f32 %v4706_v9, %v4668_v20  ;;  %v3253_v17 = vmul.f32 %v14480_v49, %v11807_v25  ;;  %v14545_v58 = vld [vmem:[#allocation73_spill] sm:$0xff]  ;;  %v14551_v40 = vld [vmem:[#allocation91_spill] sm:$0xff] }
 0x49c   : > { %v3353_v57 = vmul.f32 %v14450_v56, %v11809_v13  ;;  %v3521_v24 = vmul.f32 %v14482_v39, %v11795_v21  ;;  %v5084_v50 = vadd.f32 %v5052_v30, %v5014_v61  ;;  %v3453_v1 = vmul.f32 %v14452_v55, %v11818_v52  ;;  %v14547_v61 = vld [vmem:[#allocation75_spill] sm:$0xff] }
 0x49d   : > { %14541 = vst [vmem:[#allocation65_spill] sm:$0xff] %v11826_v19  ;;  %v3085_v34 = vadd.f32 %v3053_v11, %v2953_v54  ;;  %v3591_v32 = vmul.f32 %v14542_v29, %v11797_v47  ;;  %v3661_v59 = vmul.f32 %v14544_v41, %v11799_v28  ;;  %v3731_v20 = vmul.f32 %v14545_v58, %v11807_v25  ;;  %v14546_v19 = vld [vmem:[#allocation74_spill] sm:$0xff]  ;;  %v14548_v11 = vld [vmem:[#allocation88_spill] sm:$0xff]  ;;  %v14556_v62 = vld [vmem:[#allocation83_spill] sm:$0xff] }
 0x49e   : > { %v3553_v9 = vadd.f32 %v3521_v24, %v14543_v51  ;;  %v3801_v35 = vmul.f32 %v14546_v19, %v11809_v13  ;;  %v5154_v60 = vadd.f32 %v5122_v10, %v5084_v50  ;;  %v3871_v54 = vmul.f32 %v14547_v61, %v11818_v52  ;;  %v14549_v24 = vld [vmem:[#allocation89_spill] sm:$0xff]  ;;  %v14553_v50 = vld [vmem:[#allocation92_spill] sm:$0xff] }
 0x49f   : > { %v3185_v30 = vadd.f32 %v3153_v43, %v3085_v34  ;;  %v3939_v3 = vmul.f32 %v14548_v11, %v11795_v21  ;;  %v4009_v51 = vmul.f32 %v14549_v24, %v11797_v47  ;;  %v4079_v45 = vmul.f32 %v14550_v4, %v11799_v28  ;;  %v14552_v10 = vld [vmem:[#allocation229_spill] sm:$0xff] }
 0x4a0   : > { %v3623_v22 = vadd.f32 %v3591_v32, %v3553_v9  ;;  %v4149_v26 = vmul.f32 %v14551_v40, %v11807_v25  ;;  %v5224_v58 = vadd.f32 %v5192_v12, %v5154_v60  ;;  %v4219_v34 = vmul.f32 %v14553_v50, %v11809_v13  ;;  %v14554_v11 = vld [vmem:[#allocation93_spill] sm:$0xff]  ;;  %v14555_v9 = vld [vmem:[#allocation82_spill] sm:$0xff]  ;;  %v14557_v12 = vld [vmem:[#allocation223_spill] sm:$0xff] }
 0x4a1   : > { %v3285_v19 = vadd.f32 %v3253_v17, %v3185_v30  ;;  %v3971_v43 = vadd.f32 %v3939_v3, %v14552_v10  ;;  %v4289_v32 = vmul.f32 %v14554_v11, %v11818_v52  ;;  %v4357_v24 = vmul.f32 %v14555_v9, %v11795_v21 }
 0x4a2   : > { %v3693_v61 = vadd.f32 %v3661_v59, %v3623_v22  ;;  %v4427_v4 = vmul.f32 %v14556_v62, %v11797_v47  ;;  %v5294_v41 = vadd.f32 %v5262_v15, %v5224_v58  ;;  %v4497_v60 = vmul.f32 %v14522_v14, %v11799_v28  ;;  %v14558_v59 = vld [vmem:[#allocation86_spill] sm:$0xff] }
 0x4a3   : > { %v3385_v29 = vadd.f32 %v3353_v57, %v3285_v19  ;;  %v4041_v40 = vadd.f32 %v4009_v51, %v3971_v43  ;;  %v4389_v17 = vadd.f32 %v4357_v24, %v14557_v12  ;;  %v4567_v22 = vmul.f32 %v14524_v31, %v11807_v25  ;;  %v14560_v62 = vld [vmem:[#allocation234_spill] sm:$0xff] }
 0x4a4   : > { %v3763_v3 = vadd.f32 %v3731_v20, %v3693_v61  ;;  %v4637_v30 = vmul.f32 %v14558_v59, %v11809_v13  ;;  %v5364_v10 = vadd.f32 %v5332_v48, %v5294_v41  ;;  %v4773_v15 = vmul.f32 %v14462_v7, %v14560_v62  ;;  %v14561_v20 = vld [vmem:[#allocation236_spill] sm:$0xff]  ;;  %v14562_v43 = vld [vmem:[#allocation214_spill] sm:$0xff] }
 0x4a5   : > { %v11871_v11 = vadd.f32 %v3453_v1, %v3385_v29  ;;  %v4111_v9 = vadd.f32 %v4079_v45, %v4041_v40  ;;  %v4459_v57 = vadd.f32 %v4427_v4, %v4389_v17  ;;  %v4707_v58 = vmul.f32 %v14494_v44, %v11818_v52  ;;  %v14563_v59 = vld [vmem:[#allocation52_spill] sm:$0xff]  ;;  %v14565_v40 = vld [vmem:[#allocation237_spill] sm:$0xff]  ;;  %v14566_v4 = vld [vmem:[#allocation230_spill] sm:$0xff] }
 0x4a6   : > { %v3833_v19 = vadd.f32 %v3801_v35, %v3763_v3  ;;  %v4843_v61 = vmul.f32 %v14464_v36, %v14561_v20  ;;  %v5434_v24 = vadd.f32 %v5402_v38, %v5364_v10  ;;  %v4805_v12 = vadd.f32 %v4773_v15, %v14562_v43  ;;  %v14567_v17 = vld [vmem:[#allocation224_spill] sm:$0xff] }
 0x4a7   : > { %14559 = vst [vmem:[#allocation49_spill] sm:$0xff] %v11871_v11  ;;  %v4181_v51 = vadd.f32 %v4149_v26, %v4111_v9  ;;  %v4913_v48 = vmul.f32 %v14120_v5, %v14563_v59  ;;  %v4529_v45 = vadd.f32 %v4497_v60, %v4459_v57  ;;  %v4983_v62 = vmul.f32 %v14121_v37, %v14565_v40  ;;  %v11890_v38 = vld [vmem:[#allocation4 + $0xb0] sm:$0xff] }
 0x4a8   : > { %v11882_v1 = vadd.f32 %v3871_v54, %v3833_v19  ;;  %v5053_v35 = vmul.f32 %v14171_v46, %v14566_v4  ;;  %v5504_v29 = vadd.f32 %v5472_v42, %v5434_v24  ;;  %v4875_v3 = vadd.f32 %v4843_v61, %v4805_v12  ;;  %14568 = vst [vmem:[#allocation99_spill] sm:$0xff] %v11890_v38  ;;  %v11892_v9 = vld [vmem:[#allocation4 + $0xb1] sm:$0xff] }
 0x4a9   : > { %v4251_v41 = vadd.f32 %v4219_v34, %v4181_v51  ;;  %v5123_v26 = vmul.f32 %v14172_v27, %v14567_v17  ;;  %14569 = vst [vmem:[#allocation94_spill] sm:$0xff] %v11892_v9  ;;  %v4599_v59 = vadd.f32 %v4567_v22, %v4529_v45  ;;  %v5193_v54 = vmul.f32 %v14173_v33, %v11795_v21  ;;  %v11900_v42 = vld [vmem:[#allocation4 + $0xb2] sm:$0xff] }
 0x4aa   : > { %14564 = vst [vmem:[#allocation211_spill] sm:$0xff] %v11882_v1  ;;  %v5263_v60 = vmul.f32 %v14276_v2, %v11797_v47  ;;  %v5333_v10 = vmul.f32 %v14277_v63, %v11799_v28  ;;  %14570 = vst [vmem:[#allocation32_spill] sm:$0xff] %v11900_v42  ;;  %v11902_v34 = vld [vmem:[#allocation4 + $0xb3] sm:$0xff]  ;;  %v5574_v15 = vadd.f32 %v11816_v18, %v5504_v29 }
 0x4ab   : > { %14571 = vst [vmem:[#allocation96_spill] sm:$0xff] %v11902_v34  ;;  %v11905_v19 = vadd.f32 %v4289_v32, %v4251_v41  ;;  %v4945_v57 = vadd.f32 %v4913_v48, %v4875_v3  ;;  %v5403_v22 = vmul.f32 %v14278_v6, %v11807_v25  ;;  %v11909_v20 = vld [vmem:[#allocation4 + $0xb4] sm:$0xff]  ;;  %v4669_v61 = vadd.f32 %v4637_v30, %v4599_v59  ;;  %v14576_v3 = vld [vmem:[#allocation71_spill] sm:$0xff] }
 0x4ac   : > { %14573 = vst [vmem:[#allocation97_spill] sm:$0xff] %v11909_v20  ;;  %v5473_v24 = vmul.f32 %v14235_v53, %v11809_v13  ;;  %v2954_v51 = vmul.f32 %v14290_v0, %v11890_v38  ;;  %v3054_v43 = vmul.f32 %v14478_v16, %v11892_v9  ;;  %v11917_v12 = vld [vmem:[#allocation4 + $0xb5] sm:$0xff]  ;;  %6974 = vmatprep.mubr.f32.mxu0 %v5574_v15 }
 0x4ad   : > { %14572 = vst [vmem:[#allocation62_spill] sm:$0xff] %v11905_v19  ;;  %14574 = vst [vmem:[#allocation46_spill] sm:$0xff] %v11917_v12  ;;  %v5015_v18 = vadd.f32 %v4983_v62, %v4945_v57  ;;  %v11921_v32 = vmul.f32 %v14405_v8, %v11818_v52  ;;  %v3154_v30 = vmul.f32 %v14479_v23, %v11900_v42  ;;  %v14577_v59 = vld [vmem:[#allocation72_spill] sm:$0xff]  ;;  %v14583_v47 = vld [vmem:[#allocation89_spill] sm:$0xff] }
 0x4ae   : > { %v3254_v48 = vmul.f32 %v14480_v49, %v11902_v34  ;;  %v11927_v45 = vadd.f32 %v4707_v58, %v4669_v61  ;;  %v3086_v40 = vadd.f32 %v3054_v43, %v2954_v51  ;;  %v3354_v4 = vmul.f32 %v14450_v56, %v11909_v20  ;;  %v14578_v58 = vld [vmem:[#allocation98_spill] sm:$0xff]  ;;  %v14579_v51 = vld [vmem:[#allocation73_spill] sm:$0xff]  ;;  %v14582_v25 = vld [vmem:[#allocation88_spill] sm:$0xff] }
 0x4af   : > { %v3522_v29 = vmul.f32 %v14482_v39, %v11890_v38  ;;  %v5085_v62 = vadd.f32 %v5053_v35, %v5015_v18  ;;  %v3454_v41 = vmul.f32 %v14452_v55, %v11917_v12  ;;  %v3592_v17 = vmul.f32 %v14576_v3, %v11892_v9  ;;  %v14581_v35 = vld [vmem:[#allocation75_spill] sm:$0xff] }
 0x4b0   : > { %14575 = vst [vmem:[#allocation36_spill] sm:$0xff] %v11927_v45  ;;  %v3662_v15 = vmul.f32 %v14577_v59, %v11900_v42  ;;  %v3186_v57 = vadd.f32 %v3154_v30, %v3086_v40  ;;  %v3732_v43 = vmul.f32 %v14579_v51, %v11902_v34  ;;  %v14580_v45 = vld [vmem:[#allocation74_spill] sm:$0xff]  ;;  %v3872_v18 = vmul.f32 %v14581_v35, %v11917_v12 }
 0x4b1   : > { %v3554_v61 = vadd.f32 %v3522_v29, %v14578_v58  ;;  %v3802_v52 = vmul.f32 %v14580_v45, %v11909_v20  ;;  %v5155_v13 = vadd.f32 %v5123_v26, %v5085_v62  ;;  %v3940_v28 = vmul.f32 %v14582_v25, %v11890_v38  ;;  %v14584_v40 = vld [vmem:[#allocation90_spill] sm:$0xff]  ;;  %v14585_v58 = vld [vmem:[#allocation91_spill] sm:$0xff]  ;;  %v14586_v45 = vld [vmem:[#allocation45_spill] sm:$0xff] }
 0x4b2   : > { %v4010_v21 = vmul.f32 %v14583_v47, %v11892_v9  ;;  %v3286_v19 = vadd.f32 %v3254_v48, %v3186_v57  ;;  %v4080_v29 = vmul.f32 %v14584_v40, %v11900_v42  ;;  %v4150_v1 = vmul.f32 %v14585_v58, %v11902_v34  ;;  %v14587_v35 = vld [vmem:[#allocation82_spill] sm:$0xff]  ;;  %v14588_v48 = vld [vmem:[#allocation93_spill] sm:$0xff]  ;;  %v14589_v57 = vld [vmem:[#allocation83_spill] sm:$0xff] }
 0x4b3   : > { %v3624_v30 = vadd.f32 %v3592_v17, %v3554_v61  ;;  %v5225_v11 = vadd.f32 %v5193_v54, %v5155_v13  ;;  %v3972_v26 = vadd.f32 %v3940_v28, %v14586_v45  ;;  %v4220_v62 = vmul.f32 %v14553_v50, %v11909_v20  ;;  %v14590_v58 = vld [vmem:[#allocation29_spill] sm:$0xff] }
 0x4b4   : > { %v4358_v25 = vmul.f32 %v14587_v35, %v11890_v38  ;;  %v3386_v51 = vadd.f32 %v3354_v4, %v3286_v19  ;;  %v4290_v17 = vmul.f32 %v14588_v48, %v11917_v12  ;;  %v4428_v61 = vmul.f32 %v14589_v57, %v11892_v9  ;;  %v14592_v4 = vld [vmem:[#allocation86_spill] sm:$0xff]  ;;  %v14593_v57 = vld [vmem:[#allocation227_spill] sm:$0xff] }
 0x4b5   : > { %v3694_v59 = vadd.f32 %v3662_v15, %v3624_v30  ;;  %v5295_v40 = vadd.f32 %v5263_v60, %v5225_v11  ;;  %v4042_v47 = vadd.f32 %v4010_v21, %v3972_v26  ;;  %v4498_v28 = vmul.f32 %v14522_v14, %v11900_v42  ;;  %v14594_v60 = vld [vmem:[#allocation215_spill] sm:$0xff] }
 0x4b6   : > { %v4390_v13 = vadd.f32 %v4358_v25, %v14590_v58  ;;  %v11966_v54 = vadd.f32 %v3454_v41, %v3386_v51  ;;  %v4568_v19 = vmul.f32 %v14524_v31, %v11902_v34  ;;  %v4638_v15 = vmul.f32 %v14592_v4, %v11909_v20 }
 0x4b7   : > { %v3764_v45 = vadd.f32 %v3732_v43, %v3694_v59  ;;  %v5365_v30 = vadd.f32 %v5333_v10, %v5295_v40  ;;  %v4112_v35 = vadd.f32 %v4080_v29, %v4042_v47  ;;  %v4774_v21 = vmul.f32 %v14462_v7, %v14593_v57  ;;  %v14595_v59 = vld [vmem:[#allocation217_spill] sm:$0xff] }
 0x4b8   : > { %14591 = vst [vmem:[#allocation44_spill] sm:$0xff] %v11966_v54  ;;  %v4460_v48 = vadd.f32 %v4428_v61, %v4390_v13  ;;  %v4708_v25 = vmul.f32 %v14494_v44, %v11917_v12  ;;  %v4844_v41 = vmul.f32 %v14464_v36, %v14594_v60  ;;  %v4914_v51 = vmul.f32 %v14120_v5, %v14595_v59  ;;  %v14596_v54 = vld [vmem:[#allocation43_spill] sm:$0xff]  ;;  %v14598_v40 = vld [vmem:[#allocation33_spill] sm:$0xff] }
 0x4b9   : > { %v3834_v11 = vadd.f32 %v3802_v52, %v3764_v45  ;;  %v5435_v43 = vadd.f32 %v5403_v22, %v5365_v30  ;;  %v4182_v58 = vadd.f32 %v4150_v1, %v4112_v35  ;;  %v4806_v10 = vadd.f32 %v4774_v21, %v14596_v54  ;;  %v14599_v52 = vld [vmem:[#allocation48_spill] sm:$0xff]  ;;  %v14600_v61 = vld [vmem:[#allocation235_spill] sm:$0xff]  ;;  %v11989_v22 = vld [vmem:[#allocation4 + $0xb8] sm:$0xff] }
 0x4ba   : > { %v4530_v26 = vadd.f32 %v4498_v28, %v4460_v48  ;;  %v4984_v29 = vmul.f32 %v14121_v37, %v14598_v40  ;;  %v5054_v57 = vmul.f32 %v14171_v46, %v14599_v52  ;;  %v5124_v13 = vmul.f32 %v14172_v27, %v14600_v61  ;;  %14601 = vst [vmem:[#allocation37_spill] sm:$0xff] %v11989_v22  ;;  %v11991_v1 = vld [vmem:[#allocation4 + $0xb9] sm:$0xff] }
 0x4bb   : > { %v11981_v47 = vadd.f32 %v3872_v18, %v3834_v11  ;;  %v5505_v45 = vadd.f32 %v5473_v24, %v5435_v43  ;;  %v4252_v60 = vadd.f32 %v4220_v62, %v4182_v58  ;;  %v4876_v59 = vadd.f32 %v4844_v41, %v4806_v10  ;;  %14602 = vst [vmem:[#allocation212_spill] sm:$0xff] %v11991_v1  ;;  %v12001_v24 = vld [vmem:[#allocation4 + $0xba] sm:$0xff] }
 0x4bc   : > { %v4600_v36 = vadd.f32 %v4568_v19, %v4530_v26  ;;  %v5194_v35 = vmul.f32 %v14173_v33, %v11890_v38  ;;  %v5264_v18 = vmul.f32 %v14276_v2, %v11892_v9  ;;  %v5334_v48 = vmul.f32 %v14277_v63, %v11900_v42  ;;  %14603 = vst [vmem:[#allocation69_spill] sm:$0xff] %v12001_v24  ;;  %v12003_v62 = vld [vmem:[#allocation4 + $0xbb] sm:$0xff] }
 0x4bd   : > { %14597 = vst [vmem:[#allocation218_spill] sm:$0xff] %v11981_v47  ;;  %v5404_v28 = vmul.f32 %v14278_v6, %v11902_v34  ;;  %14604 = vst [vmem:[#allocation104_spill] sm:$0xff] %v12003_v62  ;;  %v5575_v54 = vadd.f32 %v11921_v32, %v5505_v45  ;;  %v12006_v19 = vadd.f32 %v4290_v17, %v4252_v60  ;;  %v12008_v11 = vld [vmem:[#allocation4 + $0xbc] sm:$0xff] }
 0x4be   : > { %v4670_v30 = vadd.f32 %v4638_v15, %v4600_v36  ;;  %v4946_v21 = vadd.f32 %v4914_v51, %v4876_v59  ;;  %14606 = vst [vmem:[#allocation35_spill] sm:$0xff] %v12008_v11  ;;  %v12010_v41 = vld [vmem:[#allocation4 + $0xbd] sm:$0xff]  ;;  %v5474_v43 = vmul.f32 %v14235_v53, %v11909_v20  ;;  %v12016_v58 = vmul.f32 %v14405_v8, %v11917_v12  ;;  %v14613_v12 = vld [vmem:[#allocation88_spill] sm:$0xff] }
 0x4bf   : > { %14605 = vst [vmem:[#allocation232_spill] sm:$0xff] %v12006_v19  ;;  %14607 = vst [vmem:[#allocation50_spill] sm:$0xff] %v12010_v41  ;;  %v2955_v26 = vmul.f32 %v14290_v0, %v11989_v22  ;;  %v3055_v32 = vmul.f32 %v14478_v16, %v11991_v1  ;;  %6975 = vmatmul.mubr.f32.gmra.mrb[146].mxu0 %v5575_v54  ;;  %v3155_v15 = vmul.f32 %v14479_v23, %v12001_v24  ;;  %v14610_v59 = vld [vmem:[#allocation73_spill] sm:$0xff]  ;;  %v14616_v38 = vld [vmem:[#allocation90_spill] sm:$0xff] }
 0x4c0   : > { %v12022_v36 = vadd.f32 %v4708_v25, %v4670_v30  ;;  %v5016_v17 = vadd.f32 %v4984_v29, %v4946_v21  ;;  %v3255_v51 = vmul.f32 %v14480_v49, %v12003_v62  ;;  %v3355_v40 = vmul.f32 %v14450_v56, %v12008_v11  ;;  %v14609_v29 = vld [vmem:[#allocation72_spill] sm:$0xff]  ;;  %v14611_v21 = vld [vmem:[#allocation49_spill] sm:$0xff] }
 0x4c1   : > { %v3087_v10 = vadd.f32 %v3055_v32, %v2955_v26  ;;  %v3455_v52 = vmul.f32 %v14452_v55, %v12010_v41  ;;  %v3523_v61 = vmul.f32 %v14482_v39, %v11989_v22  ;;  %v3593_v25 = vmul.f32 %v14576_v3, %v11991_v1  ;;  %v14612_v32 = vld [vmem:[#allocation74_spill] sm:$0xff]  ;;  %v14615_v42 = vld [vmem:[#allocation89_spill] sm:$0xff] }
 0x4c2   : > { %14608 = vst [vmem:[#allocation51_spill] sm:$0xff] %v12022_v36  ;;  %v5086_v45 = vadd.f32 %v5054_v57, %v5016_v17  ;;  %v3663_v60 = vmul.f32 %v14609_v29, %v12001_v24  ;;  %v3733_v54 = vmul.f32 %v14610_v59, %v12003_v62  ;;  %v3803_v36 = vmul.f32 %v14612_v32, %v12008_v11  ;;  %v14614_v57 = vld [vmem:[#allocation75_spill] sm:$0xff] }
 0x4c3   : > { %v3187_v30 = vadd.f32 %v3155_v15, %v3087_v10  ;;  %v3555_v26 = vadd.f32 %v3523_v61, %v14611_v21  ;;  %v3941_v20 = vmul.f32 %v14613_v12, %v11989_v22  ;;  %v3873_v17 = vmul.f32 %v14614_v57, %v12010_v41  ;;  %v14617_v10 = vld [vmem:[#allocation211_spill] sm:$0xff]  ;;  %v14620_v57 = vld [vmem:[#allocation82_spill] sm:$0xff] }
 0x4c4   : > { %v5156_v34 = vadd.f32 %v5124_v13, %v5086_v45  ;;  %v4011_v9 = vmul.f32 %v14615_v42, %v11991_v1  ;;  %v4081_v19 = vmul.f32 %v14616_v38, %v12001_v24  ;;  %v14618_v21 = vld [vmem:[#allocation91_spill] sm:$0xff]  ;;  %v4221_v13 = vmul.f32 %v14553_v50, %v12008_v11  ;;  %v14619_v45 = vld [vmem:[#allocation93_spill] sm:$0xff] }
 0x4c5   : > { %v3287_v47 = vadd.f32 %v3255_v51, %v3187_v30  ;;  %v3625_v15 = vadd.f32 %v3593_v25, %v3555_v26  ;;  %v3973_v61 = vadd.f32 %v3941_v20, %v14617_v10  ;;  %v4151_v32 = vmul.f32 %v14618_v21, %v12003_v62  ;;  %v14621_v51 = vld [vmem:[#allocation83_spill] sm:$0xff]  ;;  %v14622_v30 = vld [vmem:[#allocation62_spill] sm:$0xff] }
 0x4c6   : > { %v5226_v59 = vadd.f32 %v5194_v35, %v5156_v34  ;;  %v4291_v12 = vmul.f32 %v14619_v45, %v12010_v41  ;;  %v4359_v42 = vmul.f32 %v14620_v57, %v11989_v22  ;;  %v4429_v25 = vmul.f32 %v14621_v51, %v11991_v1 }
 0x4c7   : > { %v3387_v29 = vadd.f32 %v3355_v40, %v3287_v47  ;;  %v3695_v3 = vadd.f32 %v3663_v60, %v3625_v15  ;;  %v4043_v38 = vadd.f32 %v4011_v9, %v3973_v61  ;;  %v4499_v34 = vmul.f32 %v14522_v14, %v12001_v24  ;;  %v14624_v60 = vld [vmem:[#allocation61_spill] sm:$0xff]  ;;  %v14625_v61 = vld [vmem:[#allocation67_spill] sm:$0xff] }
 0x4c8   : > { %v5296_v20 = vadd.f32 %v5264_v18, %v5226_v59  ;;  %v4391_v26 = vadd.f32 %v4359_v42, %v14622_v30  ;;  %v4569_v35 = vmul.f32 %v14524_v31, %v12003_v62  ;;  %v4639_v47 = vmul.f32 %v14592_v4, %v12008_v11  ;;  %v14626_v30 = vld [vmem:[#allocation101_spill] sm:$0xff] }
 0x4c9   : > { %v12067_v10 = vadd.f32 %v3455_v52, %v3387_v29  ;;  %v3765_v45 = vadd.f32 %v3733_v54, %v3695_v3  ;;  %v4113_v50 = vadd.f32 %v4081_v19, %v4043_v38  ;;  %v4709_v18 = vmul.f32 %v14494_v44, %v12010_v41  ;;  %v14627_v52 = vld [vmem:[#allocation41_spill] sm:$0xff]  ;;  %v14628_v29 = vld [vmem:[#allocation219_spill] sm:$0xff] }
 0x4ca   : > { %v5366_v9 = vadd.f32 %v5334_v48, %v5296_v20  ;;  %v4461_v40 = vadd.f32 %v4429_v25, %v4391_v26  ;;  %v4775_v42 = vmul.f32 %v14462_v7, %v14624_v60  ;;  %v4845_v31 = vmul.f32 %v14626_v30, %v14625_v61  ;;  %v14629_v48 = vld [vmem:[#allocation27_spill] sm:$0xff] }
 0x4cb   : > { %14623 = vst [vmem:[#allocation102_spill] sm:$0xff] %v12067_v10  ;;  %v3835_v59 = vadd.f32 %v3803_v36, %v3765_v45  ;;  %v4183_v15 = vadd.f32 %v4151_v32, %v4113_v50  ;;  %v4915_v3 = vmul.f32 %v14120_v5, %v14627_v52  ;;  %v4985_v25 = vmul.f32 %v14121_v37, %v14629_v48  ;;  %v14631_v10 = vld [vmem:[#allocation64_spill] sm:$0xff]  ;;  %v14632_v50 = vld [vmem:[#allocation66_spill] sm:$0xff] }
 0x4cc   : > { %v5436_v38 = vadd.f32 %v5404_v28, %v5366_v9  ;;  %v4531_v19 = vadd.f32 %v4499_v34, %v4461_v40  ;;  %v4807_v54 = vadd.f32 %v4775_v42, %v14628_v29  ;;  %v5055_v36 = vmul.f32 %v14171_v46, %v14631_v10  ;;  %v12090_v34 = vld [vmem:[#allocation4 + $0xc0] sm:$0xff] }
 0x4cd   : > { %v12082_v20 = vadd.f32 %v3873_v17, %v3835_v59  ;;  %v4253_v26 = vadd.f32 %v4221_v13, %v4183_v15  ;;  %v5125_v32 = vmul.f32 %v14172_v27, %v14632_v50  ;;  %v5195_v28 = vmul.f32 %v14173_v33, %v11989_v22  ;;  %14633 = vst [vmem:[#allocation63_spill] sm:$0xff] %v12090_v34  ;;  %v12092_v9 = vld [vmem:[#allocation4 + $0xc1] sm:$0xff] }
 0x4ce   : > { %v5506_v45 = vadd.f32 %v5474_v43, %v5436_v38  ;;  %v4601_v60 = vadd.f32 %v4569_v35, %v4531_v19  ;;  %v4877_v61 = vadd.f32 %v4845_v31, %v4807_v54  ;;  %14634 = vst [vmem:[#allocation34_spill] sm:$0xff] %v12092_v9  ;;  %v12094_v40 = vld [vmem:[#allocation4 + $0xc2] sm:$0xff]  ;;  %v5265_v13 = vmul.f32 %v14276_v2, %v11991_v1  ;;  %v14647_v1 = vld [vmem:[#allocation88_spill] sm:$0xff] }
 0x4cf   : > { %14630 = vst [vmem:[#allocation80_spill] sm:$0xff] %v12082_v20  ;;  %14635 = vst [vmem:[#allocation222_spill] sm:$0xff] %v12094_v40  ;;  %v12096_v17 = vadd.f32 %v4291_v12, %v4253_v26  ;;  %v5335_v10 = vmul.f32 %v14277_v63, %v12001_v24  ;;  %v5405_v31 = vmul.f32 %v14278_v6, %v12003_v62  ;;  %v12104_v43 = vld [vmem:[#allocation4 + $0xc3] sm:$0xff] }
 0x4d0   : > { %14637 = vst [vmem:[#allocation226_spill] sm:$0xff] %v12104_v43  ;;  %v12106_v35 = vld [vmem:[#allocation4 + $0xc4] sm:$0xff]  ;;  %v5576_v42 = vadd.f32 %v12016_v58, %v5506_v45  ;;  %v4671_v59 = vadd.f32 %v4639_v47, %v4601_v60  ;;  %v4947_v15 = vadd.f32 %v4915_v3, %v4877_v61  ;;  %v12111_v12 = vmul.f32 %v14235_v53, %v12008_v11 }
 0x4d1   : > { %14636 = vst [vmem:[#allocation30_spill] sm:$0xff] %v12096_v17  ;;  %14638 = vst [vmem:[#allocation28_spill] sm:$0xff] %v12106_v35  ;;  %v12113_v52 = vld [vmem:[#allocation4 + $0xc5] sm:$0xff]  ;;  %v12117_v38 = vmul.f32 %v14405_v8, %v12010_v41  ;;  %v2956_v19 = vmul.f32 %v14290_v0, %v12090_v34  ;;  %v3056_v29 = vmul.f32 %v14478_v16, %v12092_v9 }
 0x4d2   : > { %14639 = vst [vmem:[#allocation100_spill] sm:$0xff] %v12113_v52  ;;  %v3156_v58 = vmul.f32 %v14479_v23, %v12094_v40  ;;  %6977 = vmatprep.mubr.f32.mxu0 %v5576_v42  ;;  %v12125_v47 = vadd.f32 %v4709_v18, %v4671_v59  ;;  %v5017_v3 = vadd.f32 %v4985_v25, %v4947_v15  ;;  %v14641_v60 = vld [vmem:[#allocation71_spill] sm:$0xff]  ;;  %v14642_v18 = vld [vmem:[#allocation72_spill] sm:$0xff]  ;;  %v14643_v59 = vld [vmem:[#allocation73_spill] sm:$0xff] }
 0x4d3   : > { %v3256_v54 = vmul.f32 %v14480_v49, %v12104_v43  ;;  %v3356_v48 = vmul.f32 %v14450_v56, %v12106_v35  ;;  %v3088_v26 = vadd.f32 %v3056_v29, %v2956_v19  ;;  %v3456_v50 = vmul.f32 %v14452_v55, %v12113_v52  ;;  %v14645_v29 = vld [vmem:[#allocation44_spill] sm:$0xff]  ;;  %v14646_v62 = vld [vmem:[#allocation75_spill] sm:$0xff]  ;;  %v14649_v20 = vld [vmem:[#allocation90_spill] sm:$0xff] }
 0x4d4   : > { %14640 = vst [vmem:[#allocation225_spill] sm:$0xff] %v12125_v47  ;;  %v3524_v45 = vmul.f32 %v14482_v39, %v12090_v34  ;;  %v3594_v61 = vmul.f32 %v14641_v60, %v12092_v9  ;;  %v5087_v42 = vadd.f32 %v5055_v36, %v5017_v3  ;;  %v3664_v25 = vmul.f32 %v14642_v18, %v12094_v40  ;;  %v14644_v47 = vld [vmem:[#allocation74_spill] sm:$0xff]  ;;  %v14648_v36 = vld [vmem:[#allocation89_spill] sm:$0xff] }
 0x4d5   : > { %v3734_v15 = vmul.f32 %v14643_v59, %v12104_v43  ;;  %v3804_v41 = vmul.f32 %v14644_v47, %v12106_v35  ;;  %v3188_v19 = vadd.f32 %v3156_v58, %v3088_v26  ;;  %v3874_v24 = vmul.f32 %v14646_v62, %v12113_v52  ;;  %v14650_v26 = vld [vmem:[#allocation218_spill] sm:$0xff] }
 0x4d6   : > { %v3556_v11 = vadd.f32 %v3524_v45, %v14645_v29  ;;  %v3942_v22 = vmul.f32 %v14647_v1, %v12090_v34  ;;  %v5157_v17 = vadd.f32 %v5125_v32, %v5087_v42  ;;  %v4012_v3 = vmul.f32 %v14648_v36, %v12092_v9  ;;  %v14651_v29 = vld [vmem:[#allocation92_spill] sm:$0xff]  ;;  %v14652_v1 = vld [vmem:[#allocation93_spill] sm:$0xff] }
 0x4d7   : > { %v4082_v18 = vmul.f32 %v14649_v20, %v12094_v40  ;;  %v4152_v59 = vmul.f32 %v14618_v21, %v12104_v43  ;;  %v3288_v47 = vadd.f32 %v3256_v54, %v3188_v19  ;;  %v4222_v62 = vmul.f32 %v14651_v29, %v12106_v35  ;;  %v14653_v54 = vld [vmem:[#allocation232_spill] sm:$0xff] }
 0x4d8   : > { %v3626_v58 = vadd.f32 %v3594_v61, %v3556_v11  ;;  %v3974_v45 = vadd.f32 %v3942_v22, %v14650_v26  ;;  %v5227_v60 = vadd.f32 %v5195_v28, %v5157_v17  ;;  %v4292_v32 = vmul.f32 %v14652_v1, %v12113_v52  ;;  %v14654_v28 = vld [vmem:[#allocation85_spill] sm:$0xff] }
 0x4d9   : > { %v4360_v42 = vmul.f32 %v14620_v57, %v12090_v34  ;;  %v4430_v20 = vmul.f32 %v14621_v51, %v12092_v9  ;;  %v3388_v36 = vadd.f32 %v3356_v48, %v3288_v47  ;;  %v4500_v11 = vmul.f32 %v14522_v14, %v12094_v40  ;;  %v14656_v51 = vld [vmem:[#allocation99_spill] sm:$0xff] }
 0x4da   : > { %v3696_v55 = vadd.f32 %v3664_v25, %v3626_v58  ;;  %v4044_v21 = vadd.f32 %v4012_v3, %v3974_v45  ;;  %v5297_v22 = vadd.f32 %v5265_v13, %v5227_v60  ;;  %v4570_v17 = vmul.f32 %v14654_v28, %v12104_v43  ;;  %v14657_v60 = vld [vmem:[#allocation94_spill] sm:$0xff] }
 0x4db   : > { %v4392_v61 = vadd.f32 %v4360_v42, %v14653_v54  ;;  %v4640_v19 = vmul.f32 %v14592_v4, %v12106_v35  ;;  %v12170_v26 = vadd.f32 %v3456_v50, %v3388_v36  ;;  %v4776_v47 = vmul.f32 %v14462_v7, %v14656_v51  ;;  %v14658_v42 = vld [vmem:[#allocation65_spill] sm:$0xff]  ;;  %v14659_v4 = vld [vmem:[#allocation32_spill] sm:$0xff] }
 0x4dc   : > { %v3766_v57 = vadd.f32 %v3734_v15, %v3696_v55  ;;  %v4114_v1 = vadd.f32 %v4082_v18, %v4044_v21  ;;  %v5367_v48 = vadd.f32 %v5335_v10, %v5297_v22  ;;  %v4710_v13 = vmul.f32 %v14494_v44, %v12113_v52  ;;  %v14660_v18 = vld [vmem:[#allocation96_spill] sm:$0xff]  ;;  %v14661_v10 = vld [vmem:[#allocation97_spill] sm:$0xff] }
 0x4dd   : > { %14655 = vst [vmem:[#allocation213_spill] sm:$0xff] %v12170_v26  ;;  %v4462_v25 = vadd.f32 %v4430_v20, %v4392_v61  ;;  %v4846_v3 = vmul.f32 %v14626_v30, %v14657_v60  ;;  %v4808_v54 = vadd.f32 %v4776_v47, %v14658_v42  ;;  %v4916_v50 = vmul.f32 %v14120_v5, %v14659_v4  ;;  %v14663_v61 = vld [vmem:[#allocation46_spill] sm:$0xff] }
 0x4de   : > { %v3836_v58 = vadd.f32 %v3804_v41, %v3766_v57  ;;  %v4184_v45 = vadd.f32 %v4152_v59, %v4114_v1  ;;  %v5437_v55 = vadd.f32 %v5405_v31, %v5367_v48  ;;  %v4986_v51 = vmul.f32 %v14121_v37, %v14660_v18  ;;  %v12194_v59 = vld [vmem:[#allocation4 + $0xc8] sm:$0xff] }
 0x4df   : > { %v4532_v21 = vadd.f32 %v4500_v11, %v4462_v25  ;;  %v5056_v20 = vmul.f32 %v14171_v46, %v14661_v10  ;;  %v4878_v22 = vadd.f32 %v4846_v3, %v4808_v54  ;;  %v5126_v1 = vmul.f32 %v14172_v27, %v14663_v61  ;;  %14664 = vst [vmem:[#allocation95_spill] sm:$0xff] %v12194_v59  ;;  %v12196_v11 = vld [vmem:[#allocation4 + $0xc9] sm:$0xff] }
 0x4e0   : > { %v12185_v15 = vadd.f32 %v3874_v24, %v3836_v58  ;;  %v4254_v36 = vadd.f32 %v4222_v62, %v4184_v45  ;;  %v5507_v41 = vadd.f32 %v12111_v12, %v5437_v55  ;;  %v5196_v4 = vmul.f32 %v14173_v33, %v12090_v34  ;;  %14665 = vst [vmem:[#allocation56_spill] sm:$0xff] %v12196_v11  ;;  %v12198_v24 = vld [vmem:[#allocation4 + $0xca] sm:$0xff]  ;;  %v14681_v34 = vld [vmem:[#allocation90_spill] sm:$0xff] }
 0x4e1   : > { %v4602_v57 = vadd.f32 %v4570_v17, %v4532_v21  ;;  %v5266_v31 = vmul.f32 %v14276_v2, %v12092_v9  ;;  %14666 = vst [vmem:[#allocation221_spill] sm:$0xff] %v12198_v24  ;;  %v4948_v47 = vadd.f32 %v4916_v50, %v4878_v22  ;;  %v5336_v48 = vmul.f32 %v14277_v63, %v12094_v40  ;;  %v12206_v17 = vld [vmem:[#allocation4 + $0xcb] sm:$0xff] }
 0x4e2   : > { %14662 = vst [vmem:[#allocation228_spill] sm:$0xff] %v12185_v15  ;;  %v12200_v62 = vadd.f32 %v4292_v32, %v4254_v36  ;;  %v5406_v12 = vmul.f32 %v14278_v6, %v12104_v43  ;;  %14668 = vst [vmem:[#allocation78_spill] sm:$0xff] %v12206_v17  ;;  %v12208_v25 = vld [vmem:[#allocation4 + $0xcc] sm:$0xff]  ;;  %v5577_v60 = vadd.f32 %v12117_v38, %v5507_v41  ;;  %v14672_v36 = vld [vmem:[#allocation81_spill] sm:$0xff] }
 0x4e3   : > { %14669 = vst [vmem:[#allocation79_spill] sm:$0xff] %v12208_v25  ;;  %v4672_v3 = vadd.f32 %v4640_v19, %v4602_v57  ;;  %v5476_v58 = vmul.f32 %v14235_v53, %v12106_v35  ;;  %v12215_v32 = vmul.f32 %v14405_v8, %v12113_v52  ;;  %v12217_v45 = vld [vmem:[#allocation4 + $0xcd] sm:$0xff]  ;;  %v5018_v42 = vadd.f32 %v4986_v51, %v4948_v47  ;;  %v14674_v57 = vld [vmem:[#allocation102_spill] sm:$0xff] }
 0x4e4   : > { %14667 = vst [vmem:[#allocation77_spill] sm:$0xff] %v12200_v62  ;;  %14670 = vst [vmem:[#allocation70_spill] sm:$0xff] %v12217_v45  ;;  %v2957_v54 = vmul.f32 %v14290_v0, %v12194_v59  ;;  %v3057_v50 = vmul.f32 %v14478_v16, %v12196_v11  ;;  %v3157_v38 = vmul.f32 %v14479_v23, %v12198_v24  ;;  %6978 = vmatmul.mubr.f32.gmra.mrb[148].mxu0 %v5577_v60  ;;  %v14673_v61 = vld [vmem:[#allocation71_spill] sm:$0xff]  ;;  %v14675_v47 = vld [vmem:[#allocation72_spill] sm:$0xff] }
 0x4e5   : > { %v12225_v19 = vadd.f32 %v4710_v13, %v4672_v3  ;;  %v3257_v55 = vmul.f32 %v14480_v49, %v12206_v17  ;;  %v3357_v21 = vmul.f32 %v14450_v56, %v12208_v25  ;;  %v3525_v18 = vmul.f32 %v14482_v39, %v12194_v59  ;;  %v14676_v3 = vld [vmem:[#allocation73_spill] sm:$0xff]  ;;  %v14677_v52 = vld [vmem:[#allocation74_spill] sm:$0xff]  ;;  %v14682_v15 = vld [vmem:[#allocation91_spill] sm:$0xff] }
 0x4e6   : > { %v5088_v51 = vadd.f32 %v5056_v20, %v5018_v42  ;;  %v3089_v10 = vadd.f32 %v3057_v50, %v2957_v54  ;;  %v3457_v22 = vmul.f32 %v14672_v36, %v12217_v45  ;;  %v3595_v41 = vmul.f32 %v14673_v61, %v12196_v11  ;;  %v14678_v42 = vld [vmem:[#allocation75_spill] sm:$0xff]  ;;  %v14679_v50 = vld [vmem:[#allocation88_spill] sm:$0xff] }
 0x4e7   : > { %14671 = vst [vmem:[#allocation105_spill] sm:$0xff] %v12225_v19  ;;  %v3557_v13 = vadd.f32 %v3525_v18, %v14674_v57  ;;  %v3665_v60 = vmul.f32 %v14675_v47, %v12198_v24  ;;  %v3735_v19 = vmul.f32 %v14676_v3, %v12206_v17  ;;  %v3805_v35 = vmul.f32 %v14677_v52, %v12208_v25  ;;  %v14680_v18 = vld [vmem:[#allocation89_spill] sm:$0xff] }
 0x4e8   : > { %v5158_v43 = vadd.f32 %v5126_v1, %v5088_v51  ;;  %v3189_v20 = vadd.f32 %v3157_v38, %v3089_v10  ;;  %v3875_v54 = vmul.f32 %v14678_v42, %v12217_v45  ;;  %v3943_v40 = vmul.f32 %v14679_v50, %v12194_v59  ;;  %v14683_v1 = vld [vmem:[#allocation80_spill] sm:$0xff]  ;;  %v14684_v50 = vld [vmem:[#allocation93_spill] sm:$0xff]  ;;  %v14686_v42 = vld [vmem:[#allocation83_spill] sm:$0xff] }
 0x4e9   : > { %v3627_v9 = vadd.f32 %v3595_v41, %v3557_v13  ;;  %v4013_v57 = vmul.f32 %v14680_v18, %v12196_v11  ;;  %v4083_v62 = vmul.f32 %v14681_v34, %v12198_v24  ;;  %v4153_v3 = vmul.f32 %v14682_v15, %v12206_v17  ;;  %v14685_v13 = vld [vmem:[#allocation82_spill] sm:$0xff] }
 0x4ea   : > { %v5228_v26 = vadd.f32 %v5196_v4, %v5158_v43  ;;  %v3289_v52 = vadd.f32 %v3257_v55, %v3189_v20  ;;  %v3975_v38 = vadd.f32 %v3943_v40, %v14683_v1  ;;  %v4223_v51 = vmul.f32 %v14651_v29, %v12208_v25  ;;  %v14687_v4 = vld [vmem:[#allocation30_spill] sm:$0xff] }
 0x4eb   : > { %v3697_v10 = vadd.f32 %v3665_v60, %v3627_v9  ;;  %v4293_v41 = vmul.f32 %v14684_v50, %v12217_v45  ;;  %v4361_v18 = vmul.f32 %v14685_v13, %v12194_v59  ;;  %v4431_v34 = vmul.f32 %v14686_v42, %v12196_v11  ;;  %v14688_v60 = vld [vmem:[#allocation86_spill] sm:$0xff]  ;;  %v14690_v42 = vld [vmem:[#allocation37_spill] sm:$0xff] }
 0x4ec   : > { %v5298_v47 = vadd.f32 %v5266_v31, %v5228_v26  ;;  %v3389_v61 = vadd.f32 %v3357_v21, %v3289_v52  ;;  %v4045_v15 = vadd.f32 %v4013_v57, %v3975_v38  ;;  %v4501_v43 = vmul.f32 %v14522_v14, %v12198_v24  ;;  %v14691_v21 = vld [vmem:[#allocation212_spill] sm:$0xff] }
 0x4ed   : > { %v3767_v40 = vadd.f32 %v3735_v19, %v3697_v10  ;;  %v4393_v55 = vadd.f32 %v4361_v18, %v14687_v4  ;;  %v4571_v9 = vmul.f32 %v14654_v28, %v12206_v17  ;;  %v4641_v20 = vmul.f32 %v14688_v60, %v12208_v25  ;;  %v14692_v10 = vld [vmem:[#allocation36_spill] sm:$0xff]  ;;  %v14693_v60 = vld [vmem:[#allocation69_spill] sm:$0xff] }
 0x4ee   : > { %v5368_v1 = vadd.f32 %v5336_v48, %v5298_v47  ;;  %v12270_v50 = vadd.f32 %v3457_v22, %v3389_v61  ;;  %v4115_v13 = vadd.f32 %v4083_v62, %v4045_v15  ;;  %v4777_v52 = vmul.f32 %v14462_v7, %v14690_v42  ;;  %v14695_v62 = vld [vmem:[#allocation104_spill] sm:$0xff] }
 0x4ef   : > { %v3837_v26 = vadd.f32 %v3805_v35, %v3767_v40  ;;  %v4463_v31 = vadd.f32 %v4431_v34, %v4393_v55  ;;  %v4711_v19 = vmul.f32 %v14494_v44, %v12217_v45  ;;  %v4847_v18 = vmul.f32 %v14626_v30, %v14691_v21  ;;  %v14696_v34 = vld [vmem:[#allocation35_spill] sm:$0xff]  ;;  %v14697_v55 = vld [vmem:[#allocation50_spill] sm:$0xff]  ;;  %v12308_v21 = vld [vmem:[#allocation4 + $0xd4] sm:$0xff] }
 0x4f0   : > { %14689 = vst [vmem:[#allocation103_spill] sm:$0xff] %v12270_v50  ;;  %v5438_v57 = vadd.f32 %v5406_v12, %v5368_v1  ;;  %v4185_v38 = vadd.f32 %v4153_v3, %v4115_v13  ;;  %v4809_v4 = vadd.f32 %v4777_v52, %v14692_v10  ;;  %v4917_v48 = vmul.f32 %v14120_v5, %v14693_v60  ;;  %v12289_v3 = vld [vmem:[#allocation4 + $0xd0] sm:$0xff] }
 0x4f1   : > { %v12281_v22 = vadd.f32 %v3875_v54, %v3837_v26  ;;  %v4533_v15 = vadd.f32 %v4501_v43, %v4463_v31  ;;  %v4987_v35 = vmul.f32 %v14121_v37, %v14695_v62  ;;  %v5057_v61 = vmul.f32 %v14171_v46, %v14696_v34  ;;  %14698 = vst [vmem:[#allocation26_spill] sm:$0xff] %v12289_v3  ;;  %v12291_v13 = vld [vmem:[#allocation4 + $0xd1] sm:$0xff] }
 0x4f2   : > { %v5508_v47 = vadd.f32 %v5476_v58, %v5438_v57  ;;  %v4255_v42 = vadd.f32 %v4223_v51, %v4185_v38  ;;  %v4879_v40 = vadd.f32 %v4847_v18, %v4809_v4  ;;  %v5127_v12 = vmul.f32 %v14172_v27, %v14697_v55  ;;  %14699 = vst [vmem:[#allocation216_spill] sm:$0xff] %v12291_v13  ;;  %v12299_v58 = vld [vmem:[#allocation4 + $0xd2] sm:$0xff] }
 0x4f3   : > { %14694 = vst [vmem:[#allocation38_spill] sm:$0xff] %v12281_v22  ;;  %v4603_v60 = vadd.f32 %v4571_v9, %v4533_v15  ;;  %v5197_v54 = vmul.f32 %v14173_v33, %v12194_v59  ;;  %v5267_v43 = vmul.f32 %v14276_v2, %v12196_v11  ;;  %v5337_v1 = vmul.f32 %v14277_v63, %v12198_v24  ;;  %v12301_v51 = vld [vmem:[#allocation4 + $0xd3] sm:$0xff] }
 0x4f4   : > { %14700 = vst [vmem:[#allocation58_spill] sm:$0xff] %v12299_v58  ;;  %14701 = vst [vmem:[#allocation76_spill] sm:$0xff] %v12301_v51  ;;  %v5578_v52 = vadd.f32 %v12215_v32, %v5508_v47  ;;  %v12304_v26 = vadd.f32 %v4293_v41, %v4255_v42  ;;  %v4949_v31 = vadd.f32 %v4917_v48, %v4879_v40  ;;  %v12316_v4 = vld [vmem:[#allocation4 + $0xd5] sm:$0xff]  ;;  %v14706_v40 = vld [vmem:[#allocation71_spill] sm:$0xff] }
 0x4f5   : > { %v5407_v9 = vmul.f32 %v14278_v6, %v12206_v17  ;;  %14703 = vst [vmem:[#allocation231_spill] sm:$0xff] %v12308_v21  ;;  %v4673_v18 = vadd.f32 %v4641_v20, %v4603_v60  ;;  %v5477_v57 = vmul.f32 %v14235_v53, %v12208_v25  ;;  %v2958_v38 = vmul.f32 %v14290_v0, %v12289_v3  ;;  %v14707_v60 = vld [vmem:[#allocation72_spill] sm:$0xff]  ;;  %v14713_v11 = vld [vmem:[#allocation89_spill] sm:$0xff] }
 0x4f6   : > { %14702 = vst [vmem:[#allocation57_spill] sm:$0xff] %v12304_v26  ;;  %v3058_v10 = vmul.f32 %v14478_v16, %v12291_v13  ;;  %14704 = vst [vmem:[#allocation60_spill] sm:$0xff] %v12316_v4  ;;  %6980 = vmatprep.mubr.f32.mxu0 %v5578_v52  ;;  %v5019_v32 = vadd.f32 %v4987_v35, %v4949_v31  ;;  %v12320_v41 = vmul.f32 %v14405_v8, %v12217_v45  ;;  %v14712_v17 = vld [vmem:[#allocation88_spill] sm:$0xff] }
 0x4f7   : > { %v3158_v20 = vmul.f32 %v14479_v23, %v12299_v58  ;;  %v3258_v48 = vmul.f32 %v14480_v49, %v12301_v51  ;;  %v12326_v15 = vadd.f32 %v4711_v19, %v4673_v18  ;;  %v3358_v34 = vmul.f32 %v14450_v56, %v12308_v21  ;;  %v14708_v19 = vld [vmem:[#allocation213_spill] sm:$0xff] }
 0x4f8   : > { %v3090_v62 = vadd.f32 %v3058_v10, %v2958_v38  ;;  %v3526_v47 = vmul.f32 %v14482_v39, %v12289_v3  ;;  %v5089_v35 = vadd.f32 %v5057_v61, %v5019_v32  ;;  %v3458_v42 = vmul.f32 %v14672_v36, %v12316_v4  ;;  %v14709_v38 = vld [vmem:[#allocation73_spill] sm:$0xff]  ;;  %v14711_v61 = vld [vmem:[#allocation75_spill] sm:$0xff] }
 0x4f9   : > { %14705 = vst [vmem:[#allocation233_spill] sm:$0xff] %v12326_v15  ;;  %v3596_v55 = vmul.f32 %v14706_v40, %v12291_v13  ;;  %v3666_v52 = vmul.f32 %v14707_v60, %v12299_v58  ;;  %v3736_v10 = vmul.f32 %v14709_v38, %v12301_v51  ;;  %v14710_v15 = vld [vmem:[#allocation74_spill] sm:$0xff]  ;;  %v3876_v32 = vmul.f32 %v14711_v61, %v12316_v4 }
 0x4fa   : > { %v3190_v31 = vadd.f32 %v3158_v20, %v3090_v62  ;;  %v3558_v18 = vadd.f32 %v3526_v47, %v14708_v19  ;;  %v3806_v45 = vmul.f32 %v14710_v15, %v12308_v21  ;;  %v5159_v25 = vadd.f32 %v5127_v12, %v5089_v35  ;;  %v14714_v62 = vld [vmem:[#allocation90_spill] sm:$0xff]  ;;  %v14715_v19 = vld [vmem:[#allocation91_spill] sm:$0xff]  ;;  %v14716_v15 = vld [vmem:[#allocation228_spill] sm:$0xff] }
 0x4fb   : > { %v3944_v24 = vmul.f32 %v14712_v17, %v12289_v3  ;;  %v4014_v59 = vmul.f32 %v14713_v11, %v12291_v13  ;;  %v4084_v47 = vmul.f32 %v14714_v62, %v12299_v58  ;;  %v4154_v22 = vmul.f32 %v14715_v19, %v12301_v51  ;;  %v14717_v61 = vld [vmem:[#allocation82_spill] sm:$0xff]  ;;  %v14720_v19 = vld [vmem:[#allocation77_spill] sm:$0xff] }
 0x4fc   : > { %v3290_v26 = vadd.f32 %v3258_v48, %v3190_v31  ;;  %v3628_v20 = vadd.f32 %v3596_v55, %v3558_v18  ;;  %v5229_v50 = vadd.f32 %v5197_v54, %v5159_v25  ;;  %v4224_v35 = vmul.f32 %v14651_v29, %v12308_v21  ;;  %v14718_v48 = vld [vmem:[#allocation93_spill] sm:$0xff]  ;;  %v14719_v31 = vld [vmem:[#allocation83_spill] sm:$0xff] }
 0x4fd   : > { %v3976_v12 = vadd.f32 %v3944_v24, %v14716_v15  ;;  %v4362_v17 = vmul.f32 %v14717_v61, %v12289_v3  ;;  %v4294_v55 = vmul.f32 %v14718_v48, %v12316_v4  ;;  %v4432_v18 = vmul.f32 %v14719_v31, %v12291_v13  ;;  %v14723_v31 = vld [vmem:[#allocation63_spill] sm:$0xff] }
 0x4fe   : > { %v3390_v38 = vadd.f32 %v3358_v34, %v3290_v26  ;;  %v3698_v60 = vadd.f32 %v3666_v52, %v3628_v20  ;;  %v5299_v62 = vadd.f32 %v5267_v43, %v5229_v50  ;;  %v4502_v24 = vmul.f32 %v14522_v14, %v12299_v58  ;;  %v14722_v34 = vld [vmem:[#allocation86_spill] sm:$0xff] }
 0x4ff   : > { %v4046_v11 = vadd.f32 %v4014_v59, %v3976_v12  ;;  %v4394_v25 = vadd.f32 %v4362_v17, %v14720_v19  ;;  %v4572_v26 = vmul.f32 %v14654_v28, %v12301_v51  ;;  %v4642_v52 = vmul.f32 %v14722_v34, %v12308_v21  ;;  %v14724_v43 = vld [vmem:[#allocation34_spill] sm:$0xff] }
 0x500   : > { %v12365_v54 = vadd.f32 %v3458_v42, %v3390_v38  ;;  %v3768_v15 = vadd.f32 %v3736_v10, %v3698_v60  ;;  %v5369_v20 = vadd.f32 %v5337_v1, %v5299_v62  ;;  %v4778_v59 = vmul.f32 %v14462_v7, %v14723_v31  ;;  %v14725_v60 = vld [vmem:[#allocation222_spill] sm:$0xff] }
 0x501   : > { %v4116_v61 = vadd.f32 %v4084_v47, %v4046_v11  ;;  %v4464_v48 = vadd.f32 %v4432_v18, %v4394_v25  ;;  %v4712_v17 = vmul.f32 %v14494_v44, %v12316_v4  ;;  %v4848_v42 = vmul.f32 %v14626_v30, %v14724_v43  ;;  %v14728_v62 = vld [vmem:[#allocation226_spill] sm:$0xff]  ;;  %v14730_v18 = vld [vmem:[#allocation100_spill] sm:$0xff] }
 0x502   : > { %14721 = vst [vmem:[#allocation54_spill] sm:$0xff] %v12365_v54  ;;  %v3838_v50 = vadd.f32 %v3806_v45, %v3768_v15  ;;  %v4918_v38 = vmul.f32 %v14120_v5, %v14725_v60  ;;  %v5439_v10 = vadd.f32 %v5407_v9, %v5369_v20  ;;  %v14726_v54 = vld [vmem:[#allocation51_spill] sm:$0xff]  ;;  %v4988_v47 = vmul.f32 %v14121_v37, %v14728_v62  ;;  %v14729_v45 = vld [vmem:[#allocation28_spill] sm:$0xff]  ;;  %v12388_v9 = vld [vmem:[#allocation4 + $0xd8] sm:$0xff] }
 0x503   : > { %v4186_v19 = vadd.f32 %v4154_v22, %v4116_v61  ;;  %v4534_v12 = vadd.f32 %v4502_v24, %v4464_v48  ;;  %v4810_v1 = vadd.f32 %v4778_v59, %v14726_v54  ;;  %v5058_v31 = vmul.f32 %v14171_v46, %v14729_v45  ;;  %14731 = vst [vmem:[#allocation40_spill] sm:$0xff] %v12388_v9  ;;  %v12390_v22 = vld [vmem:[#allocation4 + $0xd9] sm:$0xff] }
 0x504   : > { %v12380_v11 = vadd.f32 %v3876_v32, %v3838_v50  ;;  %v5128_v25 = vmul.f32 %v14172_v27, %v14730_v18  ;;  %v5509_v15 = vadd.f32 %v5477_v57, %v5439_v10  ;;  %14732 = vst [vmem:[#allocation47_spill] sm:$0xff] %v12390_v22  ;;  %v5198_v61 = vmul.f32 %v14173_v33, %v12289_v3  ;;  %v12400_v57 = vld [vmem:[#allocation4 + $0xda] sm:$0xff] }
 0x505   : > { %v4256_v43 = vadd.f32 %v4224_v35, %v4186_v19  ;;  %v4604_v30 = vadd.f32 %v4572_v26, %v4534_v12  ;;  %v4880_v60 = vadd.f32 %v4848_v42, %v4810_v1  ;;  %v5268_v32 = vmul.f32 %v14276_v2, %v12291_v13  ;;  %14733 = vst [vmem:[#allocation55_spill] sm:$0xff] %v12400_v57  ;;  %v12402_v35 = vld [vmem:[#allocation4 + $0xdb] sm:$0xff] }
 0x506   : > { %14727 = vst [vmem:[#allocation84_spill] sm:$0xff] %v12380_v11  ;;  %v5338_v48 = vmul.f32 %v14277_v63, %v12299_v58  ;;  %v5408_v24 = vmul.f32 %v14278_v6, %v12301_v51  ;;  %14734 = vst [vmem:[#allocation59_spill] sm:$0xff] %v12402_v35  ;;  %v5579_v54 = vadd.f32 %v12320_v41, %v5509_v15  ;;  %v12409_v50 = vld [vmem:[#allocation4 + $0xdc] sm:$0xff] }
 0x507   : > { %v4674_v26 = vadd.f32 %v4642_v52, %v4604_v30  ;;  %v4950_v20 = vadd.f32 %v4918_v38, %v4880_v60  ;;  %v12407_v59 = vmul.f32 %v14235_v53, %v12308_v21  ;;  %14735 = vst [vmem:[#allocation42_spill] sm:$0xff] %v12409_v50  ;;  %v12411_v42 = vld [vmem:[#allocation4 + $0xdd] sm:$0xff]  ;;  %v12413_v10 = vadd.f32 %v4294_v55, %v4256_v43 }
 0x508   : > { %14736 = vst [vmem:[#allocation220_spill] sm:$0xff] %v12411_v42  ;;  %v12417_v19 = vmul.f32 %v14405_v8, %v12316_v4  ;;  %v2959_v12 = vmul.f32 %v14290_v0, %v12388_v9  ;;  %v3059_v30 = vmul.f32 %v14478_v16, %v12390_v22  ;;  %6981 = vmatmul.mubr.f32.gmra.mrb[150].mxu0 %v5579_v54  ;;  %v14740_v60 = vld [vmem:[#allocation73_spill] sm:$0xff]  ;;  %v14743_v4 = vld [vmem:[#allocation88_spill] sm:$0xff]  ;;  %v14746_v3 = vld [vmem:[#allocation90_spill] sm:$0xff] }
 0x509   : > { %14737 = vst [vmem:[#allocation39_spill] sm:$0xff] %v12413_v10  ;;  %v12423_v41 = vadd.f32 %v4712_v17, %v4674_v26  ;;  %v5020_v52 = vadd.f32 %v4988_v47, %v4950_v20  ;;  %v3159_v38 = vmul.f32 %v14479_v23, %v12400_v57  ;;  %v3259_v55 = vmul.f32 %v14480_v49, %v12402_v35  ;;  %v14739_v47 = vld [vmem:[#allocation72_spill] sm:$0xff]  ;;  %v14741_v20 = vld [vmem:[#allocation103_spill] sm:$0xff]  ;;  %v14745_v58 = vld [vmem:[#allocation89_spill] sm:$0xff] }
 0x50a   : > { %v3091_v1 = vadd.f32 %v3059_v30, %v2959_v12  ;;  %v3359_v62 = vmul.f32 %v14450_v56, %v12409_v50  ;;  %v3459_v45 = vmul.f32 %v14672_v36, %v12411_v42  ;;  %v3527_v18 = vmul.f32 %v14482_v39, %v12388_v9  ;;  %v14742_v30 = vld [vmem:[#allocation74_spill] sm:$0xff] }
 0x50b   : > { %14738 = vst [vmem:[#allocation68_spill] sm:$0xff] %v12423_v41  ;;  %v5090_v15 = vadd.f32 %v5058_v31, %v5020_v52  ;;  %v3597_v17 = vmul.f32 %v14706_v40, %v12390_v22  ;;  %v3667_v43 = vmul.f32 %v14739_v47, %v12400_v57  ;;  %v3737_v54 = vmul.f32 %v14740_v60, %v12402_v35  ;;  %v14744_v31 = vld [vmem:[#allocation75_spill] sm:$0xff] }
 0x50c   : > { %v3191_v26 = vadd.f32 %v3159_v38, %v3091_v1  ;;  %v3559_v12 = vadd.f32 %v3527_v18, %v14741_v20  ;;  %v3807_v41 = vmul.f32 %v14742_v30, %v12409_v50  ;;  %v3945_v21 = vmul.f32 %v14743_v4, %v12388_v9  ;;  %v14747_v1 = vld [vmem:[#allocation38_spill] sm:$0xff]  ;;  %v14748_v20 = vld [vmem:[#allocation91_spill] sm:$0xff] }
 0x50d   : > { %v5160_v51 = vadd.f32 %v5128_v25, %v5090_v15  ;;  %v3877_v52 = vmul.f32 %v14744_v31, %v12411_v42  ;;  %v4015_v13 = vmul.f32 %v14745_v58, %v12390_v22  ;;  %v4085_v10 = vmul.f32 %v14746_v3, %v12400_v57  ;;  %v14749_v15 = vld [vmem:[#allocation93_spill] sm:$0xff]  ;;  %v14750_v31 = vld [vmem:[#allocation82_spill] sm:$0xff] }
 0x50e   : > { %v3291_v11 = vadd.f32 %v3259_v55, %v3191_v26  ;;  %v3629_v38 = vadd.f32 %v3597_v17, %v3559_v12  ;;  %v3977_v18 = vadd.f32 %v3945_v21, %v14747_v1  ;;  %v4155_v30 = vmul.f32 %v14748_v20, %v12402_v35  ;;  %v14751_v55 = vld [vmem:[#allocation83_spill] sm:$0xff]  ;;  %v14752_v26 = vld [vmem:[#allocation57_spill] sm:$0xff] }
 0x50f   : > { %v5230_v60 = vadd.f32 %v5198_v61, %v5160_v51  ;;  %v4225_v25 = vmul.f32 %v14651_v29, %v12409_v50  ;;  %v4295_v4 = vmul.f32 %v14749_v15, %v12411_v42  ;;  %v4363_v58 = vmul.f32 %v14750_v31, %v12388_v9 }
 0x510   : > { %v3391_v47 = vadd.f32 %v3359_v62, %v3291_v11  ;;  %v3699_v40 = vadd.f32 %v3667_v43, %v3629_v38  ;;  %v4047_v3 = vadd.f32 %v4015_v13, %v3977_v18  ;;  %v4433_v17 = vmul.f32 %v14751_v55, %v12390_v22  ;;  %v14754_v43 = vld [vmem:[#allocation95_spill] sm:$0xff]  ;;  %v14755_v18 = vld [vmem:[#allocation56_spill] sm:$0xff] }
 0x511   : > { %v5300_v21 = vadd.f32 %v5268_v32, %v5230_v60  ;;  %v4395_v12 = vadd.f32 %v4363_v58, %v14752_v26  ;;  %v4503_v51 = vmul.f32 %v14522_v14, %v12400_v57  ;;  %v4573_v61 = vmul.f32 %v14654_v28, %v12402_v35  ;;  %v14756_v26 = vld [vmem:[#allocation101_spill] sm:$0xff] }
 0x512   : > { %v12468_v1 = vadd.f32 %v3459_v45, %v3391_v47  ;;  %v3769_v15 = vadd.f32 %v3737_v54, %v3699_v40  ;;  %v4117_v29 = vadd.f32 %v4085_v10, %v4047_v3  ;;  %v4643_v11 = vmul.f32 %v14722_v34, %v12409_v50  ;;  %v14757_v45 = vld [vmem:[#allocation221_spill] sm:$0xff] }
 0x513   : > { %v5370_v13 = vadd.f32 %v5338_v48, %v5300_v21  ;;  %v4465_v62 = vadd.f32 %v4433_v17, %v4395_v12  ;;  %v4713_v32 = vmul.f32 %v14494_v44, %v12411_v42  ;;  %v4779_v58 = vmul.f32 %v14462_v7, %v14754_v43  ;;  %v14758_v47 = vld [vmem:[#allocation225_spill] sm:$0xff]  ;;  %v14759_v48 = vld [vmem:[#allocation78_spill] sm:$0xff] }
 0x514   : > { %14753 = vst [vmem:[#allocation25_spill] sm:$0xff] %v12468_v1  ;;  %v3839_v60 = vadd.f32 %v3807_v41, %v3769_v15  ;;  %v4187_v38 = vadd.f32 %v4155_v30, %v4117_v29  ;;  %v4849_v28 = vmul.f32 %v14756_v26, %v14755_v18  ;;  %v4919_v40 = vmul.f32 %v14120_v5, %v14757_v45  ;;  %v14761_v1 = vld [vmem:[#allocation79_spill] sm:$0xff]  ;;  %v14762_v29 = vld [vmem:[#allocation70_spill] sm:$0xff] }
 0x515   : > { %v5440_v3 = vadd.f32 %v5408_v24, %v5370_v13  ;;  %v4535_v10 = vadd.f32 %v4503_v51, %v4465_v62  ;;  %v4811_v54 = vadd.f32 %v4779_v58, %v14758_v47  ;;  %v4989_v17 = vmul.f32 %v14121_v37, %v14759_v48  ;;  %v12492_v51 = vld [vmem:[#allocation4 + $0xe0] sm:$0xff] }
 0x516   : > { %v12483_v21 = vadd.f32 %v3877_v52, %v3839_v60  ;;  %v4257_v12 = vadd.f32 %v4225_v25, %v4187_v38  ;;  %v5059_v41 = vmul.f32 %v14171_v46, %v14761_v1  ;;  %v5129_v30 = vmul.f32 %v14172_v27, %v14762_v29  ;;  %14763 = vst [vmem:[#allocation223_spill] sm:$0xff] %v12492_v51  ;;  %v12494_v13 = vld [vmem:[#allocation4 + $0xe1] sm:$0xff] }
 0x517   : > { %v5510_v15 = vadd.f32 %v12407_v59, %v5440_v3  ;;  %v4605_v43 = vadd.f32 %v4573_v61, %v4535_v10  ;;  %v4881_v18 = vadd.f32 %v4849_v28, %v4811_v54  ;;  %v5199_v24 = vmul.f32 %v14173_v33, %v12388_v9  ;;  %14764 = vst [vmem:[#allocation234_spill] sm:$0xff] %v12494_v13  ;;  %v12496_v52 = vld [vmem:[#allocation4 + $0xe2] sm:$0xff] }
 0x518   : > { %14760 = vst [vmem:[#allocation229_spill] sm:$0xff] %v12483_v21  ;;  %14765 = vst [vmem:[#allocation236_spill] sm:$0xff] %v12496_v52  ;;  %v12498_v25 = vadd.f32 %v4295_v4, %v4257_v12  ;;  %v5269_v1 = vmul.f32 %v14276_v2, %v12390_v22  ;;  %v5339_v62 = vmul.f32 %v14277_v63, %v12400_v57  ;;  %v12506_v59 = vld [vmem:[#allocation4 + $0xe3] sm:$0xff]  ;;  %v14777_v22 = vld [vmem:[#allocation88_spill] sm:$0xff] }
 0x519   : > { %v5409_v28 = vmul.f32 %v14278_v6, %v12402_v35  ;;  %14767 = vst [vmem:[#allocation52_spill] sm:$0xff] %v12506_v59  ;;  %v12508_v61 = vld [vmem:[#allocation4 + $0xe4] sm:$0xff]  ;;  %v5580_v58 = vadd.f32 %v12417_v19, %v5510_v15  ;;  %v4675_v60 = vadd.f32 %v4643_v11, %v4605_v43  ;;  %v4951_v38 = vadd.f32 %v4919_v40, %v4881_v18 }
 0x51a   : > { %14766 = vst [vmem:[#allocation214_spill] sm:$0xff] %v12498_v25  ;;  %14768 = vst [vmem:[#allocation237_spill] sm:$0xff] %v12508_v61  ;;  %v12513_v4 = vmul.f32 %v14235_v53, %v12409_v50  ;;  %v12515_v45 = vld [vmem:[#allocation4 + $0xe5] sm:$0xff]  ;;  %v12519_v3 = vmul.f32 %v14405_v8, %v12411_v42  ;;  %v2960_v10 = vmul.f32 %v14290_v0, %v12492_v51 }
 0x51b   : > { %14769 = vst [vmem:[#allocation230_spill] sm:$0xff] %v12515_v45  ;;  %v3060_v47 = vmul.f32 %v14478_v16, %v12494_v13  ;;  %v3160_v19 = vmul.f32 %v14479_v23, %v12496_v52  ;;  %6983 = vmatprep.mubr.f32.mxu0 %v5580_v58  ;;  %v12527_v11 = vadd.f32 %v4713_v32, %v4675_v60  ;;  %v14771_v43 = vld [vmem:[#allocation71_spill] sm:$0xff]  ;;  %v14772_v32 = vld [vmem:[#allocation72_spill] sm:$0xff]  ;;  %v14773_v60 = vld [vmem:[#allocation73_spill] sm:$0xff] }
 0x51c   : > { %v5021_v40 = vadd.f32 %v4989_v17, %v4951_v38  ;;  %v3260_v54 = vmul.f32 %v14480_v49, %v12506_v59  ;;  %v3360_v48 = vmul.f32 %v14450_v56, %v12508_v61  ;;  %v3460_v29 = vmul.f32 %v14672_v36, %v12515_v45  ;;  %v14776_v35 = vld [vmem:[#allocation75_spill] sm:$0xff]  ;;  %v14779_v21 = vld [vmem:[#allocation90_spill] sm:$0xff] }
 0x51d   : > { %14770 = vst [vmem:[#allocation224_spill] sm:$0xff] %v12527_v11  ;;  %v3092_v12 = vadd.f32 %v3060_v47, %v2960_v10  ;;  %v3528_v15 = vmul.f32 %v14482_v39, %v12492_v51  ;;  %v3598_v18 = vmul.f32 %v14771_v43, %v12494_v13  ;;  %v3668_v17 = vmul.f32 %v14772_v32, %v12496_v52  ;;  %v14774_v11 = vld [vmem:[#allocation74_spill] sm:$0xff] }
 0x51e   : > { %v5091_v58 = vadd.f32 %v5059_v41, %v5021_v40  ;;  %v3738_v38 = vmul.f32 %v14773_v60, %v12506_v59  ;;  %v3808_v42 = vmul.f32 %v14774_v11, %v12508_v61  ;;  %v14775_v47 = vld [vmem:[#allocation54_spill] sm:$0xff]  ;;  %v3878_v57 = vmul.f32 %v14776_v35, %v12515_v45  ;;  %v14778_v41 = vld [vmem:[#allocation89_spill] sm:$0xff] }
 0x51f   : > { %v3192_v10 = vadd.f32 %v3160_v19, %v3092_v12  ;;  %v3560_v50 = vadd.f32 %v3528_v15, %v14775_v47  ;;  %v3946_v9 = vmul.f32 %v14777_v22, %v12492_v51  ;;  %v4016_v40 = vmul.f32 %v14778_v41, %v12494_v13  ;;  %v14780_v12 = vld [vmem:[#allocation84_spill] sm:$0xff]  ;;  %v14782_v22 = vld [vmem:[#allocation93_spill] sm:$0xff] }
 0x520   : > { %v5161_v25 = vadd.f32 %v5129_v30, %v5091_v58  ;;  %v4086_v32 = vmul.f32 %v14779_v21, %v12496_v52  ;;  %v4156_v60 = vmul.f32 %v14748_v20, %v12506_v59  ;;  %v14781_v47 = vld [vmem:[#allocation92_spill] sm:$0xff]  ;;  %v4296_v30 = vmul.f32 %v14782_v22, %v12515_v45 }
 0x521   : > { %v3292_v11 = vadd.f32 %v3260_v54, %v3192_v10  ;;  %v3630_v19 = vadd.f32 %v3598_v18, %v3560_v50  ;;  %v3978_v15 = vadd.f32 %v3946_v9, %v14780_v12  ;;  %v4226_v35 = vmul.f32 %v14781_v47, %v12508_v61  ;;  %v14783_v54 = vld [vmem:[#allocation39_spill] sm:$0xff] }
 0x522   : > { %v5231_v43 = vadd.f32 %v5199_v24, %v5161_v25  ;;  %v4364_v58 = vmul.f32 %v14750_v31, %v12492_v51  ;;  %v4434_v21 = vmul.f32 %v14751_v55, %v12494_v13  ;;  %v4504_v50 = vmul.f32 %v14522_v14, %v12496_v52  ;;  %v14784_v24 = vld [vmem:[#allocation85_spill] sm:$0xff] }
 0x523   : > { %v3392_v41 = vadd.f32 %v3360_v48, %v3292_v11  ;;  %v3700_v36 = vadd.f32 %v3668_v17, %v3630_v19  ;;  %v4048_v20 = vadd.f32 %v4016_v40, %v3978_v15  ;;  %v4574_v25 = vmul.f32 %v14784_v24, %v12506_v59  ;;  %v14785_v11 = vld [vmem:[#allocation26_spill] sm:$0xff] }
 0x524   : > { %v5301_v9 = vadd.f32 %v5269_v1, %v5231_v43  ;;  %v4396_v18 = vadd.f32 %v4364_v58, %v14783_v54  ;;  %v4644_v10 = vmul.f32 %v14722_v34, %v12508_v61  ;;  %v4714_v55 = vmul.f32 %v14494_v44, %v12515_v45  ;;  %v14787_v43 = vld [vmem:[#allocation216_spill] sm:$0xff]  ;;  %v14788_v54 = vld [vmem:[#allocation105_spill] sm:$0xff]  ;;  %v14789_v34 = vld [vmem:[#allocation58_spill] sm:$0xff] }
 0x525   : > { %v3770_v12 = vadd.f32 %v3738_v38, %v3700_v36  ;;  %v4118_v31 = vadd.f32 %v4086_v32, %v4048_v20  ;;  %v4780_v48 = vmul.f32 %v14462_v7, %v14785_v11  ;;  %v12576_v40 = vadd.f32 %v3460_v29, %v3392_v41  ;;  %v14790_v38 = vld [vmem:[#allocation76_spill] sm:$0xff]  ;;  %v14791_v11 = vld [vmem:[#allocation231_spill] sm:$0xff] }
 0x526   : > { %v5371_v17 = vadd.f32 %v5339_v62, %v5301_v9  ;;  %v4466_v1 = vadd.f32 %v4434_v21, %v4396_v18  ;;  %v4850_v19 = vmul.f32 %v14756_v26, %v14787_v43  ;;  %v4920_v36 = vmul.f32 %v14120_v5, %v14789_v34  ;;  %v14793_v9 = vld [vmem:[#allocation60_spill] sm:$0xff] }
 0x527   : > { %14786 = vst [vmem:[#allocation98_spill] sm:$0xff] %v12576_v40  ;;  %v3840_v15 = vadd.f32 %v3808_v42, %v3770_v12  ;;  %v4188_v58 = vadd.f32 %v4156_v60, %v4118_v31  ;;  %v4812_v24 = vadd.f32 %v4780_v48, %v14788_v54  ;;  %v4990_v44 = vmul.f32 %v14121_v37, %v14790_v38  ;;  %v12598_v18 = vld [vmem:[#allocation4 + $0xe9] sm:$0xff] }
 0x528   : > { %v5441_v20 = vadd.f32 %v5409_v28, %v5371_v17  ;;  %v4536_v32 = vadd.f32 %v4504_v50, %v4466_v1  ;;  %v5060_v62 = vmul.f32 %v14171_v46, %v14791_v11  ;;  %v5130_v42 = vmul.f32 %v14172_v27, %v14793_v9  ;;  %v12596_v50 = vld [vmem:[#allocation4 + $0xe8] sm:$0xff]  ;;  %14795 = vst [vmem:[#allocation227_spill] sm:$0xff] %v12598_v18  ;;  %v14802_v11 = vld [vmem:[#allocation81_spill] sm:$0xff] }
 0x529   : > { %v12587_v29 = vadd.f32 %v3878_v57, %v3840_v15  ;;  %v4258_v21 = vadd.f32 %v4226_v35, %v4188_v58  ;;  %v4882_v41 = vadd.f32 %v4850_v19, %v4812_v24  ;;  %v5200_v34 = vmul.f32 %v14173_v33, %v12492_v51  ;;  %14794 = vst [vmem:[#allocation29_spill] sm:$0xff] %v12596_v50  ;;  %v12600_v57 = vld [vmem:[#allocation4 + $0xea] sm:$0xff] }
 0x52a   : > { %v5511_v31 = vadd.f32 %v12513_v4, %v5441_v20  ;;  %v4606_v60 = vadd.f32 %v4574_v25, %v4536_v32  ;;  %v5270_v28 = vmul.f32 %v14276_v2, %v12494_v13  ;;  %14796 = vst [vmem:[#allocation215_spill] sm:$0xff] %v12600_v57  ;;  %v5340_v12 = vmul.f32 %v14277_v63, %v12496_v52  ;;  %v12608_v25 = vld [vmem:[#allocation4 + $0xeb] sm:$0xff]  ;;  %v14811_v13 = vld [vmem:[#allocation90_spill] sm:$0xff] }
 0x52b   : > { %14792 = vst [vmem:[#allocation45_spill] sm:$0xff] %v12587_v29  ;;  %v12602_v35 = vadd.f32 %v4296_v30, %v4258_v21  ;;  %v4952_v24 = vadd.f32 %v4920_v36, %v4882_v41  ;;  %v5410_v4 = vmul.f32 %v14278_v6, %v12506_v59  ;;  %14798 = vst [vmem:[#allocation43_spill] sm:$0xff] %v12608_v25  ;;  %v12610_v48 = vld [vmem:[#allocation4 + $0xec] sm:$0xff] }
 0x52c   : > { %14799 = vst [vmem:[#allocation33_spill] sm:$0xff] %v12610_v48  ;;  %v5581_v17 = vadd.f32 %v12519_v3, %v5511_v31  ;;  %v4676_v1 = vadd.f32 %v4644_v10, %v4606_v60  ;;  %v5480_v43 = vmul.f32 %v14235_v53, %v12508_v61  ;;  %v12617_v30 = vmul.f32 %v14405_v8, %v12515_v45  ;;  %v12619_v19 = vld [vmem:[#allocation4 + $0xed] sm:$0xff]  ;;  %v14804_v31 = vld [vmem:[#allocation25_spill] sm:$0xff] }
 0x52d   : > { %14797 = vst [vmem:[#allocation217_spill] sm:$0xff] %v12602_v35  ;;  %14800 = vst [vmem:[#allocation48_spill] sm:$0xff] %v12619_v19  ;;  %v5022_v15 = vadd.f32 %v4990_v44, %v4952_v24  ;;  %v2961_v58 = vmul.f32 %v14290_v0, %v12596_v50  ;;  %v3061_v54 = vmul.f32 %v14478_v16, %v12598_v18  ;;  %v14803_v41 = vld [vmem:[#allocation71_spill] sm:$0xff]  ;;  %v14805_v60 = vld [vmem:[#allocation72_spill] sm:$0xff] }
 0x52e   : > { %v3161_v3 = vmul.f32 %v14479_v23, %v12600_v57  ;;  %6984 = vmatmul.mubr.f32.gmra.mrb[152].mxu0 %v5581_v17  ;;  %v12627_v10 = vadd.f32 %v4714_v55, %v4676_v1  ;;  %v3261_v36 = vmul.f32 %v14480_v49, %v12608_v25  ;;  %v3361_v20 = vmul.f32 %v14450_v56, %v12610_v48  ;;  %v14806_v17 = vld [vmem:[#allocation73_spill] sm:$0xff]  ;;  %v14812_v35 = vld [vmem:[#allocation91_spill] sm:$0xff] }
 0x52f   : > { %v3529_v44 = vmul.f32 %v14482_v39, %v12596_v50  ;;  %v5092_v32 = vadd.f32 %v5060_v62, %v5022_v15  ;;  %v3093_v38 = vadd.f32 %v3061_v54, %v2961_v58  ;;  %v3461_v21 = vmul.f32 %v14802_v11, %v12619_v19  ;;  %v14808_v15 = vld [vmem:[#allocation75_spill] sm:$0xff]  ;;  %v14809_v54 = vld [vmem:[#allocation88_spill] sm:$0xff] }
 0x530   : > { %14801 = vst [vmem:[#allocation235_spill] sm:$0xff] %v12627_v10  ;;  %v3599_v9 = vmul.f32 %v14803_v41, %v12598_v18  ;;  %v3669_v24 = vmul.f32 %v14805_v60, %v12600_v57  ;;  %v3739_v1 = vmul.f32 %v14806_v17, %v12608_v25  ;;  %v14807_v10 = vld [vmem:[#allocation74_spill] sm:$0xff]  ;;  %v3879_v58 = vmul.f32 %v14808_v15, %v12619_v19 }
 0x531   : > { %v3561_v55 = vadd.f32 %v3529_v44, %v14804_v31  ;;  %v3809_v45 = vmul.f32 %v14807_v10, %v12610_v48  ;;  %v5162_v61 = vadd.f32 %v5130_v42, %v5092_v32  ;;  %v3193_v62 = vadd.f32 %v3161_v3, %v3093_v38  ;;  %v14810_v44 = vld [vmem:[#allocation89_spill] sm:$0xff] }
 0x532   : > { %v3947_v59 = vmul.f32 %v14809_v54, %v12596_v50  ;;  %v4017_v31 = vmul.f32 %v14810_v44, %v12598_v18  ;;  %v4087_v51 = vmul.f32 %v14811_v13, %v12600_v57  ;;  %v4157_v29 = vmul.f32 %v14812_v35, %v12608_v25  ;;  %v14813_v42 = vld [vmem:[#allocation229_spill] sm:$0xff]  ;;  %v14815_v54 = vld [vmem:[#allocation83_spill] sm:$0xff] }
 0x533   : > { %v3631_v52 = vadd.f32 %v3599_v9, %v3561_v55  ;;  %v5232_v17 = vadd.f32 %v5200_v34, %v5162_v61  ;;  %v3293_v10 = vadd.f32 %v3261_v36, %v3193_v62  ;;  %v4227_v32 = vmul.f32 %v14781_v47, %v12610_v48  ;;  %v14814_v55 = vld [vmem:[#allocation82_spill] sm:$0xff] }
 0x534   : > { %v3979_v3 = vadd.f32 %v3947_v59, %v14813_v42  ;;  %v4297_v9 = vmul.f32 %v14782_v22, %v12619_v19  ;;  %v4365_v44 = vmul.f32 %v14814_v55, %v12596_v50  ;;  %v4435_v13 = vmul.f32 %v14815_v54, %v12598_v18  ;;  %v14816_v34 = vld [vmem:[#allocation214_spill] sm:$0xff]  ;;  %v12672_v22 = vpop.f32.mrb[136].mxu0 }
 0x535   : > { %v3701_v38 = vadd.f32 %v3669_v24, %v3631_v52  ;;  %v5302_v15 = vadd.f32 %v5270_v28, %v5232_v17  ;;  %v3393_v40 = vadd.f32 %v3361_v20, %v3293_v10  ;;  %v4505_v61 = vmul.f32 %v14522_v14, %v12600_v57  ;;  %v14817_v52 = vld [vmem:[#allocation85_spill] sm:$0xff]  ;;  %v14818_v62 = vld [vmem:[#allocation86_spill] sm:$0xff]  ;;  %14819 = vst [vmem:[#allocation49_spill] sm:$0xff] %v12672_v22  ;;  %v14820_v28 = vld [vmem:[#allocation87_spill] sm:$0xff] }
 0x536   : > { %v4049_v35 = vadd.f32 %v4017_v31, %v3979_v3  ;;  %v4397_v36 = vadd.f32 %v4365_v44, %v14816_v34  ;;  %v4575_v24 = vmul.f32 %v14817_v52, %v12608_v25  ;;  %v4645_v42 = vmul.f32 %v14818_v62, %v12610_v48  ;;  %v14821_v20 = vld [vmem:[#allocation40_spill] sm:$0xff]  ;;  %v12678_v31 = vpop.f32.mrb[137].mxu0  ;;  %v14825_v22 = vld [vmem:[#allocation233_spill] sm:$0xff] }
 0x537   : > { %v3771_v59 = vadd.f32 %v3739_v1, %v3701_v38  ;;  %v5372_v55 = vadd.f32 %v5340_v12, %v5302_v15  ;;  %v4715_v10 = vmul.f32 %v14820_v28, %v12619_v19  ;;  %v4781_v17 = vmul.f32 %v14462_v7, %v14821_v20  ;;  %14822 = vst [vmem:[#allocation211_spill] sm:$0xff] %v12678_v31  ;;  %v14824_v38 = vld [vmem:[#allocation47_spill] sm:$0xff] }
 0x538   : > { %v4119_v47 = vadd.f32 %v4087_v51, %v4049_v35  ;;  %v12680_v1 = vadd.f32 %v3461_v21, %v3393_v40  ;;  %v4467_v3 = vadd.f32 %v4435_v13, %v4397_v36  ;;  %v4851_v34 = vmul.f32 %v14756_v26, %v14824_v38  ;;  %v14826_v51 = vld [vmem:[#allocation55_spill] sm:$0xff]  ;;  %v14829_v40 = vld [vmem:[#allocation42_spill] sm:$0xff]  ;;  %v14830_v36 = vld [vmem:[#allocation220_spill] sm:$0xff] }
 0x539   : > { %v3841_v44 = vadd.f32 %v3809_v45, %v3771_v59  ;;  %v5442_v62 = vadd.f32 %v5410_v4, %v5372_v55  ;;  %v4813_v12 = vadd.f32 %v4781_v17, %v14825_v22  ;;  %v4921_v35 = vmul.f32 %v14120_v5, %v14826_v51  ;;  %v14828_v20 = vld [vmem:[#allocation59_spill] sm:$0xff]  ;;  %v12697_v22 = vld [vmem:[#allocation4 + $0xf1] sm:$0xff] }
 0x53a   : > { %14823 = vst [vmem:[#allocation62_spill] sm:$0xff] %v12680_v1  ;;  %v4189_v52 = vadd.f32 %v4157_v29, %v4119_v47  ;;  %v4537_v28 = vadd.f32 %v4505_v61, %v4467_v3  ;;  %v4991_v31 = vmul.f32 %v14121_v37, %v14828_v20  ;;  %v5061_v45 = vmul.f32 %v14171_v46, %v14829_v40  ;;  %v12695_v29 = vld [vmem:[#allocation4 + $0xf0] sm:$0xff] }
 0x53b   : > { %v12687_v15 = vadd.f32 %v3879_v58, %v3841_v44  ;;  %v5512_v13 = vadd.f32 %v5480_v43, %v5442_v62  ;;  %v4883_v59 = vadd.f32 %v4851_v34, %v4813_v12  ;;  %v5131_v47 = vmul.f32 %v14172_v27, %v14830_v36  ;;  %v12705_v43 = vld [vmem:[#allocation4 + $0xf2] sm:$0xff] }
 0x53c   : > { %v4259_v21 = vadd.f32 %v4227_v32, %v4189_v52  ;;  %v4607_v4 = vadd.f32 %v4575_v24, %v4537_v28  ;;  %v5201_v58 = vmul.f32 %v14173_v33, %v12596_v50  ;;  %v5271_v55 = vmul.f32 %v14276_v2, %v12598_v18  ;;  %v12707_v32 = vld [vmem:[#allocation4 + $0xf3] sm:$0xff]  ;;  %v14845_v50 = vld [vmem:[#allocation91_spill] sm:$0xff] }
 0x53d   : > { %14827 = vst [vmem:[#allocation61_spill] sm:$0xff] %v12687_v15  ;;  %v5341_v61 = vmul.f32 %v14277_v63, %v12600_v57  ;;  %v5582_v52 = vadd.f32 %v12617_v30, %v5512_v13  ;;  %v4953_v17 = vadd.f32 %v4921_v35, %v4883_v59  ;;  %v5411_v24 = vmul.f32 %v14278_v6, %v12608_v25  ;;  %v12714_v28 = vld [vmem:[#allocation4 + $0xf4] sm:$0xff] }
 0x53e   : > { %v12710_v62 = vadd.f32 %v4297_v9, %v4259_v21  ;;  %v4677_v44 = vadd.f32 %v4645_v42, %v4607_v4  ;;  %v12718_v3 = vmul.f32 %v14235_v53, %v12610_v48  ;;  %v2962_v38 = vmul.f32 %v14290_v0, %v12695_v29  ;;  %v12724_v30 = vld [vmem:[#allocation4 + $0xf5] sm:$0xff]  ;;  %v12726_v9 = vpop.f32.mrb[138].mxu0 }
 0x53f   : > { %v3062_v34 = vmul.f32 %v14478_v16, %v12697_v22  ;;  %14832 = vst [vmem:[#allocation41_spill] sm:$0xff] %v12724_v30  ;;  %14833 = vst [vmem:[#allocation219_spill] sm:$0xff] %v12726_v9  ;;  %6986 = vmatprep.mubr.f32.mxu0 %v5582_v52  ;;  %v5023_v12 = vadd.f32 %v4991_v31, %v4953_v17  ;;  %v12730_v51 = vmul.f32 %v14405_v8, %v12619_v19  ;;  %v12736_v20 = vpop.f32.mrb[139].mxu0  ;;  %v14841_v19 = vld [vmem:[#allocation75_spill] sm:$0xff]  ;;  %v14842_v25 = vld [vmem:[#allocation88_spill] sm:$0xff] }
 0x540   : > { %14831 = vst [vmem:[#allocation67_spill] sm:$0xff] %v12710_v62  ;;  %v3162_v42 = vmul.f32 %v14479_v23, %v12705_v43  ;;  %v3262_v35 = vmul.f32 %v14480_v49, %v12707_v32  ;;  %14834 = vst [vmem:[#allocation27_spill] sm:$0xff] %v12736_v20  ;;  %v12738_v40 = vadd.f32 %v4715_v10, %v4677_v44  ;;  %v12750_v17 = vpop.f32.mrb[140].mxu0  ;;  %v14837_v44 = vld [vmem:[#allocation98_spill] sm:$0xff] }
 0x541   : > { %v3094_v13 = vadd.f32 %v3062_v34, %v2962_v38  ;;  %v3362_v21 = vmul.f32 %v14450_v56, %v12714_v28  ;;  %v3530_v31 = vmul.f32 %v14482_v39, %v12695_v29  ;;  %v5093_v59 = vadd.f32 %v5061_v45, %v5023_v12  ;;  %14836 = vst [vmem:[#allocation66_spill] sm:$0xff] %v12750_v17  ;;  %v14838_v34 = vld [vmem:[#allocation73_spill] sm:$0xff]  ;;  %v14839_v20 = vld [vmem:[#allocation74_spill] sm:$0xff]  ;;  %v12757_v12 = vpop.f32.mrb[141].mxu0 }
 0x542   : > { %14835 = vst [vmem:[#allocation64_spill] sm:$0xff] %v12738_v40  ;;  %v3462_v36 = vmul.f32 %v14802_v11, %v12724_v30  ;;  %v3600_v4 = vmul.f32 %v14803_v41, %v12697_v22  ;;  %v3670_v52 = vmul.f32 %v14805_v60, %v12705_v43  ;;  %v3740_v9 = vmul.f32 %v14838_v34, %v12707_v32  ;;  %v14843_v17 = vld [vmem:[#allocation89_spill] sm:$0xff] }
 0x543   : > { %v3194_v10 = vadd.f32 %v3162_v42, %v3094_v13  ;;  %v3562_v38 = vadd.f32 %v3530_v31, %v14837_v44  ;;  %v3810_v45 = vmul.f32 %v14839_v20, %v12714_v28  ;;  %14840 = vst [vmem:[#allocation44_spill] sm:$0xff] %v12757_v12  ;;  %v5163_v40 = vadd.f32 %v5131_v47, %v5093_v59  ;;  %v14844_v44 = vld [vmem:[#allocation90_spill] sm:$0xff]  ;;  %v14846_v12 = vld [vmem:[#allocation45_spill] sm:$0xff]  ;;  %v14847_v59 = vld [vmem:[#allocation92_spill] sm:$0xff] }
 0x544   : > { %v3880_v48 = vmul.f32 %v14841_v19, %v12724_v30  ;;  %v3948_v57 = vmul.f32 %v14842_v25, %v12695_v29  ;;  %v4018_v42 = vmul.f32 %v14843_v17, %v12697_v22  ;;  %v4088_v18 = vmul.f32 %v14844_v44, %v12705_v43  ;;  %v14848_v20 = vld [vmem:[#allocation82_spill] sm:$0xff] }
 0x545   : > { %v3294_v13 = vadd.f32 %v3262_v35, %v3194_v10  ;;  %v3632_v31 = vadd.f32 %v3600_v4, %v3562_v38  ;;  %v4158_v62 = vmul.f32 %v14845_v50, %v12707_v32  ;;  %v5233_v15 = vadd.f32 %v5201_v58, %v5163_v40  ;;  %v14849_v35 = vld [vmem:[#allocation93_spill] sm:$0xff] }
 0x546   : > { %v3980_v47 = vadd.f32 %v3948_v57, %v14846_v12  ;;  %v4228_v19 = vmul.f32 %v14847_v59, %v12714_v28  ;;  %v4366_v25 = vmul.f32 %v14848_v20, %v12695_v29  ;;  %v4298_v4 = vmul.f32 %v14849_v35, %v12724_v30  ;;  %v14850_v50 = vld [vmem:[#allocation217_spill] sm:$0xff] }
 0x547   : > { %v3394_v1 = vadd.f32 %v3362_v21, %v3294_v13  ;;  %v3702_v34 = vadd.f32 %v3670_v52, %v3632_v31  ;;  %v4436_v10 = vmul.f32 %v14815_v54, %v12697_v22  ;;  %v5303_v38 = vadd.f32 %v5271_v55, %v5233_v15  ;;  %v14852_v20 = vld [vmem:[#allocation85_spill] sm:$0xff]  ;;  %v14853_v52 = vld [vmem:[#allocation86_spill] sm:$0xff]  ;;  %v14854_v54 = vld [vmem:[#allocation223_spill] sm:$0xff] }
 0x548   : > { %v4050_v44 = vadd.f32 %v4018_v42, %v3980_v47  ;;  %v4398_v58 = vadd.f32 %v4366_v25, %v14850_v50  ;;  %v4506_v57 = vmul.f32 %v14522_v14, %v12705_v43  ;;  %v4576_v21 = vmul.f32 %v14852_v20, %v12707_v32  ;;  %v14855_v50 = vld [vmem:[#allocation87_spill] sm:$0xff]  ;;  %v14856_v42 = vld [vmem:[#allocation234_spill] sm:$0xff] }
 0x549   : > { %v12781_v40 = vadd.f32 %v3462_v36, %v3394_v1  ;;  %v3772_v12 = vadd.f32 %v3740_v9, %v3702_v34  ;;  %v4646_v13 = vmul.f32 %v14853_v52, %v12714_v28  ;;  %v5373_v31 = vadd.f32 %v5341_v61, %v5303_v38  ;;  %v14857_v9 = vld [vmem:[#allocation236_spill] sm:$0xff]  ;;  %v14861_v38 = vld [vmem:[#allocation230_spill] sm:$0xff] }
 0x54a   : > { %v4120_v35 = vadd.f32 %v4088_v18, %v4050_v44  ;;  %v4468_v59 = vadd.f32 %v4436_v10, %v4398_v58  ;;  %v4782_v15 = vmul.f32 %v14462_v7, %v14854_v54  ;;  %v4716_v25 = vmul.f32 %v14855_v50, %v12724_v30  ;;  %v14858_v52 = vld [vmem:[#allocation68_spill] sm:$0xff] }
 0x54b   : > { %14851 = vst [vmem:[#allocation218_spill] sm:$0xff] %v12781_v40  ;;  %v3842_v55 = vadd.f32 %v3810_v45, %v3772_v12  ;;  %v4852_v1 = vmul.f32 %v14756_v26, %v14856_v42  ;;  %v4922_v36 = vmul.f32 %v14120_v5, %v14857_v9  ;;  %v5443_v34 = vadd.f32 %v5411_v24, %v5373_v31  ;;  %v14859_v44 = vld [vmem:[#allocation52_spill] sm:$0xff]  ;;  %v14860_v45 = vld [vmem:[#allocation237_spill] sm:$0xff] }
 0x54c   : > { %v4190_v47 = vadd.f32 %v4158_v62, %v4120_v35  ;;  %v4538_v40 = vadd.f32 %v4506_v57, %v4468_v59  ;;  %v4814_v61 = vadd.f32 %v4782_v15, %v14858_v52  ;;  %v4992_v54 = vmul.f32 %v14121_v37, %v14859_v44  ;;  %v12805_v62 = vld [vmem:[#allocation4 + $0xf8] sm:$0xff] }
 0x54d   : > { %v12796_v18 = vadd.f32 %v3880_v48, %v3842_v55  ;;  %v5062_v10 = vmul.f32 %v14171_v46, %v14860_v45  ;;  %v5132_v58 = vmul.f32 %v14172_v27, %v14861_v38  ;;  %v5513_v12 = vadd.f32 %v12718_v3, %v5443_v34  ;;  %v12807_v59 = vld [vmem:[#allocation4 + $0xf9] sm:$0xff]  ;;  %v12832_v34 = vpop.f32.mrb[142].mxu0 }
 0x54e   : > { %v4260_v42 = vadd.f32 %v4228_v19, %v4190_v47  ;;  %v4608_v9 = vadd.f32 %v4576_v21, %v4538_v40  ;;  %v4884_v24 = vadd.f32 %v4852_v1, %v4814_v61  ;;  %v5202_v48 = vmul.f32 %v14173_v33, %v12695_v29  ;;  %v12819_v19 = vld [vmem:[#allocation4 + $0xfa] sm:$0xff]  ;;  %14862 = vst [vmem:[#allocation232_spill] sm:$0xff] %v12832_v34 }
 0x54f   : > { %v5272_v35 = vmul.f32 %v14276_v2, %v12697_v22  ;;  %v5342_v57 = vmul.f32 %v14277_v63, %v12705_v43  ;;  %v12817_v52 = vmul.f32 %v14278_v6, %v12707_v32  ;;  %v12821_v3 = vld [vmem:[#allocation4 + $0xfb] sm:$0xff]  ;;  %v5583_v40 = vadd.f32 %v12730_v51, %v5513_v12 }
 0x550   : > { %v4678_v21 = vadd.f32 %v4646_v13, %v4608_v9  ;;  %v4954_v31 = vadd.f32 %v4922_v36, %v4884_v24  ;;  %v12826_v15 = vmul.f32 %v14235_v53, %v12714_v28  ;;  %v12828_v55 = vld [vmem:[#allocation4 + $0xfc] sm:$0xff]  ;;  %v12834_v47 = vadd.f32 %v4298_v4, %v4260_v42  ;;  %v12844_v36 = vpop.f32.mrb[143].mxu0 }
 0x551   : > { %v12830_v1 = vld [vmem:[#allocation4 + $0xfd] sm:$0xff]  ;;  %v12838_v61 = vmul.f32 %v14405_v8, %v12724_v30  ;;  %v2963_v51 = vmul.f32 %v14290_v0, %v12805_v62  ;;  %v3063_v13 = vmul.f32 %v14478_v16, %v12807_v59  ;;  %14863 = vst [vmem:[#allocation99_spill] sm:$0xff] %v12844_v36  ;;  %6987 = vmatmul.mubr.f32.gmra.mrb[154].mxu0 %v5583_v40 }
 0x552   : > { %v12846_v44 = vadd.f32 %v4716_v25, %v4678_v21  ;;  %v5024_v45 = vadd.f32 %v4992_v54, %v4954_v31  ;;  %v3163_v4 = vmul.f32 %v14479_v23, %v12819_v19  ;;  %v3263_v38 = vmul.f32 %v14480_v49, %v12821_v3  ;;  %v14865_v54 = vld [vmem:[#allocation73_spill] sm:$0xff]  ;;  %v14866_v40 = vld [vmem:[#allocation62_spill] sm:$0xff] }
 0x553   : > { %v3095_v12 = vadd.f32 %v3063_v13, %v2963_v51  ;;  %v3363_v42 = vmul.f32 %v14450_v56, %v12828_v55  ;;  %v3463_v0 = vmul.f32 %v14802_v11, %v12830_v1  ;;  %v3531_v16 = vmul.f32 %v14482_v39, %v12805_v62  ;;  %v14867_v56 = vld [vmem:[#allocation74_spill] sm:$0xff]  ;;  %v14868_v11 = vld [vmem:[#allocation88_spill] sm:$0xff] }
 0x554   : > { %14864 = vst [vmem:[#allocation94_spill] sm:$0xff] %v12846_v44  ;;  %v5094_v9 = vadd.f32 %v5062_v10, %v5024_v45  ;;  %v3601_v25 = vmul.f32 %v14803_v41, %v12807_v59  ;;  %v3671_v23 = vmul.f32 %v14805_v60, %v12819_v19  ;;  %v3741_v49 = vmul.f32 %v14865_v54, %v12821_v3  ;;  %v14869_v10 = vld [vmem:[#allocation75_spill] sm:$0xff]  ;;  %v14870_v60 = vld [vmem:[#allocation90_spill] sm:$0xff] }
 0x555   : > { %v3195_v24 = vadd.f32 %v3163_v4, %v3095_v12  ;;  %v3563_v21 = vadd.f32 %v3531_v16, %v14866_v40  ;;  %v3811_v31 = vmul.f32 %v14867_v56, %v12828_v55  ;;  %v3949_v51 = vmul.f32 %v14868_v11, %v12805_v62  ;;  %v14871_v12 = vld [vmem:[#allocation61_spill] sm:$0xff]  ;;  %v14872_v40 = vld [vmem:[#allocation91_spill] sm:$0xff]  ;;  %v14873_v11 = vld [vmem:[#allocation92_spill] sm:$0xff] }
 0x556   : > { %v5164_v39 = vadd.f32 %v5132_v58, %v5094_v9  ;;  %v3881_v13 = vmul.f32 %v14869_v10, %v12830_v1  ;;  %v4019_v41 = vmul.f32 %v14843_v17, %v12807_v59  ;;  %v4089_v45 = vmul.f32 %v14870_v60, %v12819_v19  ;;  %v14874_v9 = vld [vmem:[#allocation93_spill] sm:$0xff]  ;;  %v14875_v36 = vld [vmem:[#allocation82_spill] sm:$0xff] }
 0x557   : > { %v3295_v54 = vadd.f32 %v3263_v38, %v3195_v24  ;;  %v3633_v4 = vadd.f32 %v3601_v25, %v3563_v21  ;;  %v3981_v16 = vadd.f32 %v3949_v51, %v14871_v12  ;;  %v4159_v56 = vmul.f32 %v14872_v40, %v12821_v3  ;;  %v14876_v38 = vld [vmem:[#allocation83_spill] sm:$0xff] }
 0x558   : > { %v5234_v34 = vadd.f32 %v5202_v48, %v5164_v39  ;;  %v4229_v58 = vmul.f32 %v14873_v11, %v12828_v55  ;;  %v4299_v10 = vmul.f32 %v14874_v9, %v12830_v1  ;;  %v4367_v17 = vmul.f32 %v14875_v36, %v12805_v62  ;;  %v14877_v21 = vld [vmem:[#allocation67_spill] sm:$0xff]  ;;  %v14878_v36 = vld [vmem:[#allocation86_spill] sm:$0xff] }
 0x559   : > { %v3395_v44 = vadd.f32 %v3363_v42, %v3295_v54  ;;  %v3703_v30 = vadd.f32 %v3671_v23, %v3633_v4  ;;  %v4051_v60 = vadd.f32 %v4019_v41, %v3981_v16  ;;  %v4437_v25 = vmul.f32 %v14876_v38, %v12807_v59 }
 0x55a   : > { %v5304_v24 = vadd.f32 %v5272_v35, %v5234_v34  ;;  %v4399_v51 = vadd.f32 %v4367_v17, %v14877_v21  ;;  %v4507_v48 = vmul.f32 %v14522_v14, %v12819_v19  ;;  %v4577_v39 = vmul.f32 %v14852_v20, %v12821_v3  ;;  %v14879_v35 = vld [vmem:[#allocation29_spill] sm:$0xff]  ;;  %v14880_v14 = vld [vmem:[#allocation227_spill] sm:$0xff] }
 0x55b   : > { %v3495_v12 = vadd.f32 %v3463_v0, %v3395_v44  ;;  %v3773_v40 = vadd.f32 %v3741_v49, %v3703_v30  ;;  %v4121_v11 = vadd.f32 %v4089_v45, %v4051_v60  ;;  %v4647_v42 = vmul.f32 %v14878_v36, %v12828_v55  ;;  %v14881_v17 = vld [vmem:[#allocation215_spill] sm:$0xff]  ;;  %v14882_v49 = vld [vmem:[#allocation224_spill] sm:$0xff] }
 0x55c   : > { %v5374_v23 = vadd.f32 %v5342_v57, %v5304_v24  ;;  %v4469_v41 = vadd.f32 %v4437_v25, %v4399_v51  ;;  %v4717_v54 = vmul.f32 %v14855_v50, %v12830_v1  ;;  %v4783_v34 = vmul.f32 %v14462_v7, %v14879_v35  ;;  %v14883_v45 = vld [vmem:[#allocation43_spill] sm:$0xff]  ;;  %v14884_v24 = vld [vmem:[#allocation33_spill] sm:$0xff] }
 0x55d   : > { %v3843_v4 = vadd.f32 %v3811_v31, %v3773_v40  ;;  %v4191_v16 = vadd.f32 %v4159_v56, %v4121_v11  ;;  %v4853_v9 = vmul.f32 %v14756_v26, %v14880_v14  ;;  %v4923_v30 = vmul.f32 %v14120_v5, %v14881_v17  ;;  %v14885_v56 = vld [vmem:[#allocation48_spill] sm:$0xff]  ;;  %v14889_v14 = vld [vmem:[#allocation114_spill] sm:$0xff] }
 0x55e   : > { %v5444_v44 = vadd.f32 %v12817_v52, %v5374_v23  ;;  %v4539_v0 = vadd.f32 %v4507_v48, %v4469_v41  ;;  %v4815_v57 = vadd.f32 %v4783_v34, %v14882_v49  ;;  %v4993_v60 = vmul.f32 %v14121_v37, %v14883_v45  ;;  %v14892_v45 = vld [vmem:[#allocation115_spill] sm:$0xff] }
 0x55f   : > { %v3913_v38 = vadd.f32 %v3881_v13, %v3843_v4  ;;  %v4261_v25 = vadd.f32 %v4229_v58, %v4191_v16  ;;  %v5063_v31 = vmul.f32 %v14171_v46, %v14884_v24  ;;  %v5133_v21 = vmul.f32 %v14172_v27, %v14885_v56  ;;  %v14887_v4 = vld [vmem:[#allocation106_spill] sm:$0xff] }
 0x560   : > { %v5514_v51 = vadd.f32 %v12826_v15, %v5444_v44  ;;  %v4609_v40 = vadd.f32 %v4577_v39, %v4539_v0  ;;  %v4885_v11 = vadd.f32 %v4853_v9, %v4815_v57  ;;  %v5203_v52 = vmul.f32 %v14173_v33, %v12805_v62  ;;  %v14886_v39 = vld [vmem:[#allocation218_spill] sm:$0xff]  ;;  %v14890_v0 = vld [vmem:[#allocation107_spill] sm:$0xff] }
 0x561   : > { %v4331_v48 = vadd.f32 %v4299_v10, %v4261_v25  ;;  %v5273_v23 = vmul.f32 %v14276_v2, %v12807_v59  ;;  %v5343_v13 = vmul.f32 %v14277_v63, %v12819_v19  ;;  %v5413_v58 = vmul.f32 %v14278_v6, %v12821_v3  ;;  %v14888_v10 = vld [vmem:[#allocation118_spill] sm:$0xff]  ;;  %v14891_v57 = vld [vmem:[#allocation119_spill] sm:$0xff] }
 0x562   : > { %v5584_v41 = vadd.f32 %v12838_v61, %v5514_v51  ;;  %v4679_v35 = vadd.f32 %v4647_v42, %v4609_v40  ;;  %v4955_v34 = vadd.f32 %v4923_v30, %v4885_v11  ;;  %v5483_v15 = vmul.f32 %v14235_v53, %v12828_v55  ;;  %v14894_v51 = vld [vmem:[#allocation108_spill] sm:$0xff] }
 0x563   : > { %v3564_v33 = vadd.f32 %v14887_v4, %v14886_v39  ;;  %v3982_v16 = vadd.f32 %v14888_v10, %v12796_v18  ;;  %v4400_v9 = vadd.f32 %v14889_v14, %v12834_v47  ;;  %v4784_v17 = vmul.f32 %v14462_v7, %v12695_v29  ;;  %v14893_v47 = vld [vmem:[#allocation235_spill] sm:$0xff]  ;;  %v14895_v40 = vld [vmem:[#allocation120_spill] sm:$0xff] }
 0x564   : > { %6989 = vmatprep.mubr.f32.mxu0 %v5584_v41  ;;  %v12929_v44 = vadd.f32 %v4717_v54, %v4679_v35  ;;  %v5025_v61 = vadd.f32 %v4993_v60, %v4955_v34  ;;  %v5553_v42 = vmul.f32 %v14405_v8, %v12830_v1  ;;  %v4854_v30 = vmul.f32 %v14756_v26, %v12697_v22  ;;  %v14896_v41 = vld [vmem:[#allocation116_spill] sm:$0xff] }
 0x565   : > { %v3634_v49 = vadd.f32 %v14890_v0, %v3564_v33  ;;  %v4052_v18 = vadd.f32 %v14891_v57, %v3982_v16  ;;  %v4470_v25 = vadd.f32 %v14892_v45, %v4400_v9  ;;  %v4816_v24 = vadd.f32 %v4784_v17, %v14893_v47  ;;  %v14897_v16 = vld [vmem:[#allocation109_spill] sm:$0xff]  ;;  %v14900_v57 = vld [vmem:[#allocation112_spill] sm:$0xff]  ;;  %v14901_v45 = vld [vmem:[#allocation130_spill] sm:$0xff] }
 0x566   : > { %v5095_v56 = vadd.f32 %v5063_v31, %v5025_v61  ;;  %v4924_v29 = vmul.f32 %v14120_v5, %v12705_v43  ;;  %v4994_v54 = vmul.f32 %v14121_v37, %v12707_v32  ;;  %v5064_v60 = vmul.f32 %v14171_v46, %v12714_v28  ;;  %v14898_v32 = vld [vmem:[#allocation122_spill] sm:$0xff]  ;;  %v14899_v61 = vld [vmem:[#allocation121_spill] sm:$0xff] }
 0x567   : > { %v3704_v22 = vadd.f32 %v14894_v51, %v3634_v49  ;;  %v4122_v11 = vadd.f32 %v14895_v40, %v4052_v18  ;;  %v4540_v35 = vadd.f32 %v14896_v41, %v4470_v25  ;;  %v4886_v34 = vadd.f32 %v4854_v30, %v4816_v24  ;;  %v14902_v30 = vld [vmem:[#allocation129_spill] sm:$0xff]  ;;  %v14903_v47 = vld [vmem:[#allocation110_spill] sm:$0xff] }
 0x568   : > { %v5165_v39 = vadd.f32 %v5133_v21, %v5095_v56  ;;  %v3565_v33 = vadd.f32 %v14887_v4, %v3495_v12  ;;  %v3983_v31 = vadd.f32 %v14888_v10, %v3913_v38  ;;  %v4401_v43 = vadd.f32 %v14889_v14, %v4331_v48  ;;  %v14904_v4 = vld [vmem:[#allocation123_spill] sm:$0xff]  ;;  %v14905_v24 = vld [vmem:[#allocation125_spill] sm:$0xff] }
 0x569   : > { %v3774_v9 = vadd.f32 %v14897_v16, %v3704_v22  ;;  %v4192_v17 = vadd.f32 %v14898_v32, %v4122_v11  ;;  %v4610_v28 = vadd.f32 %v14899_v61, %v4540_v35  ;;  %v4956_v0 = vadd.f32 %v4924_v29, %v4886_v34  ;;  %v14906_v22 = vld [vmem:[#allocation113_spill] sm:$0xff]  ;;  %v14907_v11 = vld [vmem:[#allocation131_spill] sm:$0xff]  ;;  %v14913_v61 = vld [vmem:[#allocation132_spill] sm:$0xff] }
 0x56a   : > { %v5235_v49 = vadd.f32 %v5203_v52, %v5165_v39  ;;  %v3635_v18 = vadd.f32 %v14900_v57, %v3565_v33  ;;  %v4053_v25 = vadd.f32 %v14901_v45, %v3983_v31  ;;  %v4471_v21 = vadd.f32 %v14902_v30, %v4401_v43  ;;  %v14908_v29 = vld [vmem:[#allocation133_spill] sm:$0xff]  ;;  %v14909_v35 = vld [vmem:[#allocation111_spill] sm:$0xff]  ;;  %v14910_v39 = vld [vmem:[#allocation124_spill] sm:$0xff] }
 0x56b   : > { %v3844_v12 = vadd.f32 %v14903_v47, %v3774_v9  ;;  %v4262_v38 = vadd.f32 %v14904_v4, %v4192_v17  ;;  %v4680_v48 = vadd.f32 %v14905_v24, %v4610_v28  ;;  %v5026_v56 = vadd.f32 %v4994_v54, %v4956_v0  ;;  %v14911_v43 = vld [vmem:[#allocation41_spill] sm:$0xff]  ;;  %v14915_v0 = vld [vmem:[#allocation126_spill] sm:$0xff] }
 0x56c   : > { %v5305_v51 = vadd.f32 %v5273_v23, %v5235_v49  ;;  %v3705_v40 = vadd.f32 %v14906_v22, %v3635_v18  ;;  %v4123_v41 = vadd.f32 %v14907_v11, %v4053_v25  ;;  %v4541_v52 = vadd.f32 %v14908_v29, %v4471_v21  ;;  %v14912_v32 = vld [vmem:[#allocation117_spill] sm:$0xff]  ;;  %v14914_v23 = vld [vmem:[#allocation136_spill] sm:$0xff]  ;;  %v14916_v25 = vld [vmem:[#allocation127_spill] sm:$0xff] }
 0x56d   : > { %v3914_v34 = vadd.f32 %v14909_v35, %v3844_v12  ;;  %v4332_v33 = vadd.f32 %v14910_v39, %v4262_v38  ;;  %v5096_v31 = vadd.f32 %v5064_v60, %v5026_v56  ;;  %v5134_v16 = vmul.f32 %v14172_v27, %v14911_v43  ;;  %v14918_v12 = vld [vmem:[#allocation138_spill] sm:$0xff]  ;;  %v14919_v38 = vld [vmem:[#allocation137_spill] sm:$0xff]  ;;  %v14923_v11 = vld [vmem:[#allocation139_spill] sm:$0xff] }
 0x56e   : > { %v5375_v9 = vadd.f32 %v5343_v13, %v5305_v51  ;;  %v3775_v17 = vadd.f32 %v14912_v32, %v3705_v40  ;;  %v4193_v54 = vadd.f32 %v14913_v61, %v4123_v41  ;;  %v4611_v28 = vadd.f32 %v14914_v23, %v4541_v52  ;;  %v14917_v13 = vld [vmem:[#allocation134_spill] sm:$0xff]  ;;  %v14921_v51 = vld [vmem:[#allocation128_spill] sm:$0xff] }
 0x56f   : > { %v12971_v49 = vadd.f32 %v14915_v0, %v4680_v48  ;;  %v5166_v57 = vadd.f32 %v5134_v16, %v5096_v31  ;;  %v4785_v18 = vmul.f32 %v14462_v7, %v12805_v62  ;;  %v4855_v60 = vmul.f32 %v14756_v26, %v12807_v59  ;;  %v14920_v48 = vld [vmem:[#allocation64_spill] sm:$0xff]  ;;  %v12998_v16 = vpop.f32.mrb[144].mxu0 }
 0x570   : > { %v5445_v45 = vadd.f32 %v5413_v58, %v5375_v9  ;;  %v3845_v30 = vadd.f32 %v14916_v25, %v3775_v17  ;;  %v4263_v21 = vadd.f32 %v14917_v13, %v4193_v54  ;;  %v4925_v47 = vmul.f32 %v14120_v5, %v12819_v19  ;;  %v14922_v58 = vld [vmem:[#allocation135_spill] sm:$0xff]  ;;  %v14926_v9 = vld [vmem:[#allocation140_spill] sm:$0xff]  ;;  %v14927_v17 = vld [vmem:[#allocation146_spill] sm:$0xff] }
 0x571   : > { %v5236_v4 = vadd.f32 %v14918_v12, %v5166_v57  ;;  %v4681_v24 = vadd.f32 %v14919_v38, %v4611_v28  ;;  %v4817_v56 = vadd.f32 %v4785_v18, %v14920_v48  ;;  %v4995_v7 = vmul.f32 %v14121_v37, %v12821_v3  ;;  %v14924_v3 = vld [vmem:[#allocation94_spill] sm:$0xff]  ;;  %v14930_v28 = vld [vmem:[#allocation155_spill] sm:$0xff]  ;;  %v14936_v48 = vld [vmem:[#allocation157_spill] sm:$0xff] }
 0x572   : > { %v5515_v62 = vadd.f32 %v5483_v15, %v5445_v45  ;;  %v3915_v59 = vadd.f32 %v14921_v51, %v3845_v30  ;;  %v4333_v22 = vadd.f32 %v14922_v58, %v4263_v21  ;;  %v5065_v40 = vmul.f32 %v14171_v46, %v12828_v55  ;;  %v14925_v15 = vld [vmem:[#allocation164_spill] sm:$0xff]  ;;  %v14931_v57 = vld [vmem:[#allocation142_spill] sm:$0xff]  ;;  %v14932_v45 = vld [vmem:[#allocation149_spill] sm:$0xff] }
 0x573   : > { %v5306_v41 = vadd.f32 %v14923_v11, %v5236_v4  ;;  %v4887_v19 = vadd.f32 %v4855_v60, %v4817_v56  ;;  %v5135_v29 = vmul.f32 %v14172_v27, %v12830_v1  ;;  %v3984_v52 = vadd.f32 %v14888_v10, %v3914_v34  ;;  %v13003_v1 = vpop.f32.mrb[145].mxu0  ;;  %v14933_v30 = vld [vmem:[#allocation181_spill] sm:$0xff]  ;;  %v14934_v21 = vld [vmem:[#allocation147_spill] sm:$0xff]  ;;  %v14939_v11 = vld [vmem:[#allocation150_spill] sm:$0xff] }
 0x574   : > { %v5585_v35 = vadd.f32 %v5553_v42, %v5515_v62  ;;  %v4402_v39 = vadd.f32 %v14889_v14, %v4332_v33  ;;  %v4818_v31 = vadd.f32 %v14925_v15, %v14924_v3  ;;  %v3985_v43 = vadd.f32 %v14888_v10, %v3915_v59  ;;  %v14928_v42 = vld [vmem:[#allocation145_spill] sm:$0xff]  ;;  %v14935_v4 = vld [vmem:[#allocation167_spill] sm:$0xff]  ;;  %v14937_v62 = vld [vmem:[#allocation186_spill] sm:$0xff] }
 0x575   : > { %v5376_v55 = vadd.f32 %v14926_v9, %v5306_v41  ;;  %v4957_v32 = vadd.f32 %v4925_v47, %v4887_v19  ;;  %v4054_v61 = vadd.f32 %v14927_v17, %v3984_v52  ;;  %v4403_v54 = vadd.f32 %v14889_v14, %v4333_v22  ;;  %v14929_v33 = vld [vmem:[#allocation165_spill] sm:$0xff]  ;;  %v14938_v59 = vld [vmem:[#allocation143_spill] sm:$0xff]  ;;  %v14940_v41 = vld [vmem:[#allocation182_spill] sm:$0xff] }
 0x576   : > { %6990 = vmatmul.mubr.f32.gmra.mrb[156].mxu0 %v5585_v35  ;;  %v4472_v34 = vadd.f32 %v14928_v42, %v4402_v39  ;;  %v4888_v23 = vadd.f32 %v14929_v33, %v4818_v31  ;;  %v4055_v0 = vadd.f32 %v14930_v28, %v3985_v43  ;;  %v4819_v10 = vadd.f32 %v14925_v15, %v12929_v44  ;;  %v14942_v35 = vld [vmem:[#allocation169_spill] sm:$0xff]  ;;  %v14943_v3 = vld [vmem:[#allocation158_spill] sm:$0xff]  ;;  %v14944_v43 = vld [vmem:[#allocation188_spill] sm:$0xff] }
 0x577   : > { %v5446_v18 = vadd.f32 %v14931_v57, %v5376_v55  ;;  %v5027_v60 = vadd.f32 %v4995_v7, %v4957_v32  ;;  %v4124_v25 = vadd.f32 %v14932_v45, %v4054_v61  ;;  %v4473_v13 = vadd.f32 %v14933_v30, %v4403_v54  ;;  %v14941_v7 = vld [vmem:[#allocation148_spill] sm:$0xff]  ;;  %v14946_v61 = vld [vmem:[#allocation151_spill] sm:$0xff]  ;;  %v14951_v57 = vld [vmem:[#allocation190_spill] sm:$0xff] }
 0x578   : > { %v4542_v47 = vadd.f32 %v14934_v21, %v4472_v34  ;;  %v4958_v38 = vadd.f32 %v14935_v4, %v4888_v23  ;;  %v4125_v56 = vadd.f32 %v14936_v48, %v4055_v0  ;;  %v4889_v51 = vadd.f32 %v14937_v62, %v4819_v10  ;;  %v14945_v55 = vld [vmem:[#allocation144_spill] sm:$0xff]  ;;  %v14947_v42 = vld [vmem:[#allocation183_spill] sm:$0xff]  ;;  %v14954_v21 = vld [vmem:[#allocation154_spill] sm:$0xff] }
 0x579   : > { %v5516_v58 = vadd.f32 %v14938_v59, %v5446_v18  ;;  %v5097_v22 = vadd.f32 %v5065_v40, %v5027_v60  ;;  %v4194_v44 = vadd.f32 %v14939_v11, %v4124_v25  ;;  %v4543_v19 = vadd.f32 %v14940_v41, %v4473_v13  ;;  %v14948_v40 = vld [vmem:[#allocation153_spill] sm:$0xff]  ;;  %v14949_v23 = vld [vmem:[#allocation171_spill] sm:$0xff]  ;;  %v14952_v45 = vld [vmem:[#allocation152_spill] sm:$0xff] }
 0x57a   : > { %v4612_v52 = vadd.f32 %v14941_v7, %v4542_v47  ;;  %v5028_v39 = vadd.f32 %v14942_v35, %v4958_v38  ;;  %v4195_v31 = vadd.f32 %v14943_v3, %v4125_v56  ;;  %v4959_v9 = vadd.f32 %v14944_v43, %v4889_v51  ;;  %v14950_v0 = vld [vmem:[#allocation159_spill] sm:$0xff]  ;;  %v14953_v30 = vld [vmem:[#allocation184_spill] sm:$0xff]  ;;  %v14955_v4 = vld [vmem:[#allocation173_spill] sm:$0xff] }
 0x57b   : > { %v5586_v32 = vadd.f32 %v14945_v55, %v5516_v58  ;;  %v5167_v17 = vadd.f32 %v5135_v29, %v5097_v22  ;;  %v4264_v54 = vadd.f32 %v14946_v61, %v4194_v44  ;;  %v4613_v34 = vadd.f32 %v14947_v42, %v4543_v19  ;;  %v14956_v48 = vld [vmem:[#allocation180_spill] sm:$0xff]  ;;  %v14958_v59 = vld [vmem:[#allocation141_spill] sm:$0xff]  ;;  %v14960_v41 = vld [vmem:[#allocation166_spill] sm:$0xff] }
 0x57c   : > { %v4682_v33 = vadd.f32 %v14948_v40, %v4612_v52  ;;  %v5098_v28 = vadd.f32 %v14949_v23, %v5028_v39  ;;  %v4265_v10 = vadd.f32 %v14950_v0, %v4195_v31  ;;  %v5029_v18 = vadd.f32 %v14951_v57, %v4959_v9  ;;  %v14957_v62 = vld [vmem:[#allocation192_spill] sm:$0xff]  ;;  %v14961_v35 = vld [vmem:[#allocation194_spill] sm:$0xff]  ;;  %v14963_v9 = vld [vmem:[#allocation185_spill] sm:$0xff] }
 0x57d   : > { %6992 = vmatprep.mubr.f32.mxu0 %v5586_v32  ;;  %v5237_v60 = vadd.f32 %v14918_v12, %v5167_v17  ;;  %v4334_v25 = vadd.f32 %v14952_v45, %v4264_v54  ;;  %v4683_v13 = vadd.f32 %v14953_v30, %v4613_v34  ;;  %v4820_v29 = vadd.f32 %v14925_v15, %v12971_v49  ;;  %v14959_v22 = vld [vmem:[#allocation156_spill] sm:$0xff]  ;;  %v14964_v55 = vld [vmem:[#allocation201_spill] sm:$0xff]  ;;  %v14966_v54 = vld [vmem:[#allocation175_spill] sm:$0xff] }
 0x57e   : > { %v4752_v47 = vadd.f32 %v14954_v21, %v4682_v33  ;;  %v5168_v38 = vadd.f32 %v14955_v4, %v5098_v28  ;;  %v4335_v56 = vadd.f32 %v14956_v48, %v4265_v10  ;;  %v5099_v51 = vadd.f32 %v14957_v62, %v5029_v18  ;;  %v13048_v3 = vld [vmem:[#allocation4 + $0x12b] sm:$0xff]  ;;  %v14967_v40 = vld [vmem:[#allocation206_spill] sm:$0xff]  ;;  %v14968_v23 = vld [vmem:[#allocation53_spill] sm:$0xff] }
 0x57f   : > { %v4751_v58 = vadd.f32 %v14958_v59, %v4681_v24  ;;  %v5307_v11 = vadd.f32 %v14959_v22, %v5237_v60  ;;  %v4404_v44 = vadd.f32 %v14889_v14, %v4334_v25  ;;  %v4890_v19 = vadd.f32 %v14960_v41, %v4820_v29  ;;  %v14962_v31 = vld [vmem:[#allocation160_spill] sm:$0xff]  ;;  %v14969_v0 = vld [vmem:[#allocation161_spill] sm:$0xff]  ;;  %v14970_v57 = vld [vmem:[#allocation202_spill] sm:$0xff] }
 0x580   : > { %v4822_v7 = vadd.f32 %v14925_v15, %v4752_v47  ;;  %v5238_v49 = vadd.f32 %v14918_v12, %v5168_v38  ;;  %v4405_v52 = vadd.f32 %v14889_v14, %v4335_v56  ;;  %v5169_v39 = vadd.f32 %v14961_v35, %v5099_v51  ;;  %v14965_v17 = vld [vmem:[#allocation168_spill] sm:$0xff]  ;;  %v14971_v60 = vld [vmem:[#allocation170_spill] sm:$0xff]  ;;  %v14974_v47 = vld [vmem:[#allocation207_spill] sm:$0xff] }
 0x581   : > { %v5377_v43 = vadd.f32 %v14962_v31, %v5307_v11  ;;  %v4753_v24 = vadd.f32 %v14963_v9, %v4683_v13  ;;  %v4474_v32 = vadd.f32 %v14964_v55, %v4404_v44  ;;  %v4960_v61 = vadd.f32 %v14965_v17, %v4890_v19  ;;  %v13058_v28 = vld [vmem:[#allocation4 + $0x12c] sm:$0xff]  ;;  %v14976_v56 = vld [vmem:[#allocation162_spill] sm:$0xff]  ;;  %v14979_v41 = vld [vmem:[#allocation177_spill] sm:$0xff] }
 0x582   : > { %v5308_v42 = vadd.f32 %v14966_v54, %v5238_v49  ;;  %v5239_v34 = vadd.f32 %v14918_v12, %v5169_v39  ;;  %v4892_v33 = vadd.f32 %v14967_v40, %v4822_v7  ;;  %v4475_v14 = vadd.f32 %v14968_v23, %v4405_v52  ;;  %v14972_v30 = vld [vmem:[#allocation176_spill] sm:$0xff]  ;;  %v14975_v38 = vld [vmem:[#allocation31_spill] sm:$0xff]  ;;  %v14984_v17 = vld [vmem:[#allocation174_spill] sm:$0xff] }
 0x583   : > { %v5447_v10 = vadd.f32 %v14969_v0, %v5377_v43  ;;  %v4544_v18 = vadd.f32 %v14970_v57, %v4474_v32  ;;  %v5030_v45 = vadd.f32 %v14971_v60, %v4960_v61  ;;  %v4583_v25 = vmul.f32 %v14852_v20, %v13048_v3  ;;  %v14973_v29 = vld [vmem:[#allocation196_spill] sm:$0xff]  ;;  %v14977_v51 = vld [vmem:[#allocation203_spill] sm:$0xff]  ;;  %v14980_v20 = vld [vmem:[#allocation197_spill] sm:$0xff] }
 0x584   : > { %v5378_v13 = vadd.f32 %v14972_v30, %v5308_v42  ;;  %v5309_v21 = vadd.f32 %v14973_v29, %v5239_v34  ;;  %v4962_v4 = vadd.f32 %v14974_v47, %v4892_v33  ;;  %v4545_v48 = vadd.f32 %v14975_v38, %v4475_v14  ;;  %v14978_v22 = vld [vmem:[#allocation172_spill] sm:$0xff]  ;;  %v14982_v31 = vld [vmem:[#allocation163_spill] sm:$0xff]  ;;  %v14985_v54 = vld [vmem:[#allocation178_spill] sm:$0xff] }
 0x585   : > { %v5517_v62 = vadd.f32 %v14976_v56, %v5447_v10  ;;  %v4614_v59 = vadd.f32 %v14977_v51, %v4544_v18  ;;  %v5100_v11 = vadd.f32 %v14978_v22, %v5030_v45  ;;  %v4653_v44 = vmul.f32 %v14878_v36, %v13058_v28  ;;  %v14981_v49 = vld [vmem:[#allocation208_spill] sm:$0xff]  ;;  %v14986_v36 = vld [vmem:[#allocation198_spill] sm:$0xff]  ;;  %v14987_v18 = vld [vmem:[#allocation179_spill] sm:$0xff] }
 0x586   : > { %v5448_v19 = vadd.f32 %v14979_v41, %v5378_v13  ;;  %v5379_v7 = vadd.f32 %v14980_v20, %v5309_v21  ;;  %v5032_v52 = vadd.f32 %v14981_v49, %v4962_v4  ;;  %v4615_v35 = vadd.f32 %v4583_v25, %v4545_v48  ;;  %v13077_v39 = vld [vmem:[#allocation4 + $0x12d] sm:$0xff]  ;;  %v7831_v40 = vld [vmem:[#allocation4 + $0x122] sm:$0xff]  ;;  %v14989_v30 = vld [vmem:[#allocation205_spill] sm:$0xff] }
 0x587   : > { %v5587_v43 = vadd.f32 %v14982_v31, %v5517_v62  ;;  %v4823_v9 = vadd.f32 %v14925_v15, %v4753_v24  ;;  %v14983_v55 = vld [vmem:[#allocation204_spill] sm:$0xff]  ;;  %v5170_v61 = vadd.f32 %v14984_v17, %v5100_v11  ;;  %v5348_v33 = vmul.f32 %v7831_v40, %v14277_v63  ;;  %v14988_v45 = vld [vmem:[#allocation199_spill] sm:$0xff]  ;;  %v14990_v29 = vld [vmem:[#allocation209_spill] sm:$0xff] }
 0x588   : > { %v4684_v32 = vadd.f32 %v14983_v55, %v4614_v59  ;;  %v5518_v42 = vadd.f32 %v14985_v54, %v5448_v19  ;;  %v5449_v34 = vadd.f32 %v14986_v36, %v5379_v7  ;;  %v4685_v23 = vadd.f32 %v4653_v44, %v4615_v35  ;;  %v7832_v10 = vld [vmem:[#allocation4 + $0x129] sm:$0xff]  ;;  %v14991_v47 = vld [vmem:[#allocation210_spill] sm:$0xff]  ;;  %v4826_v31 = vld [vmem:[#allocation4 + $0x131] sm:$0xff] }
 0x589   : > { %6993 = vmatmul.mubr.f32.gmra.mrb[158].mxu0 %v5587_v43  ;;  %v5240_v14 = vadd.f32 %v14918_v12, %v5170_v61  ;;  %v4723_v0 = vmul.f32 %v14855_v50, %v13077_v39  ;;  %v4821_v24 = vadd.f32 %v14925_v15, %v4751_v58  ;;  %v4861_v57 = vmul.f32 %v7832_v10, %v14756_v26  ;;  %v14992_v48 = vld [vmem:[#allocation187_spill] sm:$0xff]  ;;  %v14993_v50 = vld [vmem:[#allocation200_spill] sm:$0xff] }
 0x58a   : > { %v5588_v60 = vadd.f32 %v14987_v18, %v5518_v42  ;;  %v5519_v25 = vadd.f32 %v14988_v45, %v5449_v34  ;;  %v4754_v13 = vadd.f32 %v14989_v30, %v4684_v32  ;;  %v5102_v21 = vadd.f32 %v14990_v29, %v5032_v52  ;;  %v7833_v51 = vld [vmem:[#allocation4 + $0x125] sm:$0xff]  ;;  %v14994_v52 = vld [vmem:[#allocation189_spill] sm:$0xff] }
 0x58b   : > { %v5310_v4 = vadd.f32 %v14991_v47, %v5240_v14  ;;  %v4755_v38 = vadd.f32 %v4723_v0, %v4685_v23  ;;  %v4891_v56 = vadd.f32 %v14992_v48, %v4821_v24  ;;  %v4893_v62 = vadd.f32 %v4861_v57, %v4823_v9  ;;  %v7834_v22 = vld [vmem:[#allocation4 + $0x123] sm:$0xff]  ;;  %v4896_v17 = vld [vmem:[#allocation4 + $0x132] sm:$0xff] }
 0x58c   : > { %6995 = vmatprep.mubr.f32.mxu0 %v5588_v60  ;;  %v5589_v58 = vadd.f32 %v14993_v50, %v5519_v25  ;;  %v5140_v59 = vmul.f32 %v7833_v51, %v14172_v27  ;;  %v5418_v11 = vmul.f32 %v7834_v22, %v14278_v6  ;;  %v7835_v44 = vld [vmem:[#allocation4 + $0x12a] sm:$0xff]  ;;  %v5558_v49 = vmul.f32 %v7833_v51, %v14405_v8  ;;  %v4966_v0 = vld [vmem:[#allocation4 + $0x133] sm:$0xff] }
 0x58d   : > { %v4931_v41 = vmul.f32 %v7835_v44, %v14120_v5  ;;  %v5380_v19 = vadd.f32 %v5348_v33, %v5310_v4  ;;  %v7836_v20 = vld [vmem:[#allocation4 + $0x124] sm:$0xff]  ;;  %v4961_v35 = vadd.f32 %v14994_v52, %v4891_v56  ;;  %v4824_v43 = vadd.f32 %v14925_v15, %v4754_v13  ;;  %v14996_v57 = vld [vmem:[#allocation193_spill] sm:$0xff] }
 0x58e   : > { %v5488_v7 = vmul.f32 %v7836_v20, %v14235_v53  ;;  %6996 = vmatmul.mubr.f32.gmra.mrb[160].mxu0 %v5589_v58  ;;  %v5172_v9 = vadd.f32 %v5140_v59, %v5102_v21  ;;  %v5001_v32 = vmul.f32 %v14121_v37, %v13048_v3  ;;  %v4825_v54 = vadd.f32 %v14925_v15, %v4755_v38  ;;  %v14995_v42 = vld [vmem:[#allocation191_spill] sm:$0xff]  ;;  %v5036_v30 = vld [vmem:[#allocation4 + $0x134] sm:$0xff] }
 0x58f   : > { %v4963_v55 = vadd.f32 %v4931_v41, %v4893_v62  ;;  %v5450_v61 = vadd.f32 %v5418_v11, %v5380_v19  ;;  %v5031_v36 = vadd.f32 %v14995_v42, %v4961_v35  ;;  %v5071_v34 = vmul.f32 %v14171_v46, %v13058_v28  ;;  %v4827_v21 = vld [vmem:[#allocation4 + $0x139] sm:$0xff] }
 0x590   : > { %v5141_v33 = vmul.f32 %v14172_v27, %v13077_v39  ;;  %v5279_v23 = vmul.f32 %v7832_v10, %v14276_v2  ;;  %v4862_v14 = vmul.f32 %v14756_v26, %v4826_v31  ;;  %v5349_v60 = vmul.f32 %v7835_v44, %v14277_v63  ;;  %v14997_v10 = vld [vmem:[#allocation195_spill] sm:$0xff]  ;;  %v5106_v56 = vld [vmem:[#allocation4 + $0x135] sm:$0xff] }
 0x591   : > { %v5033_v40 = vadd.f32 %v5001_v32, %v4963_v55  ;;  %v5520_v24 = vadd.f32 %v5488_v7, %v5450_v61  ;;  %v5101_v18 = vadd.f32 %v14996_v57, %v5031_v36  ;;  %v4932_v15 = vmul.f32 %v14120_v5, %v4896_v17  ;;  %v4897_v59 = vld [vmem:[#allocation4 + $0x13a] sm:$0xff] }
 0x592   : > { %v4894_v25 = vadd.f32 %v4862_v14, %v4824_v43  ;;  %v5242_v13 = vadd.f32 %v14918_v12, %v5172_v9  ;;  %v5280_v29 = vmul.f32 %v14276_v2, %v4826_v31  ;;  %v5419_v38 = vmul.f32 %v14278_v6, %v13048_v3  ;;  %v13134_v9 = vpop.f32.mrb[146].mxu0 }
 0x593   : > { %v5103_v45 = vadd.f32 %v5071_v34, %v5033_v40  ;;  %v5590_v47 = vadd.f32 %v5558_v49, %v5520_v24  ;;  %v5171_v4 = vadd.f32 %v14997_v10, %v5101_v18  ;;  %v5002_v48 = vmul.f32 %v14121_v37, %v4966_v0  ;;  %v4967_v49 = vld [vmem:[#allocation4 + $0x13b] sm:$0xff]  ;;  %v13138_v61 = vpop.f32.mrb[147].mxu0 }
 0x594   : > { %v4964_v50 = vadd.f32 %v4932_v15, %v4894_v25  ;;  %v5312_v58 = vadd.f32 %v5280_v29, %v5242_v13  ;;  %v5350_v51 = vmul.f32 %v14277_v63, %v4896_v17  ;;  %v5489_v11 = vmul.f32 %v14235_v53, %v13058_v28  ;;  %v5246_v34 = vld [vmem:[#allocation4 + $0x141] sm:$0xff]  ;;  %v5947_v10 = vld [vmem:[#allocation14] sm:$0xff] }
 0x595   : > { %v5173_v62 = vadd.f32 %v5141_v33, %v5103_v45  ;;  %6998 = vmatprep.mubr.f32.mxu0 %v5590_v47  ;;  %v5241_v22 = vadd.f32 %v14918_v12, %v5171_v4  ;;  %v5072_v44 = vmul.f32 %v14171_v46, %v5036_v30  ;;  %v4863_v41 = vmul.f32 %v14756_v26, %v4827_v21  ;;  %v5037_v26 = vld [vmem:[#allocation4 + $0x13c] sm:$0xff] }
 0x596   : > { %v5034_v3 = vadd.f32 %v5002_v48, %v4964_v50  ;;  %v5142_v19 = vmul.f32 %v14172_v27, %v5106_v56  ;;  %v5382_v20 = vadd.f32 %v5350_v51, %v5312_v58  ;;  %v5420_v7 = vmul.f32 %v14278_v6, %v4966_v0  ;;  %v5386_v47 = vld [vmem:[#allocation4 + $0x143] sm:$0xff]  ;;  %v5950_v58 = vld [vmem:[#allocation14 + $0x18] sm:$0xff] }
 0x597   : > { %v5311_v52 = vadd.f32 %v5279_v23, %v5241_v22  ;;  %v4895_v35 = vadd.f32 %v4863_v41, %v4825_v54  ;;  %v4933_v31 = vmul.f32 %v14120_v5, %v4897_v59  ;;  %v5243_v43 = vadd.f32 %v14918_v12, %v5173_v62  ;;  %v5107_v23 = vld [vmem:[#allocation4 + $0x13d] sm:$0xff]  ;;  %v5247_v62 = vld [vmem:[#allocation4 + $0x149] sm:$0xff] }
 0x598   : > { %v5104_v28 = vadd.f32 %v5072_v44, %v5034_v3  ;;  %v5452_v55 = vadd.f32 %v5420_v7, %v5382_v20  ;;  %v5490_v32 = vmul.f32 %v14235_v53, %v5036_v30  ;;  %v5281_v17 = vmul.f32 %v14276_v2, %v4827_v21  ;;  %v5948_v4 = vld [vmem:[#allocation14 + $0x8] sm:$0xff]  ;;  %v5949_v50 = vld [vmem:[#allocation14 + $0x10] sm:$0xff] }
 0x599   : > { %v5381_v42 = vadd.f32 %v5349_v60, %v5311_v52  ;;  %v5559_v36 = vmul.f32 %v14405_v8, %v13077_v39  ;;  %v4965_v54 = vadd.f32 %v4933_v31, %v4895_v35  ;;  %v5003_v5 = vmul.f32 %v14121_v37, %v4967_v49  ;;  %v5316_v60 = vld [vmem:[#allocation4 + $0x142] sm:$0xff]  ;;  %v5317_v3 = vld [vmem:[#allocation4 + $0x14a] sm:$0xff]  ;;  %v13157_v20 = vld [vmem:[%s14998_s25] ss:$0 sm:$0xff]  ;;  %s8015_s25 = scalar_lea.vmem %s8014_s22, 8192 }
 0x59a   : > { %v5174_v40 = vadd.f32 %v5142_v19, %v5104_v28  ;;  %v5522_v33 = vadd.f32 %v5490_v32, %v5452_v55  ;;  %v5313_v14 = vadd.f32 %v5281_v17, %v5243_v43  ;;  %v5351_v0 = vmul.f32 %v14277_v63, %v4897_v59  ;;  %v5951_v31 = vld [vmem:[#allocation14 + $0x20] sm:$0xff]  ;;  %v5952_v43 = vld [vmem:[#allocation14 + $0x28] sm:$0xff]  ;;  %p8017_p5 = scmp.lt.s32.totalorder %s8015_s25, %s8009_s7 }
 0x59b   : > { %v5451_v24 = vadd.f32 %v5419_v38, %v5381_v42  ;;  %v5560_v57 = vmul.f32 %v14405_v8, %v5106_v56  ;;  %v5035_v18 = vadd.f32 %v5003_v5, %v4965_v54  ;;  %v5073_v15 = vmul.f32 %v14171_v46, %v5037_v26 }
 0x59c   : > { %v5244_v45 = vadd.f32 %v14918_v12, %v5174_v40  ;;  %v5383_v39 = vadd.f32 %v5351_v0, %v5313_v14  ;;  %v5421_v25 = vmul.f32 %v14278_v6, %v4967_v49  ;;  %v5282_v37 = vmul.f32 %v14276_v2, %v5246_v34  ;;  %v5526_v49 = vld [vmem:[#allocation4 + $0x145] sm:$0xff]  ;;  %v5954_v14 = vld [vmem:[#allocation14 + $0x38] sm:$0xff]  ;;  %p8018_p9 = por %p8017_p5, %p8016_p3 }
 0x59d   : > { %v5521_v30 = vadd.f32 %v5489_v11, %v5451_v24  ;;  %v5105_v13 = vadd.f32 %v5073_v15, %v5035_v18  ;;  %v5143_v29 = vmul.f32 %v14172_v27, %v5107_v23  ;;  %v5491_v21 = vmul.f32 %v14235_v53, %v5037_v26  ;;  %v5456_v11 = vld [vmem:[#allocation4 + $0x144] sm:$0xff]  ;;  %v5457_v34 = vld [vmem:[#allocation4 + $0x14c] sm:$0xff] }
 0x59e   : > { %v5592_v38 = vadd.f32 %v5560_v57, %v5522_v33  ;;  %v5453_v48 = vadd.f32 %v5421_v25, %v5383_v39  ;;  %v5314_v46 = vadd.f32 %v5282_v37, %v5244_v45  ;;  %v5352_v56 = vmul.f32 %v14277_v63, %v5316_v60  ;;  %v5387_v26 = vld [vmem:[#allocation4 + $0x14b] sm:$0xff]  ;;  %v5955_v25 = vld [vmem:[#allocation14 + $0x40] sm:$0xff]  ;;  %v5956_v37 = vld [vmem:[#allocation14 + $0x48] sm:$0xff]  ;;  %p8019_p8 = pnand %p8018_p9, %p8012_p6 }
 0x59f   : > { %v5591_v51 = vadd.f32 %v5559_v36, %v5521_v30  ;;  %v5175_v59 = vadd.f32 %v5143_v29, %v5105_v13  ;;  %v5561_v22 = vmul.f32 %v14405_v8, %v5107_v23  ;;  %v5422_v41 = vmul.f32 %v14278_v6, %v5386_v47  ;;  %v5527_v24 = vld [vmem:[#allocation4 + $0x14d] sm:$0xff]  ;;  %v5959_v47 = vld [vmem:[#allocation14 + $0x60] sm:$0xff] }
 0x5a0   : > { %v5523_v44 = vadd.f32 %v5491_v21, %v5453_v48  ;;  %v5384_v27 = vadd.f32 %v5352_v56, %v5314_v46  ;;  %v7503_v19 = vpack.c.bf16 %v5948_v4, %v5947_v10  ;;  %v5283_v52 = vmul.f32 %v14276_v2, %v5247_v62  ;;  %v15000_v2 = vld [vmem:[#allocation211_spill] sm:$0xff]  ;;  %v5958_v21 = vld [vmem:[#allocation14 + $0x58] sm:$0xff]  ;;  %v5960_v10 = vld [vmem:[#allocation14 + $0x68] sm:$0xff] }
 0x5a1   : > { %6999 = vmatmul.mubr.f32.gmra.mrb[162].mxu0 %v5591_v51  ;;  %v5245_v7 = vadd.f32 %v14918_v12, %v5175_v59  ;;  %v7507_v35 = vpack.c.bf16 %v5950_v58, %v5949_v50  ;;  %v5492_v32 = vmul.f32 %v14235_v53, %v5456_v11  ;;  %v5353_v42 = vmul.f32 %v14277_v63, %v5317_v3  ;;  %v13166_v12 = vld [vmem:[%s14999_s21] ss:$0 sm:$0xff]  ;;  %v5953_v63 = vld [vmem:[#allocation14 + $0x30] sm:$0xff]  ;;  %v15002_v56 = vld [vmem:[#allocation49_spill] sm:$0xff] }
 0x5a2   : > { %7001 = vmatprep.mubr.f32.mxu0 %v5592_v38  ;;  %v5593_v28 = vadd.f32 %v5561_v22, %v5523_v44  ;;  %v5454_v55 = vadd.f32 %v5422_v41, %v5384_v27  ;;  %7504 = vmatprep.subr.bf16.mxu0 %v7503_v19  ;;  %v5844_v36 = vmul.f32 %v13157_v20, %v15000_v2  ;;  %v5957_v29 = vld [vmem:[#allocation14 + $0x50] sm:$0xff]  ;;  %v5962_v38 = vld [vmem:[#allocation14 + $0x78] sm:$0xff] }
 0x5a3   : > { %v5315_v17 = vadd.f32 %v5283_v52, %v5245_v7  ;;  %7506 = vmatpush3.bf16.msra.mxu0 %v7503_v19  ;;  %v5562_v5 = vmul.f32 %v14405_v8, %v5526_v49  ;;  %v7511_v40 = vpack.c.bf16 %v5952_v43, %v5951_v31  ;;  %v5423_v23 = vmul.f32 %v14278_v6, %v5387_v26  ;;  %v15001_v48 = vld [vmem:[#allocation27_spill] sm:$0xff]  ;;  %v15003_v51 = vld [vmem:[#allocation44_spill] sm:$0xff]  ;;  %v15006_v31 = vld [vmem:[#allocation66_spill] sm:$0xff] }
 0x5a4   : > { %v5524_v54 = vadd.f32 %v5492_v32, %v5454_v55  ;;  %7508 = vmatprep.subr.bf16.mxu0 %v7507_v35  ;;  %v5883_v57 = vadd.f32 %v13166_v12, %v5844_v36  ;;  %v5493_v15 = vmul.f32 %v14235_v53, %v5457_v34  ;;  %v7515_v60 = vpack.c.bf16 %v5954_v14, %v5953_v63  ;;  %v15004_v44 = vld [vmem:[#allocation219_spill] sm:$0xff] }
 0x5a5   : > { %7002 = vmatmul.mubr.f32.gmra.mrb[164].mxu0 %v5593_v28  ;;  %v5385_v33 = vadd.f32 %v5353_v42, %v5315_v17  ;;  %v5563_v39 = vmul.f32 %v14405_v8, %v5527_v24  ;;  %v7519_v13 = vpack.c.bf16 %v5956_v37, %v5955_v25  ;;  %v7523_v53 = vpack.c.bf16 %v5958_v21, %v5957_v29  ;;  %v5961_v8 = vld [vmem:[#allocation14 + $0x70] sm:$0xff]  ;;  %v15007_v42 = vld [vmem:[#allocation232_spill] sm:$0xff] }
 0x5a6   : > { %v5594_v0 = vadd.f32 %v5562_v5, %v5524_v54  ;;  %v5915_v30 = vmax.f32 %v5883_v57, 0.0  ;;  %v7527_v4 = vpack.c.bf16 %v5960_v10, %v5959_v47  ;;  %v5846_v46 = vmul.f32 %v13157_v20, %v15001_v48  ;;  %v15005_v7 = vld [vmem:[#allocation99_spill] sm:$0xff] }
 0x5a7   : > { %v5455_v18 = vadd.f32 %v5423_v23, %v5385_v33  ;;  %7510 = vmatpush3.bf16.msra.mxu0 %v7507_v35  ;;  %v5845_v62 = vmul.f32 %v15002_v56, %v13157_v20  ;;  %v7531_v50 = vpack.c.bf16 %v5962_v38, %v5961_v8  ;;  %v5848_v59 = vmul.f32 %v13157_v20, %v15003_v51 }
 0x5a8   : > { %7004 = vmatprep.mubr.f32.mxu0 %v5594_v0  ;;  %7512 = vmatprep.subr.bf16.mxu0 %v7511_v40  ;;  %v5885_v58 = vadd.f32 %v13166_v12, %v5846_v46  ;;  %v5847_v27 = vmul.f32 %v15004_v44, %v13157_v20  ;;  %v5850_v49 = vmul.f32 %v13157_v20, %v15005_v7 }
 0x5a9   : > { %v5525_v45 = vadd.f32 %v5493_v15, %v5455_v18  ;;  %v5884_v11 = vadd.f32 %v13166_v12, %v5845_v62  ;;  %v5887_v19 = vadd.f32 %v13166_v12, %v5848_v59  ;;  %v5849_v43 = vmul.f32 %v15006_v31, %v13157_v20 }
 0x5aa   : > { %v5917_v3 = vmax.f32 %v5885_v58, 0.0  ;;  %v5886_v35 = vadd.f32 %v13166_v12, %v5847_v27  ;;  %v5889_v55 = vadd.f32 %v13166_v12, %v5850_v49  ;;  %v5852_v32 = vmul.f32 %v13157_v20, %v13003_v1 }
 0x5ab   : > { %v5595_v6 = vadd.f32 %v5563_v39, %v5525_v45  ;;  %7514 = vmatpush3.bf16.msra.mxu0 %v7511_v40  ;;  %v5916_v52 = vmax.f32 %v5884_v11, 0.0  ;;  %v5919_v28 = vmax.f32 %v5887_v19, 0.0  ;;  %v5888_v17 = vadd.f32 %v13166_v12, %v5849_v43 }
 0x5ac   : > { %7516 = vmatprep.subr.bf16.mxu0 %v7515_v60  ;;  %v5918_v26 = vmax.f32 %v5886_v35, 0.0  ;;  %v5851_v2 = vmul.f32 %v15007_v42, %v13157_v20  ;;  %v5921_v36 = vmax.f32 %v5889_v55, 0.0  ;;  %v5891_v54 = vadd.f32 %v13166_v12, %v5852_v32 }
 0x5ad   : > { %7005 = vmatmul.mubr.f32.gmra.mrb[166].mxu0 %v5595_v6  ;;  %v5854_v5 = vmul.f32 %v13157_v20, %v13138_v61  ;;  %v5920_v34 = vmax.f32 %v5888_v17, 0.0  ;;  %v5853_v1 = vmul.f32 %v12998_v16, %v13157_v20  ;;  %v5855_v24 = vmul.f32 %v13134_v9, %v13157_v20 }
 0x5ae   : > { %7039 = vmatprep.mubr.f32.mxu0 %v5915_v30  ;;  %v5890_v40 = vadd.f32 %v13166_v12, %v5851_v2  ;;  %v5923_v33 = vmax.f32 %v5891_v54, 0.0 }
 0x5af   : > { %7518 = vmatpush3.bf16.msra.mxu0 %v7515_v60  ;;  %v5893_v23 = vadd.f32 %v13166_v12, %v5854_v5  ;;  %v5892_v0 = vadd.f32 %v13166_v12, %v5853_v1  ;;  %v5894_v16 = vadd.f32 %v13166_v12, %v5855_v24 }
 0x5b0   : > { %7520 = vmatprep.subr.bf16.mxu0 %v7519_v13  ;;  %v5922_v14 = vmax.f32 %v5890_v40, 0.0 }
 0x5b1   : > { %v5925_v61 = vmax.f32 %v5893_v23, 0.0  ;;  %v5924_v18 = vmax.f32 %v5892_v0, 0.0  ;;  %v5926_v45 = vmax.f32 %v5894_v16, 0.0 }
 0x5b3   : > { %7522 = vmatpush3.bf16.msra.mxu0 %v7519_v13 }
 0x5b4   : > { %7524 = vmatprep.subr.bf16.mxu0 %v7523_v53 }
 0x5b7   : > { %7526 = vmatpush3.bf16.msra.mxu0 %v7523_v53  ;;  %v6979_v22 = vpop.f32.mrb[148].mxu0 }
 0x5b8   : > { %7528 = vmatprep.subr.bf16.mxu0 %v7527_v4  ;;  %v5738_v41 = vpop.f32.mrb[149].mxu0  ;;  %v5857_v15 = vmul.f32 %v6979_v22, %v13157_v20 }
 0x5b9   : > { %v5856_v63 = vmul.f32 %v13157_v20, %v5738_v41 }
 0x5ba   : > { %v5896_v39 = vadd.f32 %v13166_v12, %v5857_v15 }
 0x5bb   : > { %7530 = vmatpush3.bf16.msra.mxu0 %v7527_v4  ;;  %v5895_v57 = vadd.f32 %v13166_v12, %v5856_v63 }
 0x5bc   : > { %7532 = vmatprep.subr.bf16.mxu0 %v7531_v50  ;;  %v5928_v25 = vmax.f32 %v5896_v39, 0.0 }
 0x5bd   : > { %v5927_v60 = vmax.f32 %v5895_v57, 0.0 }
 0x5bf   : > { %7534 = vmatpush3.bf16.msra.mxu0 %v7531_v50 }
 0x5c2   : > { %7040 = vmatmul.mubr.f32.vlgmr.msra.gmra.mrb[168].mxu0 %v5916_v52 }
 0x5c3   : > { %7042 = vmatprep.mubr.f32.mxu0 %v5917_v3 }
 0x5c6   : > { %7043 = vmatmul.mubr.f32.gmra.mrb[170].mxu0 %v5918_v26 }
 0x5c7   : > { %7045 = vmatprep.mubr.f32.mxu0 %v5919_v28 }
 0x5ca   : > { %7046 = vmatmul.mubr.f32.gmra.mrb[172].mxu0 %v5920_v34 }
 0x5cb   : > { %7048 = vmatprep.mubr.f32.mxu0 %v5921_v36 }
 0x5ce   : > { %7049 = vmatmul.mubr.f32.gmra.mrb[174].mxu0 %v5922_v14 }
 0x5cf   : > { %7051 = vmatprep.mubr.f32.mxu0 %v5923_v33 }
 0x5d2   : > { %7052 = vmatmul.mubr.f32.gmra.mrb[176].mxu0 %v5924_v18 }
 0x5d3   : > { %7054 = vmatprep.mubr.f32.mxu0 %v5925_v61 }
 0x5d6   : > { %7055 = vmatmul.mubr.f32.gmra.mrb[178].mxu0 %v5926_v45 }
 0x5d7   : > { %7057 = vmatprep.mubr.f32.mxu0 %v5927_v60 }
 0x5da   : > { %7058 = vmatmul.mubr.f32.gmra.mrb[180].mxu0 %v5928_v25 }
 0x5db   : > { %v6982_v9 = vpop.f32.mrb[150].mxu0 }
 0x5dc   : > { %v5859_v37 = vmul.f32 %v6982_v9, %v13157_v20  ;;  %v5748_v30 = vpop.f32.mrb[151].mxu0 }
 0x5dd   : > { %v5858_v6 = vmul.f32 %v13157_v20, %v5748_v30 }
 0x5de   : > { %v5898_v13 = vadd.f32 %v13166_v12, %v5859_v37 }
 0x5df   : > { %v5897_v29 = vadd.f32 %v13166_v12, %v5858_v6 }
 0x5e0   : > { %v5930_v53 = vmax.f32 %v5898_v13, 0.0 }
 0x5e1   : > { %v5929_v21 = vmax.f32 %v5897_v29, 0.0 }
 0x5e3   : > { %7060 = vmatprep.mubr.f32.mxu0 %v5929_v21 }
 0x5e4   : > { %7061 = vmatmul.mubr.f32.gmra.mrb[182].mxu0 %v5930_v53 }
 0x601   : > { %v6985_v47 = vpop.f32.mrb[152].mxu0 }
 0x602   : > { %v5861_v10 = vmul.f32 %v6985_v47, %v13157_v20  ;;  %v5758_v4 = vpop.f32.mrb[153].mxu0 }
 0x603   : > { %v5860_v8 = vmul.f32 %v13157_v20, %v5758_v4  ;;  %v13251_v4 = vld [vmem:[%s15008_s10] ss:$0 sm:$0xff] }
 0x604   : > { %v5900_v38 = vadd.f32 %v13166_v12, %v5861_v10 }
 0x605   : > { %v5899_v48 = vadd.f32 %v13166_v12, %v5860_v8 }
 0x606   : > { %v5932_v56 = vmax.f32 %v5900_v38, 0.0 }
 0x607   : > { %v5931_v46 = vmax.f32 %v5899_v48, 0.0 }
 0x609   : > { %7063 = vmatprep.mubr.f32.mxu0 %v5931_v46 }
 0x60a   : > { %7064 = vmatmul.mubr.f32.gmra.mrb[184].mxu0 %v5932_v56 }
 0x624   : > { %v6988_v62 = vpop.f32.mrb[154].mxu0 }
 0x625   : > { %v5863_v50 = vmul.f32 %v6988_v62, %v13157_v20  ;;  %v5768_v58 = vpop.f32.mrb[155].mxu0 }
 0x626   : > { %v5862_v51 = vmul.f32 %v13157_v20, %v5768_v58 }
 0x627   : > { %v5902_v59 = vadd.f32 %v13166_v12, %v5863_v50 }
 0x628   : > { %v5901_v22 = vadd.f32 %v13166_v12, %v5862_v51 }
 0x629   : > { %v5934_v44 = vmax.f32 %v5902_v59, 0.0 }
 0x62a   : > { %v5933_v11 = vmax.f32 %v5901_v22, 0.0 }
 0x62c   : > { %7066 = vmatprep.mubr.f32.mxu0 %v5933_v11 }
 0x62d   : > { %7067 = vmatmul.mubr.f32.gmra.mrb[186].mxu0 %v5934_v44 }
 0x649   : > { %v6991_v27 = vpop.f32.mrb[156].mxu0 }
 0x64a   : > { %v5865_v41 = vmul.f32 %v6991_v27, %v13157_v20  ;;  %v5778_v3 = vpop.f32.mrb[157].mxu0 }
 0x64b   : > { %v5864_v19 = vmul.f32 %v13157_v20, %v5778_v3 }
 0x64c   : > { %v5904_v7 = vadd.f32 %v13166_v12, %v5865_v41 }
 0x64d   : > { %v5903_v49 = vadd.f32 %v13166_v12, %v5864_v19 }
 0x64e   : > { %v5936_v35 = vmax.f32 %v5904_v7, 0.0 }
 0x64f   : > { %v5935_v52 = vmax.f32 %v5903_v49, 0.0 }
 0x651   : > { %7069 = vmatprep.mubr.f32.mxu0 %v5935_v52 }
 0x652   : > { %7070 = vmatmul.mubr.f32.gmra.mrb[188].mxu0 %v5936_v35 }
 0x65c   : > { %v6994_v31 = vpop.f32.mrb[158].mxu0 }
 0x65d   : > { %v5867_v43 = vmul.f32 %v6994_v31, %v13157_v20  ;;  %v5788_v28 = vpop.f32.mrb[159].mxu0 }
 0x65e   : > { %v5866_v55 = vmul.f32 %v13157_v20, %v5788_v28 }
 0x65f   : > { %v5906_v32 = vadd.f32 %v13166_v12, %v5867_v43 }
 0x660   : > { %v5905_v26 = vadd.f32 %v13166_v12, %v5866_v55 }
 0x661   : > { %v6997_v17 = vpop.f32.mrb[160].mxu0  ;;  %v5938_v54 = vmax.f32 %v5906_v32, 0.0 }
 0x662   : > { %v5937_v42 = vmax.f32 %v5905_v26, 0.0  ;;  %v5869_v2 = vmul.f32 %v6997_v17, %v13157_v20  ;;  %v5798_v36 = vpop.f32.mrb[161].mxu0 }
 0x663   : > { %v5868_v5 = vmul.f32 %v13157_v20, %v5798_v36 }
 0x664   : > { %v5908_v34 = vadd.f32 %v13166_v12, %v5869_v2  ;;  %7072 = vmatprep.mubr.f32.mxu0 %v5937_v42 }
 0x665   : > { %v5907_v40 = vadd.f32 %v13166_v12, %v5868_v5  ;;  %7073 = vmatmul.mubr.f32.gmra.mrb[190].mxu0 %v5938_v54 }
 0x666   : > { %v5940_v33 = vmax.f32 %v5908_v34, 0.0 }
 0x667   : > { %v5939_v1 = vmax.f32 %v5907_v40, 0.0 }
 0x669   : > { %7075 = vmatprep.mubr.f32.mxu0 %v5939_v1 }
 0x66a   : > { %7076 = vmatmul.mubr.f32.gmra.mrb[192].mxu0 %v5940_v33 }
 0x674   : > { %v7000_v23 = vpop.f32.mrb[162].mxu0 }
 0x675   : > { %v5871_v63 = vmul.f32 %v7000_v23, %v13157_v20  ;;  %v5808_v14 = vpop.f32.mrb[163].mxu0 }
 0x676   : > { %v5870_v0 = vmul.f32 %v13157_v20, %v5808_v14 }
 0x677   : > { %v5910_v24 = vadd.f32 %v13166_v12, %v5871_v63 }
 0x678   : > { %v5909_v61 = vadd.f32 %v13166_v12, %v5870_v0  ;;  %v7003_v57 = vpop.f32.mrb[164].mxu0 }
 0x679   : > { %v5873_v18 = vmul.f32 %v7003_v57, %v13157_v20  ;;  %v5818_v16 = vpop.f32.mrb[165].mxu0  ;;  %v5942_v45 = vmax.f32 %v5910_v24, 0.0 }
 0x67a   : > { %v5941_v15 = vmax.f32 %v5909_v61, 0.0  ;;  %v5872_v60 = vmul.f32 %v13157_v20, %v5818_v16 }
 0x67b   : > { %v5912_v39 = vadd.f32 %v13166_v12, %v5873_v18 }
 0x67c   : > { %7078 = vmatprep.mubr.f32.mxu0 %v5941_v15  ;;  %v5911_v25 = vadd.f32 %v13166_v12, %v5872_v60 }
 0x67d   : > { %7079 = vmatmul.mubr.f32.gmra.mrb[194].mxu0 %v5942_v45  ;;  %v5944_v37 = vmax.f32 %v5912_v39, 0.0 }
 0x67e   : > { %v5943_v9 = vmax.f32 %v5911_v25, 0.0 }
 0x680   : > { %v7006_v30 = vpop.f32.mrb[166].mxu0  ;;  %7081 = vmatprep.mubr.f32.mxu0 %v5943_v9 }
 0x681   : > { %v5875_v6 = vmul.f32 %v7006_v30, %v13157_v20  ;;  %v5828_v13 = vpop.f32.mrb[167].mxu0  ;;  %7082 = vmatmul.mubr.f32.gmra.mrb[196].mxu0 %v5944_v37 }
 0x682   : > { %v5874_v29 = vmul.f32 %v13157_v20, %v5828_v13 }
 0x683   : > { %v5914_v21 = vadd.f32 %v13166_v12, %v5875_v6 }
 0x684   : > { %v5913_v53 = vadd.f32 %v13166_v12, %v5874_v29 }
 0x685   : > { %v5946_v10 = vmax.f32 %v5914_v21, 0.0 }
 0x686   : > { %v5945_v47 = vmax.f32 %v5913_v53, 0.0 }
 0x688   : > { %7084 = vmatprep.mubr.f32.mxu0 %v5945_v47 }
 0x689   : > { %7085 = vmatmul.mubr.f32.gmra.mrb[198].mxu0 %v5946_v10 }
 0x695   : > { %v7041_v8 = vpop.f32.mrb[168].mxu0 }
 0x696   : > { %v6042_v38 = vadd.f32 %v7041_v8, %v13251_v4  ;;  %v6036_v48 = vpop.f32.mrb[169].mxu0 }
 0x697   : > { %v6037_v46 = vadd.f32 %v13251_v4, %v6036_v48 }
 0x698   : > { %6196 = vst [vmem:[%s13257_s19 + $0x8] sm:$0xff] %v6042_v38 }
 0x699   : > { %6195 = vst [vmem:[%s13257_s19] sm:$0xff] %v6037_v46  ;;  %v7044_v20 = vpop.f32.mrb[170].mxu0 }
 0x69a   : > { %v6052_v12 = vadd.f32 %v7044_v20, %v13251_v4  ;;  %v6046_v56 = vpop.f32.mrb[171].mxu0 }
 0x69b   : > { %v6047_v62 = vadd.f32 %v13251_v4, %v6046_v56 }
 0x69c   : > { %6198 = vst [vmem:[%s13257_s19 + $0x18] sm:$0xff] %v6052_v12 }
 0x69d   : > { %6197 = vst [vmem:[%s13257_s19 + $0x10] sm:$0xff] %v6047_v62  ;;  %v7047_v50 = vpop.f32.mrb[172].mxu0 }
 0x69e   : > { %v6062_v58 = vadd.f32 %v7047_v50, %v13251_v4  ;;  %v6056_v51 = vpop.f32.mrb[173].mxu0 }
 0x69f   : > { %v6057_v59 = vadd.f32 %v13251_v4, %v6056_v51 }
 0x6a0   : > { %6200 = vst [vmem:[%s13257_s19 + $0x28] sm:$0xff] %v6062_v58 }
 0x6a1   : > { %6199 = vst [vmem:[%s13257_s19 + $0x20] sm:$0xff] %v6057_v59  ;;  %v7050_v22 = vpop.f32.mrb[174].mxu0 }
 0x6a2   : > { %v6072_v11 = vadd.f32 %v7050_v22, %v13251_v4  ;;  %v6066_v44 = vpop.f32.mrb[175].mxu0 }
 0x6a3   : > { %v6067_v27 = vadd.f32 %v13251_v4, %v6066_v44 }
 0x6a4   : > { %6202 = vst [vmem:[%s13257_s19 + $0x38] sm:$0xff] %v6072_v11 }
 0x6a5   : > { %6201 = vst [vmem:[%s13257_s19 + $0x30] sm:$0xff] %v6067_v27  ;;  %v7053_v41 = vpop.f32.mrb[176].mxu0 }
 0x6a6   : > { %v6082_v3 = vadd.f32 %v7053_v41, %v13251_v4  ;;  %v6076_v19 = vpop.f32.mrb[177].mxu0 }
 0x6a7   : > { %v6077_v7 = vadd.f32 %v13251_v4, %v6076_v19 }
 0x6a8   : > { %6204 = vst [vmem:[%s13257_s19 + $0x48] sm:$0xff] %v6082_v3 }
 0x6a9   : > { %6203 = vst [vmem:[%s13257_s19 + $0x40] sm:$0xff] %v6077_v7  ;;  %v7056_v49 = vpop.f32.mrb[178].mxu0 }
 0x6aa   : > { %v6092_v52 = vadd.f32 %v7056_v49, %v13251_v4  ;;  %v6086_v35 = vpop.f32.mrb[179].mxu0 }
 0x6ab   : > { %v6087_v31 = vadd.f32 %v13251_v4, %v6086_v35 }
 0x6ac   : > { %6206 = vst [vmem:[%s13257_s19 + $0x58] sm:$0xff] %v6092_v52 }
 0x6ad   : > { %6205 = vst [vmem:[%s13257_s19 + $0x50] sm:$0xff] %v6087_v31  ;;  %v7059_v43 = vpop.f32.mrb[180].mxu0 }
 0x6ae   : > { %v6102_v28 = vadd.f32 %v7059_v43, %v13251_v4  ;;  %v6096_v55 = vpop.f32.mrb[181].mxu0 }
 0x6af   : > { %v6097_v32 = vadd.f32 %v13251_v4, %v6096_v55 }
 0x6b0   : > { %6208 = vst [vmem:[%s13257_s19 + $0x68] sm:$0xff] %v6102_v28 }
 0x6b1   : > { %6207 = vst [vmem:[%s13257_s19 + $0x60] sm:$0xff] %v6097_v32 }
 0x6b7   : > { %v7062_v26 = vpop.f32.mrb[182].mxu0 }
 0x6b8   : > { %v6112_v17 = vadd.f32 %v7062_v26, %v13251_v4  ;;  %v6106_v42 = vpop.f32.mrb[183].mxu0 }
 0x6b9   : > { %v6107_v2 = vadd.f32 %v13251_v4, %v6106_v42 }
 0x6ba   : > { %6210 = vst [vmem:[%s13257_s19 + $0x78] sm:$0xff] %v6112_v17 }
 0x6bb   : > { %6209 = vst [vmem:[%s13257_s19 + $0x70] sm:$0xff] %v6107_v2 }
 0x6dd   : > { %v7065_v36 = vpop.f32.mrb[184].mxu0 }
 0x6de   : > { %v6122_v54 = vadd.f32 %v7065_v36, %v13251_v4  ;;  %v6116_v5 = vpop.f32.mrb[185].mxu0 }
 0x6df   : > { %v6117_v34 = vadd.f32 %v13251_v4, %v6116_v5 }
 0x6e0   : > { %6212 = vst [vmem:[%s13257_s19 + $0x88] sm:$0xff] %v6122_v54 }
 0x6e1   : > { %6211 = vst [vmem:[%s13257_s19 + $0x80] sm:$0xff] %v6117_v34 }
 0x700   : > { %v7068_v40 = vpop.f32.mrb[186].mxu0 }
 0x701   : > { %v6132_v1 = vadd.f32 %v7068_v40, %v13251_v4  ;;  %v6126_v33 = vpop.f32.mrb[187].mxu0 }
 0x702   : > { %v6127_v23 = vadd.f32 %v13251_v4, %v6126_v33 }
 0x703   : > { %6214 = vst [vmem:[%s13257_s19 + $0x98] sm:$0xff] %v6132_v1 }
 0x704   : > { %6213 = vst [vmem:[%s13257_s19 + $0x90] sm:$0xff] %v6127_v23 }
 0x725   : > { %v7071_v63 = vpop.f32.mrb[188].mxu0 }
 0x726   : > { %v6142_v14 = vadd.f32 %v7071_v63, %v13251_v4  ;;  %v6136_v0 = vpop.f32.mrb[189].mxu0 }
 0x727   : > { %v6137_v24 = vadd.f32 %v13251_v4, %v6136_v0 }
 0x728   : > { %6216 = vst [vmem:[%s13257_s19 + $0xa8] sm:$0xff] %v6142_v14 }
 0x729   : > { %6215 = vst [vmem:[%s13257_s19 + $0xa0] sm:$0xff] %v6137_v24 }
 0x738   : > { %v7074_v61 = vpop.f32.mrb[190].mxu0 }
 0x739   : > { %v6152_v57 = vadd.f32 %v7074_v61, %v13251_v4  ;;  %v6146_v18 = vpop.f32.mrb[191].mxu0 }
 0x73a   : > { %v6147_v16 = vadd.f32 %v13251_v4, %v6146_v18 }
 0x73b   : > { %6218 = vst [vmem:[%s13257_s19 + $0xb8] sm:$0xff] %v6152_v57 }
 0x73c   : > { %6217 = vst [vmem:[%s13257_s19 + $0xb0] sm:$0xff] %v6147_v16 }
 0x73d   : > { %v7077_v15 = vpop.f32.mrb[192].mxu0 }
 0x73e   : > { %v6162_v60 = vadd.f32 %v7077_v15, %v13251_v4  ;;  %v6156_v45 = vpop.f32.mrb[193].mxu0 }
 0x73f   : > { %v6157_v39 = vadd.f32 %v13251_v4, %v6156_v45 }
 0x740   : > { %6220 = vst [vmem:[%s13257_s19 + $0xc8] sm:$0xff] %v6162_v60 }
 0x741   : > { %6219 = vst [vmem:[%s13257_s19 + $0xc0] sm:$0xff] %v6157_v39 }
 0x750   : > { %v7080_v25 = vpop.f32.mrb[194].mxu0 }
 0x751   : > { %v6172_v9 = vadd.f32 %v7080_v25, %v13251_v4  ;;  %v6166_v37 = vpop.f32.mrb[195].mxu0 }
 0x752   : > { %v6167_v30 = vadd.f32 %v13251_v4, %v6166_v37 }
 0x753   : > { %6222 = vst [vmem:[%s13257_s19 + $0xd8] sm:$0xff] %v6172_v9 }
 0x754   : > { %6221 = vst [vmem:[%s13257_s19 + $0xd0] sm:$0xff] %v6167_v30  ;;  %v7083_v6 = vpop.f32.mrb[196].mxu0 }
 0x755   : > { %v6182_v13 = vadd.f32 %v7083_v6, %v13251_v4  ;;  %v6176_v29 = vpop.f32.mrb[197].mxu0 }
 0x756   : > { %v6177_v21 = vadd.f32 %v13251_v4, %v6176_v29 }
 0x757   : > { %6224 = vst [vmem:[%s13257_s19 + $0xe8] sm:$0xff] %v6182_v13 }
 0x758   : > { %6223 = vst [vmem:[%s13257_s19 + $0xe0] sm:$0xff] %v6177_v21 }
 0x75c   : > { %v7086_v53 = vpop.f32.mrb[198].mxu0 }
 0x75d   : > { %v6192_v47 = vadd.f32 %v7086_v53, %v13251_v4  ;;  %v6186_v10 = vpop.f32.mrb[199].mxu0 }
 0x75e   : > { %v6187_v8 = vadd.f32 %v13251_v4, %v6186_v10 }
 0x75f   : > { %6226 = vst [vmem:[%s13257_s19 + $0xf8] sm:$0xff] %v6192_v47 }
 0x760   : > { %6225 = vst [vmem:[%s13257_s19 + $0xf0] sm:$0xff] %v6187_v8 }
 0x761   : > { %8022 = shalt.err (!%p8019_p8)
}
 0x762   : > { %s8023_s20 = scalar_lea.hbm %s13323_s16, 4096  ;;  %s8027_s23 = scalar_lea.hbm %s15009_s0, 8192 }
 0x763   : > { %p8024_p11 = scmp.ne.s32.totalorder %s13323_s16, %s8023_s20  ;;  %p8028_p1 = scmp.lt.u32.totalorder %s13323_s16, %s15009_s0 }
 0x764   : > { %p8029_p2 = scmp.lt.u32.totalorder %s8027_s23, %s8023_s20  ;;  %p8031_p0 = scmp.lt.u32.totalorder %s8023_s20, %s13323_s16 }
 0x765   : > { %p8025_p7 = pnand %p8024_p11, %p8347_p10 }
 0x766   : > { %p8030_p13 = por %p8029_p2, %p8028_p1 }
 0x767   : > { %p8026_p12 = pneg %p8025_p7 }
 0x768   : > { %p8032_p4 = por %p8031_p0, %p8030_p13 }
 0x76a   : > { %p8033_p6 = pnand %p8032_p4, %p8026_p12 }
 0x76c   : > { %8036 = shalt.err (!%p8033_p6)
}
 0x76d   : > { %s8104_s19 = smov 128   ;;  %s8105_s5 = smov 8  }
 0x76e   : > { %7715 = dma.vmem_to_hbm [thread:$0]  (%p8347_p10), %s13325_s24, 4096, %s13323_s16, %s6228_s29, %s8104_s19, %s8104_s19, %s8105_s5  }
 0x76f PF: > { %s15010_s15 = sld [smem:[#allocation23_spill]]  ;;  %s15011_s18 = sld [smem:[#allocation24_spill]] }
 0x770   : > { %p15013_p5 = scmp.ge.s32.totalorder %s8091_s28, 2 }
 0x775   : > { %s6256_s7 = sand.u32 1, %s15010_s15   ;;  %p15012_p3 = scmp.ne.s32.totalorder %s15011_s18, 0 }
 0x776   : > { %s6257_s14 = scalar_lea.sflag [#allocation7], %s6256_s7 }
 0x777   : > { %p7738_p9 = pnand %p15013_p5, %p15012_p3 }
 0x779   : > { %8074 = dma.done.wait (!%p7738_p9), %s6257_s14, 4096  }
 0x77a   : > { %8076 = vsyncadd (!%p7738_p9), %s6257_s14, 4294963200  ;;  %p31_p8 = scmp.ge.s32.totalorder %s8337_s13, 4   ;;  %s15014_s25 = smov %s8083_s26 }
 0x77b   : > { %s15015_s26 = smov %s8087_s27  ;;  %s15016_s27 = smov %s8353_s30 }
 0x77c   : > { %s15017_s28 = smov %s8337_s13  ;;  %33 = sbr.rel (!%p31_p8) target bundleno = 19 (0x13), region = 146 }
 0x783   :  { %6262 = vsyncpa [#allocation6], 1 }
 0x784   :  { %6264 = vsyncpa [#allocation6 + $0x1], 1 }
 0x785   :  { %6265 = vsyncpa [#allocation9], 1 }
 0x786   :  { %6267 = vsyncpa [#allocation9 + $0x1], 1 }
 0x787   :  { %6268 = vsyncpa [#allocation12], 1 }
 0x788   :  { %6269 = vsyncpa [#allocation15], 1 }
 0x789   :  { %6270 = vsyncpa [#allocation7], 1 }
 0x78a   :  { %6272 = vsyncpa [#allocation7 + $0x1], 1 }

</bundles_post_ra>
